<compile_context>
chip_gen: v7x
topology: tpu7x:2x2x1
jax: 0.10.0
libtpu: 0.0.40
codegen_flags: <defaults>
</compile_context>

<pallas_src>
import functools

import jax
import jax.numpy as jnp
from jax.experimental import pallas as pl
from jax.experimental.pallas import tpu as pltpu

LANE = 128                    # channel padding granularity (TPU lane width)
ACT_DTYPE = jnp.bfloat16      # inter-layer activation storage dtype (f32 accumulation in-kernel)


def _round_up(v, m):
    return ((v + m - 1) // m) * m


# Generation-aware scoped-VMEM limit: leave headroom below physical VMEM
# (v7x: 64 MiB per TensorCore -> ~48 MiB; v5e/v6e: 128 MiB -> 96 MiB).
try:
    _VMEM_CAP = int(pltpu.get_tpu_info().vmem_capacity_bytes)
except Exception:
    _VMEM_CAP = 64 * 1024 * 1024
_COMPILER_PARAMS = pltpu.CompilerParams(
    dimension_semantics=("parallel",),
    vmem_limit_bytes=min((_VMEM_CAP * 3) // 4, 100 * 1024 * 1024),
)


def _pick_tm(mp):
    # Largest row tile that still yields >= 2 grid steps (so v7x's two TensorCores
    # both get work); floor at 128 rows.
    for tm in (512, 256, 128):
        if mp % tm == 0 and mp // tm >= 2:
            return tm
    return 128


# -------------------------------------------------------------------------
# Pallas kernels
# -------------------------------------------------------------------------
def _apply_act(y, act):
    if act == 'hs':                                   # nn.Hardswish
        return y * jnp.clip(y + 3.0, 0.0, 6.0) * (1.0 / 6.0)
    if act == 'relu':
        return jnp.maximum(y, 0.0)
    if act == 'sigmoid':                              # exact sigmoid (feeds attention gates)
        return 1.0 / (1.0 + jnp.exp(-y))
    return y


def _chain_mm_kernel(*refs, acts):
    """Fused chain of matmuls sharing M: x -> (dot W_s + b_s -> act_s)*  -> out.

    refs = [x_ref, w_0, b_0, w_1, b_1, ..., o_ref].  One MXU dot per stage per tile;
    intermediates stay in registers/VMEM (no HBM round trips between stages).
    """
    x_ref, o_ref = refs[0], refs[-1]
    y = x_ref[...]
    for s, act in enumerate(acts):
        w = refs[1 + 2 * s][...]
        b = refs[2 + 2 * s][...]
        y = jnp.dot(y.astype(w.dtype), w, preferred_element_type=jnp.float32) + b
        y = _apply_act(y, act)
    o_ref[...] = y.astype(o_ref.dtype)


def _dw_kernel(x_ref, w_ref, b_ref, o_ref, *, k, dilation, act):
    """Depthwise k*k conv on one halo-padded batch block (stride-1 'same' conv).

    x_ref: (1, Hp, Wp, Cp) bf16, w_ref: (k*k, 1, Cp) f32, b_ref: (1, Cp) f32,
    o_ref: (1, H, W, Cp).  Taps are derived in-kernel from static slices of the
    halo block -> no k*k-fold activation blow-up in HBM.
    """
    oh, ow = o_ref.shape[1], o_ref.shape[2]
    xv = x_ref[...].astype(jnp.float32)      # single bf16->f32 convert (v5e VPU has no bf16)
    wv = w_ref[...]
    acc = None
    for ky in range(k):
        for kx in range(k):
            tap = xv[:, ky * dilation: ky * dilation + oh,
                        kx * dilation: kx * dilation + ow, :]
            term = tap * wv[ky * k + kx]
            acc = term if acc is None else acc + term
    y = acc + b_ref[...]
    o_ref[...] = _apply_act(y, act).astype(o_ref.dtype)


# -------------------------------------------------------------------------
# pallas_call wrappers
# -------------------------------------------------------------------------
def run_chain(x, stages, out_dtype=ACT_DTYPE):
    """x: (M, K) activations (bf16); stages: prepped matmul params sharing M.

    The whole chain runs in a single pallas_call; output channels stay lane-padded."""
    M, K = x.shape
    assert K == stages[0]['w'].shape[0], (K, stages[0]['w'].shape)
    Mp = _round_up(M, 128)
    if Mp != M:
        x = jnp.pad(x, ((0, Mp - M), (0, 0)))
    TM = _pick_tm(Mp)
    Np = stages[-1]['w'].shape[1]
    acts = tuple(s['act'] for s in stages)

    in_specs = [pl.BlockSpec((TM, K), lambda i: (i, 0))]
    args = [x]
    for s in stages:
        kk, nn = s['w'].shape
        in_specs.append(pl.BlockSpec((kk, nn), lambda i: (0, 0)))   # grid-invariant weight
        in_specs.append(pl.BlockSpec((1, nn), lambda i: (0, 0)))    # grid-invariant bias
        args += [s['w'], s['b']]

    out = pl.pallas_call(
        functools.partial(_chain_mm_kernel, acts=acts),
        out_shape=jax.ShapeDtypeStruct((Mp, Np), out_dtype),
        grid=(Mp // TM,),
        in_specs=in_specs,
        out_specs=pl.BlockSpec((TM, Np), lambda i: (i, 0)),
        compiler_params=_COMPILER_PARAMS,
    )(*args)
    return out if Mp == M else out[:M]


def dwconv_nhwc(x, prm, stride=1, dilation=1):
    """Depthwise conv (halo-tiled, one grid step per batch element).

    Always runs the stride-1 'same' conv and spatially subsamples afterwards when
    stride > 1 (a strided depthwise conv is exactly that subsample)."""
    n, h, w, cp = x.shape
    k = prm['k']
    pad = (k - 1) // 2 * dilation
    xp = jnp.pad(x, ((0, 0), (pad, pad), (pad, pad), (0, 0)))
    hp, wp = h + 2 * pad, w + 2 * pad
    out = pl.pallas_call(
        functools.partial(_dw_kernel, k=k, dilation=dilation, act=prm['act']),
        out_shape=jax.ShapeDtypeStruct((n, h, w, cp), ACT_DTYPE),
        grid=(n,),
        in_specs=[
            pl.BlockSpec((1, hp, wp, cp), lambda i: (i, 0, 0, 0)),
            pl.BlockSpec((k * k, 1, cp), lambda i: (0, 0, 0)),
            pl.BlockSpec((1, cp), lambda i: (0, 0)),
        ],
        out_specs=pl.BlockSpec((1, h, w, cp), lambda i: (i, 0, 0, 0)),
        compiler_params=_COMPILER_PARAMS,
    )(xp, prm['w'], prm['b'])
    if stride > 1:
        out = out[:, ::stride, ::stride, :]
    return out


# -------------------------------------------------------------------------
# NHWC conv / pooling / upsample glue around the Pallas kernels
# -------------------------------------------------------------------------
def _build_taps_cat(x, k, stride, dilation):
    """Concatenate the k*k taps channel-last -> one (M, k*k*Cp) slab (single wide-K dot)."""
    n, h, w, c = x.shape
    pad = (k - 1) // 2 * dilation
    oh = (h + 2 * pad - dilation * (k - 1) - 1) // stride + 1
    ow = (w + 2 * pad - dilation * (k - 1) - 1) // stride + 1
    xp = jnp.pad(x, ((0, 0), (pad, pad), (pad, pad), (0, 0)))
    taps = []
    for ky in range(k):
        for kx in range(k):
            taps.append(xp[:, ky * dilation: ky * dilation + (oh - 1) * stride + 1: stride,
                              kx * dilation: kx * dilation + (ow - 1) * stride + 1: stride, :])
    slab = jnp.concatenate(taps, axis=-1)                    # (n, oh, ow, k*k*c)
    return slab.reshape(n * oh * ow, k * k * c), oh, ow


def conv_nhwc(x, prm, stride=1, dilation=1):
    n, h, w, c = x.shape
    k = prm['k']
    if k == 1 and stride == 1:
        out = run_chain(x.reshape(n * h * w, c), [prm])
        return out.reshape(n, h, w, prm['np'])
    slab, oh, ow = _build_taps_cat(x, k, stride, dilation)
    out = run_chain(slab, [prm])
    return out.reshape(n, oh, ow, prm['np'])


def avg_pool_nhwc(x, k, stride, pad):
    # nn.AvgPool2d semantics (count_include_pad=True)
    # TODO(synk): could be folded into the adjacent conv taps; kept as a cheap XLA op.
    n, h, w, c = x.shape
    oh = (h + 2 * pad - k) // stride + 1
    ow = (w + 2 * pad - k) // stride + 1
    xp = jnp.pad(x, ((0, 0), (pad, pad), (pad, pad), (0, 0))).astype(jnp.float32)
    acc = jnp.zeros((n, oh, ow, c), jnp.float32)
    for ky in range(k):
        for kx in range(k):
            acc = acc + xp[:, ky: ky + (oh - 1) * stride + 1: stride,
                              kx: kx + (ow - 1) * stride + 1: stride, :]
    return (acc / float(k * k)).astype(ACT_DTYPE)


def upsample_bilinear_nhwc(x, out_h, out_w):
    # nn.UpsamplingBilinear2d semantics (align_corners=True)
    # TODO(synk): pure XLA op; could be folded into tap-weighted matmuls.
    n, h, w, c = x.shape
    xf = x.astype(jnp.float32)
    ys = (jnp.arange(out_h, dtype=jnp.float32) * ((h - 1) / (out_h - 1))
          if out_h > 1 and h > 1 else jnp.zeros((out_h,), jnp.float32))
    xs = (jnp.arange(out_w, dtype=jnp.float32) * ((w - 1) / (out_w - 1))
          if out_w > 1 and w > 1 else jnp.zeros((out_w,), jnp.float32))
    y0 = jnp.floor(ys).astype(jnp.int32)
    y1 = jnp.minimum(y0 + 1, h - 1)
    wy = (ys - y0.astype(jnp.float32)).reshape(1, out_h, 1, 1)
    x0 = jnp.floor(xs).astype(jnp.int32)
    x1 = jnp.minimum(x0 + 1, w - 1)
    wx = (xs - x0.astype(jnp.float32)).reshape(1, 1, out_w, 1)
    top, bot = xf[:, y0, :, :], xf[:, y1, :, :]
    v = top * (1.0 - wy) + bot * wy
    out = v[:, :, x0, :] * (1.0 - wx) + v[:, :, x1, :] * wx
    return out.astype(ACT_DTYPE)


# -------------------------------------------------------------------------
# Model definition (deterministic synthetic parameters, torch layouts)
# -------------------------------------------------------------------------
def make_divisible(v, divisor, min_value=None):
    if min_value is None:
        min_value = divisor
    new_v = max(min_value, int(v + divisor / 2) // divisor * divisor)
    if new_v < 0.9 * v:
        new_v += divisor
    return new_v


class Cnf:
    def __init__(self, in_c, exp_c, out_c, k, s, d, act, use_ca):
        self.in_channels = in_c
        self.exp_channels = exp_c
        self.out_channels = out_c
        self.kernel_size = k
        self.stride = s
        self.dilation = d
        self.activation = act
        self.use_ca = use_ca


class ParamGen:
    def __init__(self, key):
        self.key = key

    def _next(self):
        self.key, sub = jax.random.split(self.key)
        return sub

    def conv(self, o, c, kh=1, kw=1, bias=False):
        w = 0.1 * jax.random.normal(self._next(), (o, c, kh, kw), jnp.float32)
        b = 0.1 * jax.random.normal(self._next(), (o,), jnp.float32) if bias else None
        return w, b

    def bn(self, c):
        g = 1.0 + 0.1 * jax.random.normal(self._next(), (c,), jnp.float32)
        b = 0.1 * jax.random.normal(self._next(), (c,), jnp.float32)
        m = 0.1 * jax.random.normal(self._next(), (c,), jnp.float32)
        v = 1.0 + 0.1 * jnp.abs(jax.random.normal(self._next(), (c,), jnp.float32))
        return g, b, m, v

    def linear(self, o, i):
        w = 0.05 * jax.random.normal(self._next(), (o, i), jnp.float32)
        b = 0.05 * jax.random.normal(self._next(), (o,), jnp.float32)
        return w, b


def build_params(key, block_setting, num_joints, heatmaps_size, output_size):
    pg = ParamGen(key)

    def cba(in_c, out_c, k, groups=1):
        w, _ = pg.conv(out_c, in_c // groups, k, k, bias=False)
        g, b, m, v = pg.bn(out_c)
        return dict(w=w, gamma=g, beta=b, mean=m, var=v)

    P = {}
    first_c = block_setting[0].in_channels
    P['stem'] = cba(5, first_c, 3)

    blocks = []
    for cnf in block_setting:
        blk = {}
        if cnf.exp_channels != cnf.in_channels:
            blk['expand'] = cba(cnf.in_channels, cnf.exp_channels, 1)
        blk['dw'] = cba(cnf.exp_channels, cnf.exp_channels, cnf.kernel_size,
                        groups=cnf.exp_channels)
        mip = make_divisible(cnf.exp_channels // 16, 8)
        if cnf.use_ca:
            w1, b1 = pg.conv(mip, cnf.exp_channels, bias=True)
            g, be, m, v = pg.bn(mip)
            wh, bh = pg.conv(cnf.exp_channels, mip, bias=True)
            ww, bw = pg.conv(cnf.exp_channels, mip, bias=True)
            blk['ca'] = dict(w1=w1, b1=b1, gamma=g, beta=be, mean=m, var=v,
                             wh=wh, bh=bh, ww=ww, bw=bw)
        else:
            w1, b1 = pg.conv(mip, cnf.exp_channels, bias=True)
            g, be, m, v = pg.bn(mip)
            w2, b2 = pg.conv(cnf.exp_channels, mip, bias=True)
            blk['pa'] = dict(w1=w1, b1=b1, gamma=g, beta=be, mean=m, var=v,
                             w2=w2, b2=b2)
        blk['project'] = cba(cnf.exp_channels, cnf.out_channels, 1)
        blocks.append(blk)
    P['blocks'] = blocks

    out_c = block_setting[-1].out_channels
    P['stage'] = [cba(out_c, out_c // 4, 3) for _ in range(4)]
    P['head_conv1'] = cba(out_c * 2, num_joints * 4, 1)

    w1, _ = pg.conv(num_joints * 16, num_joints, bias=False)
    g1, b1, m1, v1 = pg.bn(num_joints * 16)
    w2, _ = pg.conv(num_joints, num_joints * 16, bias=False)
    g2, b2, m2, v2 = pg.bn(num_joints)
    P['conv2'] = dict(w1=w1[:, :, 0, 0], g1=g1, b1=b1, m1=m1, v1=v1,
                      w2=w2[:, :, 0, 0], g2=g2, b2=b2, m2=m2, v2=v2)

    seq = heatmaps_size[0] * heatmaps_size[1]
    P['coord_x'] = pg.linear(output_size[0], seq * 4)
    P['coord_y'] = pg.linear(output_size[1], seq * 4)
    return P


# -------------------------------------------------------------------------
# Parameter preparation: BN folding + padded segment layout (done once, outside jit)
# -------------------------------------------------------------------------
def _fold_bn(gamma, beta, mean, var, eps, conv_bias=None):
    s = gamma / jnp.sqrt(var + eps)
    b = beta - mean * s
    if conv_bias is not None:
        b = b + conv_bias * s
    return s, b


def _place_segments(a, segs, axis):
    """Scatter logical slices of `a` along `axis` into a zero-padded segment layout."""
    parts, off = [], 0
    for (c, cp) in segs:
        sl = jax.lax.slice_in_dim(a, off, off + c, axis=axis)
        widths = [(0, 0)] * a.ndim
        widths[axis] = (0, cp - c)
        parts.append(jnp.pad(sl, widths))
        off += c
    return jnp.concatenate(parts, axis=axis) if len(parts) > 1 else parts[0]


def prep_mm(W, scale, bias, act, in_segs=None, out_segs=None):
    """W: (O, Cin, kh, kw) torch layout -> bf16 (kh*kw*Kp, Op) matmul weight.

    BN scale folded into the weights; rows follow the tap-major, channel-padded tap
    layout produced by _build_taps_cat / the lane-padded NHWC activations."""
    O, Cin, kh, kw = W.shape
    in_segs = in_segs or [(Cin, _round_up(Cin, LANE))]
    out_segs = out_segs or [(O, _round_up(O, LANE))]
    wt = jnp.transpose(W, (2, 3, 1, 0)) * scale.reshape(1, 1, 1, O)   # (kh,kw,Cin,O)
    wt = _place_segments(wt, in_segs, axis=2)
    wt = _place_segments(wt, out_segs, axis=3)
    kp, op = wt.shape[2], wt.shape[3]
    w2 = wt.reshape(kh * kw * kp, op).astype(jnp.bfloat16)
    b2 = _place_segments(bias.reshape(1, O), out_segs, axis=1).astype(jnp.float32)
    return dict(w=w2, b=b2, k=kh, act=act, n=O, np=op)


def prep_dw(W, scale, bias, act):
    """W: (C, 1, kh, kw) depthwise torch layout -> f32 (kh*kw, 1, Cp) taps.

    f32 weights keep the v5e VPU path free of per-tap converts."""
    C, _, kh, kw = W.shape
    cp = _round_up(C, LANE)
    wt = jnp.transpose(W[:, 0], (1, 2, 0)).reshape(kh * kw, 1, C) * scale.reshape(1, 1, C)
    wt = jnp.pad(wt, ((0, 0), (0, 0), (0, cp - C))).astype(jnp.float32)
    b = jnp.pad(bias.reshape(1, C), ((0, 0), (0, cp - C))).astype(jnp.float32)
    return dict(w=wt, b=b, k=kh, act=act, n=C, np=cp)


_ACT = {'HS': 'hs', 'RE': 'relu', 'PRE': 'relu', None: 'none'}
# TODO(synk): 'PRE' (nn.PReLU, learned negative slope) approximated with ReLU; unused here.


def prepare_params(P, block_setting, num_joints):
    # Conv2dBNActivation uses BatchNorm(eps=0.01); CA/PA bn1 and the Conv1d BatchNorm1d
    # layers use the PyTorch default eps=1e-5 -- folded with matching eps values.
    def prep_cba(p, act, depthwise=False, in_segs=None):
        s, b = _fold_bn(p['gamma'], p['beta'], p['mean'], p['var'], 0.01)
        if depthwise:
            return prep_dw(p['w'], s, b, act)
        return prep_mm(p['w'], s, b, act, in_segs=in_segs)

    Q = {'stem': prep_cba(P['stem'], 'hs')}

    blocks = []
    for blk, cnf in zip(P['blocks'], block_setting):
        act = _ACT[cnf.activation]
        qb = {'expand': prep_cba(blk['expand'], act) if 'expand' in blk else None,
              'dw': prep_cba(blk['dw'], act, depthwise=True)}
        exp_c = cnf.exp_channels
        cp = _round_up(exp_c, LANE)
        if cnf.use_ca:
            ca = blk['ca']
            s1, b1 = _fold_bn(ca['gamma'], ca['beta'], ca['mean'], ca['var'], 1e-5, ca['b1'])
            mip = int(ca['w1'].shape[0])
            conv1 = prep_mm(ca['w1'], s1, b1, 'hs')
            # conv_h | conv_w merged: two output segments of cp lanes each
            w_hw = jnp.concatenate([ca['wh'], ca['ww']], axis=0)
            b_hw = jnp.concatenate([ca['bh'], ca['bw']], axis=0)
            hw = prep_mm(w_hw, jnp.ones((2 * exp_c,), jnp.float32), b_hw, 'sigmoid',
                         in_segs=[(mip, conv1['np'])],
                         out_segs=[(exp_c, cp), (exp_c, cp)])
            qb['ca'] = [conv1, hw]
        else:
            pa = blk['pa']
            s1, b1 = _fold_bn(pa['gamma'], pa['beta'], pa['mean'], pa['var'], 1e-5, pa['b1'])
            mip = int(pa['w1'].shape[0])
            conv1 = prep_mm(pa['w1'], s1, b1, 'hs')
            conv2 = prep_mm(pa['w2'], jnp.ones((exp_c,), jnp.float32), pa['b2'], 'none',
                            in_segs=[(mip, conv1['np'])])
            qb['pa'] = [conv1, conv2]
        qb['project'] = prep_cba(blk['project'], 'none')
        blocks.append(qb)
    Q['blocks'] = blocks

    out_c = block_setting[-1].out_channels
    Q['stage'] = [prep_cba(p, 'hs') for p in P['stage']]

    # head conv1 consumes the padded-channel concat [x0 | x1 | x2 | x3 | x4]
    seg_in = [(out_c, _round_up(out_c, LANE))] + \
             [(out_c // 4, _round_up(out_c // 4, LANE))] * 4
    Q['head_conv1'] = prep_cba(P['head_conv1'], 'hs', in_segs=seg_in)

    c2 = P['conv2']
    s1, b1 = _fold_bn(c2['g1'], c2['b1'], c2['m1'], c2['v1'], 1e-5)
    conv2_1 = prep_mm(c2['w1'][:, :, None, None], s1, b1, 'hs',
                      in_segs=[(num_joints, num_joints)])
    s2, b2 = _fold_bn(c2['g2'], c2['b2'], c2['m2'], c2['v2'], 1e-5)
    conv2_2 = prep_mm(c2['w2'][:, :, None, None], s2, b2, 'hs',
                      in_segs=[(num_joints * 16, conv2_1['np'])])
    Q['conv2'] = [conv2_1, conv2_2]

    wx, bx = P['coord_x']
    wy, by = P['coord_y']
    wc = jnp.concatenate([wx, wy], axis=0)                          # coord_x | coord_y merged
    bc = jnp.concatenate([bx, by], axis=0)
    coord = prep_mm(wc[:, :, None, None], jnp.ones((wc.shape[0],), jnp.float32), bc, 'none')
    coord['ox'] = int(wx.shape[0])
    Q['coord'] = coord
    return Q


# -------------------------------------------------------------------------
# Forward pass (channel-padded bf16 NHWC everywhere inside)
# -------------------------------------------------------------------------
def run_ca(x, stages):
    n, h, w, cp = x.shape
    x_h = jnp.mean(x.astype(jnp.float32), axis=2).astype(ACT_DTYPE)    # (n,h,cp)  pool over W
    x_w = jnp.mean(x.astype(jnp.float32), axis=1).astype(ACT_DTYPE)    # (n,w,cp)  pool over H
    y = jnp.concatenate([x_h, x_w], axis=1)                            # (n,h+w,cp)
    hw = run_chain(y.reshape(n * (h + w), cp), stages)                 # conv1(HS) -> conv_h|conv_w(sigmoid)
    hw = hw.reshape(n, h + w, 2 * cp)
    a_h = hw[:, :h, :cp].reshape(n, h, 1, cp)                          # conv_h output (segment 0)
    a_w = hw[:, h:, cp:].reshape(n, 1, w, cp)                          # conv_w output (segment 1)
    return x * a_w * a_h


def run_pa(x, stages, stride=4):
    scale = avg_pool_nhwc(x, 5, stride, 2)
    n, oh, ow, cp = scale.shape
    s = run_chain(scale.reshape(n * oh * ow, cp), stages)              # conv1(HS) -> conv2
    s = s.reshape(n, oh, ow, cp)
    s = upsample_bilinear_nhwc(s, oh * stride, ow * stride)
    return x * jax.nn.sigmoid(s.astype(jnp.float32)).astype(ACT_DTYPE)


def run_block(x, cnf, qb):
    y = x
    if qb['expand'] is not None:
        y = conv_nhwc(y, qb['expand'])
    y = dwconv_nhwc(y, qb['dw'], stride=cnf.stride, dilation=cnf.dilation)
    y = run_ca(y, qb['ca']) if cnf.use_ca else run_pa(y, qb['pa'])
    y = conv_nhwc(y, qb['project'])
    if cnf.stride == 1 and cnf.in_channels == cnf.out_channels:
        y = y + x
    return y


def mobile_posnet_forward(img_nchw, Q, block_setting, num_joints, heatmaps_size):
    # One NCHW -> NHWC transpose at the model boundary; bf16 + lane padding applied once.
    img = jnp.transpose(img_nchw, (0, 2, 3, 1)).astype(jnp.float32)
    b, h, w, _ = img.shape
    h_embed = jnp.broadcast_to(
        (jnp.arange(h, dtype=jnp.float32) / (h - 1)).reshape(1, h, 1, 1), (b, h, w, 1))
    w_embed = jnp.broadcast_to(
        (jnp.arange(w, dtype=jnp.float32) / (w - 1)).reshape(1, 1, w, 1), (b, h, w, 1))
    x = jnp.concatenate([img, h_embed, w_embed], axis=-1)               # IMG_EMBEDDING (5 ch)
    x = jnp.pad(x, ((0, 0), (0, 0), (0, 0), (0, LANE - x.shape[-1]))).astype(ACT_DTYPE)

    # BaseLine
    x = conv_nhwc(x, Q['stem'], stride=2)
    for cnf, qb in zip(block_setting, Q['blocks']):
        x = run_block(x, cnf, qb)
    x0 = x

    # ASPP-style multi-dilation stages
    hm_h, hm_w = heatmaps_size
    maps_list = [x0]
    for i, d in enumerate((1, 2, 4, 6)):
        xi = conv_nhwc(x0, Q['stage'][i], stride=2, dilation=d)
        maps_list.append(upsample_bilinear_nhwc(xi, hm_h, hm_w))
    maps = jnp.concatenate(maps_list, axis=-1)     # padded-channel concat; head weights match

    # head conv1 (1x1 + BN + HS)
    joints = conv_nhwc(maps, Q['head_conv1'])      # (b, hm_h, hm_w, 128) logical 4J
    bb, hh, ww, _ = joints.shape
    n_grp = 4
    # rearrange 'b (n c) h w -> b c (n h w)'  (channel-last, group-major channel order)
    j = joints[..., :n_grp * num_joints].reshape(bb, hh, ww, n_grp, num_joints)
    j = jnp.transpose(j, (0, 3, 1, 2, 4))
    L = n_grp * hh * ww
    xm = j.reshape(bb * L, num_joints)

    # conv2: Conv1d(k=1) + BN1d + HS, twice -- fused into one Pallas chain kernel
    xm = run_chain(xm, Q['conv2'])
    xm = xm[:, :num_joints].reshape(bb, L, num_joints)

    # coord heads (coord_x | coord_y merged) as one Pallas matmul
    jt = jnp.transpose(xm, (0, 2, 1)).reshape(bb * num_joints, L)
    co = run_chain(jt, [Q['coord']], out_dtype=jnp.float32)
    ox_n = Q['coord']['ox']
    oy_n = Q['coord']['n'] - ox_n
    ox = co[:, :ox_n].reshape(bb, num_joints, ox_n)
    oy = co[:, ox_n: ox_n + oy_n].reshape(bb, num_joints, oy_n)
    return ox, oy


# -------------------------------------------------------------------------
# Driver
# -------------------------------------------------------------------------
if __name__ == "__main__":
    key = jax.random.PRNGKey(0)
    k_img, k_par = jax.random.split(key)

    # Small synthetic configuration consistent with the module:
    #   input 2x3x16x16 -> stem stride 2 -> 8x8 backbone maps = heatmaps_size
    block_setting = [
        Cnf(8, 16, 8, 3, 1, 1, 'HS', True),     # CA attention + residual
        Cnf(8, 16, 16, 3, 1, 1, 'RE', False),   # PA attention
    ]
    num_joints = 4
    heatmaps_size = (8, 8)
    output_size = (8, 8)

    img = jax.random.normal(k_img, (2, 3, 16, 16), jnp.float32)
    raw_params = build_params(k_par, block_setting, num_joints, heatmaps_size, output_size)
    Q = prepare_params(raw_params, block_setting, num_joints)   # BN folded, padded layouts

    fwd = jax.jit(functools.partial(
        mobile_posnet_forward, Q=Q, block_setting=block_setting,
        num_joints=num_joints, heatmaps_size=heatmaps_size))

    x_out, y_out = fwd(img)
    jax.block_until_ready((x_out, y_out))

    assert x_out.shape == (2, num_joints, output_size[0]), x_out.shape
    assert y_out.shape == (2, num_joints, output_size[1]), y_out.shape
    assert bool(jnp.all(jnp.isfinite(x_out))) and bool(jnp.all(jnp.isfinite(y_out)))
    print("KERNEL_OK")
</pallas_src>

<mosaic_0001>
module attributes {stable_mosaic.version = 11 : i64} {
  func.func @_chain_mm_kernel(%arg0: i32, %arg1: memref<128x1152xbf16, #tpu.memory_space<vmem>>, %arg2: memref<1152x128xbf16, #tpu.memory_space<vmem>>, %arg3: memref<1x128xf32, #tpu.memory_space<vmem>>, %arg4: memref<128x128xbf16, #tpu.memory_space<vmem>>) attributes {dimension_semantics = [#tpu.dimension_semantics<parallel>], iteration_bounds = array<i64: 1>, scalar_prefetch = 0 : i64, scratch_operands = 0 : i64, tpu.core_type = #tpu.core_type<tc>, window_params = [{transform_indices = @transform_0, window_bounds = array<i64: 128, 1152>}, {pipeline_mode = #tpu.pipeline_mode<synchronous>, transform_indices = @transform_1, window_bounds = array<i64: 1152, 128>}, {pipeline_mode = #tpu.pipeline_mode<synchronous>, transform_indices = @transform_2, window_bounds = array<i64: 1, 128>}, {transform_indices = @transform_3, window_bounds = array<i64: 128, 128>}]} {
    %c0 = arith.constant 0 : index
    %c0_0 = arith.constant 0 : index
    %0 = vector.load %arg1[%c0, %c0_0] : memref<128x1152xbf16, #tpu.memory_space<vmem>>, vector<128x1152xbf16>
    %c0_1 = arith.constant 0 : index
    %c0_2 = arith.constant 0 : index
    %1 = vector.load %arg2[%c0_1, %c0_2] : memref<1152x128xbf16, #tpu.memory_space<vmem>>, vector<1152x128xbf16>
    %c0_3 = arith.constant 0 : index
    %c0_4 = arith.constant 0 : index
    %2 = vector.load %arg3[%c0_3, %c0_4] : memref<1x128xf32, #tpu.memory_space<vmem>>, vector<1x128xf32>
    %cst = arith.constant dense<0.000000e+00> : vector<128x128xf32>
    %3 = tpu.matmul %0, %1, %cst {dimension_numbers = #tpu.dot_dimension_numbers<[1], [0], [0], [1], [0, 0, 1, 1], [], []>} : vector<128x1152xbf16>, vector<1152x128xbf16>, vector<128x128xf32> -> vector<128x128xf32>
    %4 = vector.broadcast %2 : vector<1x128xf32> to vector<128x128xf32>
    %5 = arith.addf %3, %4 : vector<128x128xf32>
    %cst_5 = arith.constant 3.000000e+00 : f32
    %6 = vector.broadcast %cst_5 : f32 to vector<128x128xf32>
    %7 = arith.addf %5, %6 : vector<128x128xf32>
    %cst_6 = arith.constant 0.000000e+00 : f32
    %cst_7 = arith.constant 6.000000e+00 : f32
    %8 = vector.broadcast %cst_6 : f32 to vector<128x128xf32>
    %9 = arith.maximumf %8, %7 : vector<128x128xf32>
    %10 = vector.broadcast %cst_7 : f32 to vector<128x128xf32>
    %11 = arith.minimumf %10, %9 : vector<128x128xf32>
    %12 = arith.mulf %5, %11 : vector<128x128xf32>
    %cst_8 = arith.constant 0.166666672 : f32
    %13 = vector.broadcast %cst_8 : f32 to vector<128x128xf32>
    %14 = arith.mulf %12, %13 : vector<128x128xf32>
    %15 = arith.truncf %14 : vector<128x128xf32> to vector<128x128xbf16>
    %c0_9 = arith.constant 0 : index
    %c0_10 = arith.constant 0 : index
    %16 = vector.load %arg4[%c0_9, %c0_10] : memref<128x128xbf16, #tpu.memory_space<vmem>>, vector<128x128xbf16>
    tpu.vector_store %arg4[%c0_9, %c0_10], %15 {strides = array<i32>} : memref<128x128xbf16, #tpu.memory_space<vmem>>, vector<128x128xbf16>,
    return
  }
  func.func @transform_0(%arg0: i32) -> (i32, i32) {
    %c0_i32 = arith.constant 0 : i32
    %c0_i32_0 = arith.constant 0 : i32
    return %arg0, %c0_i32 : i32, i32
  }
  func.func @transform_1(%arg0: i32) -> (i32, i32) {
    %c0_i32 = arith.constant 0 : i32
    %c0_i32_0 = arith.constant 0 : i32
    %c0_i32_1 = arith.constant 0 : i32
    return %c0_i32, %c0_i32_0 : i32, i32
  }
  func.func @transform_2(%arg0: i32) -> (i32, i32) {
    %c0_i32 = arith.constant 0 : i32
    %c0_i32_0 = arith.constant 0 : i32
    %c0_i32_1 = arith.constant 0 : i32
    return %c0_i32, %c0_i32_0 : i32, i32
  }
  func.func @transform_3(%arg0: i32) -> (i32, i32) {
    %c0_i32 = arith.constant 0 : i32
    %c0_i32_0 = arith.constant 0 : i32
    return %arg0, %c0_i32 : i32, i32
  }
}

module attributes {stable_mosaic.version = 11 : i64} {
  func.func @_chain_mm_kernel(%arg0: i32, %arg1: memref<128x128xbf16, #tpu.memory_space<vmem>>, %arg2: memref<128x128xbf16, #tpu.memory_space<vmem>>, %arg3: memref<1x128xf32, #tpu.memory_space<vmem>>, %arg4: memref<128x128xbf16, #tpu.memory_space<vmem>>) attributes {dimension_semantics = [#tpu.dimension_semantics<parallel>], iteration_bounds = array<i64: 1>, scalar_prefetch = 0 : i64, scratch_operands = 0 : i64, tpu.core_type = #tpu.core_type<tc>, window_params = [{transform_indices = @transform_0, window_bounds = array<i64: 128, 128>}, {pipeline_mode = #tpu.pipeline_mode<synchronous>, transform_indices = @transform_1, window_bounds = array<i64: 128, 128>}, {pipeline_mode = #tpu.pipeline_mode<synchronous>, transform_indices = @transform_2, window_bounds = array<i64: 1, 128>}, {transform_indices = @transform_3, window_bounds = array<i64: 128, 128>}]} {
    %c0 = arith.constant 0 : index
    %c0_0 = arith.constant 0 : index
    %0 = vector.load %arg1[%c0, %c0_0] : memref<128x128xbf16, #tpu.memory_space<vmem>>, vector<128x128xbf16>
    %c0_1 = arith.constant 0 : index
    %c0_2 = arith.constant 0 : index
    %1 = vector.load %arg2[%c0_1, %c0_2] : memref<128x128xbf16, #tpu.memory_space<vmem>>, vector<128x128xbf16>
    %c0_3 = arith.constant 0 : index
    %c0_4 = arith.constant 0 : index
    %2 = vector.load %arg3[%c0_3, %c0_4] : memref<1x128xf32, #tpu.memory_space<vmem>>, vector<1x128xf32>
    %cst = arith.constant dense<0.000000e+00> : vector<128x128xf32>
    %3 = tpu.matmul %0, %1, %cst {dimension_numbers = #tpu.dot_dimension_numbers<[1], [0], [0], [1], [0, 0, 1, 1], [], []>} : vector<128x128xbf16>, vector<128x128xbf16>, vector<128x128xf32> -> vector<128x128xf32>
    %4 = vector.broadcast %2 : vector<1x128xf32> to vector<128x128xf32>
    %5 = arith.addf %3, %4 : vector<128x128xf32>
    %cst_5 = arith.constant 3.000000e+00 : f32
    %6 = vector.broadcast %cst_5 : f32 to vector<128x128xf32>
    %7 = arith.addf %5, %6 : vector<128x128xf32>
    %cst_6 = arith.constant 0.000000e+00 : f32
    %cst_7 = arith.constant 6.000000e+00 : f32
    %8 = vector.broadcast %cst_6 : f32 to vector<128x128xf32>
    %9 = arith.maximumf %8, %7 : vector<128x128xf32>
    %10 = vector.broadcast %cst_7 : f32 to vector<128x128xf32>
    %11 = arith.minimumf %10, %9 : vector<128x128xf32>
    %12 = arith.mulf %5, %11 : vector<128x128xf32>
    %cst_8 = arith.constant 0.166666672 : f32
    %13 = vector.broadcast %cst_8 : f32 to vector<128x128xf32>
    %14 = arith.mulf %12, %13 : vector<128x128xf32>
    %15 = arith.truncf %14 : vector<128x128xf32> to vector<128x128xbf16>
    %c0_9 = arith.constant 0 : index
    %c0_10 = arith.constant 0 : index
    %16 = vector.load %arg4[%c0_9, %c0_10] : memref<128x128xbf16, #tpu.memory_space<vmem>>, vector<128x128xbf16>
    tpu.vector_store %arg4[%c0_9, %c0_10], %15 {strides = array<i32>} : memref<128x128xbf16, #tpu.memory_space<vmem>>, vector<128x128xbf16>,
    return
  }
  func.func @transform_0(%arg0: i32) -> (i32, i32) {
    %c0_i32 = arith.constant 0 : i32
    %c0_i32_0 = arith.constant 0 : i32
    return %arg0, %c0_i32 : i32, i32
  }
  func.func @transform_1(%arg0: i32) -> (i32, i32) {
    %c0_i32 = arith.constant 0 : i32
    %c0_i32_0 = arith.constant 0 : i32
    %c0_i32_1 = arith.constant 0 : i32
    return %c0_i32, %c0_i32_0 : i32, i32
  }
  func.func @transform_2(%arg0: i32) -> (i32, i32) {
    %c0_i32 = arith.constant 0 : i32
    %c0_i32_0 = arith.constant 0 : i32
    %c0_i32_1 = arith.constant 0 : i32
    return %c0_i32, %c0_i32_0 : i32, i32
  }
  func.func @transform_3(%arg0: i32) -> (i32, i32) {
    %c0_i32 = arith.constant 0 : i32
    %c0_i32_0 = arith.constant 0 : i32
    return %arg0, %c0_i32 : i32, i32
  }
}

module attributes {stable_mosaic.version = 11 : i64} {
  func.func @_dw_kernel(%arg0: i32, %arg1: memref<1x10x10x128xbf16, #tpu.memory_space<vmem>>, %arg2: memref<9x1x128xf32, #tpu.memory_space<vmem>>, %arg3: memref<1x128xf32, #tpu.memory_space<vmem>>, %arg4: memref<1x8x8x128xbf16, #tpu.memory_space<vmem>>) attributes {dimension_semantics = [#tpu.dimension_semantics<parallel>], iteration_bounds = array<i64: 2>, scalar_prefetch = 0 : i64, scratch_operands = 0 : i64, tpu.core_type = #tpu.core_type<tc>, window_params = [{transform_indices = @transform_0, window_bounds = array<i64: 1, 10, 10, 128>}, {pipeline_mode = #tpu.pipeline_mode<synchronous>, transform_indices = @transform_1, window_bounds = array<i64: 9, 1, 128>}, {pipeline_mode = #tpu.pipeline_mode<synchronous>, transform_indices = @transform_2, window_bounds = array<i64: 1, 128>}, {transform_indices = @transform_3, window_bounds = array<i64: 1, 8, 8, 128>}]} {
    %c0 = arith.constant 0 : index
    %c0_0 = arith.constant 0 : index
    %c0_1 = arith.constant 0 : index
    %c0_2 = arith.constant 0 : index
    %0 = vector.load %arg1[%c0, %c0_0, %c0_1, %c0_2] : memref<1x10x10x128xbf16, #tpu.memory_space<vmem>>, vector<1x10x10x128xbf16>
    %1 = arith.extf %0 : vector<1x10x10x128xbf16> to vector<1x10x10x128xf32>
    %c0_3 = arith.constant 0 : index
    %c0_4 = arith.constant 0 : index
    %c0_5 = arith.constant 0 : index
    %2 = vector.load %arg2[%c0_3, %c0_4, %c0_5] : memref<9x1x128xf32, #tpu.memory_space<vmem>>, vector<9x1x128xf32>
    %3 = vector.extract_strided_slice %1 {offsets = [0, 0, 0, 0], sizes = [1, 8, 8, 128], strides = [1, 1, 1, 1]} : vector<1x10x10x128xf32> to vector<1x8x8x128xf32>
    %4 = vector.extract_strided_slice %2 {offsets = [0, 0, 0], sizes = [1, 1, 128], strides = [1, 1, 1]} : vector<9x1x128xf32> to vector<1x1x128xf32>
    %5 = vector.shape_cast %4 : vector<1x1x128xf32> to vector<1x128xf32>
    %6 = vector.shape_cast %5 : vector<1x128xf32> to vector<1x1x1x128xf32>
    %7 = vector.broadcast %6 : vector<1x1x1x128xf32> to vector<1x8x8x128xf32>
    %8 = arith.mulf %3, %7 : vector<1x8x8x128xf32>
    %9 = vector.extract_strided_slice %1 {offsets = [0, 0, 1, 0], sizes = [1, 8, 8, 128], strides = [1, 1, 1, 1]} : vector<1x10x10x128xf32> to vector<1x8x8x128xf32>
    %10 = vector.extract_strided_slice %2 {offsets = [1, 0, 0], sizes = [1, 1, 128], strides = [1, 1, 1]} : vector<9x1x128xf32> to vector<1x1x128xf32>
    %11 = vector.shape_cast %10 : vector<1x1x128xf32> to vector<1x128xf32>
    %12 = vector.shape_cast %11 : vector<1x128xf32> to vector<1x1x1x128xf32>
    %13 = vector.broadcast %12 : vector<1x1x1x128xf32> to vector<1x8x8x128xf32>
    %14 = arith.mulf %9, %13 : vector<1x8x8x128xf32>
    %15 = arith.addf %8, %14 : vector<1x8x8x128xf32>
    %16 = vector.extract_strided_slice %1 {offsets = [0, 0, 2, 0], sizes = [1, 8, 8, 128], strides = [1, 1, 1, 1]} : vector<1x10x10x128xf32> to vector<1x8x8x128xf32>
    %17 = vector.extract_strided_slice %2 {offsets = [2, 0, 0], sizes = [1, 1, 128], strides = [1, 1, 1]} : vector<9x1x128xf32> to vector<1x1x128xf32>
    %18 = vector.shape_cast %17 : vector<1x1x128xf32> to vector<1x128xf32>
    %19 = vector.shape_cast %18 : vector<1x128xf32> to vector<1x1x1x128xf32>
    %20 = vector.broadcast %19 : vector<1x1x1x128xf32> to vector<1x8x8x128xf32>
    %21 = arith.mulf %16, %20 : vector<1x8x8x128xf32>
    %22 = arith.addf %15, %21 : vector<1x8x8x128xf32>
    %23 = vector.extract_strided_slice %1 {offsets = [0, 1, 0, 0], sizes = [1, 8, 8, 128], strides = [1, 1, 1, 1]} : vector<1x10x10x128xf32> to vector<1x8x8x128xf32>
    %24 = vector.extract_strided_slice %2 {offsets = [3, 0, 0], sizes = [1, 1, 128], strides = [1, 1, 1]} : vector<9x1x128xf32> to vector<1x1x128xf32>
    %25 = vector.shape_cast %24 : vector<1x1x128xf32> to vector<1x128xf32>
    %26 = vector.shape_cast %25 : vector<1x128xf32> to vector<1x1x1x128xf32>
    %27 = vector.broadcast %26 : vector<1x1x1x128xf32> to vector<1x8x8x128xf32>
    %28 = arith.mulf %23, %27 : vector<1x8x8x128xf32>
    %29 = arith.addf %22, %28 : vector<1x8x8x128xf32>
    %30 = vector.extract_strided_slice %1 {offsets = [0, 1, 1, 0], sizes = [1, 8, 8, 128], strides = [1, 1, 1, 1]} : vector<1x10x10x128xf32> to vector<1x8x8x128xf32>
    %31 = vector.extract_strided_slice %2 {offsets = [4, 0, 0], sizes = [1, 1, 128], strides = [1, 1, 1]} : vector<9x1x128xf32> to vector<1x1x128xf32>
    %32 = vector.shape_cast %31 : vector<1x1x128xf32> to vector<1x128xf32>
    %33 = vector.shape_cast %32 : vector<1x128xf32> to vector<1x1x1x128xf32>
    %34 = vector.broadcast %33 : vector<1x1x1x128xf32> to vector<1x8x8x128xf32>
    %35 = arith.mulf %30, %34 : vector<1x8x8x128xf32>
    %36 = arith.addf %29, %35 : vector<1x8x8x128xf32>
    %37 = vector.extract_strided_slice %1 {offsets = [0, 1, 2, 0], sizes = [1, 8, 8, 128], strides = [1, 1, 1, 1]} : vector<1x10x10x128xf32> to vector<1x8x8x128xf32>
    %38 = vector.extract_strided_slice %2 {offsets = [5, 0, 0], sizes = [1, 1, 128], strides = [1, 1, 1]} : vector<9x1x128xf32> to vector<1x1x128xf32>
    %39 = vector.shape_cast %38 : vector<1x1x128xf32> to vector<1x128xf32>
    %40 = vector.shape_cast %39 : vector<1x128xf32> to vector<1x1x1x128xf32>
    %41 = vector.broadcast %40 : vector<1x1x1x128xf32> to vector<1x8x8x128xf32>
    %42 = arith.mulf %37, %41 : vector<1x8x8x128xf32>
    %43 = arith.addf %36, %42 : vector<1x8x8x128xf32>
    %44 = vector.extract_strided_slice %1 {offsets = [0, 2, 0, 0], sizes = [1, 8, 8, 128], strides = [1, 1, 1, 1]} : vector<1x10x10x128xf32> to vector<1x8x8x128xf32>
    %45 = vector.extract_strided_slice %2 {offsets = [6, 0, 0], sizes = [1, 1, 128], strides = [1, 1, 1]} : vector<9x1x128xf32> to vector<1x1x128xf32>
    %46 = vector.shape_cast %45 : vector<1x1x128xf32> to vector<1x128xf32>
    %47 = vector.shape_cast %46 : vector<1x128xf32> to vector<1x1x1x128xf32>
    %48 = vector.broadcast %47 : vector<1x1x1x128xf32> to vector<1x8x8x128xf32>
    %49 = arith.mulf %44, %48 : vector<1x8x8x128xf32>
    %50 = arith.addf %43, %49 : vector<1x8x8x128xf32>
    %51 = vector.extract_strided_slice %1 {offsets = [0, 2, 1, 0], sizes = [1, 8, 8, 128], strides = [1, 1, 1, 1]} : vector<1x10x10x128xf32> to vector<1x8x8x128xf32>
    %52 = vector.extract_strided_slice %2 {offsets = [7, 0, 0], sizes = [1, 1, 128], strides = [1, 1, 1]} : vector<9x1x128xf32> to vector<1x1x128xf32>
    %53 = vector.shape_cast %52 : vector<1x1x128xf32> to vector<1x128xf32>
    %54 = vector.shape_cast %53 : vector<1x128xf32> to vector<1x1x1x128xf32>
    %55 = vector.broadcast %54 : vector<1x1x1x128xf32> to vector<1x8x8x128xf32>
    %56 = arith.mulf %51, %55 : vector<1x8x8x128xf32>
    %57 = arith.addf %50, %56 : vector<1x8x8x128xf32>
    %58 = vector.extract_strided_slice %1 {offsets = [0, 2, 2, 0], sizes = [1, 8, 8, 128], strides = [1, 1, 1, 1]} : vector<1x10x10x128xf32> to vector<1x8x8x128xf32>
    %59 = vector.extract_strided_slice %2 {offsets = [8, 0, 0], sizes = [1, 1, 128], strides = [1, 1, 1]} : vector<9x1x128xf32> to vector<1x1x128xf32>
    %60 = vector.shape_cast %59 : vector<1x1x128xf32> to vector<1x128xf32>
    %61 = vector.shape_cast %60 : vector<1x128xf32> to vector<1x1x1x128xf32>
    %62 = vector.broadcast %61 : vector<1x1x1x128xf32> to vector<1x8x8x128xf32>
    %63 = arith.mulf %58, %62 : vector<1x8x8x128xf32>
    %64 = arith.addf %57, %63 : vector<1x8x8x128xf32>
    %c0_6 = arith.constant 0 : index
    %c0_7 = arith.constant 0 : index
    %65 = vector.load %arg3[%c0_6, %c0_7] : memref<1x128xf32, #tpu.memory_space<vmem>>, vector<1x128xf32>
    %66 = vector.shape_cast %65 : vector<1x128xf32> to vector<1x1x1x128xf32>
    %67 = vector.broadcast %66 : vector<1x1x1x128xf32> to vector<1x8x8x128xf32>
    %68 = arith.addf %64, %67 : vector<1x8x8x128xf32>
    %cst = arith.constant 3.000000e+00 : f32
    %69 = vector.broadcast %cst : f32 to vector<1x8x8x128xf32>
    %70 = arith.addf %68, %69 : vector<1x8x8x128xf32>
    %cst_8 = arith.constant 0.000000e+00 : f32
    %cst_9 = arith.constant 6.000000e+00 : f32
    %71 = vector.broadcast %cst_8 : f32 to vector<1x8x8x128xf32>
    %72 = arith.maximumf %71, %70 : vector<1x8x8x128xf32>
    %73 = vector.broadcast %cst_9 : f32 to vector<1x8x8x128xf32>
    %74 = arith.minimumf %73, %72 : vector<1x8x8x128xf32>
    %75 = arith.mulf %68, %74 : vector<1x8x8x128xf32>
    %cst_10 = arith.constant 0.166666672 : f32
    %76 = vector.broadcast %cst_10 : f32 to vector<1x8x8x128xf32>
    %77 = arith.mulf %75, %76 : vector<1x8x8x128xf32>
    %78 = arith.truncf %77 : vector<1x8x8x128xf32> to vector<1x8x8x128xbf16>
    %c0_11 = arith.constant 0 : index
    %c0_12 = arith.constant 0 : index
    %c0_13 = arith.constant 0 : index
    %c0_14 = arith.constant 0 : index
    %79 = vector.load %arg4[%c0_11, %c0_12, %c0_13, %c0_14] : memref<1x8x8x128xbf16, #tpu.memory_space<vmem>>, vector<1x8x8x128xbf16>
    tpu.vector_store %arg4[%c0_11, %c0_12, %c0_13, %c0_14], %78 {strides = array<i32>} : memref<1x8x8x128xbf16, #tpu.memory_space<vmem>>, vector<1x8x8x128xbf16>,
    return
  }
  func.func @transform_0(%arg0: i32) -> (i32, i32, i32, i32) {
    %c0_i32 = arith.constant 0 : i32
    %c0_i32_0 = arith.constant 0 : i32
    %c0_i32_1 = arith.constant 0 : i32
    %c0_i32_2 = arith.constant 0 : i32
    return %arg0, %c0_i32, %c0_i32_0, %c0_i32_1 : i32, i32, i32, i32
  }
  func.func @transform_1(%arg0: i32) -> (i32, i32, i32) {
    %c0_i32 = arith.constant 0 : i32
    %c0_i32_0 = arith.constant 0 : i32
    %c0_i32_1 = arith.constant 0 : i32
    %c0_i32_2 = arith.constant 0 : i32
    return %c0_i32, %c0_i32_0, %c0_i32_1 : i32, i32, i32
  }
  func.func @transform_2(%arg0: i32) -> (i32, i32) {
    %c0_i32 = arith.constant 0 : i32
    %c0_i32_0 = arith.constant 0 : i32
    %c0_i32_1 = arith.constant 0 : i32
    return %c0_i32, %c0_i32_0 : i32, i32
  }
  func.func @transform_3(%arg0: i32) -> (i32, i32, i32, i32) {
    %c0_i32 = arith.constant 0 : i32
    %c0_i32_0 = arith.constant 0 : i32
    %c0_i32_1 = arith.constant 0 : i32
    %c0_i32_2 = arith.constant 0 : i32
    return %arg0, %c0_i32, %c0_i32_0, %c0_i32_1 : i32, i32, i32, i32
  }
}

module attributes {stable_mosaic.version = 11 : i64} {
  func.func @_chain_mm_kernel(%arg0: i32, %arg1: memref<128x128xbf16, #tpu.memory_space<vmem>>, %arg2: memref<128x128xbf16, #tpu.memory_space<vmem>>, %arg3: memref<1x128xf32, #tpu.memory_space<vmem>>, %arg4: memref<128x256xbf16, #tpu.memory_space<vmem>>, %arg5: memref<1x256xf32, #tpu.memory_space<vmem>>, %arg6: memref<128x256xbf16, #tpu.memory_space<vmem>>) attributes {dimension_semantics = [#tpu.dimension_semantics<parallel>], iteration_bounds = array<i64: 1>, scalar_prefetch = 0 : i64, scratch_operands = 0 : i64, tpu.core_type = #tpu.core_type<tc>, window_params = [{transform_indices = @transform_0, window_bounds = array<i64: 128, 128>}, {pipeline_mode = #tpu.pipeline_mode<synchronous>, transform_indices = @transform_1, window_bounds = array<i64: 128, 128>}, {pipeline_mode = #tpu.pipeline_mode<synchronous>, transform_indices = @transform_2, window_bounds = array<i64: 1, 128>}, {pipeline_mode = #tpu.pipeline_mode<synchronous>, transform_indices = @transform_3, window_bounds = array<i64: 128, 256>}, {pipeline_mode = #tpu.pipeline_mode<synchronous>, transform_indices = @transform_4, window_bounds = array<i64: 1, 256>}, {transform_indices = @transform_5, window_bounds = array<i64: 128, 256>}]} {
    %c0 = arith.constant 0 : index
    %c0_0 = arith.constant 0 : index
    %0 = vector.load %arg1[%c0, %c0_0] : memref<128x128xbf16, #tpu.memory_space<vmem>>, vector<128x128xbf16>
    %c0_1 = arith.constant 0 : index
    %c0_2 = arith.constant 0 : index
    %1 = vector.load %arg2[%c0_1, %c0_2] : memref<128x128xbf16, #tpu.memory_space<vmem>>, vector<128x128xbf16>
    %c0_3 = arith.constant 0 : index
    %c0_4 = arith.constant 0 : index
    %2 = vector.load %arg3[%c0_3, %c0_4] : memref<1x128xf32, #tpu.memory_space<vmem>>, vector<1x128xf32>
    %cst = arith.constant dense<0.000000e+00> : vector<128x128xf32>
    %3 = tpu.matmul %0, %1, %cst {dimension_numbers = #tpu.dot_dimension_numbers<[1], [0], [0], [1], [0, 0, 1, 1], [], []>} : vector<128x128xbf16>, vector<128x128xbf16>, vector<128x128xf32> -> vector<128x128xf32>
    %4 = vector.broadcast %2 : vector<1x128xf32> to vector<128x128xf32>
    %5 = arith.addf %3, %4 : vector<128x128xf32>
    %cst_5 = arith.constant 3.000000e+00 : f32
    %6 = vector.broadcast %cst_5 : f32 to vector<128x128xf32>
    %7 = arith.addf %5, %6 : vector<128x128xf32>
    %cst_6 = arith.constant 0.000000e+00 : f32
    %cst_7 = arith.constant 6.000000e+00 : f32
    %8 = vector.broadcast %cst_6 : f32 to vector<128x128xf32>
    %9 = arith.maximumf %8, %7 : vector<128x128xf32>
    %10 = vector.broadcast %cst_7 : f32 to vector<128x128xf32>
    %11 = arith.minimumf %10, %9 : vector<128x128xf32>
    %12 = arith.mulf %5, %11 : vector<128x128xf32>
    %cst_8 = arith.constant 0.166666672 : f32
    %13 = vector.broadcast %cst_8 : f32 to vector<128x128xf32>
    %14 = arith.mulf %12, %13 : vector<128x128xf32>
    %c0_9 = arith.constant 0 : index
    %c0_10 = arith.constant 0 : index
    %15 = vector.load %arg4[%c0_9, %c0_10] : memref<128x256xbf16, #tpu.memory_space<vmem>>, vector<128x256xbf16>
    %c0_11 = arith.constant 0 : index
    %c0_12 = arith.constant 0 : index
    %16 = vector.load %arg5[%c0_11, %c0_12] : memref<1x256xf32, #tpu.memory_space<vmem>>, vector<1x256xf32>
    %17 = arith.truncf %14 : vector<128x128xf32> to vector<128x128xbf16>
    %cst_13 = arith.constant dense<0.000000e+00> : vector<128x256xf32>
    %18 = tpu.matmul %17, %15, %cst_13 {dimension_numbers = #tpu.dot_dimension_numbers<[1], [0], [0], [1], [0, 0, 1, 1], [], []>} : vector<128x128xbf16>, vector<128x256xbf16>, vector<128x256xf32> -> vector<128x256xf32>
    %19 = vector.broadcast %16 : vector<1x256xf32> to vector<128x256xf32>
    %20 = arith.addf %18, %19 : vector<128x256xf32>
    %cst_14 = arith.constant 0.000000e+00 : f32
    %21 = vector.broadcast %cst_14 : f32 to vector<128x256xf32>
    %22 = arith.subf %21, %20 : vector<128x256xf32>
    %23 = math.exp %22 : vector<128x256xf32>
    %cst_15 = arith.constant 1.000000e+00 : f32
    %24 = vector.broadcast %cst_15 : f32 to vector<128x256xf32>
    %25 = arith.addf %24, %23 : vector<128x256xf32>
    %cst_16 = arith.constant 1.000000e+00 : f32
    %26 = vector.broadcast %cst_16 : f32 to vector<128x256xf32>
    %27 = arith.divf %26, %25 : vector<128x256xf32>
    %28 = arith.truncf %27 : vector<128x256xf32> to vector<128x256xbf16>
    %c0_17 = arith.constant 0 : index
    %c0_18 = arith.constant 0 : index
    %29 = vector.load %arg6[%c0_17, %c0_18] : memref<128x256xbf16, #tpu.memory_space<vmem>>, vector<128x256xbf16>
    tpu.vector_store %arg6[%c0_17, %c0_18], %28 {strides = array<i32>} : memref<128x256xbf16, #tpu.memory_space<vmem>>, vector<128x256xbf16>,
    return
  }
  func.func @transform_0(%arg0: i32) -> (i32, i32) {
    %c0_i32 = arith.constant 0 : i32
    %c0_i32_0 = arith.constant 0 : i32
    return %arg0, %c0_i32 : i32, i32
  }
  func.func @transform_1(%arg0: i32) -> (i32, i32) {
    %c0_i32 = arith.constant 0 : i32
    %c0_i32_0 = arith.constant 0 : i32
    %c0_i32_1 = arith.constant 0 : i32
    return %c0_i32, %c0_i32_0 : i32, i32
  }
  func.func @transform_2(%arg0: i32) -> (i32, i32) {
    %c0_i32 = arith.constant 0 : i32
    %c0_i32_0 = arith.constant 0 : i32
    %c0_i32_1 = arith.constant 0 : i32
    return %c0_i32, %c0_i32_0 : i32, i32
  }
  func.func @transform_3(%arg0: i32) -> (i32, i32) {
    %c0_i32 = arith.constant 0 : i32
    %c0_i32_0 = arith.constant 0 : i32
    %c0_i32_1 = arith.constant 0 : i32
    return %c0_i32, %c0_i32_0 : i32, i32
  }
  func.func @transform_4(%arg0: i32) -> (i32, i32) {
    %c0_i32 = arith.constant 0 : i32
    %c0_i32_0 = arith.constant 0 : i32
    %c0_i32_1 = arith.constant 0 : i32
    return %c0_i32, %c0_i32_0 : i32, i32
  }
  func.func @transform_5(%arg0: i32) -> (i32, i32) {
    %c0_i32 = arith.constant 0 : i32
    %c0_i32_0 = arith.constant 0 : i32
    return %arg0, %c0_i32 : i32, i32
  }
}

module attributes {stable_mosaic.version = 11 : i64} {
  func.func @_chain_mm_kernel(%arg0: i32, %arg1: memref<128x128xbf16, #tpu.memory_space<vmem>>, %arg2: memref<128x128xbf16, #tpu.memory_space<vmem>>, %arg3: memref<1x128xf32, #tpu.memory_space<vmem>>, %arg4: memref<128x128xbf16, #tpu.memory_space<vmem>>) attributes {dimension_semantics = [#tpu.dimension_semantics<parallel>], iteration_bounds = array<i64: 1>, scalar_prefetch = 0 : i64, scratch_operands = 0 : i64, tpu.core_type = #tpu.core_type<tc>, window_params = [{transform_indices = @transform_0, window_bounds = array<i64: 128, 128>}, {pipeline_mode = #tpu.pipeline_mode<synchronous>, transform_indices = @transform_1, window_bounds = array<i64: 128, 128>}, {pipeline_mode = #tpu.pipeline_mode<synchronous>, transform_indices = @transform_2, window_bounds = array<i64: 1, 128>}, {transform_indices = @transform_3, window_bounds = array<i64: 128, 128>}]} {
    %c0 = arith.constant 0 : index
    %c0_0 = arith.constant 0 : index
    %0 = vector.load %arg1[%c0, %c0_0] : memref<128x128xbf16, #tpu.memory_space<vmem>>, vector<128x128xbf16>
    %c0_1 = arith.constant 0 : index
    %c0_2 = arith.constant 0 : index
    %1 = vector.load %arg2[%c0_1, %c0_2] : memref<128x128xbf16, #tpu.memory_space<vmem>>, vector<128x128xbf16>
    %c0_3 = arith.constant 0 : index
    %c0_4 = arith.constant 0 : index
    %2 = vector.load %arg3[%c0_3, %c0_4] : memref<1x128xf32, #tpu.memory_space<vmem>>, vector<1x128xf32>
    %cst = arith.constant dense<0.000000e+00> : vector<128x128xf32>
    %3 = tpu.matmul %0, %1, %cst {dimension_numbers = #tpu.dot_dimension_numbers<[1], [0], [0], [1], [0, 0, 1, 1], [], []>} : vector<128x128xbf16>, vector<128x128xbf16>, vector<128x128xf32> -> vector<128x128xf32>
    %4 = vector.broadcast %2 : vector<1x128xf32> to vector<128x128xf32>
    %5 = arith.addf %3, %4 : vector<128x128xf32>
    %cst_5 = arith.constant 0.000000e+00 : f32
    %6 = vector.broadcast %cst_5 : f32 to vector<128x128xf32>
    %7 = arith.maximumf %5, %6 : vector<128x128xf32>
    %8 = arith.truncf %7 : vector<128x128xf32> to vector<128x128xbf16>
    %c0_6 = arith.constant 0 : index
    %c0_7 = arith.constant 0 : index
    %9 = vector.load %arg4[%c0_6, %c0_7] : memref<128x128xbf16, #tpu.memory_space<vmem>>, vector<128x128xbf16>
    tpu.vector_store %arg4[%c0_6, %c0_7], %8 {strides = array<i32>} : memref<128x128xbf16, #tpu.memory_space<vmem>>, vector<128x128xbf16>,
    return
  }
  func.func @transform_0(%arg0: i32) -> (i32, i32) {
    %c0_i32 = arith.constant 0 : i32
    %c0_i32_0 = arith.constant 0 : i32
    return %arg0, %c0_i32 : i32, i32
  }
  func.func @transform_1(%arg0: i32) -> (i32, i32) {
    %c0_i32 = arith.constant 0 : i32
    %c0_i32_0 = arith.constant 0 : i32
    %c0_i32_1 = arith.constant 0 : i32
    return %c0_i32, %c0_i32_0 : i32, i32
  }
  func.func @transform_2(%arg0: i32) -> (i32, i32) {
    %c0_i32 = arith.constant 0 : i32
    %c0_i32_0 = arith.constant 0 : i32
    %c0_i32_1 = arith.constant 0 : i32
    return %c0_i32, %c0_i32_0 : i32, i32
  }
  func.func @transform_3(%arg0: i32) -> (i32, i32) {
    %c0_i32 = arith.constant 0 : i32
    %c0_i32_0 = arith.constant 0 : i32
    return %arg0, %c0_i32 : i32, i32
  }
}

module attributes {stable_mosaic.version = 11 : i64} {
  func.func @_chain_mm_kernel(%arg0: i32, %arg1: memref<128x128xbf16, #tpu.memory_space<vmem>>, %arg2: memref<128x128xbf16, #tpu.memory_space<vmem>>, %arg3: memref<1x128xf32, #tpu.memory_space<vmem>>, %arg4: memref<128x128xbf16, #tpu.memory_space<vmem>>) attributes {dimension_semantics = [#tpu.dimension_semantics<parallel>], iteration_bounds = array<i64: 1>, scalar_prefetch = 0 : i64, scratch_operands = 0 : i64, tpu.core_type = #tpu.core_type<tc>, window_params = [{transform_indices = @transform_0, window_bounds = array<i64: 128, 128>}, {pipeline_mode = #tpu.pipeline_mode<synchronous>, transform_indices = @transform_1, window_bounds = array<i64: 128, 128>}, {pipeline_mode = #tpu.pipeline_mode<synchronous>, transform_indices = @transform_2, window_bounds = array<i64: 1, 128>}, {transform_indices = @transform_3, window_bounds = array<i64: 128, 128>}]} {
    %c0 = arith.constant 0 : index
    %c0_0 = arith.constant 0 : index
    %0 = vector.load %arg1[%c0, %c0_0] : memref<128x128xbf16, #tpu.memory_space<vmem>>, vector<128x128xbf16>
    %c0_1 = arith.constant 0 : index
    %c0_2 = arith.constant 0 : index
    %1 = vector.load %arg2[%c0_1, %c0_2] : memref<128x128xbf16, #tpu.memory_space<vmem>>, vector<128x128xbf16>
    %c0_3 = arith.constant 0 : index
    %c0_4 = arith.constant 0 : index
    %2 = vector.load %arg3[%c0_3, %c0_4] : memref<1x128xf32, #tpu.memory_space<vmem>>, vector<1x128xf32>
    %cst = arith.constant dense<0.000000e+00> : vector<128x128xf32>
    %3 = tpu.matmul %0, %1, %cst {dimension_numbers = #tpu.dot_dimension_numbers<[1], [0], [0], [1], [0, 0, 1, 1], [], []>} : vector<128x128xbf16>, vector<128x128xbf16>, vector<128x128xf32> -> vector<128x128xf32>
    %4 = vector.broadcast %2 : vector<1x128xf32> to vector<128x128xf32>
    %5 = arith.addf %3, %4 : vector<128x128xf32>
    %6 = arith.truncf %5 : vector<128x128xf32> to vector<128x128xbf16>
    %c0_5 = arith.constant 0 : index
    %c0_6 = arith.constant 0 : index
    %7 = vector.load %arg4[%c0_5, %c0_6] : memref<128x128xbf16, #tpu.memory_space<vmem>>, vector<128x128xbf16>
    tpu.vector_store %arg4[%c0_5, %c0_6], %6 {strides = array<i32>} : memref<128x128xbf16, #tpu.memory_space<vmem>>, vector<128x128xbf16>,
    return
  }
  func.func @transform_0(%arg0: i32) -> (i32, i32) {
    %c0_i32 = arith.constant 0 : i32
    %c0_i32_0 = arith.constant 0 : i32
    return %arg0, %c0_i32 : i32, i32
  }
  func.func @transform_1(%arg0: i32) -> (i32, i32) {
    %c0_i32 = arith.constant 0 : i32
    %c0_i32_0 = arith.constant 0 : i32
    %c0_i32_1 = arith.constant 0 : i32
    return %c0_i32, %c0_i32_0 : i32, i32
  }
  func.func @transform_2(%arg0: i32) -> (i32, i32) {
    %c0_i32 = arith.constant 0 : i32
    %c0_i32_0 = arith.constant 0 : i32
    %c0_i32_1 = arith.constant 0 : i32
    return %c0_i32, %c0_i32_0 : i32, i32
  }
  func.func @transform_3(%arg0: i32) -> (i32, i32) {
    %c0_i32 = arith.constant 0 : i32
    %c0_i32_0 = arith.constant 0 : i32
    return %arg0, %c0_i32 : i32, i32
  }
}

module attributes {stable_mosaic.version = 11 : i64} {
  func.func @_dw_kernel(%arg0: i32, %arg1: memref<1x10x10x128xbf16, #tpu.memory_space<vmem>>, %arg2: memref<9x1x128xf32, #tpu.memory_space<vmem>>, %arg3: memref<1x128xf32, #tpu.memory_space<vmem>>, %arg4: memref<1x8x8x128xbf16, #tpu.memory_space<vmem>>) attributes {dimension_semantics = [#tpu.dimension_semantics<parallel>], iteration_bounds = array<i64: 2>, scalar_prefetch = 0 : i64, scratch_operands = 0 : i64, tpu.core_type = #tpu.core_type<tc>, window_params = [{transform_indices = @transform_0, window_bounds = array<i64: 1, 10, 10, 128>}, {pipeline_mode = #tpu.pipeline_mode<synchronous>, transform_indices = @transform_1, window_bounds = array<i64: 9, 1, 128>}, {pipeline_mode = #tpu.pipeline_mode<synchronous>, transform_indices = @transform_2, window_bounds = array<i64: 1, 128>}, {transform_indices = @transform_3, window_bounds = array<i64: 1, 8, 8, 128>}]} {
    %c0 = arith.constant 0 : index
    %c0_0 = arith.constant 0 : index
    %c0_1 = arith.constant 0 : index
    %c0_2 = arith.constant 0 : index
    %0 = vector.load %arg1[%c0, %c0_0, %c0_1, %c0_2] : memref<1x10x10x128xbf16, #tpu.memory_space<vmem>>, vector<1x10x10x128xbf16>
    %1 = arith.extf %0 : vector<1x10x10x128xbf16> to vector<1x10x10x128xf32>
    %c0_3 = arith.constant 0 : index
    %c0_4 = arith.constant 0 : index
    %c0_5 = arith.constant 0 : index
    %2 = vector.load %arg2[%c0_3, %c0_4, %c0_5] : memref<9x1x128xf32, #tpu.memory_space<vmem>>, vector<9x1x128xf32>
    %3 = vector.extract_strided_slice %1 {offsets = [0, 0, 0, 0], sizes = [1, 8, 8, 128], strides = [1, 1, 1, 1]} : vector<1x10x10x128xf32> to vector<1x8x8x128xf32>
    %4 = vector.extract_strided_slice %2 {offsets = [0, 0, 0], sizes = [1, 1, 128], strides = [1, 1, 1]} : vector<9x1x128xf32> to vector<1x1x128xf32>
    %5 = vector.shape_cast %4 : vector<1x1x128xf32> to vector<1x128xf32>
    %6 = vector.shape_cast %5 : vector<1x128xf32> to vector<1x1x1x128xf32>
    %7 = vector.broadcast %6 : vector<1x1x1x128xf32> to vector<1x8x8x128xf32>
    %8 = arith.mulf %3, %7 : vector<1x8x8x128xf32>
    %9 = vector.extract_strided_slice %1 {offsets = [0, 0, 1, 0], sizes = [1, 8, 8, 128], strides = [1, 1, 1, 1]} : vector<1x10x10x128xf32> to vector<1x8x8x128xf32>
    %10 = vector.extract_strided_slice %2 {offsets = [1, 0, 0], sizes = [1, 1, 128], strides = [1, 1, 1]} : vector<9x1x128xf32> to vector<1x1x128xf32>
    %11 = vector.shape_cast %10 : vector<1x1x128xf32> to vector<1x128xf32>
    %12 = vector.shape_cast %11 : vector<1x128xf32> to vector<1x1x1x128xf32>
    %13 = vector.broadcast %12 : vector<1x1x1x128xf32> to vector<1x8x8x128xf32>
    %14 = arith.mulf %9, %13 : vector<1x8x8x128xf32>
    %15 = arith.addf %8, %14 : vector<1x8x8x128xf32>
    %16 = vector.extract_strided_slice %1 {offsets = [0, 0, 2, 0], sizes = [1, 8, 8, 128], strides = [1, 1, 1, 1]} : vector<1x10x10x128xf32> to vector<1x8x8x128xf32>
    %17 = vector.extract_strided_slice %2 {offsets = [2, 0, 0], sizes = [1, 1, 128], strides = [1, 1, 1]} : vector<9x1x128xf32> to vector<1x1x128xf32>
    %18 = vector.shape_cast %17 : vector<1x1x128xf32> to vector<1x128xf32>
    %19 = vector.shape_cast %18 : vector<1x128xf32> to vector<1x1x1x128xf32>
    %20 = vector.broadcast %19 : vector<1x1x1x128xf32> to vector<1x8x8x128xf32>
    %21 = arith.mulf %16, %20 : vector<1x8x8x128xf32>
    %22 = arith.addf %15, %21 : vector<1x8x8x128xf32>
    %23 = vector.extract_strided_slice %1 {offsets = [0, 1, 0, 0], sizes = [1, 8, 8, 128], strides = [1, 1, 1, 1]} : vector<1x10x10x128xf32> to vector<1x8x8x128xf32>
    %24 = vector.extract_strided_slice %2 {offsets = [3, 0, 0], sizes = [1, 1, 128], strides = [1, 1, 1]} : vector<9x1x128xf32> to vector<1x1x128xf32>
    %25 = vector.shape_cast %24 : vector<1x1x128xf32> to vector<1x128xf32>
    %26 = vector.shape_cast %25 : vector<1x128xf32> to vector<1x1x1x128xf32>
    %27 = vector.broadcast %26 : vector<1x1x1x128xf32> to vector<1x8x8x128xf32>
    %28 = arith.mulf %23, %27 : vector<1x8x8x128xf32>
    %29 = arith.addf %22, %28 : vector<1x8x8x128xf32>
    %30 = vector.extract_strided_slice %1 {offsets = [0, 1, 1, 0], sizes = [1, 8, 8, 128], strides = [1, 1, 1, 1]} : vector<1x10x10x128xf32> to vector<1x8x8x128xf32>
    %31 = vector.extract_strided_slice %2 {offsets = [4, 0, 0], sizes = [1, 1, 128], strides = [1, 1, 1]} : vector<9x1x128xf32> to vector<1x1x128xf32>
    %32 = vector.shape_cast %31 : vector<1x1x128xf32> to vector<1x128xf32>
    %33 = vector.shape_cast %32 : vector<1x128xf32> to vector<1x1x1x128xf32>
    %34 = vector.broadcast %33 : vector<1x1x1x128xf32> to vector<1x8x8x128xf32>
    %35 = arith.mulf %30, %34 : vector<1x8x8x128xf32>
    %36 = arith.addf %29, %35 : vector<1x8x8x128xf32>
    %37 = vector.extract_strided_slice %1 {offsets = [0, 1, 2, 0], sizes = [1, 8, 8, 128], strides = [1, 1, 1, 1]} : vector<1x10x10x128xf32> to vector<1x8x8x128xf32>
    %38 = vector.extract_strided_slice %2 {offsets = [5, 0, 0], sizes = [1, 1, 128], strides = [1, 1, 1]} : vector<9x1x128xf32> to vector<1x1x128xf32>
    %39 = vector.shape_cast %38 : vector<1x1x128xf32> to vector<1x128xf32>
    %40 = vector.shape_cast %39 : vector<1x128xf32> to vector<1x1x1x128xf32>
    %41 = vector.broadcast %40 : vector<1x1x1x128xf32> to vector<1x8x8x128xf32>
    %42 = arith.mulf %37, %41 : vector<1x8x8x128xf32>
    %43 = arith.addf %36, %42 : vector<1x8x8x128xf32>
    %44 = vector.extract_strided_slice %1 {offsets = [0, 2, 0, 0], sizes = [1, 8, 8, 128], strides = [1, 1, 1, 1]} : vector<1x10x10x128xf32> to vector<1x8x8x128xf32>
    %45 = vector.extract_strided_slice %2 {offsets = [6, 0, 0], sizes = [1, 1, 128], strides = [1, 1, 1]} : vector<9x1x128xf32> to vector<1x1x128xf32>
    %46 = vector.shape_cast %45 : vector<1x1x128xf32> to vector<1x128xf32>
    %47 = vector.shape_cast %46 : vector<1x128xf32> to vector<1x1x1x128xf32>
    %48 = vector.broadcast %47 : vector<1x1x1x128xf32> to vector<1x8x8x128xf32>
    %49 = arith.mulf %44, %48 : vector<1x8x8x128xf32>
    %50 = arith.addf %43, %49 : vector<1x8x8x128xf32>
    %51 = vector.extract_strided_slice %1 {offsets = [0, 2, 1, 0], sizes = [1, 8, 8, 128], strides = [1, 1, 1, 1]} : vector<1x10x10x128xf32> to vector<1x8x8x128xf32>
    %52 = vector.extract_strided_slice %2 {offsets = [7, 0, 0], sizes = [1, 1, 128], strides = [1, 1, 1]} : vector<9x1x128xf32> to vector<1x1x128xf32>
    %53 = vector.shape_cast %52 : vector<1x1x128xf32> to vector<1x128xf32>
    %54 = vector.shape_cast %53 : vector<1x128xf32> to vector<1x1x1x128xf32>
    %55 = vector.broadcast %54 : vector<1x1x1x128xf32> to vector<1x8x8x128xf32>
    %56 = arith.mulf %51, %55 : vector<1x8x8x128xf32>
    %57 = arith.addf %50, %56 : vector<1x8x8x128xf32>
    %58 = vector.extract_strided_slice %1 {offsets = [0, 2, 2, 0], sizes = [1, 8, 8, 128], strides = [1, 1, 1, 1]} : vector<1x10x10x128xf32> to vector<1x8x8x128xf32>
    %59 = vector.extract_strided_slice %2 {offsets = [8, 0, 0], sizes = [1, 1, 128], strides = [1, 1, 1]} : vector<9x1x128xf32> to vector<1x1x128xf32>
    %60 = vector.shape_cast %59 : vector<1x1x128xf32> to vector<1x128xf32>
    %61 = vector.shape_cast %60 : vector<1x128xf32> to vector<1x1x1x128xf32>
    %62 = vector.broadcast %61 : vector<1x1x1x128xf32> to vector<1x8x8x128xf32>
    %63 = arith.mulf %58, %62 : vector<1x8x8x128xf32>
    %64 = arith.addf %57, %63 : vector<1x8x8x128xf32>
    %c0_6 = arith.constant 0 : index
    %c0_7 = arith.constant 0 : index
    %65 = vector.load %arg3[%c0_6, %c0_7] : memref<1x128xf32, #tpu.memory_space<vmem>>, vector<1x128xf32>
    %66 = vector.shape_cast %65 : vector<1x128xf32> to vector<1x1x1x128xf32>
    %67 = vector.broadcast %66 : vector<1x1x1x128xf32> to vector<1x8x8x128xf32>
    %68 = arith.addf %64, %67 : vector<1x8x8x128xf32>
    %cst = arith.constant 0.000000e+00 : f32
    %69 = vector.broadcast %cst : f32 to vector<1x8x8x128xf32>
    %70 = arith.maximumf %68, %69 : vector<1x8x8x128xf32>
    %71 = arith.truncf %70 : vector<1x8x8x128xf32> to vector<1x8x8x128xbf16>
    %c0_8 = arith.constant 0 : index
    %c0_9 = arith.constant 0 : index
    %c0_10 = arith.constant 0 : index
    %c0_11 = arith.constant 0 : index
    %72 = vector.load %arg4[%c0_8, %c0_9, %c0_10, %c0_11] : memref<1x8x8x128xbf16, #tpu.memory_space<vmem>>, vector<1x8x8x128xbf16>
    tpu.vector_store %arg4[%c0_8, %c0_9, %c0_10, %c0_11], %71 {strides = array<i32>} : memref<1x8x8x128xbf16, #tpu.memory_space<vmem>>, vector<1x8x8x128xbf16>,
    return
  }
  func.func @transform_0(%arg0: i32) -> (i32, i32, i32, i32) {
    %c0_i32 = arith.constant 0 : i32
    %c0_i32_0 = arith.constant 0 : i32
    %c0_i32_1 = arith.constant 0 : i32
    %c0_i32_2 = arith.constant 0 : i32
    return %arg0, %c0_i32, %c0_i32_0, %c0_i32_1 : i32, i32, i32, i32
  }
  func.func @transform_1(%arg0: i32) -> (i32, i32, i32) {
    %c0_i32 = arith.constant 0 : i32
    %c0_i32_0 = arith.constant 0 : i32
    %c0_i32_1 = arith.constant 0 : i32
    %c0_i32_2 = arith.constant 0 : i32
    return %c0_i32, %c0_i32_0, %c0_i32_1 : i32, i32, i32
  }
  func.func @transform_2(%arg0: i32) -> (i32, i32) {
    %c0_i32 = arith.constant 0 : i32
    %c0_i32_0 = arith.constant 0 : i32
    %c0_i32_1 = arith.constant 0 : i32
    return %c0_i32, %c0_i32_0 : i32, i32
  }
  func.func @transform_3(%arg0: i32) -> (i32, i32, i32, i32) {
    %c0_i32 = arith.constant 0 : i32
    %c0_i32_0 = arith.constant 0 : i32
    %c0_i32_1 = arith.constant 0 : i32
    %c0_i32_2 = arith.constant 0 : i32
    return %arg0, %c0_i32, %c0_i32_0, %c0_i32_1 : i32, i32, i32, i32
  }
}

module attributes {stable_mosaic.version = 11 : i64} {
  func.func @_chain_mm_kernel(%arg0: i32, %arg1: memref<128x128xbf16, #tpu.memory_space<vmem>>, %arg2: memref<128x128xbf16, #tpu.memory_space<vmem>>, %arg3: memref<1x128xf32, #tpu.memory_space<vmem>>, %arg4: memref<128x128xbf16, #tpu.memory_space<vmem>>, %arg5: memref<1x128xf32, #tpu.memory_space<vmem>>, %arg6: memref<128x128xbf16, #tpu.memory_space<vmem>>) attributes {dimension_semantics = [#tpu.dimension_semantics<parallel>], iteration_bounds = array<i64: 1>, scalar_prefetch = 0 : i64, scratch_operands = 0 : i64, tpu.core_type = #tpu.core_type<tc>, window_params = [{transform_indices = @transform_0, window_bounds = array<i64: 128, 128>}, {pipeline_mode = #tpu.pipeline_mode<synchronous>, transform_indices = @transform_1, window_bounds = array<i64: 128, 128>}, {pipeline_mode = #tpu.pipeline_mode<synchronous>, transform_indices = @transform_2, window_bounds = array<i64: 1, 128>}, {pipeline_mode = #tpu.pipeline_mode<synchronous>, transform_indices = @transform_3, window_bounds = array<i64: 128, 128>}, {pipeline_mode = #tpu.pipeline_mode<synchronous>, transform_indices = @transform_4, window_bounds = array<i64: 1, 128>}, {transform_indices = @transform_5, window_bounds = array<i64: 128, 128>}]} {
    %c0 = arith.constant 0 : index
    %c0_0 = arith.constant 0 : index
    %0 = vector.load %arg1[%c0, %c0_0] : memref<128x128xbf16, #tpu.memory_space<vmem>>, vector<128x128xbf16>
    %c0_1 = arith.constant 0 : index
    %c0_2 = arith.constant 0 : index
    %1 = vector.load %arg2[%c0_1, %c0_2] : memref<128x128xbf16, #tpu.memory_space<vmem>>, vector<128x128xbf16>
    %c0_3 = arith.constant 0 : index
    %c0_4 = arith.constant 0 : index
    %2 = vector.load %arg3[%c0_3, %c0_4] : memref<1x128xf32, #tpu.memory_space<vmem>>, vector<1x128xf32>
    %cst = arith.constant dense<0.000000e+00> : vector<128x128xf32>
    %3 = tpu.matmul %0, %1, %cst {dimension_numbers = #tpu.dot_dimension_numbers<[1], [0], [0], [1], [0, 0, 1, 1], [], []>} : vector<128x128xbf16>, vector<128x128xbf16>, vector<128x128xf32> -> vector<128x128xf32>
    %4 = vector.broadcast %2 : vector<1x128xf32> to vector<128x128xf32>
    %5 = arith.addf %3, %4 : vector<128x128xf32>
    %cst_5 = arith.constant 3.000000e+00 : f32
    %6 = vector.broadcast %cst_5 : f32 to vector<128x128xf32>
    %7 = arith.addf %5, %6 : vector<128x128xf32>
    %cst_6 = arith.constant 0.000000e+00 : f32
    %cst_7 = arith.constant 6.000000e+00 : f32
    %8 = vector.broadcast %cst_6 : f32 to vector<128x128xf32>
    %9 = arith.maximumf %8, %7 : vector<128x128xf32>
    %10 = vector.broadcast %cst_7 : f32 to vector<128x128xf32>
    %11 = arith.minimumf %10, %9 : vector<128x128xf32>
    %12 = arith.mulf %5, %11 : vector<128x128xf32>
    %cst_8 = arith.constant 0.166666672 : f32
    %13 = vector.broadcast %cst_8 : f32 to vector<128x128xf32>
    %14 = arith.mulf %12, %13 : vector<128x128xf32>
    %c0_9 = arith.constant 0 : index
    %c0_10 = arith.constant 0 : index
    %15 = vector.load %arg4[%c0_9, %c0_10] : memref<128x128xbf16, #tpu.memory_space<vmem>>, vector<128x128xbf16>
    %c0_11 = arith.constant 0 : index
    %c0_12 = arith.constant 0 : index
    %16 = vector.load %arg5[%c0_11, %c0_12] : memref<1x128xf32, #tpu.memory_space<vmem>>, vector<1x128xf32>
    %17 = arith.truncf %14 : vector<128x128xf32> to vector<128x128xbf16>
    %cst_13 = arith.constant dense<0.000000e+00> : vector<128x128xf32>
    %18 = tpu.matmul %17, %15, %cst_13 {dimension_numbers = #tpu.dot_dimension_numbers<[1], [0], [0], [1], [0, 0, 1, 1], [], []>} : vector<128x128xbf16>, vector<128x128xbf16>, vector<128x128xf32> -> vector<128x128xf32>
    %19 = vector.broadcast %16 : vector<1x128xf32> to vector<128x128xf32>
    %20 = arith.addf %18, %19 : vector<128x128xf32>
    %21 = arith.truncf %20 : vector<128x128xf32> to vector<128x128xbf16>
    %c0_14 = arith.constant 0 : index
    %c0_15 = arith.constant 0 : index
    %22 = vector.load %arg6[%c0_14, %c0_15] : memref<128x128xbf16, #tpu.memory_space<vmem>>, vector<128x128xbf16>
    tpu.vector_store %arg6[%c0_14, %c0_15], %21 {strides = array<i32>} : memref<128x128xbf16, #tpu.memory_space<vmem>>, vector<128x128xbf16>,
    return
  }
  func.func @transform_0(%arg0: i32) -> (i32, i32) {
    %c0_i32 = arith.constant 0 : i32
    %c0_i32_0 = arith.constant 0 : i32
    return %arg0, %c0_i32 : i32, i32
  }
  func.func @transform_1(%arg0: i32) -> (i32, i32) {
    %c0_i32 = arith.constant 0 : i32
    %c0_i32_0 = arith.constant 0 : i32
    %c0_i32_1 = arith.constant 0 : i32
    return %c0_i32, %c0_i32_0 : i32, i32
  }
  func.func @transform_2(%arg0: i32) -> (i32, i32) {
    %c0_i32 = arith.constant 0 : i32
    %c0_i32_0 = arith.constant 0 : i32
    %c0_i32_1 = arith.constant 0 : i32
    return %c0_i32, %c0_i32_0 : i32, i32
  }
  func.func @transform_3(%arg0: i32) -> (i32, i32) {
    %c0_i32 = arith.constant 0 : i32
    %c0_i32_0 = arith.constant 0 : i32
    %c0_i32_1 = arith.constant 0 : i32
    return %c0_i32, %c0_i32_0 : i32, i32
  }
  func.func @transform_4(%arg0: i32) -> (i32, i32) {
    %c0_i32 = arith.constant 0 : i32
    %c0_i32_0 = arith.constant 0 : i32
    %c0_i32_1 = arith.constant 0 : i32
    return %c0_i32, %c0_i32_0 : i32, i32
  }
  func.func @transform_5(%arg0: i32) -> (i32, i32) {
    %c0_i32 = arith.constant 0 : i32
    %c0_i32_0 = arith.constant 0 : i32
    return %arg0, %c0_i32 : i32, i32
  }
}

module attributes {stable_mosaic.version = 11 : i64} {
  func.func @_chain_mm_kernel(%arg0: i32, %arg1: memref<128x640xbf16, #tpu.memory_space<vmem>>, %arg2: memref<640x128xbf16, #tpu.memory_space<vmem>>, %arg3: memref<1x128xf32, #tpu.memory_space<vmem>>, %arg4: memref<128x128xbf16, #tpu.memory_space<vmem>>) attributes {dimension_semantics = [#tpu.dimension_semantics<parallel>], iteration_bounds = array<i64: 1>, scalar_prefetch = 0 : i64, scratch_operands = 0 : i64, tpu.core_type = #tpu.core_type<tc>, window_params = [{transform_indices = @transform_0, window_bounds = array<i64: 128, 640>}, {pipeline_mode = #tpu.pipeline_mode<synchronous>, transform_indices = @transform_1, window_bounds = array<i64: 640, 128>}, {pipeline_mode = #tpu.pipeline_mode<synchronous>, transform_indices = @transform_2, window_bounds = array<i64: 1, 128>}, {transform_indices = @transform_3, window_bounds = array<i64: 128, 128>}]} {
    %c0 = arith.constant 0 : index
    %c0_0 = arith.constant 0 : index
    %0 = vector.load %arg1[%c0, %c0_0] : memref<128x640xbf16, #tpu.memory_space<vmem>>, vector<128x640xbf16>
    %c0_1 = arith.constant 0 : index
    %c0_2 = arith.constant 0 : index
    %1 = vector.load %arg2[%c0_1, %c0_2] : memref<640x128xbf16, #tpu.memory_space<vmem>>, vector<640x128xbf16>
    %c0_3 = arith.constant 0 : index
    %c0_4 = arith.constant 0 : index
    %2 = vector.load %arg3[%c0_3, %c0_4] : memref<1x128xf32, #tpu.memory_space<vmem>>, vector<1x128xf32>
    %cst = arith.constant dense<0.000000e+00> : vector<128x128xf32>
    %3 = tpu.matmul %0, %1, %cst {dimension_numbers = #tpu.dot_dimension_numbers<[1], [0], [0], [1], [0, 0, 1, 1], [], []>} : vector<128x640xbf16>, vector<640x128xbf16>, vector<128x128xf32> -> vector<128x128xf32>
    %4 = vector.broadcast %2 : vector<1x128xf32> to vector<128x128xf32>
    %5 = arith.addf %3, %4 : vector<128x128xf32>
    %cst_5 = arith.constant 3.000000e+00 : f32
    %6 = vector.broadcast %cst_5 : f32 to vector<128x128xf32>
    %7 = arith.addf %5, %6 : vector<128x128xf32>
    %cst_6 = arith.constant 0.000000e+00 : f32
    %cst_7 = arith.constant 6.000000e+00 : f32
    %8 = vector.broadcast %cst_6 : f32 to vector<128x128xf32>
    %9 = arith.maximumf %8, %7 : vector<128x128xf32>
    %10 = vector.broadcast %cst_7 : f32 to vector<128x128xf32>
    %11 = arith.minimumf %10, %9 : vector<128x128xf32>
    %12 = arith.mulf %5, %11 : vector<128x128xf32>
    %cst_8 = arith.constant 0.166666672 : f32
    %13 = vector.broadcast %cst_8 : f32 to vector<128x128xf32>
    %14 = arith.mulf %12, %13 : vector<128x128xf32>
    %15 = arith.truncf %14 : vector<128x128xf32> to vector<128x128xbf16>
    %c0_9 = arith.constant 0 : index
    %c0_10 = arith.constant 0 : index
    %16 = vector.load %arg4[%c0_9, %c0_10] : memref<128x128xbf16, #tpu.memory_space<vmem>>, vector<128x128xbf16>
    tpu.vector_store %arg4[%c0_9, %c0_10], %15 {strides = array<i32>} : memref<128x128xbf16, #tpu.memory_space<vmem>>, vector<128x128xbf16>,
    return
  }
  func.func @transform_0(%arg0: i32) -> (i32, i32) {
    %c0_i32 = arith.constant 0 : i32
    %c0_i32_0 = arith.constant 0 : i32
    return %arg0, %c0_i32 : i32, i32
  }
  func.func @transform_1(%arg0: i32) -> (i32, i32) {
    %c0_i32 = arith.constant 0 : i32
    %c0_i32_0 = arith.constant 0 : i32
    %c0_i32_1 = arith.constant 0 : i32
    return %c0_i32, %c0_i32_0 : i32, i32
  }
  func.func @transform_2(%arg0: i32) -> (i32, i32) {
    %c0_i32 = arith.constant 0 : i32
    %c0_i32_0 = arith.constant 0 : i32
    %c0_i32_1 = arith.constant 0 : i32
    return %c0_i32, %c0_i32_0 : i32, i32
  }
  func.func @transform_3(%arg0: i32) -> (i32, i32) {
    %c0_i32 = arith.constant 0 : i32
    %c0_i32_0 = arith.constant 0 : i32
    return %arg0, %c0_i32 : i32, i32
  }
}

module attributes {stable_mosaic.version = 11 : i64} {
  func.func @_chain_mm_kernel(%arg0: i32, %arg1: memref<256x4xbf16, #tpu.memory_space<vmem>>, %arg2: memref<4x128xbf16, #tpu.memory_space<vmem>>, %arg3: memref<1x128xf32, #tpu.memory_space<vmem>>, %arg4: memref<128x128xbf16, #tpu.memory_space<vmem>>, %arg5: memref<1x128xf32, #tpu.memory_space<vmem>>, %arg6: memref<256x128xbf16, #tpu.memory_space<vmem>>) attributes {dimension_semantics = [#tpu.dimension_semantics<parallel>], iteration_bounds = array<i64: 2>, scalar_prefetch = 0 : i64, scratch_operands = 0 : i64, tpu.core_type = #tpu.core_type<tc>, window_params = [{transform_indices = @transform_0, window_bounds = array<i64: 256, 4>}, {pipeline_mode = #tpu.pipeline_mode<synchronous>, transform_indices = @transform_1, window_bounds = array<i64: 4, 128>}, {pipeline_mode = #tpu.pipeline_mode<synchronous>, transform_indices = @transform_2, window_bounds = array<i64: 1, 128>}, {pipeline_mode = #tpu.pipeline_mode<synchronous>, transform_indices = @transform_3, window_bounds = array<i64: 128, 128>}, {pipeline_mode = #tpu.pipeline_mode<synchronous>, transform_indices = @transform_4, window_bounds = array<i64: 1, 128>}, {transform_indices = @transform_5, window_bounds = array<i64: 256, 128>}]} {
    %c0 = arith.constant 0 : index
    %c0_0 = arith.constant 0 : index
    %0 = vector.load %arg1[%c0, %c0_0] : memref<256x4xbf16, #tpu.memory_space<vmem>>, vector<256x4xbf16>
    %c0_1 = arith.constant 0 : index
    %c0_2 = arith.constant 0 : index
    %1 = vector.load %arg2[%c0_1, %c0_2] : memref<4x128xbf16, #tpu.memory_space<vmem>>, vector<4x128xbf16>
    %c0_3 = arith.constant 0 : index
    %c0_4 = arith.constant 0 : index
    %2 = vector.load %arg3[%c0_3, %c0_4] : memref<1x128xf32, #tpu.memory_space<vmem>>, vector<1x128xf32>
    %cst = arith.constant dense<0.000000e+00> : vector<256x128xf32>
    %3 = tpu.matmul %0, %1, %cst {dimension_numbers = #tpu.dot_dimension_numbers<[1], [0], [0], [1], [0, 0, 1, 1], [], []>} : vector<256x4xbf16>, vector<4x128xbf16>, vector<256x128xf32> -> vector<256x128xf32>
    %4 = vector.broadcast %2 : vector<1x128xf32> to vector<256x128xf32>
    %5 = arith.addf %3, %4 : vector<256x128xf32>
    %cst_5 = arith.constant 3.000000e+00 : f32
    %6 = vector.broadcast %cst_5 : f32 to vector<256x128xf32>
    %7 = arith.addf %5, %6 : vector<256x128xf32>
    %cst_6 = arith.constant 0.000000e+00 : f32
    %cst_7 = arith.constant 6.000000e+00 : f32
    %8 = vector.broadcast %cst_6 : f32 to vector<256x128xf32>
    %9 = arith.maximumf %8, %7 : vector<256x128xf32>
    %10 = vector.broadcast %cst_7 : f32 to vector<256x128xf32>
    %11 = arith.minimumf %10, %9 : vector<256x128xf32>
    %12 = arith.mulf %5, %11 : vector<256x128xf32>
    %cst_8 = arith.constant 0.166666672 : f32
    %13 = vector.broadcast %cst_8 : f32 to vector<256x128xf32>
    %14 = arith.mulf %12, %13 : vector<256x128xf32>
    %c0_9 = arith.constant 0 : index
    %c0_10 = arith.constant 0 : index
    %15 = vector.load %arg4[%c0_9, %c0_10] : memref<128x128xbf16, #tpu.memory_space<vmem>>, vector<128x128xbf16>
    %c0_11 = arith.constant 0 : index
    %c0_12 = arith.constant 0 : index
    %16 = vector.load %arg5[%c0_11, %c0_12] : memref<1x128xf32, #tpu.memory_space<vmem>>, vector<1x128xf32>
    %17 = arith.truncf %14 : vector<256x128xf32> to vector<256x128xbf16>
    %cst_13 = arith.constant dense<0.000000e+00> : vector<256x128xf32>
    %18 = tpu.matmul %17, %15, %cst_13 {dimension_numbers = #tpu.dot_dimension_numbers<[1], [0], [0], [1], [0, 0, 1, 1], [], []>} : vector<256x128xbf16>, vector<128x128xbf16>, vector<256x128xf32> -> vector<256x128xf32>
    %19 = vector.broadcast %16 : vector<1x128xf32> to vector<256x128xf32>
    %20 = arith.addf %18, %19 : vector<256x128xf32>
    %cst_14 = arith.constant 3.000000e+00 : f32
    %21 = vector.broadcast %cst_14 : f32 to vector<256x128xf32>
    %22 = arith.addf %20, %21 : vector<256x128xf32>
    %cst_15 = arith.constant 0.000000e+00 : f32
    %cst_16 = arith.constant 6.000000e+00 : f32
    %23 = vector.broadcast %cst_15 : f32 to vector<256x128xf32>
    %24 = arith.maximumf %23, %22 : vector<256x128xf32>
    %25 = vector.broadcast %cst_16 : f32 to vector<256x128xf32>
    %26 = arith.minimumf %25, %24 : vector<256x128xf32>
    %27 = arith.mulf %20, %26 : vector<256x128xf32>
    %cst_17 = arith.constant 0.166666672 : f32
    %28 = vector.broadcast %cst_17 : f32 to vector<256x128xf32>
    %29 = arith.mulf %27, %28 : vector<256x128xf32>
    %30 = arith.truncf %29 : vector<256x128xf32> to vector<256x128xbf16>
    %c0_18 = arith.constant 0 : index
    %c0_19 = arith.constant 0 : index
    %31 = vector.load %arg6[%c0_18, %c0_19] : memref<256x128xbf16, #tpu.memory_space<vmem>>, vector<256x128xbf16>
    tpu.vector_store %arg6[%c0_18, %c0_19], %30 {strides = array<i32>} : memref<256x128xbf16, #tpu.memory_space<vmem>>, vector<256x128xbf16>,
    return
  }
  func.func @transform_0(%arg0: i32) -> (i32, i32) {
    %c0_i32 = arith.constant 0 : i32
    %c0_i32_0 = arith.constant 0 : i32
    return %arg0, %c0_i32 : i32, i32
  }
  func.func @transform_1(%arg0: i32) -> (i32, i32) {
    %c0_i32 = arith.constant 0 : i32
    %c0_i32_0 = arith.constant 0 : i32
    %c0_i32_1 = arith.constant 0 : i32
    return %c0_i32, %c0_i32_0 : i32, i32
  }
  func.func @transform_2(%arg0: i32) -> (i32, i32) {
    %c0_i32 = arith.constant 0 : i32
    %c0_i32_0 = arith.constant 0 : i32
    %c0_i32_1 = arith.constant 0 : i32
    return %c0_i32, %c0_i32_0 : i32, i32
  }
  func.func @transform_3(%arg0: i32) -> (i32, i32) {
    %c0_i32 = arith.constant 0 : i32
    %c0_i32_0 = arith.constant 0 : i32
    %c0_i32_1 = arith.constant 0 : i32
    return %c0_i32, %c0_i32_0 : i32, i32
  }
  func.func @transform_4(%arg0: i32) -> (i32, i32) {
    %c0_i32 = arith.constant 0 : i32
    %c0_i32_0 = arith.constant 0 : i32
    %c0_i32_1 = arith.constant 0 : i32
    return %c0_i32, %c0_i32_0 : i32, i32
  }
  func.func @transform_5(%arg0: i32) -> (i32, i32) {
    %c0_i32 = arith.constant 0 : i32
    %c0_i32_0 = arith.constant 0 : i32
    return %arg0, %c0_i32 : i32, i32
  }
}

module attributes {stable_mosaic.version = 11 : i64} {
  func.func @_chain_mm_kernel(%arg0: i32, %arg1: memref<128x256xbf16, #tpu.memory_space<vmem>>, %arg2: memref<256x128xbf16, #tpu.memory_space<vmem>>, %arg3: memref<1x128xf32, #tpu.memory_space<vmem>>, %arg4: memref<128x128xf32, #tpu.memory_space<vmem>>) attributes {dimension_semantics = [#tpu.dimension_semantics<parallel>], iteration_bounds = array<i64: 1>, scalar_prefetch = 0 : i64, scratch_operands = 0 : i64, tpu.core_type = #tpu.core_type<tc>, window_params = [{transform_indices = @transform_0, window_bounds = array<i64: 128, 256>}, {pipeline_mode = #tpu.pipeline_mode<synchronous>, transform_indices = @transform_1, window_bounds = array<i64: 256, 128>}, {pipeline_mode = #tpu.pipeline_mode<synchronous>, transform_indices = @transform_2, window_bounds = array<i64: 1, 128>}, {transform_indices = @transform_3, window_bounds = array<i64: 128, 128>}]} {
    %c0 = arith.constant 0 : index
    %c0_0 = arith.constant 0 : index
    %0 = vector.load %arg1[%c0, %c0_0] : memref<128x256xbf16, #tpu.memory_space<vmem>>, vector<128x256xbf16>
    %c0_1 = arith.constant 0 : index
    %c0_2 = arith.constant 0 : index
    %1 = vector.load %arg2[%c0_1, %c0_2] : memref<256x128xbf16, #tpu.memory_space<vmem>>, vector<256x128xbf16>
    %c0_3 = arith.constant 0 : index
    %c0_4 = arith.constant 0 : index
    %2 = vector.load %arg3[%c0_3, %c0_4] : memref<1x128xf32, #tpu.memory_space<vmem>>, vector<1x128xf32>
    %cst = arith.constant dense<0.000000e+00> : vector<128x128xf32>
    %3 = tpu.matmul %0, %1, %cst {dimension_numbers = #tpu.dot_dimension_numbers<[1], [0], [0], [1], [0, 0, 1, 1], [], []>} : vector<128x256xbf16>, vector<256x128xbf16>, vector<128x128xf32> -> vector<128x128xf32>
    %4 = vector.broadcast %2 : vector<1x128xf32> to vector<128x128xf32>
    %5 = arith.addf %3, %4 : vector<128x128xf32>
    %c0_5 = arith.constant 0 : index
    %c0_6 = arith.constant 0 : index
    %6 = vector.load %arg4[%c0_5, %c0_6] : memref<128x128xf32, #tpu.memory_space<vmem>>, vector<128x128xf32>
    tpu.vector_store %arg4[%c0_5, %c0_6], %5 {strides = array<i32>} : memref<128x128xf32, #tpu.memory_space<vmem>>, vector<128x128xf32>,
    return
  }
  func.func @transform_0(%arg0: i32) -> (i32, i32) {
    %c0_i32 = arith.constant 0 : i32
    %c0_i32_0 = arith.constant 0 : i32
    return %arg0, %c0_i32 : i32, i32
  }
  func.func @transform_1(%arg0: i32) -> (i32, i32) {
    %c0_i32 = arith.constant 0 : i32
    %c0_i32_0 = arith.constant 0 : i32
    %c0_i32_1 = arith.constant 0 : i32
    return %c0_i32, %c0_i32_0 : i32, i32
  }
  func.func @transform_2(%arg0: i32) -> (i32, i32) {
    %c0_i32 = arith.constant 0 : i32
    %c0_i32_0 = arith.constant 0 : i32
    %c0_i32_1 = arith.constant 0 : i32
    return %c0_i32, %c0_i32_0 : i32, i32
  }
  func.func @transform_3(%arg0: i32) -> (i32, i32) {
    %c0_i32 = arith.constant 0 : i32
    %c0_i32_0 = arith.constant 0 : i32
    return %arg0, %c0_i32 : i32, i32
  }
}

</mosaic_0001>

<bundles_post_ra>
// kernel: mobile_posnet_forward.17
= control target key start
LH: loop header
LB: loop body
LE: loop exit
PB: predicated region body
PF: predicated region fallthrough
CT: control target
= control target key end

     0   :  { %s700_s1 = inlined_call_operand.vmem [shape: bf16[128,128], index: 1, kind: input, shape index: {}]   ;;  %s701_s0 = inlined_call_operand.vmem [shape: bf16[128,128], index: 0, kind: input, shape index: {}]   ;;  %s702_s2 = inlined_call_operand.vmem [shape: f32[1,128], index: 2, kind: input, shape index: {}]   ;;  %s703_s3 = inlined_call_operand.vmem [shape: bf16[128,128], index: 3, kind: output, shape index: {}]  }
   0x1   :  { %v571_v0 = vld [vmem:[%s700_s1] sm:$0xff]   ;;  %v572_v1 = vld [vmem:[%s700_s1 + $0x8] sm:$0xff]   ;;  %v573_v2 = vld [vmem:[%s700_s1 + $0x10] sm:$0xff]  }
   0x2   :  { %523 = vmatprep.subr.bf16.mxu0 %v571_v0  ;;  %555 = vmatprep.subr.bf16.mxu1 %v571_v0  ;;  %v574_v3 = vld [vmem:[%s700_s1 + $0x18] sm:$0xff]   ;;  %v579_v4 = vld [vmem:[%s701_s0] sm:$0xff]   ;;  %v576_v7 = vld [vmem:[%s700_s1 + $0x28] sm:$0xff]  }
   0x3   :  { %524 = vmatpush3.bf16.msra.mxu0 %v571_v0  ;;  %563 = vmatpush3.bf16.msra.mxu1 %v571_v0  ;;  %v580_v5 = vld [vmem:[%s701_s0 + $0x20] sm:$0xff]   ;;  %v577_v8 = vld [vmem:[%s700_s1 + $0x30] sm:$0xff]   ;;  %v578_v9 = vld [vmem:[%s700_s1 + $0x38] sm:$0xff]  }
   0x4   :  { %525 = vmatprep.subr.bf16.mxu0 %v572_v1  ;;  %556 = vmatprep.subr.bf16.mxu1 %v572_v1  ;;  %v575_v6 = vld [vmem:[%s700_s1 + $0x20] sm:$0xff]   ;;  %v581_v10 = vld [vmem:[%s701_s0 + $0x8] sm:$0xff]   ;;  %v583_v12 = vld [vmem:[%s701_s0 + $0x10] sm:$0xff]  }
   0x5   :  { %539 = vmatprep.mubr.bf16.mxu0 %v579_v4  ;;  %547 = vmatprep.mubr.bf16.mxu1 %v580_v5  ;;  %v582_v11 = vld [vmem:[%s701_s0 + $0x28] sm:$0xff]   ;;  %v584_v13 = vld [vmem:[%s701_s0 + $0x30] sm:$0xff]   ;;  %v585_v14 = vld [vmem:[%s701_s0 + $0x18] sm:$0xff]  }
   0x6   :  { %v586_v15 = vld [vmem:[%s701_s0 + $0x38] sm:$0xff]   ;;  %v658_v16 = vld [vmem:[%s702_s2] ss:$0 sm:$0xff] }
   0x7   :  { %526 = vmatpush3.bf16.msra.mxu0 %v572_v1  ;;  %564 = vmatpush3.bf16.msra.mxu1 %v572_v1 }
   0x8   :  { %527 = vmatprep.subr.bf16.mxu0 %v573_v2  ;;  %557 = vmatprep.subr.bf16.mxu1 %v573_v2 }
   0xb   :  { %528 = vmatpush3.bf16.msra.mxu0 %v573_v2  ;;  %565 = vmatpush3.bf16.msra.mxu1 %v573_v2 }
   0xc   :  { %529 = vmatprep.subr.bf16.mxu0 %v574_v3  ;;  %558 = vmatprep.subr.bf16.mxu1 %v574_v3 }
   0xf   :  { %530 = vmatpush3.bf16.msra.mxu0 %v574_v3  ;;  %566 = vmatpush3.bf16.msra.mxu1 %v574_v3 }
  0x10   :  { %531 = vmatprep.subr.bf16.mxu0 %v575_v6  ;;  %559 = vmatprep.subr.bf16.mxu1 %v575_v6 }
  0x13   :  { %532 = vmatpush3.bf16.msra.mxu0 %v575_v6  ;;  %567 = vmatpush3.bf16.msra.mxu1 %v575_v6 }
  0x14   :  { %533 = vmatprep.subr.bf16.mxu0 %v576_v7  ;;  %560 = vmatprep.subr.bf16.mxu1 %v576_v7 }
  0x17   :  { %534 = vmatpush3.bf16.msra.mxu0 %v576_v7  ;;  %568 = vmatpush3.bf16.msra.mxu1 %v576_v7 }
  0x18   :  { %535 = vmatprep.subr.bf16.mxu0 %v577_v8  ;;  %561 = vmatprep.subr.bf16.mxu1 %v577_v8 }
  0x1b   :  { %536 = vmatpush3.bf16.msra.mxu0 %v577_v8  ;;  %569 = vmatpush3.bf16.msra.mxu1 %v577_v8 }
  0x1c   :  { %537 = vmatprep.subr.bf16.mxu0 %v578_v9  ;;  %562 = vmatprep.subr.bf16.mxu1 %v578_v9 }
  0x1f   :  { %538 = vmatpush3.bf16.msra.mxu0 %v578_v9  ;;  %570 = vmatpush3.bf16.msra.mxu1 %v578_v9 }
  0x22   :  { %540 = vmatmul.mubr.bf16.vlgmr.msra.gmra.mrb[0].mxu0 %v581_v10  ;;  %548 = vmatmul.mubr.bf16.vlgmr.msra.gmra.mrb[0].mxu1 %v582_v11 }
  0x23   :  { %543 = vmatprep.mubr.bf16.mxu0 %v583_v12  ;;  %551 = vmatprep.mubr.bf16.mxu1 %v584_v13 }
  0x2a   :  { %544 = vmatmul.mubr.bf16.gmra.mrb[4].mxu0 %v585_v14  ;;  %552 = vmatmul.mubr.bf16.gmra.mrb[4].mxu1 %v586_v15 }
  0xf5   :  { %v541_v17 = vpop.f32.mrb[0].mxu0  ;;  %v549_v18 = vpop.f32.mrb[0].mxu1 }
  0xf6   :  { %v193_v19 = vadd.f32 %v541_v17, %v658_v16  ;;  %v225_v20 = vadd.f32 %v549_v18, %v658_v16  ;;  %v184_v21 = vpop.f32.mrb[1].mxu0  ;;  %v216_v22 = vpop.f32.mrb[1].mxu1 }
  0xf7   :  { %v185_v23 = vadd.f32 %v658_v16, %v184_v21  ;;  %v217_v24 = vadd.f32 %v658_v16, %v216_v22  ;;  %v542_v25 = vpop.f32.mrb[2].mxu0  ;;  %v550_v26 = vpop.f32.mrb[2].mxu1 }
  0xf8   :  { %v249_v27 = vadd.f32 3.0, %v193_v19  ;;  %v257_v28 = vadd.f32 3.0, %v225_v20  ;;  %v196_v29 = vadd.f32 %v542_v25, %v658_v16  ;;  %v228_v30 = vadd.f32 %v550_v26, %v658_v16  ;;  %v187_v31 = vpop.f32.mrb[3].mxu0  ;;  %v219_v32 = vpop.f32.mrb[3].mxu1 }
  0xf9   :  { %v247_v33 = vadd.f32 3.0, %v185_v23  ;;  %v255_v34 = vadd.f32 3.0, %v217_v24  ;;  %v188_v35 = vadd.f32 %v658_v16, %v187_v31  ;;  %v220_v36 = vadd.f32 %v658_v16, %v219_v32 }
  0xfa   :  { %v265_v37 = vmax.f32 %v249_v27, 0.0  ;;  %v273_v38 = vmax.f32 %v257_v28, 0.0  ;;  %v250_v39 = vadd.f32 3.0, %v196_v29  ;;  %v258_v40 = vadd.f32 3.0, %v228_v30 }
  0xfb   :  { %v263_v41 = vmax.f32 %v247_v33, 0.0  ;;  %v271_v42 = vmax.f32 %v255_v34, 0.0  ;;  %v248_v43 = vadd.f32 3.0, %v188_v35  ;;  %v256_v44 = vadd.f32 3.0, %v220_v36 }
  0xfc   :  { %v281_v45 = vmin.f32 %v265_v37, 6.0  ;;  %v289_v46 = vmin.f32 %v273_v38, 6.0  ;;  %v266_v47 = vmax.f32 %v250_v39, 0.0  ;;  %v274_v48 = vmax.f32 %v258_v40, 0.0 }
  0xfd   :  { %v279_v49 = vmin.f32 %v263_v41, 6.0  ;;  %v287_v50 = vmin.f32 %v271_v42, 6.0  ;;  %v264_v51 = vmax.f32 %v248_v43, 0.0  ;;  %v272_v52 = vmax.f32 %v256_v44, 0.0  ;;  %v545_v53 = vpop.f32.mrb[4].mxu0  ;;  %v553_v54 = vpop.f32.mrb[4].mxu1 }
  0xfe   :  { %v297_v55 = vmul.f32 %v281_v45, %v193_v19  ;;  %v305_v56 = vmul.f32 %v289_v46, %v225_v20  ;;  %v282_v57 = vmin.f32 %v266_v47, 6.0  ;;  %v290_v58 = vmin.f32 %v274_v48, 6.0  ;;  %v200_v59 = vpop.f32.mrb[5].mxu0  ;;  %v232_v60 = vpop.f32.mrb[5].mxu1 }
  0xff   :  { %v295_v61 = vmul.f32 %v279_v49, %v185_v23  ;;  %v303_v62 = vmul.f32 %v287_v50, %v217_v24  ;;  %v280_v63 = vmin.f32 %v264_v51, 6.0  ;;  %v288_v0 = vmin.f32 %v272_v52, 6.0  ;;  %v546_v1 = vpop.f32.mrb[6].mxu0  ;;  %v554_v2 = vpop.f32.mrb[6].mxu1 }
 0x100   :  { %v313_v3 = vmul.f32 0.16666667, %v297_v55  ;;  %v321_v4 = vmul.f32 0.16666667, %v305_v56  ;;  %v298_v5 = vmul.f32 %v282_v57, %v196_v29  ;;  %v306_v6 = vmul.f32 %v290_v58, %v228_v30  ;;  %v203_v7 = vpop.f32.mrb[7].mxu0  ;;  %v235_v8 = vpop.f32.mrb[7].mxu1 }
 0x101   :  { %v311_v9 = vmul.f32 0.16666667, %v295_v61  ;;  %v319_v10 = vmul.f32 0.16666667, %v303_v62  ;;  %v296_v11 = vmul.f32 %v280_v63, %v188_v35  ;;  %v304_v12 = vmul.f32 %v288_v0, %v220_v36 }
 0x102   :  { %v314_v13 = vmul.f32 0.16666667, %v298_v5  ;;  %v322_v14 = vmul.f32 0.16666667, %v306_v6  ;;  %v209_v15 = vadd.f32 %v545_v53, %v658_v16  ;;  %v241_v17 = vadd.f32 %v553_v54, %v658_v16 }
 0x103   :  { %v312_v18 = vmul.f32 0.16666667, %v296_v11  ;;  %v320_v19 = vmul.f32 0.16666667, %v304_v12  ;;  %v201_v20 = vadd.f32 %v658_v16, %v200_v59  ;;  %v233_v21 = vadd.f32 %v658_v16, %v232_v60 }
 0x104   :  { %v468_v22 = vpack.c.bf16 %v314_v13, %v313_v3  ;;  %v488_v23 = vpack.c.bf16 %v322_v14, %v321_v4  ;;  %v253_v24 = vadd.f32 3.0, %v209_v15  ;;  %v261_v25 = vadd.f32 3.0, %v241_v17 }
 0x105   :  { %v463_v26 = vpack.c.bf16 %v312_v18, %v311_v9  ;;  %v483_v27 = vpack.c.bf16 %v320_v19, %v319_v10  ;;  %v251_v28 = vadd.f32 3.0, %v201_v20  ;;  %v259_v29 = vadd.f32 3.0, %v233_v21 }
 0x106   :  { %500 = vst [vmem:[%s703_s3 + $0x8] sm:$0xff] %v468_v22   ;;  %504 = vst [vmem:[%s703_s3 + $0x28] sm:$0xff] %v488_v23   ;;  %v269_v30 = vmax.f32 %v253_v24, 0.0  ;;  %v277_v31 = vmax.f32 %v261_v25, 0.0  ;;  %v212_v32 = vadd.f32 %v546_v1, %v658_v16  ;;  %v244_v33 = vadd.f32 %v554_v2, %v658_v16 }
 0x107   :  { %464 = vst [vmem:[%s703_s3] sm:$0xff] %v463_v26   ;;  %503 = vst [vmem:[%s703_s3 + $0x20] sm:$0xff] %v483_v27   ;;  %v267_v34 = vmax.f32 %v251_v28, 0.0  ;;  %v275_v35 = vmax.f32 %v259_v29, 0.0  ;;  %v204_v36 = vadd.f32 %v658_v16, %v203_v7  ;;  %v236_v37 = vadd.f32 %v658_v16, %v235_v8 }
 0x108   :  { %v285_v38 = vmin.f32 %v269_v30, 6.0  ;;  %v293_v39 = vmin.f32 %v277_v31, 6.0  ;;  %v254_v40 = vadd.f32 3.0, %v212_v32  ;;  %v262_v41 = vadd.f32 3.0, %v244_v33 }
 0x109   :  { %v283_v42 = vmin.f32 %v267_v34, 6.0  ;;  %v291_v43 = vmin.f32 %v275_v35, 6.0  ;;  %v252_v44 = vadd.f32 3.0, %v204_v36  ;;  %v260_v45 = vadd.f32 3.0, %v236_v37 }
 0x10a   :  { %v270_v46 = vmax.f32 %v254_v40, 0.0  ;;  %v278_v47 = vmax.f32 %v262_v41, 0.0  ;;  %v301_v48 = vmul.f32 %v285_v38, %v209_v15  ;;  %v309_v49 = vmul.f32 %v293_v39, %v241_v17 }
 0x10b   :  { %v268_v50 = vmax.f32 %v252_v44, 0.0  ;;  %v276_v51 = vmax.f32 %v260_v45, 0.0  ;;  %v299_v52 = vmul.f32 %v283_v42, %v201_v20  ;;  %v307_v55 = vmul.f32 %v291_v43, %v233_v21 }
 0x10c   :  { %v286_v53 = vmin.f32 %v270_v46, 6.0  ;;  %v294_v54 = vmin.f32 %v278_v47, 6.0  ;;  %v317_v59 = vmul.f32 0.16666667, %v301_v48  ;;  %v325_v60 = vmul.f32 0.16666667, %v309_v49 }
 0x10d   :  { %v284_v56 = vmin.f32 %v268_v50, 6.0  ;;  %v292_v16 = vmin.f32 %v276_v51, 6.0  ;;  %v315_v63 = vmul.f32 0.16666667, %v299_v52  ;;  %v323_v2 = vmul.f32 0.16666667, %v307_v55 }
 0x10e   :  { %v302_v57 = vmul.f32 %v286_v53, %v212_v32  ;;  %v310_v58 = vmul.f32 %v294_v54, %v244_v33 }
 0x10f   :  { %v300_v61 = vmul.f32 %v284_v56, %v204_v36  ;;  %v308_v62 = vmul.f32 %v292_v16, %v236_v37 }
 0x110   :  { %v318_v0 = vmul.f32 0.16666667, %v302_v57  ;;  %v326_v1 = vmul.f32 0.16666667, %v310_v58 }
 0x111   :  { %v316_v3 = vmul.f32 0.16666667, %v300_v61  ;;  %v324_v4 = vmul.f32 0.16666667, %v308_v62 }
 0x112   :  { %v478_v5 = vpack.c.bf16 %v318_v0, %v317_v59  ;;  %v498_v6 = vpack.c.bf16 %v326_v1, %v325_v60 }
 0x113   :  { %v473_v7 = vpack.c.bf16 %v316_v3, %v315_v63  ;;  %v493_v8 = vpack.c.bf16 %v324_v4, %v323_v2 }
 0x114   :  { %502 = vst [vmem:[%s703_s3 + $0x18] sm:$0xff] %v478_v5   ;;  %506 = vst [vmem:[%s703_s3 + $0x38] sm:$0xff] %v498_v6  }
 0x115   :  { %501 = vst [vmem:[%s703_s3 + $0x10] sm:$0xff] %v473_v7   ;;  %505 = vst [vmem:[%s703_s3 + $0x30] sm:$0xff] %v493_v8  }

// kernel: mobile_posnet_forward.16
= control target key start
LH: loop header
LB: loop body
LE: loop exit
PB: predicated region body
PF: predicated region fallthrough
CT: control target
= control target key end

     0   :  { %s2999_s1 = inlined_call_operand.vmem [shape: bf16[1152,128], index: 1, kind: input, shape index: {}]   ;;  %s3000_s0 = inlined_call_operand.vmem [shape: bf16[128,1152], index: 0, kind: input, shape index: {}]   ;;  %s3001_s2 = inlined_call_operand.vmem [shape: f32[1,128], index: 2, kind: input, shape index: {}]   ;;  %s3002_s3 = inlined_call_operand.vmem [shape: bf16[128,128], index: 3, kind: output, shape index: {}]  }
   0x1   :  { %v2239_v0 = vld [vmem:[%s2999_s1 + $0x40] sm:$0xff]   ;;  %v2243_v4 = vld [vmem:[%s2999_s1 + $0x48] sm:$0xff]   ;;  %v2247_v8 = vld [vmem:[%s2999_s1 + $0x50] sm:$0xff]  }
   0x2   :  { %v2240_v1 = vld [vmem:[%s2999_s1 + $0xc0] sm:$0xff]   ;;  %1919 = vmatprep.subr.bf16.mxu0 %v2239_v0  ;;  %v2244_v5 = vld [vmem:[%s2999_s1 + $0xc8] sm:$0xff]   ;;  %v2248_v9 = vld [vmem:[%s2999_s1 + $0xd0] sm:$0xff]  }
   0x3   :  { %v2241_v2 = vld [vmem:[%s2999_s1] sm:$0xff]   ;;  %1983 = vmatprep.subr.bf16.mxu1 %v2240_v1  ;;  %v2245_v6 = vld [vmem:[%s2999_s1 + $0x8] sm:$0xff]   ;;  %v2249_v10 = vld [vmem:[%s2999_s1 + $0x10] sm:$0xff]  }
   0x4   :  { %v2242_v3 = vld [vmem:[%s2999_s1 + $0x80] sm:$0xff]   ;;  %1920 = vmatpush3.bf16.msra.mxu0 %v2241_v2  ;;  %v2246_v7 = vld [vmem:[%s2999_s1 + $0x88] sm:$0xff]   ;;  %v2250_v11 = vld [vmem:[%s2999_s1 + $0x90] sm:$0xff]  }
   0x5   :  { %1984 = vmatpush3.bf16.msra.mxu1 %v2242_v3  ;;  %1921 = vmatprep.subr.bf16.mxu0 %v2243_v4  ;;  %v2251_v12 = vld [vmem:[%s2999_s1 + $0x58] sm:$0xff]   ;;  %v2255_v16 = vld [vmem:[%s2999_s1 + $0x60] sm:$0xff]   ;;  %v2259_v20 = vld [vmem:[%s2999_s1 + $0x68] sm:$0xff]  }
   0x6   :  { %1985 = vmatprep.subr.bf16.mxu1 %v2244_v5  ;;  %v2252_v13 = vld [vmem:[%s2999_s1 + $0xd8] sm:$0xff]   ;;  %v2256_v17 = vld [vmem:[%s2999_s1 + $0xe0] sm:$0xff]   ;;  %v2260_v21 = vld [vmem:[%s2999_s1 + $0xe8] sm:$0xff]  }
   0x7   :  { %v2253_v14 = vld [vmem:[%s2999_s1 + $0x18] sm:$0xff]   ;;  %v2257_v18 = vld [vmem:[%s2999_s1 + $0x20] sm:$0xff]   ;;  %v2261_v22 = vld [vmem:[%s2999_s1 + $0x28] sm:$0xff]  }
   0x8   :  { %1922 = vmatpush3.bf16.msra.mxu0 %v2245_v6  ;;  %v2254_v15 = vld [vmem:[%s2999_s1 + $0x98] sm:$0xff]   ;;  %v2258_v19 = vld [vmem:[%s2999_s1 + $0xa0] sm:$0xff]   ;;  %v2262_v23 = vld [vmem:[%s2999_s1 + $0xa8] sm:$0xff]  }
   0x9   :  { %1986 = vmatpush3.bf16.msra.mxu1 %v2246_v7  ;;  %1923 = vmatprep.subr.bf16.mxu0 %v2247_v8  ;;  %v2263_v24 = vld [vmem:[%s2999_s1 + $0x70] sm:$0xff]   ;;  %v2267_v28 = vld [vmem:[%s2999_s1 + $0x78] sm:$0xff]   ;;  %v2271_v32 = vld [vmem:[%s3000_s0] ss:$36 sps:$4 sm:$0xff]  }
   0xa   :  { %1987 = vmatprep.subr.bf16.mxu1 %v2248_v9  ;;  %v2264_v25 = vld [vmem:[%s2999_s1 + $0xf0] sm:$0xff]   ;;  %v2268_v29 = vld [vmem:[%s2999_s1 + $0xf8] sm:$0xff]   ;;  %v2273_v33 = vld [vmem:[%s3000_s0 + $0x4] ss:$36 sps:$4 sm:$0xff]  }
   0xb   :  { %v2265_v26 = vld [vmem:[%s2999_s1 + $0x30] sm:$0xff]   ;;  %v2269_v30 = vld [vmem:[%s2999_s1 + $0x38] sm:$0xff]   ;;  %v2274_v34 = vld [vmem:[%s3000_s0 + $0x8] ss:$36 sps:$4 sm:$0xff]   ;;  %1078 = vmatprep.mubr.bf16.mxu0 %v2273_v33 }
   0xc   :  { %1924 = vmatpush3.bf16.msra.mxu0 %v2249_v10  ;;  %v2266_v27 = vld [vmem:[%s2999_s1 + $0xb0] sm:$0xff]   ;;  %v2270_v31 = vld [vmem:[%s2999_s1 + $0xb8] sm:$0xff]   ;;  %v2277_v36 = vld [vmem:[%s2999_s1 + $0x140] sm:$0xff]  }
   0xd   :  { %1988 = vmatpush3.bf16.msra.mxu1 %v2250_v11  ;;  %1925 = vmatprep.subr.bf16.mxu0 %v2251_v12  ;;  %v2276_v35 = vld [vmem:[%s3000_s0 + $0xc] ss:$36 sps:$4 sm:$0xff]   ;;  %v2278_v37 = vld [vmem:[%s2999_s1 + $0x1c0] sm:$0xff]   ;;  %v2283_v41 = vld [vmem:[%s3000_s0 + $0x54] ss:$36 sps:$4 sm:$0xff]  }
   0xe   :  { %1989 = vmatprep.subr.bf16.mxu1 %v2252_v13  ;;  %1175 = vmatprep.mubr.bf16.mxu1 %v2276_v35  ;;  %v2279_v38 = vld [vmem:[%s2999_s1 + $0x100] sm:$0xff]   ;;  %v2281_v40 = vld [vmem:[%s3000_s0 + $0x4c] ss:$36 sps:$4 sm:$0xff]   ;;  %v2291_v48 = vld [vmem:[%s3000_s0 + $0x94] ss:$36 sps:$4 sm:$0xff]  }
   0xf   :  { %v2280_v39 = vld [vmem:[%s2999_s1 + $0x180] sm:$0xff]   ;;  %v2285_v42 = vld [vmem:[%s3000_s0 + $0x48] ss:$36 sps:$4 sm:$0xff]   ;;  %v2286_v43 = vld [vmem:[%s3000_s0 + $0x50] ss:$36 sps:$4 sm:$0xff]  }
  0x10   :  { %1926 = vmatpush3.bf16.msra.mxu0 %v2253_v14  ;;  %v2287_v44 = vld [vmem:[%s2999_s1 + $0x148] sm:$0xff]   ;;  %v2293_v49 = vld [vmem:[%s3000_s0 + $0x9c] ss:$36 sps:$4 sm:$0xff]   ;;  %v2295_v50 = vld [vmem:[%s3000_s0 + $0x90] ss:$36 sps:$4 sm:$0xff]  }
  0x11   :  { %1990 = vmatpush3.bf16.msra.mxu1 %v2254_v15  ;;  %1927 = vmatprep.subr.bf16.mxu0 %v2255_v16  ;;  %v2288_v45 = vld [vmem:[%s2999_s1 + $0x1c8] sm:$0xff]   ;;  %v2296_v51 = vld [vmem:[%s3000_s0 + $0x98] ss:$36 sps:$4 sm:$0xff]   ;;  %v2297_v52 = vld [vmem:[%s2999_s1 + $0x150] sm:$0xff]  }
  0x12   :  { %1991 = vmatprep.subr.bf16.mxu1 %v2256_v17  ;;  %v2289_v46 = vld [vmem:[%s2999_s1 + $0x108] sm:$0xff]   ;;  %v2298_v53 = vld [vmem:[%s2999_s1 + $0x1d0] sm:$0xff]   ;;  %v2301_v56 = vld [vmem:[%s3000_s0 + $0xdc] ss:$36 sps:$4 sm:$0xff]  }
  0x13   :  { %v2290_v47 = vld [vmem:[%s2999_s1 + $0x188] sm:$0xff]   ;;  %v2299_v54 = vld [vmem:[%s2999_s1 + $0x110] sm:$0xff]   ;;  %v2305_v58 = vld [vmem:[%s3000_s0 + $0xd8] ss:$36 sps:$4 sm:$0xff]  }
  0x14   :  { %1928 = vmatpush3.bf16.msra.mxu0 %v2257_v18  ;;  %v2300_v55 = vld [vmem:[%s2999_s1 + $0x190] sm:$0xff]   ;;  %v2303_v57 = vld [vmem:[%s3000_s0 + $0xe4] ss:$36 sps:$4 sm:$0xff]   ;;  %v2307_v60 = vld [vmem:[%s2999_s1 + $0x158] sm:$0xff]  }
  0x15   :  { %1992 = vmatpush3.bf16.msra.mxu1 %v2258_v19  ;;  %1929 = vmatprep.subr.bf16.mxu0 %v2259_v20  ;;  %v2306_v59 = vld [vmem:[%s3000_s0 + $0xe0] ss:$36 sps:$4 sm:$0xff]   ;;  %v2308_v61 = vld [vmem:[%s2999_s1 + $0x1d8] sm:$0xff]   ;;  %v2313_v1 = vld [vmem:[%s3000_s0 + $0x12c] ss:$36 sps:$4 sm:$0xff]  }
  0x16   :  { %1993 = vmatprep.subr.bf16.mxu1 %v2260_v21  ;;  %v2309_v62 = vld [vmem:[%s2999_s1 + $0x118] sm:$0xff]   ;;  %v2311_v0 = vld [vmem:[%s3000_s0 + $0x124] ss:$36 sps:$4 sm:$0xff]   ;;  %v2321_v8 = vld [vmem:[%s3000_s0 + $0x16c] ss:$36 sps:$4 sm:$0xff]  }
  0x17   :  { %v2310_v63 = vld [vmem:[%s2999_s1 + $0x198] sm:$0xff]   ;;  %v2315_v2 = vld [vmem:[%s3000_s0 + $0x120] ss:$36 sps:$4 sm:$0xff]   ;;  %v2316_v4 = vld [vmem:[%s3000_s0 + $0x128] ss:$36 sps:$4 sm:$0xff]  }
  0x18   :  { %1930 = vmatpush3.bf16.msra.mxu0 %v2261_v22  ;;  %v2317_v3 = vld [vmem:[%s2999_s1 + $0x160] sm:$0xff]   ;;  %v2323_v9 = vld [vmem:[%s3000_s0 + $0x174] ss:$36 sps:$4 sm:$0xff]   ;;  %v2327_v10 = vld [vmem:[%s2999_s1 + $0x168] sm:$0xff]  }
  0x19   :  { %1994 = vmatpush3.bf16.msra.mxu1 %v2262_v23  ;;  %1931 = vmatprep.subr.bf16.mxu0 %v2263_v24  ;;  %v2318_v5 = vld [vmem:[%s2999_s1 + $0x1e0] sm:$0xff]   ;;  %v2328_v11 = vld [vmem:[%s2999_s1 + $0x1e8] sm:$0xff]   ;;  %v2326_v15 = vld [vmem:[%s3000_s0 + $0x170] ss:$36 sps:$4 sm:$0xff]  }
  0x1a   :  { %1995 = vmatprep.subr.bf16.mxu1 %v2264_v25  ;;  %v2319_v6 = vld [vmem:[%s2999_s1 + $0x120] sm:$0xff]   ;;  %v2325_v12 = vld [vmem:[%s3000_s0 + $0x168] ss:$36 sps:$4 sm:$0xff]   ;;  %v2331_v16 = vld [vmem:[%s3000_s0 + $0x1b4] ss:$36 sps:$4 sm:$0xff]  }
  0x1b   :  { %v2320_v7 = vld [vmem:[%s2999_s1 + $0x1a0] sm:$0xff]   ;;  %v2329_v13 = vld [vmem:[%s2999_s1 + $0x128] sm:$0xff]   ;;  %v2337_v18 = vld [vmem:[%s2999_s1 + $0x170] sm:$0xff]  }
  0x1c   :  { %1932 = vmatpush3.bf16.msra.mxu0 %v2265_v26  ;;  %v2330_v14 = vld [vmem:[%s2999_s1 + $0x1a8] sm:$0xff]   ;;  %v2333_v17 = vld [vmem:[%s3000_s0 + $0x1bc] ss:$36 sps:$4 sm:$0xff]   ;;  %v2338_v19 = vld [vmem:[%s2999_s1 + $0x1f0] sm:$0xff]  }
  0x1d   :  { %1996 = vmatpush3.bf16.msra.mxu1 %v2266_v27  ;;  %1933 = vmatprep.subr.bf16.mxu0 %v2267_v28  ;;  %v2339_v20 = vld [vmem:[%s2999_s1 + $0x130] sm:$0xff]   ;;  %v2336_v23 = vld [vmem:[%s3000_s0 + $0x1b8] ss:$36 sps:$4 sm:$0xff]   ;;  %v2343_v25 = vld [vmem:[%s3000_s0 + $0x204] ss:$36 sps:$4 sm:$0xff]  }
  0x1e   :  { %1997 = vmatprep.subr.bf16.mxu1 %v2268_v29  ;;  %v2340_v21 = vld [vmem:[%s2999_s1 + $0x1b0] sm:$0xff]   ;;  %v2341_v24 = vld [vmem:[%s3000_s0 + $0x1fc] ss:$36 sps:$4 sm:$0xff]  }
  0x1f   :  { %v2335_v22 = vld [vmem:[%s3000_s0 + $0x1b0] ss:$36 sps:$4 sm:$0xff]   ;;  %v2347_v26 = vld [vmem:[%s2999_s1 + $0x178] sm:$0xff]  }
  0x20   :  { %1934 = vmatpush3.bf16.msra.mxu0 %v2269_v30  ;;  %v2348_v27 = vld [vmem:[%s2999_s1 + $0x1f8] sm:$0xff]   ;;  %v2351_v35 = vld [vmem:[%s3000_s0 + $0x10] ss:$36 sps:$4 sm:$0xff]  }
  0x21   :  { %1998 = vmatpush3.bf16.msra.mxu1 %v2270_v31  ;;  %2047 = vmatprep.subr.bf16.mxu0 %v2277_v36  ;;  %v2349_v28 = vld [vmem:[%s2999_s1 + $0x138] sm:$0xff]   ;;  %v2346_v31 = vld [vmem:[%s3000_s0 + $0x200] ss:$36 sps:$4 sm:$0xff]  }
  0x22   :  { %2111 = vmatprep.subr.bf16.mxu1 %v2278_v37  ;;  %v2350_v29 = vld [vmem:[%s2999_s1 + $0x1b8] sm:$0xff]  }
  0x23   :  { %1079 = vmatmul.mubr.bf16.vlgmr.msra.gmra.mrb[0].mxu0 %v2271_v32  ;;  %v2345_v30 = vld [vmem:[%s3000_s0 + $0x1f8] ss:$36 sps:$4 sm:$0xff]   ;;  %v2357_v32 = vld [vmem:[%s2999_s1 + $0x200] sm:$0xff]  }
  0x24   :  { %1176 = vmatmul.mubr.bf16.vlgmr.msra.gmra.mrb[0].mxu1 %v2274_v34  ;;  %2048 = vmatpush3.bf16.msra.mxu0 %v2279_v38  ;;  %v2353_v33 = vld [vmem:[%s3000_s0 + $0x14] ss:$36 sps:$4 sm:$0xff]   ;;  %v2356_v34 = vld [vmem:[%s3000_s0 + $0x1c] ss:$36 sps:$4 sm:$0xff]   ;;  %v2360_v38 = vld [vmem:[%s3000_s0 + $0x64] ss:$36 sps:$4 sm:$0xff]  }
  0x25   :  { %2112 = vmatpush3.bf16.msra.mxu1 %v2280_v39  ;;  %1086 = vmatprep.mubr.bf16.mxu0 %v2281_v40  ;;  %v2354_v36 = vld [vmem:[%s3000_s0 + $0x18] ss:$36 sps:$4 sm:$0xff]   ;;  %v2364_v39 = vld [vmem:[%s2999_s1 + $0x208] sm:$0xff]   ;;  %v2371_v40 = vld [vmem:[%s2999_s1 + $0x210] sm:$0xff]  }
  0x26   :  { %1183 = vmatprep.mubr.bf16.mxu1 %v2283_v41  ;;  %2049 = vmatprep.subr.bf16.mxu0 %v2287_v44  ;;  %v2358_v37 = vld [vmem:[%s3000_s0 + $0x5c] ss:$36 sps:$4 sm:$0xff]   ;;  %v2367_v44 = vld [vmem:[%s3000_s0 + $0xac] ss:$36 sps:$4 sm:$0xff]  }
  0x27   :  { %2113 = vmatprep.subr.bf16.mxu1 %v2288_v45  ;;  %v2362_v41 = vld [vmem:[%s3000_s0 + $0x58] ss:$36 sps:$4 sm:$0xff]  }
  0x28   :  { %2050 = vmatpush3.bf16.msra.mxu0 %v2289_v46  ;;  %v2378_v45 = vld [vmem:[%s2999_s1 + $0x218] sm:$0xff]   ;;  %v2385_v46 = vld [vmem:[%s2999_s1 + $0x220] sm:$0xff]  }
  0x29   :  { %2114 = vmatpush3.bf16.msra.mxu1 %v2290_v47  ;;  %2051 = vmatprep.subr.bf16.mxu0 %v2297_v52  ;;  %v2369_v47 = vld [vmem:[%s3000_s0 + $0xa0] ss:$36 sps:$4 sm:$0xff]   ;;  %v2376_v52 = vld [vmem:[%s3000_s0 + $0xe8] ss:$36 sps:$4 sm:$0xff]  }
  0x2a   :  { %2115 = vmatprep.subr.bf16.mxu1 %v2298_v53  ;;  %v2399_v53 = vld [vmem:[%s2999_s1 + $0x230] sm:$0xff]  }
  0x2b   :  { %1087 = vmatmul.mubr.bf16.gmra.mrb[4].mxu0 %v2285_v42  ;;  %v2363_v42 = vld [vmem:[%s3000_s0 + $0x60] ss:$36 sps:$4 sm:$0xff]  }
  0x2c   :  { %1184 = vmatmul.mubr.bf16.gmra.mrb[4].mxu1 %v2286_v43  ;;  %1094 = vmatprep.mubr.bf16.mxu0 %v2291_v48  ;;  %v2365_v43 = vld [vmem:[%s3000_s0 + $0xa4] ss:$36 sps:$4 sm:$0xff]  }
  0x2d   :  { %1191 = vmatprep.mubr.bf16.mxu1 %v2293_v49  ;;  %2052 = vmatpush3.bf16.msra.mxu0 %v2299_v54  ;;  %v2370_v48 = vld [vmem:[%s3000_s0 + $0xa8] ss:$36 sps:$4 sm:$0xff]   ;;  %v2377_v54 = vld [vmem:[%s3000_s0 + $0xf0] ss:$36 sps:$4 sm:$0xff]  }
  0x2e   :  { %2116 = vmatpush3.bf16.msra.mxu1 %v2300_v55  ;;  %2053 = vmatprep.subr.bf16.mxu0 %v2307_v60  ;;  %v2372_v49 = vld [vmem:[%s3000_s0 + $0xec] ss:$36 sps:$4 sm:$0xff]   ;;  %v2379_v55 = vld [vmem:[%s3000_s0 + $0x134] ss:$36 sps:$4 sm:$0xff]   ;;  %v2386_v60 = vld [vmem:[%s3000_s0 + $0x17c] ss:$36 sps:$4 sm:$0xff]  }
  0x2f   :  { %2117 = vmatprep.subr.bf16.mxu1 %v2308_v61  ;;  %v2388_v61 = vld [vmem:[%s3000_s0 + $0x184] ss:$36 sps:$4 sm:$0xff]  }
  0x31   :  { %2054 = vmatpush3.bf16.msra.mxu0 %v2309_v62  ;;  %v2390_v62 = vld [vmem:[%s3000_s0 + $0x178] ss:$36 sps:$4 sm:$0xff]  }
  0x32   :  { %2118 = vmatpush3.bf16.msra.mxu1 %v2310_v63  ;;  %2055 = vmatprep.subr.bf16.mxu0 %v2317_v3  ;;  %v2391_v63 = vld [vmem:[%s3000_s0 + $0x180] ss:$36 sps:$4 sm:$0xff]   ;;  %v2398_v3 = vld [vmem:[%s3000_s0 + $0x1c8] ss:$36 sps:$4 sm:$0xff]  }
  0x33   :  { %1095 = vmatmul.mubr.bf16.gmra.mrb[8].mxu0 %v2295_v50  ;;  %2119 = vmatprep.subr.bf16.mxu1 %v2318_v5  ;;  %v2374_v50 = vld [vmem:[%s3000_s0 + $0xf4] ss:$36 sps:$4 sm:$0xff]  }
  0x34   :  { %1192 = vmatmul.mubr.bf16.gmra.mrb[8].mxu1 %v2296_v51  ;;  %1102 = vmatprep.mubr.bf16.mxu0 %v2301_v56  ;;  %v2392_v51 = vld [vmem:[%s2999_s1 + $0x228] sm:$0xff]   ;;  %v2381_v56 = vld [vmem:[%s3000_s0 + $0x13c] ss:$36 sps:$4 sm:$0xff]   ;;  %v2402_v5 = vld [vmem:[%s3000_s0 + $0x214] ss:$36 sps:$4 sm:$0xff]  }
  0x35   :  { %1199 = vmatprep.mubr.bf16.mxu1 %v2303_v57  ;;  %2056 = vmatpush3.bf16.msra.mxu0 %v2319_v6  ;;  %v2406_v57 = vld [vmem:[%s2999_s1 + $0x238] sm:$0xff]   ;;  %v2404_v6 = vld [vmem:[%s3000_s0 + $0x208] ss:$36 sps:$4 sm:$0xff]  }
  0x36   :  { %2120 = vmatpush3.bf16.msra.mxu1 %v2320_v7  ;;  %2057 = vmatprep.subr.bf16.mxu0 %v2327_v10  ;;  %v2405_v7 = vld [vmem:[%s3000_s0 + $0x210] ss:$36 sps:$4 sm:$0xff]   ;;  %v2409_v10 = vld [vmem:[%s3000_s0 + $0x68] ss:$36 sps:$4 sm:$0xff]  }
  0x37   :  { %2121 = vmatprep.subr.bf16.mxu1 %v2328_v11  ;;  %v2410_v11 = vld [vmem:[%s3000_s0 + $0x188] ss:$36 sps:$4 sm:$0xff]  }
  0x39   :  { %2058 = vmatpush3.bf16.msra.mxu0 %v2329_v13  ;;  %v2412_v13 = vld [vmem:[%s3000_s0 + $0x1d0] ss:$36 sps:$4 sm:$0xff]  }
  0x3a   :  { %2122 = vmatpush3.bf16.msra.mxu1 %v2330_v14  ;;  %2059 = vmatprep.subr.bf16.mxu0 %v2337_v18  ;;  %v2413_v14 = vld [vmem:[%s3000_s0 + $0xf8] ss:$36 sps:$4 sm:$0xff]   ;;  %v2870_v18 = vld [vmem:[%s3001_s2] ss:$0 sm:$0xff] }
  0x3b   :  { %1103 = vmatmul.mubr.bf16.gmra.mrb[12].mxu0 %v2305_v58  ;;  %2123 = vmatprep.subr.bf16.mxu1 %v2338_v19  ;;  %v2383_v58 = vld [vmem:[%s3000_s0 + $0x130] ss:$36 sps:$4 sm:$0xff]  }
  0x3c   :  { %1200 = vmatmul.mubr.bf16.gmra.mrb[12].mxu1 %v2306_v59  ;;  %1110 = vmatprep.mubr.bf16.mxu0 %v2311_v0  ;;  %v2384_v59 = vld [vmem:[%s3000_s0 + $0x138] ss:$36 sps:$4 sm:$0xff]   ;;  %v2393_v0 = vld [vmem:[%s3000_s0 + $0x1c4] ss:$36 sps:$4 sm:$0xff]  }
  0x3d   :  { %1207 = vmatprep.mubr.bf16.mxu1 %v2313_v1  ;;  %2060 = vmatpush3.bf16.msra.mxu0 %v2339_v20  ;;  %v2395_v1 = vld [vmem:[%s3000_s0 + $0x1cc] ss:$36 sps:$4 sm:$0xff]  }
  0x3e   :  { %2124 = vmatpush3.bf16.msra.mxu1 %v2340_v21  ;;  %2061 = vmatprep.subr.bf16.mxu0 %v2347_v26 }
  0x3f   :  { %2125 = vmatprep.subr.bf16.mxu1 %v2348_v27 }
  0x41   :  { %2062 = vmatpush3.bf16.msra.mxu0 %v2349_v28 }
  0x42   :  { %2126 = vmatpush3.bf16.msra.mxu1 %v2350_v29  ;;  %2191 = vmatprep.subr.bf16.mxu0 %v2357_v32 }
  0x43   :  { %1111 = vmatmul.mubr.bf16.gmra.mrb[16].mxu0 %v2315_v2  ;;  %2223 = vmatprep.subr.bf16.mxu1 %v2357_v32  ;;  %v2397_v2 = vld [vmem:[%s3000_s0 + $0x1c0] ss:$36 sps:$4 sm:$0xff]  }
  0x44   :  { %1208 = vmatmul.mubr.bf16.gmra.mrb[16].mxu1 %v2316_v4  ;;  %1118 = vmatprep.mubr.bf16.mxu0 %v2321_v8  ;;  %v2400_v4 = vld [vmem:[%s3000_s0 + $0x20c] ss:$36 sps:$4 sm:$0xff]   ;;  %v2407_v8 = vld [vmem:[%s3000_s0 + $0x20] ss:$36 sps:$4 sm:$0xff]  }
  0x45   :  { %1215 = vmatprep.mubr.bf16.mxu1 %v2323_v9  ;;  %v2408_v9 = vld [vmem:[%s3000_s0 + $0x140] ss:$36 sps:$4 sm:$0xff]  }
  0x4b   :  { %1119 = vmatmul.mubr.bf16.gmra.mrb[20].mxu0 %v2325_v12  ;;  %v2411_v12 = vld [vmem:[%s3000_s0 + $0xb0] ss:$36 sps:$4 sm:$0xff]  }
  0x4c   :  { %1216 = vmatmul.mubr.bf16.gmra.mrb[20].mxu1 %v2326_v15  ;;  %1126 = vmatprep.mubr.bf16.mxu0 %v2331_v16  ;;  %v2414_v15 = vld [vmem:[%s3000_s0 + $0x218] ss:$36 sps:$4 sm:$0xff]  }
  0x4d   :  { %1223 = vmatprep.mubr.bf16.mxu1 %v2333_v17 }
  0x53   :  { %1127 = vmatmul.mubr.bf16.gmra.mrb[24].mxu0 %v2335_v22 }
  0x54   :  { %1224 = vmatmul.mubr.bf16.gmra.mrb[24].mxu1 %v2336_v23  ;;  %1134 = vmatprep.mubr.bf16.mxu0 %v2341_v24 }
  0x55   :  { %1231 = vmatprep.mubr.bf16.mxu1 %v2343_v25 }
  0x5b   :  { %1135 = vmatmul.mubr.bf16.gmra.mrb[28].mxu0 %v2345_v30 }
  0x5c   :  { %1232 = vmatmul.mubr.bf16.gmra.mrb[28].mxu1 %v2346_v31  ;;  %1272 = vmatprep.mubr.bf16.mxu0 %v2353_v33 }
  0x5d   :  { %1369 = vmatprep.mubr.bf16.mxu1 %v2356_v34 }
  0x63   :  { %1273 = vmatmul.mubr.bf16.vlgmr.msra.gmra.mrb[32].mxu0 %v2351_v35 }
  0x64   :  { %1370 = vmatmul.mubr.bf16.vlgmr.msra.gmra.mrb[32].mxu1 %v2354_v36  ;;  %2192 = vmatpush3.bf16.msra.mxu0 %v2357_v32 }
  0x65   :  { %2231 = vmatpush3.bf16.msra.mxu1 %v2357_v32  ;;  %1280 = vmatprep.mubr.bf16.mxu0 %v2358_v37 }
  0x66   :  { %1377 = vmatprep.mubr.bf16.mxu1 %v2360_v38  ;;  %2193 = vmatprep.subr.bf16.mxu0 %v2364_v39 }
  0x67   :  { %2224 = vmatprep.subr.bf16.mxu1 %v2364_v39 }
  0x68   :  { %2194 = vmatpush3.bf16.msra.mxu0 %v2364_v39 }
  0x69   :  { %2232 = vmatpush3.bf16.msra.mxu1 %v2364_v39  ;;  %2195 = vmatprep.subr.bf16.mxu0 %v2371_v40 }
  0x6a   :  { %2225 = vmatprep.subr.bf16.mxu1 %v2371_v40 }
  0x6b   :  { %1281 = vmatmul.mubr.bf16.gmra.mrb[36].mxu0 %v2362_v41 }
  0x6c   :  { %1378 = vmatmul.mubr.bf16.gmra.mrb[36].mxu1 %v2363_v42  ;;  %1288 = vmatprep.mubr.bf16.mxu0 %v2365_v43 }
  0x6d   :  { %1385 = vmatprep.mubr.bf16.mxu1 %v2367_v44  ;;  %2196 = vmatpush3.bf16.msra.mxu0 %v2371_v40 }
  0x6e   :  { %2233 = vmatpush3.bf16.msra.mxu1 %v2371_v40  ;;  %2197 = vmatprep.subr.bf16.mxu0 %v2378_v45 }
  0x6f   :  { %2226 = vmatprep.subr.bf16.mxu1 %v2378_v45 }
  0x71   :  { %2198 = vmatpush3.bf16.msra.mxu0 %v2378_v45 }
  0x72   :  { %2234 = vmatpush3.bf16.msra.mxu1 %v2378_v45  ;;  %2199 = vmatprep.subr.bf16.mxu0 %v2385_v46 }
  0x73   :  { %1289 = vmatmul.mubr.bf16.gmra.mrb[40].mxu0 %v2369_v47  ;;  %2227 = vmatprep.subr.bf16.mxu1 %v2385_v46 }
  0x74   :  { %1386 = vmatmul.mubr.bf16.gmra.mrb[40].mxu1 %v2370_v48  ;;  %1296 = vmatprep.mubr.bf16.mxu0 %v2372_v49 }
  0x75   :  { %1393 = vmatprep.mubr.bf16.mxu1 %v2374_v50  ;;  %2200 = vmatpush3.bf16.msra.mxu0 %v2385_v46 }
  0x76   :  { %2235 = vmatpush3.bf16.msra.mxu1 %v2385_v46  ;;  %2201 = vmatprep.subr.bf16.mxu0 %v2392_v51 }
  0x77   :  { %2228 = vmatprep.subr.bf16.mxu1 %v2392_v51 }
  0x79   :  { %2202 = vmatpush3.bf16.msra.mxu0 %v2392_v51 }
  0x7a   :  { %2236 = vmatpush3.bf16.msra.mxu1 %v2392_v51  ;;  %2203 = vmatprep.subr.bf16.mxu0 %v2399_v53 }
  0x7b   :  { %1297 = vmatmul.mubr.bf16.gmra.mrb[44].mxu0 %v2376_v52  ;;  %2229 = vmatprep.subr.bf16.mxu1 %v2399_v53 }
  0x7c   :  { %1394 = vmatmul.mubr.bf16.gmra.mrb[44].mxu1 %v2377_v54  ;;  %1304 = vmatprep.mubr.bf16.mxu0 %v2379_v55 }
  0x7d   :  { %1401 = vmatprep.mubr.bf16.mxu1 %v2381_v56  ;;  %2204 = vmatpush3.bf16.msra.mxu0 %v2399_v53 }
  0x7e   :  { %2237 = vmatpush3.bf16.msra.mxu1 %v2399_v53  ;;  %2205 = vmatprep.subr.bf16.mxu0 %v2406_v57 }
  0x7f   :  { %2230 = vmatprep.subr.bf16.mxu1 %v2406_v57 }
  0x81   :  { %2206 = vmatpush3.bf16.msra.mxu0 %v2406_v57 }
  0x82   :  { %2238 = vmatpush3.bf16.msra.mxu1 %v2406_v57 }
  0x83   :  { %1305 = vmatmul.mubr.bf16.gmra.mrb[48].mxu0 %v2383_v58 }
  0x84   :  { %1402 = vmatmul.mubr.bf16.gmra.mrb[48].mxu1 %v2384_v59  ;;  %1312 = vmatprep.mubr.bf16.mxu0 %v2386_v60 }
  0x85   :  { %1409 = vmatprep.mubr.bf16.mxu1 %v2388_v61 }
  0x8b   :  { %1313 = vmatmul.mubr.bf16.gmra.mrb[52].mxu0 %v2390_v62 }
  0x8c   :  { %1410 = vmatmul.mubr.bf16.gmra.mrb[52].mxu1 %v2391_v63  ;;  %1320 = vmatprep.mubr.bf16.mxu0 %v2393_v0 }
  0x8d   :  { %1417 = vmatprep.mubr.bf16.mxu1 %v2395_v1 }
  0x93   :  { %1321 = vmatmul.mubr.bf16.gmra.mrb[56].mxu0 %v2397_v2 }
  0x94   :  { %1418 = vmatmul.mubr.bf16.gmra.mrb[56].mxu1 %v2398_v3  ;;  %1328 = vmatprep.mubr.bf16.mxu0 %v2400_v4 }
  0x95   :  { %1425 = vmatprep.mubr.bf16.mxu1 %v2402_v5 }
  0x9b   :  { %1329 = vmatmul.mubr.bf16.gmra.mrb[60].mxu0 %v2404_v6 }
  0x9c   :  { %1426 = vmatmul.mubr.bf16.gmra.mrb[60].mxu1 %v2405_v7  ;;  %2207 = vmatprep.mubr.bf16.mxu0 %v2407_v8 }
  0x9d   :  { %2215 = vmatprep.mubr.bf16.mxu1 %v2408_v9 }
  0xa3   :  { %2208 = vmatmul.mubr.bf16.vlgmr.msra.gmra.mrb[64].mxu0 %v2409_v10 }
  0xa4   :  { %2216 = vmatmul.mubr.bf16.vlgmr.msra.gmra.mrb[64].mxu1 %v2410_v11  ;;  %2211 = vmatprep.mubr.bf16.mxu0 %v2411_v12 }
  0xa5   :  { %2219 = vmatprep.mubr.bf16.mxu1 %v2412_v13 }
  0xab   :  { %2212 = vmatmul.mubr.bf16.gmra.mrb[68].mxu0 %v2413_v14 }
  0xac   :  { %2220 = vmatmul.mubr.bf16.gmra.mrb[68].mxu1 %v2414_v15 }
  0xf6   :  { %v1935_v16 = vpop.f32.mrb[0].mxu0 }
  0xf7   :  { %v1999_v17 = vpop.f32.mrb[0].mxu1  ;;  %v1936_v19 = vpop.f32.mrb[1].mxu0 }
  0xf8   :  { %v1937_v20 = vadd.f32 %v1936_v19, %v1935_v16  ;;  %v2000_v21 = vpop.f32.mrb[1].mxu1  ;;  %v1938_v22 = vpop.f32.mrb[2].mxu0 }
  0xf9   :  { %v2001_v23 = vadd.f32 %v2000_v21, %v1999_v17  ;;  %v2002_v24 = vpop.f32.mrb[2].mxu1  ;;  %v1939_v25 = vpop.f32.mrb[3].mxu0 }
  0xfa   :  { %v1081_v26 = vadd.f32 %v1937_v20, %v2870_v18  ;;  %v1940_v27 = vadd.f32 %v1939_v25, %v1938_v22  ;;  %v2003_v28 = vpop.f32.mrb[3].mxu1 }
  0xfb   :  { %v2004_v29 = vadd.f32 %v2003_v28, %v2002_v24 }
  0xfc   :  { %v2873_v30 = vadd.f32 %v2001_v23, %v1081_v26  ;;  %v1084_v31 = vadd.f32 %v1940_v27, %v2870_v18 }
  0xfe   :  { %v2876_v32 = vadd.f32 %v2004_v29, %v1084_v31  ;;  %v1941_v33 = vpop.f32.mrb[4].mxu0 }
  0xff   :  { %v2005_v34 = vpop.f32.mrb[4].mxu1  ;;  %v1942_v35 = vpop.f32.mrb[5].mxu0 }
 0x100   :  { %v1943_v36 = vadd.f32 %v1942_v35, %v1941_v33  ;;  %v2006_v37 = vpop.f32.mrb[5].mxu1  ;;  %v1944_v38 = vpop.f32.mrb[6].mxu0 }
 0x101   :  { %v2007_v39 = vadd.f32 %v2006_v37, %v2005_v34  ;;  %v2008_v40 = vpop.f32.mrb[6].mxu1  ;;  %v1945_v41 = vpop.f32.mrb[7].mxu0 }
 0x102   :  { %v1089_v42 = vadd.f32 %v1943_v36, %v2870_v18  ;;  %v1946_v43 = vadd.f32 %v1945_v41, %v1944_v38  ;;  %v2009_v44 = vpop.f32.mrb[7].mxu1 }
 0x103   :  { %v2010_v45 = vadd.f32 %v2009_v44, %v2008_v40 }
 0x104   :  { %v2879_v46 = vadd.f32 %v2007_v39, %v1089_v42  ;;  %v1092_v47 = vadd.f32 %v1946_v43, %v2870_v18 }
 0x106   :  { %v2882_v48 = vadd.f32 %v2010_v45, %v1092_v47  ;;  %v1947_v49 = vpop.f32.mrb[8].mxu0 }
 0x107   :  { %v2011_v50 = vpop.f32.mrb[8].mxu1  ;;  %v1948_v51 = vpop.f32.mrb[9].mxu0 }
 0x108   :  { %v1949_v52 = vadd.f32 %v1948_v51, %v1947_v49  ;;  %v2012_v53 = vpop.f32.mrb[9].mxu1  ;;  %v1950_v54 = vpop.f32.mrb[10].mxu0 }
 0x109   :  { %v2013_v55 = vadd.f32 %v2012_v53, %v2011_v50  ;;  %v2014_v56 = vpop.f32.mrb[10].mxu1  ;;  %v1951_v57 = vpop.f32.mrb[11].mxu0 }
 0x10a   :  { %v1097_v58 = vadd.f32 %v1949_v52, %v2870_v18  ;;  %v1952_v59 = vadd.f32 %v1951_v57, %v1950_v54  ;;  %v2015_v60 = vpop.f32.mrb[11].mxu1 }
 0x10b   :  { %v2016_v61 = vadd.f32 %v2015_v60, %v2014_v56 }
 0x10c   :  { %v2885_v62 = vadd.f32 %v2013_v55, %v1097_v58  ;;  %v1100_v63 = vadd.f32 %v1952_v59, %v2870_v18 }
 0x10e   :  { %v2888_v0 = vadd.f32 %v2016_v61, %v1100_v63  ;;  %v1953_v1 = vpop.f32.mrb[12].mxu0 }
 0x10f   :  { %v2017_v2 = vpop.f32.mrb[12].mxu1  ;;  %v1954_v3 = vpop.f32.mrb[13].mxu0 }
 0x110   :  { %v1955_v4 = vadd.f32 %v1954_v3, %v1953_v1  ;;  %v2018_v5 = vpop.f32.mrb[13].mxu1  ;;  %v1956_v6 = vpop.f32.mrb[14].mxu0 }
 0x111   :  { %v2019_v7 = vadd.f32 %v2018_v5, %v2017_v2  ;;  %v2020_v8 = vpop.f32.mrb[14].mxu1  ;;  %v1957_v9 = vpop.f32.mrb[15].mxu0 }
 0x112   :  { %v1105_v10 = vadd.f32 %v1955_v4, %v2870_v18  ;;  %v1958_v11 = vadd.f32 %v1957_v9, %v1956_v6  ;;  %v2021_v12 = vpop.f32.mrb[15].mxu1 }
 0x113   :  { %v2022_v13 = vadd.f32 %v2021_v12, %v2020_v8 }
 0x114   :  { %v2891_v14 = vadd.f32 %v2019_v7, %v1105_v10  ;;  %v1108_v15 = vadd.f32 %v1958_v11, %v2870_v18 }
 0x116   :  { %v2894_v16 = vadd.f32 %v2022_v13, %v1108_v15  ;;  %v1959_v17 = vpop.f32.mrb[16].mxu0 }
 0x117   :  { %v2023_v19 = vpop.f32.mrb[16].mxu1  ;;  %v1960_v20 = vpop.f32.mrb[17].mxu0 }
 0x118   :  { %v1961_v21 = vadd.f32 %v1960_v20, %v1959_v17  ;;  %v2024_v22 = vpop.f32.mrb[17].mxu1  ;;  %v1962_v23 = vpop.f32.mrb[18].mxu0 }
 0x119   :  { %v2025_v24 = vadd.f32 %v2024_v22, %v2023_v19  ;;  %v2026_v25 = vpop.f32.mrb[18].mxu1  ;;  %v1963_v26 = vpop.f32.mrb[19].mxu0 }
 0x11a   :  { %v1113_v27 = vadd.f32 %v1961_v21, %v2870_v18  ;;  %v1964_v28 = vadd.f32 %v1963_v26, %v1962_v23  ;;  %v2027_v29 = vpop.f32.mrb[19].mxu1 }
 0x11b   :  { %v2028_v31 = vadd.f32 %v2027_v29, %v2026_v25 }
 0x11c   :  { %v2897_v33 = vadd.f32 %v2025_v24, %v1113_v27  ;;  %v1116_v34 = vadd.f32 %v1964_v28, %v2870_v18 }
 0x11e   :  { %v2900_v35 = vadd.f32 %v2028_v31, %v1116_v34  ;;  %v1965_v36 = vpop.f32.mrb[20].mxu0 }
 0x11f   :  { %v2029_v37 = vpop.f32.mrb[20].mxu1  ;;  %v1966_v38 = vpop.f32.mrb[21].mxu0 }
 0x120   :  { %v1967_v39 = vadd.f32 %v1966_v38, %v1965_v36  ;;  %v2030_v40 = vpop.f32.mrb[21].mxu1  ;;  %v1968_v41 = vpop.f32.mrb[22].mxu0 }
 0x121   :  { %v2031_v42 = vadd.f32 %v2030_v40, %v2029_v37  ;;  %v2032_v43 = vpop.f32.mrb[22].mxu1  ;;  %v1969_v44 = vpop.f32.mrb[23].mxu0 }
 0x122   :  { %v1121_v45 = vadd.f32 %v1967_v39, %v2870_v18  ;;  %v1970_v47 = vadd.f32 %v1969_v44, %v1968_v41  ;;  %v2033_v49 = vpop.f32.mrb[23].mxu1 }
 0x123   :  { %v2034_v50 = vadd.f32 %v2033_v49, %v2032_v43 }
 0x124   :  { %v2903_v51 = vadd.f32 %v2031_v42, %v1121_v45  ;;  %v1124_v52 = vadd.f32 %v1970_v47, %v2870_v18 }
 0x126   :  { %v2906_v53 = vadd.f32 %v2034_v50, %v1124_v52  ;;  %v1971_v54 = vpop.f32.mrb[24].mxu0 }
 0x127   :  { %v2035_v55 = vpop.f32.mrb[24].mxu1  ;;  %v1972_v56 = vpop.f32.mrb[25].mxu0 }
 0x128   :  { %v1973_v57 = vadd.f32 %v1972_v56, %v1971_v54  ;;  %v2036_v58 = vpop.f32.mrb[25].mxu1  ;;  %v1974_v59 = vpop.f32.mrb[26].mxu0 }
 0x129   :  { %v2037_v60 = vadd.f32 %v2036_v58, %v2035_v55  ;;  %v2038_v61 = vpop.f32.mrb[26].mxu1  ;;  %v1975_v63 = vpop.f32.mrb[27].mxu0 }
 0x12a   :  { %v1129_v1 = vadd.f32 %v1973_v57, %v2870_v18  ;;  %v1976_v2 = vadd.f32 %v1975_v63, %v1974_v59  ;;  %v2039_v3 = vpop.f32.mrb[27].mxu1 }
 0x12b   :  { %v2040_v4 = vadd.f32 %v2039_v3, %v2038_v61 }
 0x12c   :  { %v2909_v5 = vadd.f32 %v2037_v60, %v1129_v1  ;;  %v1132_v6 = vadd.f32 %v1976_v2, %v2870_v18 }
 0x12e   :  { %v2912_v7 = vadd.f32 %v2040_v4, %v1132_v6  ;;  %v1977_v8 = vpop.f32.mrb[28].mxu0 }
 0x12f   :  { %v2041_v9 = vpop.f32.mrb[28].mxu1  ;;  %v1978_v10 = vpop.f32.mrb[29].mxu0 }
 0x130   :  { %v1979_v11 = vadd.f32 %v1978_v10, %v1977_v8  ;;  %v2042_v12 = vpop.f32.mrb[29].mxu1  ;;  %v1980_v13 = vpop.f32.mrb[30].mxu0 }
 0x131   :  { %v2043_v15 = vadd.f32 %v2042_v12, %v2041_v9  ;;  %v2044_v17 = vpop.f32.mrb[30].mxu1  ;;  %v1981_v19 = vpop.f32.mrb[31].mxu0 }
 0x132   :  { %v1137_v20 = vadd.f32 %v1979_v11, %v2870_v18  ;;  %v1982_v21 = vadd.f32 %v1981_v19, %v1980_v13  ;;  %v2045_v22 = vpop.f32.mrb[31].mxu1 }
 0x133   :  { %v2046_v23 = vadd.f32 %v2045_v22, %v2044_v17 }
 0x134   :  { %v2915_v24 = vadd.f32 %v2043_v15, %v1137_v20  ;;  %v1140_v25 = vadd.f32 %v1982_v21, %v2870_v18 }
 0x136   :  { %v2918_v26 = vadd.f32 %v2046_v23, %v1140_v25  ;;  %v2063_v27 = vpop.f32.mrb[32].mxu0 }
 0x137   :  { %v2127_v28 = vpop.f32.mrb[32].mxu1  ;;  %v2064_v29 = vpop.f32.mrb[33].mxu0 }
 0x138   :  { %v2065_v31 = vadd.f32 %v2064_v29, %v2063_v27  ;;  %v2128_v34 = vpop.f32.mrb[33].mxu1  ;;  %v2066_v36 = vpop.f32.mrb[34].mxu0 }
 0x139   :  { %v2129_v37 = vadd.f32 %v2128_v34, %v2127_v28  ;;  %v2130_v38 = vpop.f32.mrb[34].mxu1  ;;  %v2067_v39 = vpop.f32.mrb[35].mxu0 }
 0x13a   :  { %v1275_v40 = vadd.f32 %v2065_v31, %v2873_v30  ;;  %v2068_v41 = vadd.f32 %v2067_v39, %v2066_v36  ;;  %v2131_v42 = vpop.f32.mrb[35].mxu1 }
 0x13b   :  { %v2132_v43 = vadd.f32 %v2131_v42, %v2130_v38 }
 0x13c   :  { %v1278_v44 = vadd.f32 %v2068_v41, %v2876_v32  ;;  %v2922_v45 = vadd.f32 %v2129_v37, %v1275_v40 }
 0x13e   :  { %v2069_v18 = vpop.f32.mrb[36].mxu0  ;;  %v2924_v47 = vadd.f32 %v2132_v43, %v1278_v44 }
 0x13f   :  { %v2133_v49 = vpop.f32.mrb[36].mxu1  ;;  %v2070_v50 = vpop.f32.mrb[37].mxu0 }
 0x140   :  { %v2071_v52 = vadd.f32 %v2070_v50, %v2069_v18  ;;  %v2134_v54 = vpop.f32.mrb[37].mxu1  ;;  %v2072_v55 = vpop.f32.mrb[38].mxu0 }
 0x141   :  { %v2135_v56 = vadd.f32 %v2134_v54, %v2133_v49  ;;  %v2136_v57 = vpop.f32.mrb[38].mxu1  ;;  %v2073_v58 = vpop.f32.mrb[39].mxu0 }
 0x142   :  { %v1283_v30 = vadd.f32 %v2071_v52, %v2879_v46  ;;  %v2074_v59 = vadd.f32 %v2073_v58, %v2072_v55  ;;  %v2137_v60 = vpop.f32.mrb[39].mxu1 }
 0x143   :  { %v2138_v61 = vadd.f32 %v2137_v60, %v2136_v57 }
 0x144   :  { %v1286_v32 = vadd.f32 %v2074_v59, %v2882_v48  ;;  %v2928_v63 = vadd.f32 %v2135_v56, %v1283_v30 }
 0x146   :  { %v2075_v1 = vpop.f32.mrb[40].mxu0  ;;  %v2930_v2 = vadd.f32 %v2138_v61, %v1286_v32 }
 0x147   :  { %v2139_v3 = vpop.f32.mrb[40].mxu1  ;;  %v2076_v4 = vpop.f32.mrb[41].mxu0 }
 0x148   :  { %v2077_v6 = vadd.f32 %v2076_v4, %v2075_v1  ;;  %v2140_v8 = vpop.f32.mrb[41].mxu1  ;;  %v2078_v9 = vpop.f32.mrb[42].mxu0 }
 0x149   :  { %v2141_v10 = vadd.f32 %v2140_v8, %v2139_v3  ;;  %v2142_v11 = vpop.f32.mrb[42].mxu1  ;;  %v2079_v12 = vpop.f32.mrb[43].mxu0 }
 0x14a   :  { %v1291_v46 = vadd.f32 %v2077_v6, %v2885_v62  ;;  %v2080_v13 = vadd.f32 %v2079_v12, %v2078_v9  ;;  %v2143_v15 = vpop.f32.mrb[43].mxu1 }
 0x14b   :  { %v2144_v17 = vadd.f32 %v2143_v15, %v2142_v11 }
 0x14c   :  { %v1294_v48 = vadd.f32 %v2080_v13, %v2888_v0  ;;  %v2934_v19 = vadd.f32 %v2141_v10, %v1291_v46 }
 0x14e   :  { %v2081_v20 = vpop.f32.mrb[44].mxu0  ;;  %v2936_v21 = vadd.f32 %v2144_v17, %v1294_v48 }
 0x14f   :  { %v2145_v22 = vpop.f32.mrb[44].mxu1  ;;  %v2082_v23 = vpop.f32.mrb[45].mxu0 }
 0x150   :  { %v2083_v25 = vadd.f32 %v2082_v23, %v2081_v20  ;;  %v2146_v27 = vpop.f32.mrb[45].mxu1  ;;  %v2084_v28 = vpop.f32.mrb[46].mxu0 }
 0x151   :  { %v2147_v29 = vadd.f32 %v2146_v27, %v2145_v22  ;;  %v2148_v31 = vpop.f32.mrb[46].mxu1  ;;  %v2085_v34 = vpop.f32.mrb[47].mxu0 }
 0x152   :  { %v1299_v62 = vadd.f32 %v2083_v25, %v2891_v14  ;;  %v2086_v36 = vadd.f32 %v2085_v34, %v2084_v28  ;;  %v2149_v37 = vpop.f32.mrb[47].mxu1 }
 0x153   :  { %v2150_v38 = vadd.f32 %v2149_v37, %v2148_v31 }
 0x154   :  { %v1302_v0 = vadd.f32 %v2086_v36, %v2894_v16  ;;  %v2940_v39 = vadd.f32 %v2147_v29, %v1299_v62 }
 0x156   :  { %v2087_v40 = vpop.f32.mrb[48].mxu0  ;;  %v2942_v41 = vadd.f32 %v2150_v38, %v1302_v0 }
 0x157   :  { %v2151_v42 = vpop.f32.mrb[48].mxu1  ;;  %v2088_v43 = vpop.f32.mrb[49].mxu0 }
 0x158   :  { %v2089_v44 = vadd.f32 %v2088_v43, %v2087_v40  ;;  %v2152_v18 = vpop.f32.mrb[49].mxu1  ;;  %v2090_v49 = vpop.f32.mrb[50].mxu0 }
 0x159   :  { %v2153_v50 = vadd.f32 %v2152_v18, %v2151_v42  ;;  %v2154_v52 = vpop.f32.mrb[50].mxu1  ;;  %v2091_v54 = vpop.f32.mrb[51].mxu0 }
 0x15a   :  { %v1307_v14 = vadd.f32 %v2089_v44, %v2897_v33  ;;  %v2092_v55 = vadd.f32 %v2091_v54, %v2090_v49  ;;  %v2155_v56 = vpop.f32.mrb[51].mxu1 }
 0x15b   :  { %v2156_v57 = vadd.f32 %v2155_v56, %v2154_v52 }
 0x15c   :  { %v1310_v16 = vadd.f32 %v2092_v55, %v2900_v35  ;;  %v1404_v58 = vadd.f32 %v2153_v50, %v1307_v14 }
 0x15e   :  { %v2093_v30 = vpop.f32.mrb[52].mxu0  ;;  %v2946_v59 = vadd.f32 %v2156_v57, %v1310_v16 }
 0x15f   :  { %v2157_v60 = vpop.f32.mrb[52].mxu1  ;;  %v2094_v61 = vpop.f32.mrb[53].mxu0 }
 0x160   :  { %v2095_v32 = vadd.f32 %v2094_v61, %v2093_v30  ;;  %v2158_v1 = vpop.f32.mrb[53].mxu1  ;;  %v2096_v3 = vpop.f32.mrb[54].mxu0 }
 0x161   :  { %v2159_v4 = vadd.f32 %v2158_v1, %v2157_v60  ;;  %v2160_v6 = vpop.f32.mrb[54].mxu1  ;;  %v2097_v8 = vpop.f32.mrb[55].mxu0 }
 0x162   :  { %v1315_v9 = vadd.f32 %v2095_v32, %v2903_v51  ;;  %v2098_v33 = vadd.f32 %v2097_v8, %v2096_v3  ;;  %v2161_v10 = vpop.f32.mrb[55].mxu1 }
 0x163   :  { %v2162_v11 = vadd.f32 %v2161_v10, %v2160_v6 }
 0x164   :  { %v1318_v12 = vadd.f32 %v2098_v33, %v2906_v53  ;;  %v1412_v35 = vadd.f32 %v2159_v4, %v1315_v9 }
 0x166   :  { %v2099_v46 = vpop.f32.mrb[56].mxu0  ;;  %v1415_v13 = vadd.f32 %v2162_v11, %v1318_v12 }
 0x167   :  { %v2163_v15 = vpop.f32.mrb[56].mxu1  ;;  %v2100_v17 = vpop.f32.mrb[57].mxu0 }
 0x168   :  { %v2101_v48 = vadd.f32 %v2100_v17, %v2099_v46  ;;  %v2164_v20 = vpop.f32.mrb[57].mxu1  ;;  %v2102_v22 = vpop.f32.mrb[58].mxu0 }
 0x169   :  { %v2165_v23 = vadd.f32 %v2164_v20, %v2163_v15  ;;  %v2166_v25 = vpop.f32.mrb[58].mxu1  ;;  %v2103_v27 = vpop.f32.mrb[59].mxu0 }
 0x16a   :  { %v1323_v28 = vadd.f32 %v2101_v48, %v2909_v5  ;;  %v2104_v29 = vadd.f32 %v2103_v27, %v2102_v22  ;;  %v2167_v51 = vpop.f32.mrb[59].mxu1 }
 0x16b   :  { %v2168_v31 = vadd.f32 %v2167_v51, %v2166_v25 }
 0x16c   :  { %v1326_v34 = vadd.f32 %v2104_v29, %v2912_v7  ;;  %v2952_v62 = vadd.f32 %v2165_v23, %v1323_v28 }
 0x16e   :  { %v2105_v53 = vpop.f32.mrb[60].mxu0  ;;  %v2954_v36 = vadd.f32 %v2168_v31, %v1326_v34 }
 0x16f   :  { %v2169_v37 = vpop.f32.mrb[60].mxu1  ;;  %v2106_v38 = vpop.f32.mrb[61].mxu0 }
 0x170   :  { %v2107_v0 = vadd.f32 %v2106_v38, %v2105_v53  ;;  %v2170_v40 = vpop.f32.mrb[61].mxu1  ;;  %v2108_v42 = vpop.f32.mrb[62].mxu0 }
 0x171   :  { %v2171_v43 = vadd.f32 %v2170_v40, %v2169_v37  ;;  %v2172_v44 = vpop.f32.mrb[62].mxu1  ;;  %v2109_v18 = vpop.f32.mrb[63].mxu0 }
 0x172   :  { %v1331_v5 = vadd.f32 %v2107_v0, %v2915_v24  ;;  %v2110_v49 = vadd.f32 %v2109_v18, %v2108_v42  ;;  %v2173_v50 = vpop.f32.mrb[63].mxu1 }
 0x173   :  { %v2174_v52 = vadd.f32 %v2173_v50, %v2172_v44 }
 0x174   :  { %v1334_v7 = vadd.f32 %v2110_v49, %v2918_v26  ;;  %v2958_v54 = vadd.f32 %v2171_v43, %v1331_v5 }
 0x176   :  { %v2209_v14 = vpop.f32.mrb[64].mxu0  ;;  %v2960_v55 = vadd.f32 %v2174_v52, %v1334_v7 }
 0x177   :  { %v1477_v56 = vadd.f32 %v2209_v14, %v2928_v63  ;;  %v2217_v57 = vpop.f32.mrb[64].mxu1  ;;  %v1468_v16 = vpop.f32.mrb[65].mxu0 }
 0x178   :  { %v1509_v30 = vadd.f32 %v2217_v57, %v1412_v35  ;;  %v1469_v60 = vadd.f32 %v1468_v16, %v2922_v45  ;;  %v1500_v61 = vpop.f32.mrb[65].mxu1  ;;  %v2210_v32 = vpop.f32.mrb[66].mxu0 }
 0x179   :  { %v1533_v24 = vadd.f32 3.0, %v1477_v56  ;;  %v1501_v1 = vadd.f32 %v1500_v61, %v1404_v58  ;;  %v1480_v3 = vadd.f32 %v2210_v32, %v2930_v2  ;;  %v2218_v4 = vpop.f32.mrb[66].mxu1  ;;  %v1471_v26 = vpop.f32.mrb[67].mxu0 }
 0x17a   :  { %v1541_v6 = vadd.f32 3.0, %v1509_v30  ;;  %v1531_v8 = vadd.f32 3.0, %v1469_v60  ;;  %v1512_v9 = vadd.f32 %v2218_v4, %v1415_v13  ;;  %v1472_v33 = vadd.f32 %v1471_v26, %v2924_v47  ;;  %v1503_v10 = vpop.f32.mrb[67].mxu1 }
 0x17b   :  { %v1549_v63 = vmax.f32 %v1533_v24, 0.0  ;;  %v1539_v11 = vadd.f32 3.0, %v1501_v1  ;;  %v1534_v12 = vadd.f32 3.0, %v1480_v3  ;;  %v1504_v35 = vadd.f32 %v1503_v10, %v2946_v59 }
 0x17c   :  { %v1557_v45 = vmax.f32 %v1541_v6, 0.0  ;;  %v1547_v46 = vmax.f32 %v1531_v8, 0.0  ;;  %v1542_v15 = vadd.f32 3.0, %v1512_v9  ;;  %v1532_v17 = vadd.f32 3.0, %v1472_v33 }
 0x17d   :  { %v1565_v58 = vmin.f32 %v1549_v63, 6.0  ;;  %v1555_v48 = vmax.f32 %v1539_v11, 0.0  ;;  %v1550_v2 = vmax.f32 %v1534_v12, 0.0  ;;  %v1540_v20 = vadd.f32 3.0, %v1504_v35 }
 0x17e   :  { %v1573_v22 = vmin.f32 %v1557_v45, 6.0  ;;  %v1563_v23 = vmin.f32 %v1547_v46, 6.0  ;;  %v1558_v25 = vmax.f32 %v1542_v15, 0.0  ;;  %v1548_v13 = vmax.f32 %v1532_v17, 0.0  ;;  %v2213_v27 = vpop.f32.mrb[68].mxu0 }
 0x17f   :  { %v1581_v47 = vmul.f32 %v1565_v58, %v1477_v56  ;;  %v1571_v28 = vmin.f32 %v1555_v48, 6.0  ;;  %v1566_v29 = vmin.f32 %v1550_v2, 6.0  ;;  %v1556_v51 = vmax.f32 %v1540_v20, 0.0  ;;  %v2221_v31 = vpop.f32.mrb[68].mxu1  ;;  %v1484_v34 = vpop.f32.mrb[69].mxu0 }
 0x180   :  { %v1589_v59 = vmul.f32 %v1573_v22, %v1509_v30  ;;  %v1579_v53 = vmul.f32 %v1563_v23, %v1469_v60  ;;  %v1574_v37 = vmin.f32 %v1558_v25, 6.0  ;;  %v1564_v38 = vmin.f32 %v1548_v13, 6.0  ;;  %v1516_v0 = vpop.f32.mrb[69].mxu1  ;;  %v2214_v40 = vpop.f32.mrb[70].mxu0 }
 0x181   :  { %v1597_v42 = vmul.f32 0.16666667, %v1581_v47  ;;  %v1587_v43 = vmul.f32 %v1571_v28, %v1501_v1  ;;  %v1582_v44 = vmul.f32 %v1566_v29, %v1480_v3  ;;  %v1572_v18 = vmin.f32 %v1556_v51, 6.0  ;;  %v2222_v5 = vpop.f32.mrb[70].mxu1  ;;  %v1487_v49 = vpop.f32.mrb[71].mxu0 }
 0x182   :  { %v1605_v50 = vmul.f32 0.16666667, %v1589_v59  ;;  %v1595_v52 = vmul.f32 0.16666667, %v1579_v53  ;;  %v1590_v7 = vmul.f32 %v1574_v37, %v1512_v9  ;;  %v1580_v14 = vmul.f32 %v1564_v38, %v1472_v33  ;;  %v1519_v56 = vpop.f32.mrb[71].mxu1 }
 0x183   :  { %v1603_v57 = vmul.f32 0.16666667, %v1587_v43  ;;  %v1598_v16 = vmul.f32 0.16666667, %v1582_v44  ;;  %v1588_v61 = vmul.f32 %v1572_v18, %v1504_v35  ;;  %v1493_v30 = vadd.f32 %v2213_v27, %v2940_v39 }
 0x184   :  { %v1606_v60 = vmul.f32 0.16666667, %v1590_v7  ;;  %v1596_v32 = vmul.f32 0.16666667, %v1580_v14  ;;  %v1525_v24 = vadd.f32 %v2221_v31, %v2958_v54  ;;  %v1485_v1 = vadd.f32 %v1484_v34, %v2934_v19 }
 0x185   :  { %v1880_v3 = vpack.c.bf16 %v1598_v16, %v1597_v42  ;;  %v1604_v4 = vmul.f32 0.16666667, %v1588_v61  ;;  %v1537_v26 = vadd.f32 3.0, %v1493_v30  ;;  %v1517_v6 = vadd.f32 %v1516_v0, %v2952_v62 }
 0x186   :  { %v1900_v8 = vpack.c.bf16 %v1606_v60, %v1605_v50  ;;  %v1875_v9 = vpack.c.bf16 %v1596_v32, %v1595_v52  ;;  %v1545_v33 = vadd.f32 3.0, %v1525_v24  ;;  %v1535_v10 = vadd.f32 3.0, %v1485_v1 }
 0x187   :  { %1912 = vst [vmem:[%s3002_s3 + $0x8] sm:$0xff] %v1880_v3   ;;  %v1895_v39 = vpack.c.bf16 %v1604_v4, %v1603_v57  ;;  %v1553_v63 = vmax.f32 %v1537_v26, 0.0  ;;  %v1543_v11 = vadd.f32 3.0, %v1517_v6  ;;  %v1496_v54 = vadd.f32 %v2214_v40, %v2942_v41 }
 0x188   :  { %1916 = vst [vmem:[%s3002_s3 + $0x28] sm:$0xff] %v1900_v8   ;;  %1876 = vst [vmem:[%s3002_s3] sm:$0xff] %v1875_v9   ;;  %v1561_v19 = vmax.f32 %v1545_v33, 0.0  ;;  %v1551_v62 = vmax.f32 %v1535_v10, 0.0  ;;  %v1528_v12 = vadd.f32 %v2222_v5, %v2960_v55  ;;  %v1488_v35 = vadd.f32 %v1487_v49, %v2936_v21 }
 0x189   :  { %1915 = vst [vmem:[%s3002_s3 + $0x20] sm:$0xff] %v1895_v39   ;;  %v1569_v45 = vmin.f32 %v1553_v63, 6.0  ;;  %v1559_v41 = vmax.f32 %v1543_v11, 0.0  ;;  %v1538_v46 = vadd.f32 3.0, %v1496_v54  ;;  %v1520_v15 = vadd.f32 %v1519_v56, %v2954_v36 }
 0x18a   :  { %v1577_v17 = vmin.f32 %v1561_v19, 6.0  ;;  %v1567_v58 = vmin.f32 %v1551_v62, 6.0  ;;  %v1546_v48 = vadd.f32 3.0, %v1528_v12  ;;  %v1536_v2 = vadd.f32 3.0, %v1488_v35 }
 0x18b   :  { %v1575_v20 = vmin.f32 %v1559_v41, 6.0  ;;  %v1554_v22 = vmax.f32 %v1538_v46, 0.0  ;;  %v1544_v23 = vadd.f32 3.0, %v1520_v15  ;;  %v1585_v13 = vmul.f32 %v1569_v45, %v1493_v30 }
 0x18c   :  { %v1562_v25 = vmax.f32 %v1546_v48, 0.0  ;;  %v1552_v55 = vmax.f32 %v1536_v2, 0.0  ;;  %v1593_v21 = vmul.f32 %v1577_v17, %v1525_v24  ;;  %v1583_v28 = vmul.f32 %v1567_v58, %v1485_v1 }
 0x18d   :  { %v1570_v27 = vmin.f32 %v1554_v22, 6.0  ;;  %v1560_v47 = vmax.f32 %v1544_v23, 0.0  ;;  %v1591_v31 = vmul.f32 %v1575_v20, %v1517_v6  ;;  %v1601_v37 = vmul.f32 0.16666667, %v1585_v13 }
 0x18e   :  { %v1578_v29 = vmin.f32 %v1562_v25, 6.0  ;;  %v1568_v51 = vmin.f32 %v1552_v55, 6.0  ;;  %v1609_v38 = vmul.f32 0.16666667, %v1593_v21  ;;  %v1599_v42 = vmul.f32 0.16666667, %v1583_v28 }
 0x18f   :  { %v1586_v34 = vmul.f32 %v1570_v27, %v1496_v54  ;;  %v1576_v59 = vmin.f32 %v1560_v47, 6.0  ;;  %v1607_v18 = vmul.f32 0.16666667, %v1591_v31 }
 0x190   :  { %v1594_v36 = vmul.f32 %v1578_v29, %v1528_v12  ;;  %v1584_v53 = vmul.f32 %v1568_v51, %v1488_v35 }
 0x191   :  { %v1602_v0 = vmul.f32 0.16666667, %v1586_v34  ;;  %v1592_v40 = vmul.f32 %v1576_v59, %v1520_v15 }
 0x192   :  { %v1610_v43 = vmul.f32 0.16666667, %v1594_v36  ;;  %v1600_v44 = vmul.f32 0.16666667, %v1584_v53 }
 0x193   :  { %v1890_v5 = vpack.c.bf16 %v1602_v0, %v1601_v37  ;;  %v1608_v49 = vmul.f32 0.16666667, %v1592_v40 }
 0x194   :  { %v1910_v50 = vpack.c.bf16 %v1610_v43, %v1609_v38  ;;  %v1885_v52 = vpack.c.bf16 %v1600_v44, %v1599_v42 }
 0x195   :  { %1914 = vst [vmem:[%s3002_s3 + $0x18] sm:$0xff] %v1890_v5   ;;  %v1905_v7 = vpack.c.bf16 %v1608_v49, %v1607_v18 }
 0x196   :  { %1918 = vst [vmem:[%s3002_s3 + $0x38] sm:$0xff] %v1910_v50   ;;  %1913 = vst [vmem:[%s3002_s3 + $0x10] sm:$0xff] %v1885_v52  }
 0x197   :  { %1917 = vst [vmem:[%s3002_s3 + $0x30] sm:$0xff] %v1905_v7  }

// kernel: mobile_posnet_forward.18
= control target key start
LH: loop header
LB: loop body
LE: loop exit
PB: predicated region body
PF: predicated region fallthrough
CT: control target
= control target key end

     0   :  { %s955_s12 = smov 0   ;;  %s1220_s0 = inlined_call_operand.vmem [shape: bf16[2,10,10,128], index: 0, kind: input, shape index: {}]   ;;  %s1221_s1 = inlined_call_operand.vmem [shape: f32[9,1,128], index: 1, kind: input, shape index: {}]   ;;  %s1222_s2 = inlined_call_operand.vmem [shape: f32[1,128], index: 2, kind: input, shape index: {}]   ;;  %s1223_s3 = inlined_call_operand.vmem [shape: bf16[2,8,8,128], index: 3, kind: output, shape index: {}]  }
   0x1 LB: > { %s874_s13 = sadd.s32 4294967295, %s933_s12   ;;  %p878_p0 = scmp.ge.s32.totalorder %s933_s12, 1  ;;  %s933_s12 = sphi %s955_s12, %s13_s12  }
   0x2   : > { %p137_p1 = scmp.lt.s32.totalorder %s933_s12, 3 }
   0x4   : > { %p138_p2 = pnand %p878_p0, %p137_p1 }
   0x5   : > { %p161_p3 = scmp.lt.s32.totalorder (!%p138_p2), %s874_s13, 1  ;;  %v882_v10 = vld [vmem:[%s1221_s1] ss:$0 sm:$0xff] (!%p138_p2)  ;;  %vm272_vm0 = vcmask (!%p138_p2), 1046528   ;;  %v883_v36 = vld [vmem:[%s1221_s1 + $0x1] ss:$0 sm:$0xff] (!%p138_p2) }
   0x6   : > { %141 = sbr.rel (%p138_p2) target bundleno = 122 (0x7a), region = 32  ;;  %vm351_vm1 = vcmask (!%p138_p2), 1045504  }
   0xd   : > { %s1225_s13 = smov (!%p161_p3, %s874_s13), 1 }
   0xe   : > { %s918_s14 = smul.u32 80, %s1225_s13  ;;  %s894_s11 = sshll.u32 %s1225_s13, 5 }
   0xf   : > { %s170_s16 = scalar_lea.vmem %s1223_s3, %s894_s11 }
  0x10   : > { %s165_s17 = scalar_lea.vmem %s1220_s0, %s918_s14 }
  0x11   : > { %v171_v0 = vld [vmem:[%s165_s17] ss:$8 sps:$4 sm:$0xff]   ;;  %v969_v1 = vld [vmem:[%s165_s17 + $0x4] sm:$0x1]  ;;  %v174_v2 = vld [vmem:[%s165_s17 + $0xc] sm:$0x1] }
  0x12   : > { %v175_v3 = vld [vmem:[%s165_s17 + $0x10] ss:$8 sps:$4 sm:$0xff]   ;;  %v176_v4 = vld [vmem:[%s165_s17 + $0x14] sm:$0x1]  ;;  %v178_v5 = vld [vmem:[%s165_s17 + $0x1c] sm:$0x1]  ;;  %v971_v6 = vunpack.c.l.bf16 %v171_v0  ;;  %v192_v7 = vunpack.c.l.bf16 %v969_v1  ;;  %v974_v8 = vunpack.c.h.bf16 %v171_v0  ;;  %v976_v9 = vunpack.c.l.bf16 %v174_v2 }
  0x13   : > { %v179_v11 = vld [vmem:[%s165_s17 + $0x20] ss:$8 sps:$4 sm:$0xff]   ;;  %v180_v12 = vld [vmem:[%s165_s17 + $0x24] sm:$0x1]  ;;  %v182_v13 = vld [vmem:[%s165_s17 + $0x2c] sm:$0x1]  ;;  %v981_v14 = vunpack.c.l.bf16 %v175_v3  ;;  %v983_v15 = vunpack.c.l.bf16 %v176_v4  ;;  %v985_v16 = vunpack.c.h.bf16 %v175_v3  ;;  %v987_v17 = vunpack.c.l.bf16 %v178_v5 }
  0x14   : > { %v183_v18 = vld [vmem:[%s165_s17 + $0x30] ss:$8 sps:$4 sm:$0xff]   ;;  %v184_v19 = vld [vmem:[%s165_s17 + $0x34] sm:$0x1]  ;;  %v186_v20 = vld [vmem:[%s165_s17 + $0x3c] sm:$0x1]  ;;  %v989_v21 = vunpack.c.l.bf16 %v179_v11  ;;  %v991_v22 = vunpack.c.l.bf16 %v180_v12  ;;  %v993_v23 = vunpack.c.h.bf16 %v179_v11  ;;  %v995_v24 = vunpack.c.l.bf16 %v182_v13 }
  0x15   : > { %v187_v25 = vld [vmem:[%s165_s17 + $0x40] ss:$8 sps:$4 sm:$0xff]   ;;  %v188_v26 = vld [vmem:[%s165_s17 + $0x44] sm:$0x1]  ;;  %v997_v27 = vld [vmem:[%s165_s17 + $0x4c] sm:$0x1]  ;;  %v999_v28 = vunpack.c.l.bf16 %v183_v18  ;;  %v1001_v29 = vunpack.c.l.bf16 %v184_v19  ;;  %v1003_v30 = vunpack.c.h.bf16 %v183_v18  ;;  %v1005_v31 = vunpack.c.l.bf16 %v186_v20 }
  0x16   : > { %v1007_v32 = vunpack.c.l.bf16 %v187_v25  ;;  %v1009_v33 = vunpack.c.l.bf16 %v188_v26  ;;  %v1011_v34 = vunpack.c.h.bf16 %v187_v25  ;;  %v210_v35 = vunpack.c.l.bf16 %v997_v27  ;;  %v884_v26 = vld [vmem:[%s1221_s1 + $0x2] ss:$0 sm:$0xff] }
  0x17   : > { %v226_v37 = vmul.f32 %v882_v10, %v971_v6  ;;  %v227_v38 = vmul.f32 %v882_v10, %v974_v8  ;;  %v228_v39 = vmul.f32 %v882_v10, %v981_v14  ;;  %v229_v40 = vmul.f32 %v882_v10, %v985_v16 }
  0x18   : > { %v230_v41 = vmul.f32 %v882_v10, %v989_v21  ;;  %v231_v42 = vmul.f32 %v882_v10, %v993_v23  ;;  %v232_v43 = vmul.f32 %v882_v10, %v999_v28  ;;  %v233_v44 = vmul.f32 %v882_v10, %v1003_v30 }
  0x19   : > { %v240_v45 = vmul.f32 %v883_v36, %v971_v6  ;;  %v241_v46 = vmul.f32 %v883_v36, %v192_v7  ;;  %v242_v47 = vmul.f32 %v883_v36, %v974_v8  ;;  %v243_v48 = vmul.f32 %v883_v36, %v976_v9 }
  0x1a   : > { %v244_v49 = vmul.f32 %v883_v36, %v981_v14  ;;  %v245_v50 = vmul.f32 %v883_v36, %v983_v15  ;;  %v246_v51 = vmul.f32 %v883_v36, %v985_v16  ;;  %v247_v52 = vmul.f32 %v883_v36, %v987_v17 }
  0x1b   : > { %v248_v53 = vmul.f32 %v883_v36, %v989_v21  ;;  %v249_v54 = vmul.f32 %v883_v36, %v991_v22  ;;  %v250_v55 = vmul.f32 %v883_v36, %v993_v23  ;;  %v251_v56 = vmul.f32 %v883_v36, %v995_v24 }
  0x1c   : > { %v252_v57 = vmul.f32 %v883_v36, %v999_v28  ;;  %v253_v58 = vmul.f32 %v883_v36, %v1001_v29  ;;  %v254_v59 = vmul.f32 %v883_v36, %v1003_v30  ;;  %v255_v60 = vmul.f32 %v883_v36, %v1005_v31 }
  0x1d   : > { %v273_v61 = vrot.slane %v240_v45, 1  ;;  %v274_v62 = vrot.slane %v241_v46, 1  ;;  %v276_v63 = vrot.slane %v242_v47, 1  ;;  %v277_v0 = vrot.slane %v243_v48, 1 }
  0x1e   : > { %v279_v2 = vrot.slane %v244_v49, 1  ;;  %v280_v3 = vrot.slane %v245_v50, 1  ;;  %v282_v4 = vrot.slane %v246_v51, 1  ;;  %v283_v5 = vrot.slane %v247_v52, 1 }
  0x1f   : > { %v275_v10 = vsel %vm272_vm0, %v273_v61, %v274_v62  ;;  %v278_v11 = vsel %vm272_vm0, %v276_v63, %v277_v0  ;;  %v285_v12 = vrot.slane %v248_v53, 1  ;;  %v286_v13 = vrot.slane %v249_v54, 1 }
  0x20   : > { %v281_v18 = vsel %vm272_vm0, %v279_v2, %v280_v3  ;;  %v284_v19 = vsel %vm272_vm0, %v282_v4, %v283_v5  ;;  %v288_v20 = vrot.slane %v250_v55, 1  ;;  %v289_v25 = vrot.slane %v251_v56, 1 }
  0x21   : > { %v287_v36 = vsel %vm272_vm0, %v285_v12, %v286_v13  ;;  %v291_v45 = vrot.slane %v252_v57, 1  ;;  %v292_v46 = vrot.slane %v253_v58, 1  ;;  %v294_v47 = vrot.slane %v254_v59, 1 }
  0x22   : > { %v290_v48 = vsel %vm272_vm0, %v288_v20, %v289_v25  ;;  %v295_v49 = vrot.slane %v255_v60, 1  ;;  %v305_v50 = vadd.f32 %v275_v10, %v226_v37  ;;  %v306_v51 = vadd.f32 %v278_v11, %v227_v38 }
  0x23   : > { %v293_v52 = vsel %vm272_vm0, %v291_v45, %v292_v46  ;;  %v307_v53 = vadd.f32 %v281_v18, %v228_v39  ;;  %v308_v54 = vadd.f32 %v284_v19, %v229_v40  ;;  %v309_v55 = vadd.f32 %v287_v36, %v230_v41 }
  0x24   : > { %v296_v56 = vsel %vm272_vm0, %v294_v47, %v295_v49  ;;  %v310_v61 = vadd.f32 %v290_v48, %v231_v42  ;;  %v311_v62 = vadd.f32 %v293_v52, %v232_v43  ;;  %v319_v63 = vmul.f32 %v884_v26, %v971_v6  ;;  %v885_v47 = vld [vmem:[%s1221_s1 + $0x3] ss:$0 sm:$0xff] }
  0x25   : > { %v312_v0 = vadd.f32 %v296_v56, %v233_v44  ;;  %v320_v57 = vmul.f32 %v884_v26, %v192_v7  ;;  %v321_v58 = vmul.f32 %v884_v26, %v974_v8  ;;  %v322_v37 = vmul.f32 %v884_v26, %v976_v9 }
  0x26   : > { %v323_v38 = vmul.f32 %v884_v26, %v981_v14  ;;  %v324_v39 = vmul.f32 %v884_v26, %v983_v15  ;;  %v325_v40 = vmul.f32 %v884_v26, %v985_v16  ;;  %v326_v41 = vmul.f32 %v884_v26, %v987_v17 }
  0x27   : > { %v327_v42 = vmul.f32 %v884_v26, %v989_v21  ;;  %v328_v6 = vmul.f32 %v884_v26, %v991_v22  ;;  %v329_v43 = vmul.f32 %v884_v26, %v993_v23  ;;  %v330_v1 = vmul.f32 %v884_v26, %v995_v24 }
  0x28   : > { %v331_v7 = vmul.f32 %v884_v26, %v999_v28  ;;  %v332_v44 = vmul.f32 %v884_v26, %v1001_v29  ;;  %v333_v59 = vmul.f32 %v884_v26, %v1003_v30  ;;  %v334_v60 = vmul.f32 %v884_v26, %v1005_v31 }
  0x29   : > { %v352_v2 = vrot.slane %v319_v63, 2  ;;  %v353_v3 = vrot.slane %v320_v57, 2  ;;  %v355_v4 = vrot.slane %v321_v58, 2  ;;  %v356_v5 = vrot.slane %v322_v37, 2 }
  0x2a   : > { %v358_v10 = vrot.slane %v323_v38, 2  ;;  %v359_v11 = vrot.slane %v324_v39, 2  ;;  %v361_v12 = vrot.slane %v325_v40, 2  ;;  %v362_v13 = vrot.slane %v326_v41, 2 }
  0x2b   : > { %v354_v18 = vsel %vm351_vm1, %v352_v2, %v353_v3  ;;  %v357_v19 = vsel %vm351_vm1, %v355_v4, %v356_v5  ;;  %v364_v20 = vrot.slane %v327_v42, 2  ;;  %v365_v25 = vrot.slane %v328_v6, 2 }
  0x2c   : > { %v360_v36 = vsel %vm351_vm1, %v358_v10, %v359_v11  ;;  %v363_v45 = vsel %vm351_vm1, %v361_v12, %v362_v13  ;;  %v367_v46 = vrot.slane %v329_v43, 2  ;;  %v368_v26 = vrot.slane %v330_v1, 2 }
  0x2d   : > { %v366_v48 = vsel %vm351_vm1, %v364_v20, %v365_v25  ;;  %v370_v49 = vrot.slane %v331_v7, 2  ;;  %v371_v52 = vrot.slane %v332_v44, 2  ;;  %v373_v56 = vrot.slane %v333_v59, 2 }
  0x2e   : > { %v369_v63 = vsel %vm351_vm1, %v367_v46, %v368_v26  ;;  %v374_v57 = vrot.slane %v334_v60, 2  ;;  %v384_v58 = vadd.f32 %v354_v18, %v305_v50  ;;  %v385_v37 = vadd.f32 %v357_v19, %v306_v51  ;;  %v886_v50 = vld [vmem:[%s1221_s1 + $0x4] ss:$0 sm:$0xff] }
  0x2f   : > { %v372_v38 = vsel %vm351_vm1, %v370_v49, %v371_v52  ;;  %v386_v39 = vadd.f32 %v360_v36, %v307_v53  ;;  %v387_v40 = vadd.f32 %v363_v45, %v308_v54  ;;  %v388_v41 = vadd.f32 %v366_v48, %v309_v55 }
  0x30   : > { %v375_v42 = vsel %vm351_vm1, %v373_v56, %v374_v57  ;;  %v389_v6 = vadd.f32 %v369_v63, %v310_v61  ;;  %v390_v43 = vadd.f32 %v372_v38, %v311_v62  ;;  %v398_v1 = vmul.f32 %v885_v47, %v974_v8 }
  0x31   : > { %v391_v2 = vadd.f32 %v375_v42, %v312_v0  ;;  %v399_v7 = vmul.f32 %v885_v47, %v981_v14  ;;  %v400_v44 = vmul.f32 %v885_v47, %v985_v16  ;;  %v401_v59 = vmul.f32 %v885_v47, %v989_v21 }
  0x32   : > { %v402_v51 = vmul.f32 %v885_v47, %v993_v23  ;;  %v403_v53 = vmul.f32 %v885_v47, %v999_v28  ;;  %v404_v54 = vmul.f32 %v885_v47, %v1003_v30  ;;  %v405_v55 = vmul.f32 %v885_v47, %v1007_v32 }
  0x33   : > { %v406_v61 = vadd.f32 %v398_v1, %v384_v58  ;;  %v407_v62 = vadd.f32 %v399_v7, %v385_v37  ;;  %v408_v0 = vadd.f32 %v400_v44, %v386_v39  ;;  %v409_v60 = vadd.f32 %v401_v59, %v387_v40 }
  0x34   : > { %v410_v3 = vadd.f32 %v402_v51, %v388_v41  ;;  %v411_v4 = vadd.f32 %v403_v53, %v389_v6  ;;  %v412_v5 = vadd.f32 %v404_v54, %v390_v43  ;;  %v413_v10 = vadd.f32 %v405_v55, %v391_v2 }
  0x35   : > { %v420_v11 = vmul.f32 %v886_v50, %v974_v8  ;;  %v421_v12 = vmul.f32 %v886_v50, %v976_v9  ;;  %v422_v13 = vmul.f32 %v886_v50, %v981_v14  ;;  %v423_v18 = vmul.f32 %v886_v50, %v983_v15 }
  0x36   : > { %v424_v19 = vmul.f32 %v886_v50, %v985_v16  ;;  %v425_v20 = vmul.f32 %v886_v50, %v987_v17  ;;  %v426_v25 = vmul.f32 %v886_v50, %v989_v21  ;;  %v427_v36 = vmul.f32 %v886_v50, %v991_v22 }
  0x37   : > { %v428_v45 = vmul.f32 %v886_v50, %v993_v23  ;;  %v429_v46 = vmul.f32 %v886_v50, %v995_v24  ;;  %v430_v26 = vmul.f32 %v886_v50, %v999_v28  ;;  %v431_v47 = vmul.f32 %v886_v50, %v1001_v29 }
  0x38   : > { %v432_v48 = vmul.f32 %v886_v50, %v1003_v30  ;;  %v433_v49 = vmul.f32 %v886_v50, %v1005_v31  ;;  %v434_v52 = vmul.f32 %v886_v50, %v1007_v32  ;;  %v435_v56 = vmul.f32 %v886_v50, %v1009_v33  ;;  %v887_v50 = vld [vmem:[%s1221_s1 + $0x5] ss:$0 sm:$0xff] }
  0x39   : > { %v452_v63 = vrot.slane %v420_v11, 1  ;;  %v453_v57 = vrot.slane %v421_v12, 1  ;;  %v455_v58 = vrot.slane %v422_v13, 1  ;;  %v456_v37 = vrot.slane %v423_v18, 1 }
  0x3a   : > { %v458_v38 = vrot.slane %v424_v19, 1  ;;  %v459_v39 = vrot.slane %v425_v20, 1  ;;  %v461_v40 = vrot.slane %v426_v25, 1  ;;  %v462_v41 = vrot.slane %v427_v36, 1 }
  0x3b   : > { %v454_v42 = vsel %vm272_vm0, %v452_v63, %v453_v57  ;;  %v457_v6 = vsel %vm272_vm0, %v455_v58, %v456_v37  ;;  %v464_v43 = vrot.slane %v428_v45, 1  ;;  %v465_v1 = vrot.slane %v429_v46, 1 }
  0x3c   : > { %v460_v2 = vsel %vm272_vm0, %v458_v38, %v459_v39  ;;  %v463_v7 = vsel %vm272_vm0, %v461_v40, %v462_v41  ;;  %v467_v44 = vrot.slane %v430_v26, 1  ;;  %v468_v59 = vrot.slane %v431_v47, 1 }
  0x3d   : > { %v466_v51 = vsel %vm272_vm0, %v464_v43, %v465_v1  ;;  %v470_v53 = vrot.slane %v432_v48, 1  ;;  %v471_v54 = vrot.slane %v433_v49, 1  ;;  %v473_v55 = vrot.slane %v434_v52, 1 }
  0x3e   : > { %v469_v11 = vsel %vm272_vm0, %v467_v44, %v468_v59  ;;  %v474_v12 = vrot.slane %v435_v56, 1  ;;  %v484_v13 = vadd.f32 %v454_v42, %v406_v61  ;;  %v485_v18 = vadd.f32 %v457_v6, %v407_v62 }
  0x3f   : > { %v472_v19 = vsel %vm272_vm0, %v470_v53, %v471_v54  ;;  %v486_v20 = vadd.f32 %v460_v2, %v408_v0  ;;  %v487_v25 = vadd.f32 %v463_v7, %v409_v60  ;;  %v488_v36 = vadd.f32 %v466_v51, %v410_v3  ;;  %v888_v53 = vld [vmem:[%s1221_s1 + $0x6] ss:$0 sm:$0xff] }
  0x40   : > { %v475_v45 = vsel %vm272_vm0, %v473_v55, %v474_v12  ;;  %v489_v46 = vadd.f32 %v469_v11, %v411_v4  ;;  %v490_v26 = vadd.f32 %v472_v19, %v412_v5  ;;  %v498_v47 = vmul.f32 %v887_v50, %v974_v8 }
  0x41   : > { %v491_v63 = vadd.f32 %v475_v45, %v413_v10  ;;  %v499_v48 = vmul.f32 %v887_v50, %v976_v9  ;;  %v500_v49 = vmul.f32 %v887_v50, %v981_v14  ;;  %v501_v52 = vmul.f32 %v887_v50, %v983_v15 }
  0x42   : > { %v502_v61 = vmul.f32 %v887_v50, %v985_v16  ;;  %v503_v62 = vmul.f32 %v887_v50, %v987_v17  ;;  %v504_v0 = vmul.f32 %v887_v50, %v989_v21  ;;  %v505_v60 = vmul.f32 %v887_v50, %v991_v22 }
  0x43   : > { %v506_v3 = vmul.f32 %v887_v50, %v993_v23  ;;  %v507_v4 = vmul.f32 %v887_v50, %v995_v24  ;;  %v508_v8 = vmul.f32 %v887_v50, %v999_v28  ;;  %v509_v9 = vmul.f32 %v887_v50, %v1001_v29 }
  0x44   : > { %v510_v5 = vmul.f32 %v887_v50, %v1003_v30  ;;  %v511_v10 = vmul.f32 %v887_v50, %v1005_v31  ;;  %v512_v56 = vmul.f32 %v887_v50, %v1007_v32  ;;  %v513_v57 = vmul.f32 %v887_v50, %v1009_v33 }
  0x45   : > { %v530_v58 = vrot.slane %v498_v47, 2  ;;  %v531_v37 = vrot.slane %v499_v48, 2  ;;  %v533_v38 = vrot.slane %v500_v49, 2  ;;  %v534_v39 = vrot.slane %v501_v52, 2 }
  0x46   : > { %v536_v40 = vrot.slane %v502_v61, 2  ;;  %v537_v41 = vrot.slane %v503_v62, 2  ;;  %v539_v42 = vrot.slane %v504_v0, 2  ;;  %v540_v6 = vrot.slane %v505_v60, 2 }
  0x47   : > { %v532_v43 = vsel %vm351_vm1, %v530_v58, %v531_v37  ;;  %v535_v1 = vsel %vm351_vm1, %v533_v38, %v534_v39  ;;  %v542_v2 = vrot.slane %v506_v3, 2  ;;  %v543_v7 = vrot.slane %v507_v4, 2 }
  0x48   : > { %v538_v44 = vsel %vm351_vm1, %v536_v40, %v537_v41  ;;  %v541_v59 = vsel %vm351_vm1, %v539_v42, %v540_v6  ;;  %v545_v51 = vrot.slane %v508_v8, 2  ;;  %v546_v50 = vrot.slane %v509_v9, 2 }
  0x49   : > { %v544_v54 = vsel %vm351_vm1, %v542_v2, %v543_v7  ;;  %v548_v55 = vrot.slane %v510_v5, 2  ;;  %v549_v11 = vrot.slane %v511_v10, 2  ;;  %v551_v12 = vrot.slane %v512_v56, 2 }
  0x4a   : > { %v547_v19 = vsel %vm351_vm1, %v545_v51, %v546_v50  ;;  %v552_v45 = vrot.slane %v513_v57, 2  ;;  %v562_v47 = vadd.f32 %v532_v43, %v484_v13  ;;  %v563_v48 = vadd.f32 %v535_v1, %v485_v18  ;;  %v889_v13 = vld [vmem:[%s1221_s1 + $0x7] ss:$0 sm:$0xff] }
  0x4b   : > { %v550_v49 = vsel %vm351_vm1, %v548_v55, %v549_v11  ;;  %v564_v52 = vadd.f32 %v538_v44, %v486_v20  ;;  %v565_v61 = vadd.f32 %v541_v59, %v487_v25  ;;  %v566_v62 = vadd.f32 %v544_v54, %v488_v36 }
  0x4c   : > { %v553_v0 = vsel %vm351_vm1, %v551_v12, %v552_v45  ;;  %v567_v60 = vadd.f32 %v547_v19, %v489_v46  ;;  %v568_v3 = vadd.f32 %v550_v49, %v490_v26  ;;  %v576_v4 = vmul.f32 %v888_v53, %v981_v14 }
  0x4d   : > { %v569_v8 = vadd.f32 %v553_v0, %v491_v63  ;;  %v577_v9 = vmul.f32 %v888_v53, %v985_v16  ;;  %v578_v5 = vmul.f32 %v888_v53, %v989_v21  ;;  %v579_v10 = vmul.f32 %v888_v53, %v993_v23 }
  0x4e   : > { %v580_v18 = vmul.f32 %v888_v53, %v999_v28  ;;  %v581_v20 = vmul.f32 %v888_v53, %v1003_v30  ;;  %v582_v25 = vmul.f32 %v888_v53, %v1007_v32  ;;  %v583_v36 = vmul.f32 %v888_v53, %v1011_v34 }
  0x4f   : > { %v584_v46 = vadd.f32 %v576_v4, %v562_v47  ;;  %v585_v26 = vadd.f32 %v577_v9, %v563_v48  ;;  %v586_v63 = vadd.f32 %v578_v5, %v564_v52  ;;  %v587_v56 = vadd.f32 %v579_v10, %v565_v61  ;;  %v890_v5 = vld [vmem:[%s1221_s1 + $0x8] ss:$0 sm:$0xff] }
  0x50   : > { %v588_v57 = vadd.f32 %v580_v18, %v566_v62  ;;  %v589_v58 = vadd.f32 %v581_v20, %v567_v60  ;;  %v590_v37 = vadd.f32 %v582_v25, %v568_v3  ;;  %v591_v38 = vadd.f32 %v583_v36, %v569_v8 }
  0x51   : > { %v598_v39 = vmul.f32 %v889_v13, %v981_v14  ;;  %v599_v40 = vmul.f32 %v889_v13, %v983_v15  ;;  %v600_v41 = vmul.f32 %v889_v13, %v985_v16  ;;  %v601_v42 = vmul.f32 %v889_v13, %v987_v17 }
  0x52   : > { %v602_v6 = vmul.f32 %v889_v13, %v989_v21  ;;  %v603_v43 = vmul.f32 %v889_v13, %v991_v22  ;;  %v604_v1 = vmul.f32 %v889_v13, %v993_v23  ;;  %v605_v2 = vmul.f32 %v889_v13, %v995_v24 }
  0x53   : > { %v606_v7 = vmul.f32 %v889_v13, %v999_v28  ;;  %v607_v44 = vmul.f32 %v889_v13, %v1001_v29  ;;  %v608_v59 = vmul.f32 %v889_v13, %v1003_v30  ;;  %v609_v51 = vmul.f32 %v889_v13, %v1005_v31 }
  0x54   : > { %v610_v50 = vmul.f32 %v889_v13, %v1007_v32  ;;  %v611_v53 = vmul.f32 %v889_v13, %v1009_v33  ;;  %v612_v54 = vmul.f32 %v889_v13, %v1011_v34  ;;  %v613_v55 = vmul.f32 %v889_v13, %v210_v35 }
  0x55   : > { %v630_v11 = vrot.slane %v598_v39, 1  ;;  %v631_v12 = vrot.slane %v599_v40, 1  ;;  %v633_v19 = vrot.slane %v600_v41, 1  ;;  %v634_v45 = vrot.slane %v601_v42, 1 }
  0x56   : > { %v636_v47 = vrot.slane %v602_v6, 1  ;;  %v637_v48 = vrot.slane %v603_v43, 1  ;;  %v639_v49 = vrot.slane %v604_v1, 1  ;;  %v640_v52 = vrot.slane %v605_v2, 1 }
  0x57   : > { %v632_v61 = vsel %vm272_vm0, %v630_v11, %v631_v12  ;;  %v635_v62 = vsel %vm272_vm0, %v633_v19, %v634_v45  ;;  %v642_v0 = vrot.slane %v606_v7, 1  ;;  %v643_v60 = vrot.slane %v607_v44, 1 }
  0x58   : > { %v638_v3 = vsel %vm272_vm0, %v636_v47, %v637_v48  ;;  %v641_v4 = vsel %vm272_vm0, %v639_v49, %v640_v52  ;;  %v645_v8 = vrot.slane %v608_v59, 1  ;;  %v646_v9 = vrot.slane %v609_v51, 1  ;;  %v891_v48 = vld [vmem:[%s1222_s2] ss:$0 sm:$0xff] }
  0x59   : > { %v644_v10 = vsel %vm272_vm0, %v642_v0, %v643_v60  ;;  %v648_v13 = vrot.slane %v610_v50, 1  ;;  %v649_v18 = vrot.slane %v611_v53, 1  ;;  %v651_v20 = vrot.slane %v612_v54, 1 }
  0x5a   : > { %v647_v25 = vsel %vm272_vm0, %v645_v8, %v646_v9  ;;  %v652_v36 = vrot.slane %v613_v55, 1  ;;  %v662_v39 = vadd.f32 %v632_v61, %v584_v46  ;;  %v663_v40 = vadd.f32 %v635_v62, %v585_v26 }
  0x5b   : > { %v650_v41 = vsel %vm272_vm0, %v648_v13, %v649_v18  ;;  %v664_v42 = vadd.f32 %v638_v3, %v586_v63  ;;  %v665_v6 = vadd.f32 %v641_v4, %v587_v56  ;;  %v666_v43 = vadd.f32 %v644_v10, %v588_v57 }
  0x5c   : > { %v653_v1 = vsel %vm272_vm0, %v651_v20, %v652_v36  ;;  %v667_v2 = vadd.f32 %v647_v25, %v589_v58  ;;  %v668_v7 = vadd.f32 %v650_v41, %v590_v37  ;;  %v676_v44 = vmul.f32 %v890_v5, %v981_v14 }
  0x5d   : > { %v669_v59 = vadd.f32 %v653_v1, %v591_v38  ;;  %v677_v51 = vmul.f32 %v890_v5, %v983_v15  ;;  %v678_v50 = vmul.f32 %v890_v5, %v985_v16  ;;  %v679_v53 = vmul.f32 %v890_v5, %v987_v17 }
  0x5e   : > { %v680_v46 = vmul.f32 %v890_v5, %v989_v21  ;;  %v681_v26 = vmul.f32 %v890_v5, %v991_v22  ;;  %v682_v63 = vmul.f32 %v890_v5, %v993_v23  ;;  %v683_v56 = vmul.f32 %v890_v5, %v995_v24 }
  0x5f   : > { %v684_v57 = vmul.f32 %v890_v5, %v999_v28  ;;  %v685_v58 = vmul.f32 %v890_v5, %v1001_v29  ;;  %v686_v14 = vmul.f32 %v890_v5, %v1003_v30  ;;  %v687_v15 = vmul.f32 %v890_v5, %v1005_v31 }
  0x60   : > { %v688_v16 = vmul.f32 %v890_v5, %v1007_v32  ;;  %v689_v17 = vmul.f32 %v890_v5, %v1009_v33  ;;  %v690_v21 = vmul.f32 %v890_v5, %v1011_v34  ;;  %v691_v22 = vmul.f32 %v890_v5, %v210_v35 }
  0x61   : > { %v708_v23 = vrot.slane %v676_v44, 2  ;;  %v709_v37 = vrot.slane %v677_v51, 2  ;;  %v711_v24 = vrot.slane %v678_v50, 2  ;;  %v712_v38 = vrot.slane %v679_v53, 2 }
  0x62   : > { %v714_v28 = vrot.slane %v680_v46, 2  ;;  %v715_v54 = vrot.slane %v681_v26, 2  ;;  %v717_v29 = vrot.slane %v682_v63, 2  ;;  %v718_v55 = vrot.slane %v683_v56, 2 }
  0x63   : > { %v710_v30 = vsel %vm351_vm1, %v708_v23, %v709_v37  ;;  %v713_v31 = vsel %vm351_vm1, %v711_v24, %v712_v38  ;;  %v720_v32 = vrot.slane %v684_v57, 2  ;;  %v721_v11 = vrot.slane %v685_v58, 2 }
  0x64   : > { %v716_v33 = vsel %vm351_vm1, %v714_v28, %v715_v54  ;;  %v719_v34 = vsel %vm351_vm1, %v717_v29, %v718_v55  ;;  %v723_v27 = vrot.slane %v686_v14, 2  ;;  %v724_v35 = vrot.slane %v687_v15, 2 }
  0x65   : > { %v722_v12 = vsel %vm351_vm1, %v720_v32, %v721_v11  ;;  %v726_v19 = vrot.slane %v688_v16, 2  ;;  %v727_v45 = vrot.slane %v689_v17, 2  ;;  %v729_v47 = vrot.slane %v690_v21, 2 }
  0x66   : > { %v725_v49 = vsel %vm351_vm1, %v723_v27, %v724_v35  ;;  %v730_v52 = vrot.slane %v691_v22, 2  ;;  %v740_v61 = vadd.f32 %v710_v30, %v662_v39  ;;  %v741_v62 = vadd.f32 %v713_v31, %v663_v40 }
  0x67   : > { %v728_v0 = vsel %vm351_vm1, %v726_v19, %v727_v45  ;;  %v742_v60 = vadd.f32 %v716_v33, %v664_v42  ;;  %v743_v3 = vadd.f32 %v719_v34, %v665_v6  ;;  %v744_v4 = vadd.f32 %v722_v12, %v666_v43 }
  0x68   : > { %v731_v8 = vsel %vm351_vm1, %v729_v47, %v730_v52  ;;  %v745_v9 = vadd.f32 %v725_v49, %v667_v2  ;;  %v746_v5 = vadd.f32 %v728_v0, %v668_v7  ;;  %v755_v10 = vadd.f32 %v891_v48, %v740_v61 }
  0x69   : > { %v747_v13 = vadd.f32 %v731_v8, %v669_v59  ;;  %v756_v18 = vadd.f32 %v891_v48, %v741_v62  ;;  %v757_v20 = vadd.f32 %v891_v48, %v742_v60  ;;  %v758_v25 = vadd.f32 %v891_v48, %v743_v3 }
  0x6a   : > { %v759_v36 = vadd.f32 %v891_v48, %v744_v4  ;;  %v760_v41 = vadd.f32 %v891_v48, %v745_v9  ;;  %v761_v1 = vadd.f32 %v891_v48, %v746_v5  ;;  %v763_v44 = vadd.f32 3.0, %v755_v10 }
  0x6b   : > { %v762_v39 = vadd.f32 %v891_v48, %v747_v13  ;;  %v764_v40 = vadd.f32 3.0, %v756_v18  ;;  %v765_v51 = vadd.f32 3.0, %v757_v20  ;;  %v766_v50 = vadd.f32 3.0, %v758_v25 }
  0x6c   : > { %v767_v42 = vadd.f32 3.0, %v759_v36  ;;  %v768_v6 = vadd.f32 3.0, %v760_v41  ;;  %v769_v43 = vadd.f32 3.0, %v761_v1  ;;  %v771_v53 = vmax.f32 %v763_v44, 0.0 }
  0x6d   : > { %v770_v46 = vadd.f32 3.0, %v762_v39  ;;  %v772_v2 = vmax.f32 %v764_v40, 0.0  ;;  %v773_v7 = vmax.f32 %v765_v51, 0.0  ;;  %v774_v59 = vmax.f32 %v766_v50, 0.0 }
  0x6e   : > { %v775_v26 = vmax.f32 %v767_v42, 0.0  ;;  %v776_v63 = vmax.f32 %v768_v6, 0.0  ;;  %v777_v56 = vmax.f32 %v769_v43, 0.0  ;;  %v779_v57 = vmin.f32 %v771_v53, 6.0 }
  0x6f   : > { %v778_v58 = vmax.f32 %v770_v46, 0.0  ;;  %v780_v14 = vmin.f32 %v772_v2, 6.0  ;;  %v781_v15 = vmin.f32 %v773_v7, 6.0  ;;  %v782_v16 = vmin.f32 %v774_v59, 6.0 }
  0x70   : > { %v783_v17 = vmin.f32 %v775_v26, 6.0  ;;  %v784_v21 = vmin.f32 %v776_v63, 6.0  ;;  %v785_v22 = vmin.f32 %v777_v56, 6.0  ;;  %v787_v23 = vmul.f32 %v779_v57, %v755_v10 }
  0x71   : > { %v786_v37 = vmin.f32 %v778_v58, 6.0  ;;  %v788_v24 = vmul.f32 %v780_v14, %v756_v18  ;;  %v789_v38 = vmul.f32 %v781_v15, %v757_v20  ;;  %v790_v28 = vmul.f32 %v782_v16, %v758_v25 }
  0x72   : > { %v791_v54 = vmul.f32 %v783_v17, %v759_v36  ;;  %v792_v29 = vmul.f32 %v784_v21, %v760_v41  ;;  %v793_v55 = vmul.f32 %v785_v22, %v761_v1  ;;  %v795_v30 = vmul.f32 0.16666667, %v787_v23 }
  0x73   : > { %v794_v31 = vmul.f32 %v786_v37, %v762_v39  ;;  %v796_v32 = vmul.f32 0.16666667, %v788_v24  ;;  %v797_v11 = vmul.f32 0.16666667, %v789_v38  ;;  %v798_v33 = vmul.f32 0.16666667, %v790_v28 }
  0x74   : > { %v799_v34 = vmul.f32 0.16666667, %v791_v54  ;;  %v800_v27 = vmul.f32 0.16666667, %v792_v29  ;;  %v801_v35 = vmul.f32 0.16666667, %v793_v55 }
  0x75   : > { %v802_v12 = vmul.f32 0.16666667, %v794_v31  ;;  %v898_v19 = vpack.c.bf16 %v796_v32, %v795_v30  ;;  %v903_v45 = vpack.c.bf16 %v798_v33, %v797_v11 }
  0x76   : > { %v908_v47 = vpack.c.bf16 %v800_v27, %v799_v34 }
  0x77   : > { %899 = vst [vmem:[%s170_s16] sm:$0xff] %v898_v19   ;;  %915 = vst [vmem:[%s170_s16 + $0x8] sm:$0xff] %v903_v45   ;;  %v913_v48 = vpack.c.bf16 %v802_v12, %v801_v35 }
  0x78   : > { %916 = vst [vmem:[%s170_s16 + $0x10] sm:$0xff] %v908_v47  }
  0x79   : > { %917 = vst [vmem:[%s170_s16 + $0x18] sm:$0xff] %v913_v48  }
  0x7a PF: > { %s13_s12 = sadd.s32 1, %s933_s12  }
  0x7b   : > { %p10_p4 = scmp.ge.s32.totalorder %s13_s12, 4  }
  0x7d   :  { %12 = sbr.rel (!%p10_p4) target bundleno = 1 (0x1), region = 62 }

// kernel: mobile_posnet_forward.21
= control target key start
LH: loop header
LB: loop body
LE: loop exit
PB: predicated region body
PF: predicated region fallthrough
CT: control target
= control target key end

     0   :  { %s618_s1 = inlined_call_operand.vmem [shape: bf16[128,128], index: 1, kind: input, shape index: {}]   ;;  %s619_s0 = inlined_call_operand.vmem [shape: bf16[128,128], index: 0, kind: input, shape index: {}]   ;;  %s620_s2 = inlined_call_operand.vmem [shape: f32[1,128], index: 2, kind: input, shape index: {}]   ;;  %s621_s3 = inlined_call_operand.vmem [shape: bf16[128,128], index: 3, kind: output, shape index: {}]  }
   0x1   :  { %v507_v0 = vld [vmem:[%s618_s1] sm:$0xff]   ;;  %v508_v1 = vld [vmem:[%s618_s1 + $0x8] sm:$0xff]   ;;  %v509_v2 = vld [vmem:[%s618_s1 + $0x10] sm:$0xff]  }
   0x2   :  { %459 = vmatprep.subr.bf16.mxu0 %v507_v0  ;;  %491 = vmatprep.subr.bf16.mxu1 %v507_v0  ;;  %v510_v3 = vld [vmem:[%s618_s1 + $0x18] sm:$0xff]   ;;  %v515_v4 = vld [vmem:[%s619_s0] sm:$0xff]   ;;  %v512_v7 = vld [vmem:[%s618_s1 + $0x28] sm:$0xff]  }
   0x3   :  { %460 = vmatpush3.bf16.msra.mxu0 %v507_v0  ;;  %499 = vmatpush3.bf16.msra.mxu1 %v507_v0  ;;  %v516_v5 = vld [vmem:[%s619_s0 + $0x20] sm:$0xff]   ;;  %v513_v8 = vld [vmem:[%s618_s1 + $0x30] sm:$0xff]   ;;  %v514_v9 = vld [vmem:[%s618_s1 + $0x38] sm:$0xff]  }
   0x4   :  { %461 = vmatprep.subr.bf16.mxu0 %v508_v1  ;;  %492 = vmatprep.subr.bf16.mxu1 %v508_v1  ;;  %v511_v6 = vld [vmem:[%s618_s1 + $0x20] sm:$0xff]   ;;  %v517_v10 = vld [vmem:[%s619_s0 + $0x8] sm:$0xff]   ;;  %v519_v12 = vld [vmem:[%s619_s0 + $0x10] sm:$0xff]  }
   0x5   :  { %475 = vmatprep.mubr.bf16.mxu0 %v515_v4  ;;  %483 = vmatprep.mubr.bf16.mxu1 %v516_v5  ;;  %v518_v11 = vld [vmem:[%s619_s0 + $0x28] sm:$0xff]   ;;  %v520_v13 = vld [vmem:[%s619_s0 + $0x30] sm:$0xff]   ;;  %v521_v14 = vld [vmem:[%s619_s0 + $0x18] sm:$0xff]  }
   0x6   :  { %v522_v15 = vld [vmem:[%s619_s0 + $0x38] sm:$0xff]   ;;  %v347_v16 = vld [vmem:[%s620_s2] ss:$0 sm:$0xff] }
   0x7   :  { %462 = vmatpush3.bf16.msra.mxu0 %v508_v1  ;;  %500 = vmatpush3.bf16.msra.mxu1 %v508_v1 }
   0x8   :  { %463 = vmatprep.subr.bf16.mxu0 %v509_v2  ;;  %493 = vmatprep.subr.bf16.mxu1 %v509_v2 }
   0xb   :  { %464 = vmatpush3.bf16.msra.mxu0 %v509_v2  ;;  %501 = vmatpush3.bf16.msra.mxu1 %v509_v2 }
   0xc   :  { %465 = vmatprep.subr.bf16.mxu0 %v510_v3  ;;  %494 = vmatprep.subr.bf16.mxu1 %v510_v3 }
   0xf   :  { %466 = vmatpush3.bf16.msra.mxu0 %v510_v3  ;;  %502 = vmatpush3.bf16.msra.mxu1 %v510_v3 }
  0x10   :  { %467 = vmatprep.subr.bf16.mxu0 %v511_v6  ;;  %495 = vmatprep.subr.bf16.mxu1 %v511_v6 }
  0x13   :  { %468 = vmatpush3.bf16.msra.mxu0 %v511_v6  ;;  %503 = vmatpush3.bf16.msra.mxu1 %v511_v6 }
  0x14   :  { %469 = vmatprep.subr.bf16.mxu0 %v512_v7  ;;  %496 = vmatprep.subr.bf16.mxu1 %v512_v7 }
  0x17   :  { %470 = vmatpush3.bf16.msra.mxu0 %v512_v7  ;;  %504 = vmatpush3.bf16.msra.mxu1 %v512_v7 }
  0x18   :  { %471 = vmatprep.subr.bf16.mxu0 %v513_v8  ;;  %497 = vmatprep.subr.bf16.mxu1 %v513_v8 }
  0x1b   :  { %472 = vmatpush3.bf16.msra.mxu0 %v513_v8  ;;  %505 = vmatpush3.bf16.msra.mxu1 %v513_v8 }
  0x1c   :  { %473 = vmatprep.subr.bf16.mxu0 %v514_v9  ;;  %498 = vmatprep.subr.bf16.mxu1 %v514_v9 }
  0x1f   :  { %474 = vmatpush3.bf16.msra.mxu0 %v514_v9  ;;  %506 = vmatpush3.bf16.msra.mxu1 %v514_v9 }
  0x22   :  { %476 = vmatmul.mubr.bf16.vlgmr.msra.gmra.mrb[0].mxu0 %v517_v10  ;;  %484 = vmatmul.mubr.bf16.vlgmr.msra.gmra.mrb[0].mxu1 %v518_v11 }
  0x23   :  { %479 = vmatprep.mubr.bf16.mxu0 %v519_v12  ;;  %487 = vmatprep.mubr.bf16.mxu1 %v520_v13 }
  0x2a   :  { %480 = vmatmul.mubr.bf16.gmra.mrb[4].mxu0 %v521_v14  ;;  %488 = vmatmul.mubr.bf16.gmra.mrb[4].mxu1 %v522_v15 }
  0xf5   :  { %v477_v17 = vpop.f32.mrb[0].mxu0  ;;  %v485_v18 = vpop.f32.mrb[0].mxu1 }
  0xf6   :  { %v193_v19 = vadd.f32 %v477_v17, %v347_v16  ;;  %v225_v20 = vadd.f32 %v485_v18, %v347_v16  ;;  %v184_v21 = vpop.f32.mrb[1].mxu0  ;;  %v216_v22 = vpop.f32.mrb[1].mxu1 }
  0xf7   :  { %v185_v23 = vadd.f32 %v347_v16, %v184_v21  ;;  %v217_v24 = vadd.f32 %v347_v16, %v216_v22  ;;  %v478_v25 = vpop.f32.mrb[2].mxu0  ;;  %v486_v26 = vpop.f32.mrb[2].mxu1 }
  0xf8   :  { %v196_v27 = vadd.f32 %v478_v25, %v347_v16  ;;  %v228_v28 = vadd.f32 %v486_v26, %v347_v16  ;;  %v187_v29 = vpop.f32.mrb[3].mxu0  ;;  %v219_v30 = vpop.f32.mrb[3].mxu1  ;;  %v249_v33 = vmax.f32 %v193_v19, 0.0  ;;  %v257_v34 = vmax.f32 %v225_v20, 0.0 }
  0xf9   :  { %v188_v31 = vadd.f32 %v347_v16, %v187_v29  ;;  %v220_v32 = vadd.f32 %v347_v16, %v219_v30  ;;  %v247_v37 = vmax.f32 %v185_v23, 0.0  ;;  %v255_v38 = vmax.f32 %v217_v24, 0.0 }
  0xfa   :  { %v250_v35 = vmax.f32 %v196_v27, 0.0  ;;  %v258_v36 = vmax.f32 %v228_v28, 0.0 }
  0xfb   :  { %v248_v39 = vmax.f32 %v188_v31, 0.0  ;;  %v256_v40 = vmax.f32 %v220_v32, 0.0 }
  0xfc   :  { %v404_v41 = vpack.c.bf16 %v250_v35, %v249_v33  ;;  %v424_v42 = vpack.c.bf16 %v258_v36, %v257_v34 }
  0xfd   :  { %v399_v43 = vpack.c.bf16 %v248_v39, %v247_v37  ;;  %v419_v44 = vpack.c.bf16 %v256_v40, %v255_v38  ;;  %v481_v45 = vpop.f32.mrb[4].mxu0  ;;  %v489_v46 = vpop.f32.mrb[4].mxu1 }
  0xfe   :  { %436 = vst [vmem:[%s621_s3 + $0x8] sm:$0xff] %v404_v41   ;;  %440 = vst [vmem:[%s621_s3 + $0x28] sm:$0xff] %v424_v42   ;;  %v209_v47 = vadd.f32 %v481_v45, %v347_v16  ;;  %v241_v48 = vadd.f32 %v489_v46, %v347_v16  ;;  %v200_v49 = vpop.f32.mrb[5].mxu0  ;;  %v232_v50 = vpop.f32.mrb[5].mxu1 }
  0xff   :  { %400 = vst [vmem:[%s621_s3] sm:$0xff] %v399_v43   ;;  %439 = vst [vmem:[%s621_s3 + $0x20] sm:$0xff] %v419_v44   ;;  %v201_v51 = vadd.f32 %v347_v16, %v200_v49  ;;  %v233_v52 = vadd.f32 %v347_v16, %v232_v50  ;;  %v482_v53 = vpop.f32.mrb[6].mxu0  ;;  %v490_v54 = vpop.f32.mrb[6].mxu1 }
 0x100   :  { %v212_v55 = vadd.f32 %v482_v53, %v347_v16  ;;  %v244_v56 = vadd.f32 %v490_v54, %v347_v16  ;;  %v203_v57 = vpop.f32.mrb[7].mxu0  ;;  %v235_v58 = vpop.f32.mrb[7].mxu1  ;;  %v253_v61 = vmax.f32 %v209_v47, 0.0  ;;  %v261_v62 = vmax.f32 %v241_v48, 0.0 }
 0x101   :  { %v204_v59 = vadd.f32 %v347_v16, %v203_v57  ;;  %v236_v60 = vadd.f32 %v347_v16, %v235_v58  ;;  %v251_v1 = vmax.f32 %v201_v51, 0.0  ;;  %v259_v2 = vmax.f32 %v233_v52, 0.0 }
 0x102   :  { %v254_v63 = vmax.f32 %v212_v55, 0.0  ;;  %v262_v0 = vmax.f32 %v244_v56, 0.0 }
 0x103   :  { %v252_v3 = vmax.f32 %v204_v59, 0.0  ;;  %v260_v4 = vmax.f32 %v236_v60, 0.0 }
 0x104   :  { %v414_v5 = vpack.c.bf16 %v254_v63, %v253_v61  ;;  %v434_v6 = vpack.c.bf16 %v262_v0, %v261_v62 }
 0x105   :  { %v409_v7 = vpack.c.bf16 %v252_v3, %v251_v1  ;;  %v429_v8 = vpack.c.bf16 %v260_v4, %v259_v2 }
 0x106   :  { %438 = vst [vmem:[%s621_s3 + $0x18] sm:$0xff] %v414_v5   ;;  %442 = vst [vmem:[%s621_s3 + $0x38] sm:$0xff] %v434_v6  }
 0x107   :  { %437 = vst [vmem:[%s621_s3 + $0x10] sm:$0xff] %v409_v7   ;;  %441 = vst [vmem:[%s621_s3 + $0x30] sm:$0xff] %v429_v8  }

// kernel: mobile_posnet_forward.19
= control target key start
LH: loop header
LB: loop body
LE: loop exit
PB: predicated region body
PF: predicated region fallthrough
CT: control target
= control target key end

     0   :  { %v1168_v32 = vmov 0   ;;  %s1411_s1 = inlined_call_operand.vmem [shape: bf16[128,128], index: 1, kind: input, shape index: {}]   ;;  %s1412_s0 = inlined_call_operand.vmem [shape: bf16[128,128], index: 0, kind: input, shape index: {}]   ;;  %s1413_s3 = inlined_call_operand.vmem [shape: bf16[128,256], index: 3, kind: input, shape index: {}]   ;;  %s1414_s2 = inlined_call_operand.vmem [shape: f32[1,128], index: 2, kind: input, shape index: {}]   ;;  %s1415_s4 = inlined_call_operand.vmem [shape: f32[1,256], index: 4, kind: input, shape index: {}]   ;;  %s1416_s5 = inlined_call_operand.vmem [shape: bf16[128,256], index: 5, kind: output, shape index: {}]  }
   0x1   :  { %v1000_v0 = vld [vmem:[%s1411_s1] sm:$0xff]   ;;  %v1001_v1 = vld [vmem:[%s1411_s1 + $0x8] sm:$0xff]   ;;  %v1002_v2 = vld [vmem:[%s1411_s1 + $0x10] sm:$0xff]   ;;  %501 = vmatprep.mubr.bf16.mxu1 %v1168_v32 }
   0x2   :  { %951 = vmatprep.subr.bf16.mxu0 %v1000_v0  ;;  %v1003_v3 = vld [vmem:[%s1411_s1 + $0x18] sm:$0xff]   ;;  %v1008_v4 = vld [vmem:[%s1412_s0] sm:$0xff]   ;;  %v1005_v6 = vld [vmem:[%s1411_s1 + $0x28] sm:$0xff]  }
   0x3   :  { %952 = vmatpush3.bf16.msra.mxu0 %v1000_v0  ;;  %967 = vmatprep.mubr.bf16.mxu0 %v1008_v4  ;;  %v1004_v5 = vld [vmem:[%s1411_s1 + $0x20] sm:$0xff]   ;;  %v1006_v9 = vld [vmem:[%s1411_s1 + $0x30] sm:$0xff]   ;;  %v1007_v13 = vld [vmem:[%s1411_s1 + $0x38] sm:$0xff]  }
   0x4   :  { %953 = vmatprep.subr.bf16.mxu0 %v1001_v1  ;;  %v1018_v7 = vld [vmem:[%s1413_s3 + $0x4] ss:$8 sps:$4 sm:$0xff]   ;;  %v1016_v8 = vld [vmem:[%s1413_s3] ss:$8 sps:$4 sm:$0xff]   ;;  %v1021_v10 = vld [vmem:[%s1413_s3 + $0x14] ss:$8 sps:$4 sm:$0xff]  }
   0x5   :  { %983 = vmatprep.subr.bf16.mxu1 %v1018_v7  ;;  %v1019_v11 = vld [vmem:[%s1413_s3 + $0x10] ss:$8 sps:$4 sm:$0xff]   ;;  %v1024_v12 = vld [vmem:[%s1413_s3 + $0x24] ss:$8 sps:$4 sm:$0xff]   ;;  %v1022_v14 = vld [vmem:[%s1413_s3 + $0x20] ss:$8 sps:$4 sm:$0xff]  }
   0x6   :  { %991 = vmatpush1.bf16.msra.mxu1 %v1016_v8  ;;  %v1027_v15 = vld [vmem:[%s1413_s3 + $0x34] ss:$8 sps:$4 sm:$0xff]   ;;  %v1009_v16 = vld [vmem:[%s1412_s0 + $0x8] sm:$0xff]   ;;  %v1025_v17 = vld [vmem:[%s1413_s3 + $0x30] ss:$8 sps:$4 sm:$0xff]  }
   0x7   :  { %954 = vmatpush3.bf16.msra.mxu0 %v1001_v1  ;;  %984 = vmatprep.subr.bf16.mxu1 %v1021_v10  ;;  %v1010_v18 = vld [vmem:[%s1412_s0 + $0x10] sm:$0xff]   ;;  %v1011_v19 = vld [vmem:[%s1412_s0 + $0x18] sm:$0xff]   ;;  %v1012_v20 = vld [vmem:[%s1412_s0 + $0x20] sm:$0xff]  }
   0x8   :  { %955 = vmatprep.subr.bf16.mxu0 %v1002_v2  ;;  %v1013_v21 = vld [vmem:[%s1412_s0 + $0x28] sm:$0xff]   ;;  %v1014_v22 = vld [vmem:[%s1412_s0 + $0x30] sm:$0xff]   ;;  %v1015_v23 = vld [vmem:[%s1412_s0 + $0x38] sm:$0xff]  }
   0x9   :  { %v1030_v24 = vld [vmem:[%s1413_s3 + $0x44] ss:$8 sps:$4 sm:$0xff]   ;;  %v1028_v25 = vld [vmem:[%s1413_s3 + $0x40] ss:$8 sps:$4 sm:$0xff]   ;;  %v1033_v26 = vld [vmem:[%s1413_s3 + $0x54] ss:$8 sps:$4 sm:$0xff]  }
   0xa   :  { %992 = vmatpush1.bf16.msra.mxu1 %v1019_v11  ;;  %v1031_v27 = vld [vmem:[%s1413_s3 + $0x50] ss:$8 sps:$4 sm:$0xff]   ;;  %v1036_v28 = vld [vmem:[%s1413_s3 + $0x64] ss:$8 sps:$4 sm:$0xff]   ;;  %v1034_v29 = vld [vmem:[%s1413_s3 + $0x60] ss:$8 sps:$4 sm:$0xff]  }
   0xb   :  { %956 = vmatpush3.bf16.msra.mxu0 %v1002_v2  ;;  %985 = vmatprep.subr.bf16.mxu1 %v1024_v12  ;;  %v1039_v30 = vld [vmem:[%s1413_s3 + $0x74] ss:$8 sps:$4 sm:$0xff]   ;;  %v1037_v31 = vld [vmem:[%s1413_s3 + $0x70] ss:$8 sps:$4 sm:$0xff]   ;;  %v1300_v33 = vld [vmem:[%s1414_s2] ss:$0 sm:$0xff] }
   0xc   :  { %957 = vmatprep.subr.bf16.mxu0 %v1003_v3 }
   0xe   :  { %993 = vmatpush1.bf16.msra.mxu1 %v1022_v14 }
   0xf   :  { %958 = vmatpush3.bf16.msra.mxu0 %v1003_v3  ;;  %986 = vmatprep.subr.bf16.mxu1 %v1027_v15 }
  0x10   :  { %959 = vmatprep.subr.bf16.mxu0 %v1004_v5 }
  0x12   :  { %994 = vmatpush1.bf16.msra.mxu1 %v1025_v17 }
  0x13   :  { %960 = vmatpush3.bf16.msra.mxu0 %v1004_v5  ;;  %987 = vmatprep.subr.bf16.mxu1 %v1030_v24 }
  0x14   :  { %961 = vmatprep.subr.bf16.mxu0 %v1005_v6 }
  0x16   :  { %995 = vmatpush1.bf16.msra.mxu1 %v1028_v25 }
  0x17   :  { %962 = vmatpush3.bf16.msra.mxu0 %v1005_v6  ;;  %988 = vmatprep.subr.bf16.mxu1 %v1033_v26 }
  0x18   :  { %963 = vmatprep.subr.bf16.mxu0 %v1006_v9 }
  0x1a   :  { %996 = vmatpush1.bf16.msra.mxu1 %v1031_v27 }
  0x1b   :  { %964 = vmatpush3.bf16.msra.mxu0 %v1006_v9  ;;  %989 = vmatprep.subr.bf16.mxu1 %v1036_v28 }
  0x1c   :  { %965 = vmatprep.subr.bf16.mxu0 %v1007_v13 }
  0x1e   :  { %997 = vmatpush1.bf16.msra.mxu1 %v1034_v29 }
  0x1f   :  { %966 = vmatpush3.bf16.msra.mxu0 %v1007_v13  ;;  %990 = vmatprep.subr.bf16.mxu1 %v1039_v30 }
  0x20   :  { %449 = vmatprep.subr.bf16.mxu0 %v1018_v7 }
  0x22   :  { %968 = vmatmul.mubr.bf16.vlgmr.msra.gmra.mrb[0].mxu0 %v1009_v16  ;;  %998 = vmatpush1.bf16.msra.mxu1 %v1037_v31 }
  0x23   :  { %971 = vmatprep.mubr.bf16.mxu0 %v1010_v18  ;;  %450 = vmatpush1.bf16.msra.mxu0 %v1016_v8 }
  0x24   :  { %451 = vmatprep.subr.bf16.mxu0 %v1021_v10 }
  0x27   :  { %452 = vmatpush1.bf16.msra.mxu0 %v1019_v11 }
  0x28   :  { %453 = vmatprep.subr.bf16.mxu0 %v1024_v12 }
  0x2a   :  { %972 = vmatmul.mubr.bf16.gmra.mrb[4].mxu0 %v1011_v19 }
  0x2b   :  { %975 = vmatprep.mubr.bf16.mxu0 %v1012_v20  ;;  %454 = vmatpush1.bf16.msra.mxu0 %v1022_v14 }
  0x2c   :  { %455 = vmatprep.subr.bf16.mxu0 %v1027_v15 }
  0x2f   :  { %456 = vmatpush1.bf16.msra.mxu0 %v1025_v17 }
  0x30   :  { %457 = vmatprep.subr.bf16.mxu0 %v1030_v24 }
  0x32   :  { %976 = vmatmul.mubr.bf16.gmra.mrb[8].mxu0 %v1013_v21 }
  0x33   :  { %979 = vmatprep.mubr.bf16.mxu0 %v1014_v22  ;;  %458 = vmatpush1.bf16.msra.mxu0 %v1028_v25 }
  0x34   :  { %459 = vmatprep.subr.bf16.mxu0 %v1033_v26 }
  0x37   :  { %460 = vmatpush1.bf16.msra.mxu0 %v1031_v27 }
  0x38   :  { %461 = vmatprep.subr.bf16.mxu0 %v1036_v28 }
  0x3a   :  { %980 = vmatmul.mubr.bf16.gmra.mrb[12].mxu0 %v1015_v23 }
  0x3b   :  { %462 = vmatpush1.bf16.msra.mxu0 %v1034_v29  ;;  %481 = vmatprep.mubr.bf16.mxu0 %v1168_v32 }
  0x3c   :  { %463 = vmatprep.subr.bf16.mxu0 %v1039_v30 }
  0x3f   :  { %464 = vmatpush1.bf16.msra.mxu0 %v1037_v31 }
  0xf5   :  { %v969_v34 = vpop.f32.mrb[0].mxu0 }
  0xf6   :  { %v199_v35 = vadd.f32 %v969_v34, %v1300_v33  ;;  %v190_v36 = vpop.f32.mrb[1].mxu0 }
  0xf7   :  { %v191_v37 = vadd.f32 %v1300_v33, %v190_v36  ;;  %v970_v38 = vpop.f32.mrb[2].mxu0 }
  0xf8   :  { %v255_v39 = vadd.f32 3.0, %v199_v35  ;;  %v202_v40 = vadd.f32 %v970_v38, %v1300_v33  ;;  %v193_v41 = vpop.f32.mrb[3].mxu0 }
  0xf9   :  { %v253_v42 = vadd.f32 3.0, %v191_v37  ;;  %v194_v43 = vadd.f32 %v1300_v33, %v193_v41 }
  0xfa   :  { %v271_v44 = vmax.f32 %v255_v39, 0.0  ;;  %v256_v45 = vadd.f32 3.0, %v202_v40 }
  0xfb   :  { %v269_v46 = vmax.f32 %v253_v42, 0.0  ;;  %v254_v47 = vadd.f32 3.0, %v194_v43 }
  0xfc   :  { %v287_v48 = vmin.f32 %v271_v44, 6.0  ;;  %v272_v49 = vmax.f32 %v256_v45, 0.0 }
  0xfd   :  { %v285_v50 = vmin.f32 %v269_v46, 6.0  ;;  %v270_v51 = vmax.f32 %v254_v47, 0.0  ;;  %v973_v52 = vpop.f32.mrb[4].mxu0 }
  0xfe   :  { %v303_v53 = vmul.f32 %v287_v48, %v199_v35  ;;  %v288_v54 = vmin.f32 %v272_v49, 6.0  ;;  %v215_v55 = vadd.f32 %v973_v52, %v1300_v33  ;;  %v206_v56 = vpop.f32.mrb[5].mxu0 }
  0xff   :  { %v301_v57 = vmul.f32 %v285_v50, %v191_v37  ;;  %v286_v58 = vmin.f32 %v270_v51, 6.0  ;;  %v207_v59 = vadd.f32 %v1300_v33, %v206_v56  ;;  %v974_v60 = vpop.f32.mrb[6].mxu0 }
 0x100   :  { %v304_v61 = vmul.f32 %v288_v54, %v202_v40  ;;  %v259_v62 = vadd.f32 3.0, %v215_v55  ;;  %v218_v63 = vadd.f32 %v974_v60, %v1300_v33  ;;  %v209_v0 = vpop.f32.mrb[7].mxu0  ;;  %v319_v4 = vmul.f32 0.16666667, %v303_v53 }
 0x101   :  { %v302_v1 = vmul.f32 %v286_v58, %v194_v43  ;;  %v257_v2 = vadd.f32 3.0, %v207_v59  ;;  %v210_v3 = vadd.f32 %v1300_v33, %v209_v0  ;;  %v317_v8 = vmul.f32 0.16666667, %v301_v57 }
 0x102   :  { %v320_v5 = vmul.f32 0.16666667, %v304_v61  ;;  %v275_v6 = vmax.f32 %v259_v62, 0.0  ;;  %v260_v7 = vadd.f32 3.0, %v218_v63 }
 0x103   :  { %v318_v9 = vmul.f32 0.16666667, %v302_v1  ;;  %v273_v10 = vmax.f32 %v257_v2, 0.0  ;;  %v258_v11 = vadd.f32 3.0, %v210_v3 }
 0x104   :  { %v291_v12 = vmin.f32 %v275_v6, 6.0  ;;  %v276_v13 = vmax.f32 %v260_v7, 0.0  ;;  %v351_v14 = vpack.c.bf16 %v320_v5, %v319_v4 }
 0x105   :  { %v350_v15 = vpack.c.bf16 %v318_v9, %v317_v8  ;;  %v289_v16 = vmin.f32 %v273_v10, 6.0  ;;  %v274_v17 = vmax.f32 %v258_v11, 0.0  ;;  %v977_v18 = vpop.f32.mrb[8].mxu0 }
 0x106   :  { %v307_v19 = vmul.f32 %v291_v12, %v215_v55  ;;  %v292_v20 = vmin.f32 %v276_v13, 6.0  ;;  %v231_v21 = vadd.f32 %v977_v18, %v1300_v33  ;;  %v222_v22 = vpop.f32.mrb[9].mxu0 }
 0x107   :  { %v305_v23 = vmul.f32 %v289_v16, %v207_v59  ;;  %v290_v24 = vmin.f32 %v274_v17, 6.0  ;;  %v223_v25 = vadd.f32 %v1300_v33, %v222_v22  ;;  %v978_v26 = vpop.f32.mrb[10].mxu0  ;;  %482 = vmatmul.mubr.bf16.vlgmr.msra.gmra.mrb[16].mxu0 %v350_v15 }
 0x108   :  { %v308_v27 = vmul.f32 %v292_v20, %v218_v63  ;;  %v263_v28 = vadd.f32 3.0, %v231_v21  ;;  %v234_v29 = vadd.f32 %v978_v26, %v1300_v33  ;;  %v225_v30 = vpop.f32.mrb[11].mxu0  ;;  %491 = vmatprep.mubr.bf16.mxu0 %v1168_v32  ;;  %v323_v36 = vmul.f32 0.16666667, %v307_v19 }
 0x109   :  { %v306_v31 = vmul.f32 %v290_v24, %v210_v3  ;;  %v261_v34 = vadd.f32 3.0, %v223_v25  ;;  %v226_v35 = vadd.f32 %v1300_v33, %v225_v30  ;;  %v321_v40 = vmul.f32 0.16666667, %v305_v23  ;;  %v349_v30 = vld [vmem:[%s1415_s4] sm:$0x3] }
 0x10a   :  { %v324_v37 = vmul.f32 0.16666667, %v308_v27  ;;  %v279_v38 = vmax.f32 %v263_v28, 0.0  ;;  %v264_v39 = vadd.f32 3.0, %v234_v29  ;;  %v359_v27 = vlaneseq }
 0x10b   :  { %v322_v41 = vmul.f32 0.16666667, %v306_v31  ;;  %v277_v42 = vmax.f32 %v261_v34, 0.0  ;;  %v262_v43 = vadd.f32 3.0, %v226_v35 }
 0x10c   :  { %v295_v44 = vmin.f32 %v279_v38, 6.0  ;;  %v280_v45 = vmax.f32 %v264_v39, 0.0  ;;  %v353_v46 = vpack.c.bf16 %v324_v37, %v323_v36  ;;  %v360_v28 = vshrl.u32 %v359_v27, 7 }
 0x10d   :  { %v293_v47 = vmin.f32 %v277_v42, 6.0  ;;  %v278_v48 = vmax.f32 %v262_v43, 0.0  ;;  %v352_v49 = vpack.c.bf16 %v322_v41, %v321_v40  ;;  %v981_v50 = vpop.f32.mrb[12].mxu0 }
 0x10e   :  { %v311_v51 = vmul.f32 %v295_v44, %v231_v21  ;;  %v296_v52 = vmin.f32 %v280_v45, 6.0  ;;  %v247_v53 = vadd.f32 %v981_v50, %v1300_v33  ;;  %v238_v54 = vpop.f32.mrb[13].mxu0  ;;  %v365_v31 = vsub.s32 1, %v360_v28 }
 0x10f   :  { %v309_v55 = vmul.f32 %v293_v47, %v223_v25  ;;  %v294_v56 = vmin.f32 %v278_v48, 6.0  ;;  %492 = vmatmul.mubr.bf16.gmra.mrb[20].mxu0 %v351_v14  ;;  %502 = vmatmul.mubr.bf16.vlgmr.msra.gmra.mrb[0].mxu1 %v352_v49  ;;  %v239_v57 = vadd.f32 %v1300_v33, %v238_v54  ;;  %v982_v58 = vpop.f32.mrb[14].mxu0 }
 0x110   :  { %v327_v59 = vmul.f32 0.16666667, %v311_v51  ;;  %v312_v60 = vmul.f32 %v296_v52, %v234_v29  ;;  %v267_v61 = vadd.f32 3.0, %v247_v53  ;;  %v250_v62 = vadd.f32 %v982_v58, %v1300_v33  ;;  %511 = vmatprep.mubr.bf16.mxu1 %v1168_v32  ;;  %v241_v63 = vpop.f32.mrb[15].mxu0 }
 0x111   :  { %v325_v0 = vmul.f32 0.16666667, %v309_v55  ;;  %v310_v1 = vmul.f32 %v294_v56, %v226_v35  ;;  %v265_v2 = vadd.f32 3.0, %v239_v57  ;;  %v242_v3 = vadd.f32 %v1300_v33, %v241_v63 }
 0x112   :  { %v328_v4 = vmul.f32 0.16666667, %v312_v60  ;;  %v283_v5 = vmax.f32 %v267_v61, 0.0  ;;  %v268_v6 = vadd.f32 3.0, %v250_v62  ;;  %v361_v29 = vsub.s32 0, %v360_v28 }
 0x113   :  { %v326_v7 = vmul.f32 0.16666667, %v310_v1  ;;  %v281_v8 = vmax.f32 %v265_v2, 0.0  ;;  %v266_v9 = vadd.f32 3.0, %v242_v3  ;;  %v1329_v35 = vrot.slane %v349_v30, %v365_v31 }
 0x114   :  { %v299_v10 = vmin.f32 %v283_v5, 6.0  ;;  %v284_v11 = vmax.f32 %v268_v6, 0.0  ;;  %v355_v12 = vpack.c.bf16 %v328_v4, %v327_v59  ;;  %v1327_v34 = vrot.slane %v349_v30, %v361_v29 }
 0x115   :  { %v297_v13 = vmin.f32 %v281_v8, 6.0  ;;  %v282_v14 = vmax.f32 %v266_v9, 0.0  ;;  %v354_v15 = vpack.c.bf16 %v326_v7, %v325_v0 }
 0x116   :  { %v315_v16 = vmul.f32 %v299_v10, %v247_v53  ;;  %v300_v17 = vmin.f32 %v284_v11, 6.0 }
 0x117   :  { %v313_v18 = vmul.f32 %v297_v13, %v239_v57  ;;  %v298_v19 = vmin.f32 %v282_v14, 6.0  ;;  %512 = vmatmul.mubr.bf16.gmra.mrb[4].mxu1 %v353_v46 }
 0x118   :  { %v331_v20 = vmul.f32 0.16666667, %v315_v16  ;;  %v316_v21 = vmul.f32 %v300_v17, %v250_v62  ;;  %521 = vmatprep.mubr.bf16.mxu1 %v1168_v32 }
 0x119   :  { %v329_v33 = vmul.f32 0.16666667, %v313_v18  ;;  %v314_v22 = vmul.f32 %v298_v19, %v242_v3 }
 0x11a   :  { %v332_v23 = vmul.f32 0.16666667, %v316_v21 }
 0x11b   :  { %v330_v24 = vmul.f32 0.16666667, %v314_v22 }
 0x11c   :  { %v357_v25 = vpack.c.bf16 %v332_v23, %v331_v20 }
 0x11d   :  { %v356_v26 = vpack.c.bf16 %v330_v24, %v329_v33 }
 0x11f   :  { %522 = vmatmul.mubr.bf16.gmra.mrb[8].mxu1 %v354_v15 }
 0x120   :  { %531 = vmatprep.mubr.bf16.mxu1 %v1168_v32 }
 0x127   :  { %532 = vmatmul.mubr.bf16.gmra.mrb[12].mxu1 %v355_v12 }
 0x128   :  { %541 = vmatprep.mubr.bf16.mxu1 %v1168_v32 }
 0x12f   :  { %542 = vmatmul.mubr.bf16.gmra.mrb[16].mxu1 %v356_v26 }
 0x130   :  { %551 = vmatprep.mubr.bf16.mxu1 %v1168_v32 }
 0x137   :  { %552 = vmatmul.mubr.bf16.gmra.mrb[20].mxu1 %v357_v25 }
 0x1da   :  { %v483_v36 = vpop.f32.mrb[16].mxu0 }
 0x1db   :  { %v484_v37 = vadd.f32 %v483_v36, %v1327_v34  ;;  %v485_v38 = vpop.f32.mrb[17].mxu0 }
 0x1dc   :  { %v486_v39 = vadd.f32 %v485_v38, %v1329_v35  ;;  %v487_v32 = vpop.f32.mrb[18].mxu0 }
 0x1dd   :  { %v562_v40 = vsub.f32 0.0, %v484_v37  ;;  %v488_v41 = vadd.f32 %v487_v32, %v1327_v34  ;;  %v489_v42 = vpop.f32.mrb[19].mxu0 }
 0x1de   :  { %v563_v43 = vsub.f32 0.0, %v486_v39  ;;  %v490_v44 = vadd.f32 %v489_v42, %v1329_v35 }
 0x1df   :  { %v594_v45 = vmul.f32 1.442695, %v562_v40  ;;  %v564_v46 = vsub.f32 0.0, %v488_v41 }
 0x1e0   :  { %v596_v47 = vmul.f32 1.442695, %v563_v43  ;;  %v565_v48 = vsub.f32 0.0, %v490_v44 }
 0x1e1   :  { %1040 = vpow2.f32 %v594_v45  ;;  %v598_v49 = vmul.f32 1.442695, %v564_v46 }
 0x1e2   :  { %1042 = vpow2.f32 %v596_v47  ;;  %v600_v50 = vmul.f32 1.442695, %v565_v48  ;;  %v493_v51 = vpop.f32.mrb[20].mxu0  ;;  %v503_v52 = vpop.f32.mrb[0].mxu1 }
 0x1e3   :  { %1044 = vpow2.f32 %v598_v49  ;;  %v494_v53 = vadd.f32 %v493_v51, %v1327_v34  ;;  %v504_v54 = vadd.f32 %v503_v52, %v1327_v34  ;;  %v495_v55 = vpop.f32.mrb[21].mxu0  ;;  %v505_v56 = vpop.f32.mrb[1].mxu1 }
 0x1e4   :  { %1046 = vpow2.f32 %v600_v50  ;;  %v496_v57 = vadd.f32 %v495_v55, %v1329_v35  ;;  %v506_v58 = vadd.f32 %v505_v56, %v1329_v35  ;;  %v497_v59 = vpop.f32.mrb[22].mxu0  ;;  %v507_v60 = vpop.f32.mrb[2].mxu1 }
 0x1e5   :  { %v566_v61 = vsub.f32 0.0, %v494_v53  ;;  %v570_v62 = vsub.f32 0.0, %v504_v54  ;;  %v498_v63 = vadd.f32 %v497_v59, %v1327_v34  ;;  %v499_v0 = vpop.f32.mrb[23].mxu0  ;;  %v509_v1 = vpop.f32.mrb[3].mxu1  ;;  %v508_v4 = vadd.f32 %v507_v60, %v1327_v34 }
 0x1e6   :  { %v567_v2 = vsub.f32 0.0, %v496_v57  ;;  %v571_v3 = vsub.f32 0.0, %v506_v58  ;;  %v500_v8 = vadd.f32 %v499_v0, %v1329_v35  ;;  %v510_v11 = vadd.f32 %v509_v1, %v1329_v35 }
 0x1e7   :  { %v602_v5 = vmul.f32 1.442695, %v566_v61  ;;  %v610_v6 = vmul.f32 1.442695, %v570_v62  ;;  %v568_v7 = vsub.f32 0.0, %v498_v63  ;;  %v572_v13 = vsub.f32 0.0, %v508_v4 }
 0x1e8   :  { %v604_v9 = vmul.f32 1.442695, %v567_v2  ;;  %v612_v10 = vmul.f32 1.442695, %v571_v3  ;;  %v569_v16 = vsub.f32 0.0, %v500_v8  ;;  %v573_v21 = vsub.f32 0.0, %v510_v11 }
 0x1e9   :  { %1048 = vpow2.f32 %v602_v5  ;;  %v606_v12 = vmul.f32 1.442695, %v568_v7  ;;  %v614_v28 = vmul.f32 1.442695, %v572_v13 }
 0x1ea   :  { %1050 = vpow2.f32 %v610_v6  ;;  %v513_v14 = vpop.f32.mrb[4].mxu1  ;;  %v608_v30 = vmul.f32 1.442695, %v569_v16  ;;  %v616_v36 = vmul.f32 1.442695, %v573_v21 }
 0x1eb   :  { %v1041_v15 = vpop.eup %1040  ;;  %1052 = vpow2.f32 %v604_v9  ;;  %v514_v17 = vadd.f32 %v513_v14, %v1327_v34  ;;  %v515_v18 = vpop.f32.mrb[5].mxu1 }
 0x1ec   :  { %v1043_v19 = vpop.eup %1042  ;;  %v658_v20 = vadd.f32 1.0, %v1041_v15  ;;  %1054 = vpow2.f32 %v612_v10  ;;  %v517_v33 = vpop.f32.mrb[6].mxu1  ;;  %v516_v31 = vadd.f32 %v515_v18, %v1329_v35 }
 0x1ed   :  { %v1045_v22 = vpop.eup %1044  ;;  %v659_v23 = vadd.f32 1.0, %v1043_v19  ;;  %1056 = vpow2.f32 %v606_v12  ;;  %v574_v24 = vsub.f32 0.0, %v514_v17  ;;  %v519_v25 = vpop.f32.mrb[7].mxu1  ;;  %v518_v37 = vadd.f32 %v517_v33, %v1327_v34 }
 0x1ee   :  { %v1047_v26 = vpop.eup %1046  ;;  %1058 = vrcp.f32 %v658_v20  ;;  %v660_v27 = vadd.f32 1.0, %v1045_v22  ;;  %v520_v39 = vadd.f32 %v519_v25, %v1329_v35  ;;  %v575_v41 = vsub.f32 0.0, %v516_v31 }
 0x1ef   :  { %1060 = vrcp.f32 %v659_v23  ;;  %v661_v29 = vadd.f32 1.0, %v1047_v26  ;;  %v618_v38 = vmul.f32 1.442695, %v574_v24  ;;  %v576_v46 = vsub.f32 0.0, %v518_v37 }
 0x1f0   :  { %1062 = vrcp.f32 %v660_v27  ;;  %v577_v50 = vsub.f32 0.0, %v520_v39  ;;  %v620_v57 = vmul.f32 1.442695, %v575_v41 }
 0x1f1   :  { %1064 = vrcp.f32 %v661_v29  ;;  %v622_v61 = vmul.f32 1.442695, %v576_v46 }
 0x1f2   :  { %1066 = vpow2.f32 %v614_v28  ;;  %v523_v32 = vpop.f32.mrb[8].mxu1  ;;  %v624_v0 = vmul.f32 1.442695, %v577_v50 }
 0x1f3   :  { %v1049_v40 = vpop.eup %1048  ;;  %1068 = vpow2.f32 %v608_v30  ;;  %v524_v42 = vadd.f32 %v523_v32, %v1327_v34  ;;  %v525_v43 = vpop.f32.mrb[9].mxu1 }
 0x1f4   :  { %v1051_v44 = vpop.eup %1050  ;;  %v662_v45 = vadd.f32 1.0, %v1049_v40  ;;  %1070 = vpow2.f32 %v616_v36  ;;  %v527_v47 = vpop.f32.mrb[10].mxu1  ;;  %v526_v58 = vadd.f32 %v525_v43, %v1329_v35 }
 0x1f5   :  { %v1053_v48 = vpop.eup %1052  ;;  %v666_v49 = vadd.f32 1.0, %v1051_v44  ;;  %1072 = vpow2.f32 %v618_v38  ;;  %v529_v51 = vpop.f32.mrb[11].mxu1  ;;  %v578_v54 = vsub.f32 0.0, %v524_v42  ;;  %v528_v62 = vadd.f32 %v527_v47, %v1327_v34 }
 0x1f6   :  { %v1055_v52 = vpop.eup %1054  ;;  %1074 = vrcp.f32 %v662_v45  ;;  %v663_v53 = vadd.f32 1.0, %v1053_v48  ;;  %v530_v1 = vadd.f32 %v529_v51, %v1329_v35  ;;  %v579_v7 = vsub.f32 0.0, %v526_v58 }
 0x1f7   :  { %v1057_v55 = vpop.eup %1056  ;;  %1076 = vrcp.f32 %v666_v49  ;;  %v667_v56 = vadd.f32 1.0, %v1055_v52  ;;  %v626_v4 = vmul.f32 1.442695, %v578_v54  ;;  %v580_v12 = vsub.f32 0.0, %v528_v62 }
 0x1f8   :  { %v1059_v59 = vpop.eup %1058  ;;  %1078 = vrcp.f32 %v663_v53  ;;  %v664_v60 = vadd.f32 1.0, %v1057_v55  ;;  %v581_v17 = vsub.f32 0.0, %v530_v1  ;;  %v628_v23 = vmul.f32 1.442695, %v579_v7 }
 0x1f9   :  { %v1061_v63 = vpop.eup %1060  ;;  %1080 = vrcp.f32 %v667_v56  ;;  %v630_v27 = vmul.f32 1.442695, %v580_v12 }
 0x1fa   :  { %v1063_v2 = vpop.eup %1062  ;;  %v919_v3 = vpack.c.bf16 %v1061_v63, %v1059_v59  ;;  %1082 = vrcp.f32 %v664_v60  ;;  %v533_v5 = vpop.f32.mrb[12].mxu1  ;;  %v632_v30 = vmul.f32 1.442695, %v581_v17 }
 0x1fb   :  { %v1065_v6 = vpop.eup %1064  ;;  %1084 = vpow2.f32 %v620_v57  ;;  %v534_v8 = vadd.f32 %v533_v5, %v1327_v34  ;;  %v535_v9 = vpop.f32.mrb[13].mxu1 }
 0x1fc   :  { %v1067_v10 = vpop.eup %1066  ;;  %850 = vst [vmem:[%s1416_s5] sm:$0xff] %v919_v3  ;;  %v920_v11 = vpack.c.bf16 %v1065_v6, %v1063_v2  ;;  %1086 = vpow2.f32 %v622_v61  ;;  %v536_v13 = vadd.f32 %v535_v9, %v1329_v35  ;;  %v537_v14 = vpop.f32.mrb[14].mxu1 }
 0x1fd   :  { %v1069_v15 = vpop.eup %1068  ;;  %v668_v16 = vadd.f32 1.0, %v1067_v10  ;;  %1088 = vpow2.f32 %v624_v0  ;;  %v539_v18 = vpop.f32.mrb[15].mxu1  ;;  %v582_v21 = vsub.f32 0.0, %v534_v8  ;;  %v538_v28 = vadd.f32 %v537_v14, %v1327_v34 }
 0x1fe   :  { %v1071_v19 = vpop.eup %1070  ;;  %851 = vst [vmem:[%s1416_s5 + $0x8] sm:$0xff] %v920_v11  ;;  %v665_v20 = vadd.f32 1.0, %v1069_v15  ;;  %1090 = vpow2.f32 %v626_v4  ;;  %v583_v24 = vsub.f32 0.0, %v536_v13  ;;  %v540_v31 = vadd.f32 %v539_v18, %v1329_v35 }
 0x1ff   :  { %v1073_v33 = vpop.eup %1072  ;;  %1092 = vrcp.f32 %v668_v16  ;;  %v669_v22 = vadd.f32 1.0, %v1071_v19  ;;  %v634_v37 = vmul.f32 1.442695, %v582_v21  ;;  %v584_v45 = vsub.f32 0.0, %v538_v28 }
 0x200   :  { %v1075_v25 = vpop.eup %1074  ;;  %1094 = vrcp.f32 %v665_v20  ;;  %v670_v26 = vadd.f32 1.0, %v1073_v33  ;;  %v636_v40 = vmul.f32 1.442695, %v583_v24  ;;  %v585_v49 = vsub.f32 0.0, %v540_v31 }
 0x201   :  { %v1077_v29 = vpop.eup %1076  ;;  %1096 = vrcp.f32 %v669_v22  ;;  %v638_v59 = vmul.f32 1.442695, %v584_v45 }
 0x202   :  { %v1079_v36 = vpop.eup %1078  ;;  %1098 = vrcp.f32 %v670_v26  ;;  %v543_v38 = vpop.f32.mrb[16].mxu1  ;;  %v640_v62 = vmul.f32 1.442695, %v585_v49 }
 0x203   :  { %v1081_v39 = vpop.eup %1080  ;;  %v921_v32 = vpack.c.bf16 %v1079_v36, %v1075_v25  ;;  %1100 = vpow2.f32 %v628_v23  ;;  %v544_v41 = vadd.f32 %v543_v38, %v1327_v34  ;;  %v545_v42 = vpop.f32.mrb[17].mxu1 }
 0x204   :  { %v1083_v43 = vpop.eup %1082  ;;  %v923_v44 = vpack.c.bf16 %v1081_v39, %v1077_v29  ;;  %1102 = vpow2.f32 %v630_v27  ;;  %v546_v46 = vadd.f32 %v545_v42, %v1329_v35  ;;  %v547_v47 = vpop.f32.mrb[18].mxu1 }
 0x205   :  { %v1085_v48 = vpop.eup %1084  ;;  %852 = vst [vmem:[%s1416_s5 + $0x10] sm:$0xff] %v921_v32  ;;  %1104 = vpow2.f32 %v632_v30  ;;  %v549_v50 = vpop.f32.mrb[19].mxu1  ;;  %v586_v53 = vsub.f32 0.0, %v544_v41  ;;  %v548_v63 = vadd.f32 %v547_v47, %v1327_v34 }
 0x206   :  { %v1087_v51 = vpop.eup %1086  ;;  %854 = vst [vmem:[%s1416_s5 + $0x20] sm:$0xff] %v923_v44  ;;  %v671_v52 = vadd.f32 1.0, %v1085_v48  ;;  %1106 = vpow2.f32 %v634_v37  ;;  %v587_v56 = vsub.f32 0.0, %v546_v46  ;;  %v550_v2 = vadd.f32 %v549_v50, %v1329_v35 }
 0x207   :  { %v1089_v54 = vpop.eup %1088  ;;  %v672_v55 = vadd.f32 1.0, %v1087_v51  ;;  %1108 = vpow2.f32 %v636_v40  ;;  %v642_v1 = vmul.f32 1.442695, %v586_v53  ;;  %v588_v14 = vsub.f32 0.0, %v548_v63 }
 0x208   :  { %v1091_v57 = vpop.eup %1090  ;;  %1110 = vrcp.f32 %v671_v52  ;;  %v673_v58 = vadd.f32 1.0, %v1089_v54  ;;  %v644_v6 = vmul.f32 1.442695, %v587_v56  ;;  %v589_v18 = vsub.f32 0.0, %v550_v2 }
 0x209   :  { %v1093_v60 = vpop.eup %1092  ;;  %1112 = vrcp.f32 %v672_v55  ;;  %v674_v61 = vadd.f32 1.0, %v1091_v57  ;;  %v646_v26 = vmul.f32 1.442695, %v588_v14 }
 0x20a   :  { %v1095_v0 = vpop.eup %1094  ;;  %1114 = vrcp.f32 %v673_v58  ;;  %v553_v3 = vpop.f32.mrb[20].mxu1  ;;  %v648_v30 = vmul.f32 1.442695, %v589_v18 }
 0x20b   :  { %v1097_v4 = vpop.eup %1096  ;;  %v922_v5 = vpack.c.bf16 %v1095_v0, %v1083_v43  ;;  %1116 = vrcp.f32 %v674_v61  ;;  %v554_v7 = vadd.f32 %v553_v3, %v1327_v34  ;;  %v555_v8 = vpop.f32.mrb[21].mxu1 }
 0x20c   :  { %v1099_v9 = vpop.eup %1098  ;;  %v924_v10 = vpack.c.bf16 %v1097_v4, %v1093_v60  ;;  %1118 = vpow2.f32 %v638_v59  ;;  %v556_v11 = vadd.f32 %v555_v8, %v1329_v35  ;;  %v557_v12 = vpop.f32.mrb[22].mxu1 }
 0x20d   :  { %v1101_v13 = vpop.eup %1100  ;;  %853 = vst [vmem:[%s1416_s5 + $0x18] sm:$0xff] %v922_v5  ;;  %1120 = vpow2.f32 %v640_v62  ;;  %v559_v15 = vpop.f32.mrb[23].mxu1  ;;  %v590_v21 = vsub.f32 0.0, %v554_v7  ;;  %v558_v27 = vadd.f32 %v557_v12, %v1327_v34 }
 0x20e   :  { %v1103_v16 = vpop.eup %1102  ;;  %855 = vst [vmem:[%s1416_s5 + $0x28] sm:$0xff] %v924_v10  ;;  %v675_v17 = vadd.f32 1.0, %v1101_v13  ;;  %1122 = vpow2.f32 %v642_v1  ;;  %v591_v23 = vsub.f32 0.0, %v556_v11  ;;  %v560_v31 = vadd.f32 %v559_v15, %v1329_v35 }
 0x20f   :  { %v1105_v19 = vpop.eup %1104  ;;  %v676_v20 = vadd.f32 1.0, %v1103_v16  ;;  %1124 = vpow2.f32 %v644_v6  ;;  %v650_v38 = vmul.f32 1.442695, %v590_v21  ;;  %v592_v34 = vsub.f32 0.0, %v558_v27 }
 0x210   :  { %v1107_v33 = vpop.eup %1106  ;;  %1126 = vrcp.f32 %v675_v17  ;;  %v677_v22 = vadd.f32 1.0, %v1105_v19  ;;  %v652_v32 = vmul.f32 1.442695, %v591_v23  ;;  %v593_v43 = vsub.f32 0.0, %v560_v31 }
 0x211   :  { %v1109_v24 = vpop.eup %1108  ;;  %1128 = vrcp.f32 %v676_v20  ;;  %v678_v25 = vadd.f32 1.0, %v1107_v33  ;;  %v654_v49 = vmul.f32 1.442695, %v592_v34 }
 0x212   :  { %v1111_v28 = vpop.eup %1110  ;;  %1130 = vrcp.f32 %v677_v22  ;;  %v679_v29 = vadd.f32 1.0, %v1109_v24  ;;  %v656_v52 = vmul.f32 1.442695, %v593_v43 }
 0x213   :  { %v1113_v36 = vpop.eup %1112  ;;  %v925_v37 = vpack.c.bf16 %v1111_v28, %v1099_v9  ;;  %1132 = vrcp.f32 %v678_v25 }
 0x214   :  { %v1115_v39 = vpop.eup %1114  ;;  %1134 = vrcp.f32 %v679_v29 }
 0x215   :  { %v1117_v40 = vpop.eup %1116  ;;  %856 = vst [vmem:[%s1416_s5 + $0x30] sm:$0xff] %v925_v37  ;;  %v926_v41 = vpack.c.bf16 %v1115_v39, %v1113_v36  ;;  %1136 = vpow2.f32 %v646_v26 }
 0x216   :  { %v1119_v42 = vpop.eup %1118  ;;  %1138 = vpow2.f32 %v648_v30 }
 0x217   :  { %v1121_v44 = vpop.eup %1120  ;;  %857 = vst [vmem:[%s1416_s5 + $0x38] sm:$0xff] %v926_v41  ;;  %v680_v35 = vadd.f32 1.0, %v1119_v42  ;;  %1140 = vpow2.f32 %v650_v38 }
 0x218   :  { %v1123_v45 = vpop.eup %1122  ;;  %v681_v46 = vadd.f32 1.0, %v1121_v44  ;;  %1142 = vpow2.f32 %v652_v32 }
 0x219   :  { %v1125_v47 = vpop.eup %1124  ;;  %1144 = vrcp.f32 %v680_v35  ;;  %v682_v48 = vadd.f32 1.0, %v1123_v45 }
 0x21a   :  { %v1127_v50 = vpop.eup %1126  ;;  %1146 = vrcp.f32 %v681_v46  ;;  %v683_v51 = vadd.f32 1.0, %v1125_v47 }
 0x21b   :  { %v1129_v53 = vpop.eup %1128  ;;  %v927_v54 = vpack.c.bf16 %v1127_v50, %v1117_v40  ;;  %1148 = vrcp.f32 %v682_v48 }
 0x21c   :  { %v1131_v55 = vpop.eup %1130  ;;  %1150 = vrcp.f32 %v683_v51 }
 0x21d   :  { %v1133_v56 = vpop.eup %1132  ;;  %858 = vst [vmem:[%s1416_s5 + $0x40] sm:$0xff] %v927_v54  ;;  %v928_v57 = vpack.c.bf16 %v1131_v55, %v1129_v53  ;;  %1152 = vpow2.f32 %v654_v49 }
 0x21e   :  { %v1135_v58 = vpop.eup %1134  ;;  %1154 = vpow2.f32 %v656_v52 }
 0x21f   :  { %v1137_v59 = vpop.eup %1136  ;;  %859 = vst [vmem:[%s1416_s5 + $0x48] sm:$0xff] %v928_v57  ;;  %v929_v60 = vpack.c.bf16 %v1135_v58, %v1133_v56 }
 0x220   :  { %v1139_v61 = vpop.eup %1138  ;;  %v684_v62 = vadd.f32 1.0, %v1137_v59 }
 0x221   :  { %v1141_v63 = vpop.eup %1140  ;;  %860 = vst [vmem:[%s1416_s5 + $0x50] sm:$0xff] %v929_v60  ;;  %v685_v0 = vadd.f32 1.0, %v1139_v61 }
 0x222   :  { %v1143_v1 = vpop.eup %1142  ;;  %1156 = vrcp.f32 %v684_v62  ;;  %v686_v2 = vadd.f32 1.0, %v1141_v63 }
 0x223   :  { %v1145_v3 = vpop.eup %1144  ;;  %1158 = vrcp.f32 %v685_v0  ;;  %v687_v4 = vadd.f32 1.0, %v1143_v1 }
 0x224   :  { %v1147_v5 = vpop.eup %1146  ;;  %1160 = vrcp.f32 %v686_v2 }
 0x225   :  { %v1149_v6 = vpop.eup %1148  ;;  %v930_v7 = vpack.c.bf16 %v1147_v5, %v1145_v3  ;;  %1162 = vrcp.f32 %v687_v4 }
 0x226   :  { %v1151_v8 = vpop.eup %1150 }
 0x227   :  { %v1153_v9 = vpop.eup %1152  ;;  %861 = vst [vmem:[%s1416_s5 + $0x58] sm:$0xff] %v930_v7  ;;  %v931_v10 = vpack.c.bf16 %v1151_v8, %v1149_v6 }
 0x228   :  { %v1155_v11 = vpop.eup %1154  ;;  %v688_v12 = vadd.f32 1.0, %v1153_v9 }
 0x229   :  { %862 = vst [vmem:[%s1416_s5 + $0x60] sm:$0xff] %v931_v10  ;;  %v689_v13 = vadd.f32 1.0, %v1155_v11 }
 0x22a   :  { %1164 = vrcp.f32 %v688_v12 }
 0x22b   :  { %1166 = vrcp.f32 %v689_v13 }
 0x22c   :  { %v1157_v14 = vpop.eup %1156 }
 0x22d   :  { %v1159_v15 = vpop.eup %1158 }
 0x22e   :  { %v1161_v16 = vpop.eup %1160  ;;  %v932_v17 = vpack.c.bf16 %v1159_v15, %v1157_v14 }
 0x22f   :  { %v1163_v18 = vpop.eup %1162 }
 0x230   :  { %863 = vst [vmem:[%s1416_s5 + $0x68] sm:$0xff] %v932_v17  ;;  %v933_v19 = vpack.c.bf16 %v1163_v18, %v1161_v16 }
 0x232   :  { %864 = vst [vmem:[%s1416_s5 + $0x70] sm:$0xff] %v933_v19 }
 0x234   :  { %v1165_v20 = vpop.eup %1164 }
 0x235   :  { %v1167_v21 = vpop.eup %1166 }
 0x236   :  { %v934_v33 = vpack.c.bf16 %v1167_v21, %v1165_v20 }
 0x238   :  { %865 = vst [vmem:[%s1416_s5 + $0x78] sm:$0xff] %v934_v33 }

// kernel: mobile_posnet_forward.20
= control target key start
LH: loop header
LB: loop body
LE: loop exit
PB: predicated region body
PF: predicated region fallthrough
CT: control target
= control target key end

     0   :  { %s602_s1 = inlined_call_operand.vmem [shape: bf16[128,128], index: 1, kind: input, shape index: {}]   ;;  %s603_s0 = inlined_call_operand.vmem [shape: bf16[128,128], index: 0, kind: input, shape index: {}]   ;;  %s604_s2 = inlined_call_operand.vmem [shape: f32[1,128], index: 2, kind: input, shape index: {}]   ;;  %s605_s3 = inlined_call_operand.vmem [shape: bf16[128,128], index: 3, kind: output, shape index: {}]  }
   0x1   :  { %v491_v0 = vld [vmem:[%s602_s1] sm:$0xff]   ;;  %v492_v1 = vld [vmem:[%s602_s1 + $0x8] sm:$0xff]   ;;  %v493_v2 = vld [vmem:[%s602_s1 + $0x10] sm:$0xff]  }
   0x2   :  { %443 = vmatprep.subr.bf16.mxu0 %v491_v0  ;;  %475 = vmatprep.subr.bf16.mxu1 %v491_v0  ;;  %v494_v3 = vld [vmem:[%s602_s1 + $0x18] sm:$0xff]   ;;  %v499_v4 = vld [vmem:[%s603_s0] sm:$0xff]   ;;  %v496_v7 = vld [vmem:[%s602_s1 + $0x28] sm:$0xff]  }
   0x3   :  { %444 = vmatpush3.bf16.msra.mxu0 %v491_v0  ;;  %483 = vmatpush3.bf16.msra.mxu1 %v491_v0  ;;  %v500_v5 = vld [vmem:[%s603_s0 + $0x20] sm:$0xff]   ;;  %v497_v8 = vld [vmem:[%s602_s1 + $0x30] sm:$0xff]   ;;  %v498_v9 = vld [vmem:[%s602_s1 + $0x38] sm:$0xff]  }
   0x4   :  { %445 = vmatprep.subr.bf16.mxu0 %v492_v1  ;;  %476 = vmatprep.subr.bf16.mxu1 %v492_v1  ;;  %v495_v6 = vld [vmem:[%s602_s1 + $0x20] sm:$0xff]   ;;  %v501_v10 = vld [vmem:[%s603_s0 + $0x8] sm:$0xff]   ;;  %v503_v12 = vld [vmem:[%s603_s0 + $0x10] sm:$0xff]  }
   0x5   :  { %459 = vmatprep.mubr.bf16.mxu0 %v499_v4  ;;  %467 = vmatprep.mubr.bf16.mxu1 %v500_v5  ;;  %v502_v11 = vld [vmem:[%s603_s0 + $0x28] sm:$0xff]   ;;  %v504_v13 = vld [vmem:[%s603_s0 + $0x30] sm:$0xff]   ;;  %v505_v14 = vld [vmem:[%s603_s0 + $0x18] sm:$0xff]  }
   0x6   :  { %v506_v15 = vld [vmem:[%s603_s0 + $0x38] sm:$0xff]   ;;  %v331_v17 = vld [vmem:[%s604_s2] ss:$0 sm:$0xff] }
   0x7   :  { %446 = vmatpush3.bf16.msra.mxu0 %v492_v1  ;;  %484 = vmatpush3.bf16.msra.mxu1 %v492_v1 }
   0x8   :  { %447 = vmatprep.subr.bf16.mxu0 %v493_v2  ;;  %477 = vmatprep.subr.bf16.mxu1 %v493_v2 }
   0xb   :  { %448 = vmatpush3.bf16.msra.mxu0 %v493_v2  ;;  %485 = vmatpush3.bf16.msra.mxu1 %v493_v2 }
   0xc   :  { %449 = vmatprep.subr.bf16.mxu0 %v494_v3  ;;  %478 = vmatprep.subr.bf16.mxu1 %v494_v3 }
   0xf   :  { %450 = vmatpush3.bf16.msra.mxu0 %v494_v3  ;;  %486 = vmatpush3.bf16.msra.mxu1 %v494_v3 }
  0x10   :  { %451 = vmatprep.subr.bf16.mxu0 %v495_v6  ;;  %479 = vmatprep.subr.bf16.mxu1 %v495_v6 }
  0x13   :  { %452 = vmatpush3.bf16.msra.mxu0 %v495_v6  ;;  %487 = vmatpush3.bf16.msra.mxu1 %v495_v6 }
  0x14   :  { %453 = vmatprep.subr.bf16.mxu0 %v496_v7  ;;  %480 = vmatprep.subr.bf16.mxu1 %v496_v7 }
  0x17   :  { %454 = vmatpush3.bf16.msra.mxu0 %v496_v7  ;;  %488 = vmatpush3.bf16.msra.mxu1 %v496_v7 }
  0x18   :  { %455 = vmatprep.subr.bf16.mxu0 %v497_v8  ;;  %481 = vmatprep.subr.bf16.mxu1 %v497_v8 }
  0x1b   :  { %456 = vmatpush3.bf16.msra.mxu0 %v497_v8  ;;  %489 = vmatpush3.bf16.msra.mxu1 %v497_v8 }
  0x1c   :  { %457 = vmatprep.subr.bf16.mxu0 %v498_v9  ;;  %482 = vmatprep.subr.bf16.mxu1 %v498_v9 }
  0x1f   :  { %458 = vmatpush3.bf16.msra.mxu0 %v498_v9  ;;  %490 = vmatpush3.bf16.msra.mxu1 %v498_v9 }
  0x22   :  { %460 = vmatmul.mubr.bf16.vlgmr.msra.gmra.mrb[0].mxu0 %v501_v10  ;;  %468 = vmatmul.mubr.bf16.vlgmr.msra.gmra.mrb[0].mxu1 %v502_v11 }
  0x23   :  { %463 = vmatprep.mubr.bf16.mxu0 %v503_v12  ;;  %471 = vmatprep.mubr.bf16.mxu1 %v504_v13 }
  0x2a   :  { %464 = vmatmul.mubr.bf16.gmra.mrb[4].mxu0 %v505_v14  ;;  %472 = vmatmul.mubr.bf16.gmra.mrb[4].mxu1 %v506_v15 }
  0xf5   :  { %v461_v16 = vpop.f32.mrb[0].mxu0  ;;  %v469_v18 = vpop.f32.mrb[0].mxu1 }
  0xf6   :  { %v184_v19 = vpop.f32.mrb[1].mxu0  ;;  %v216_v20 = vpop.f32.mrb[1].mxu1  ;;  %v193_v23 = vadd.f32 %v461_v16, %v331_v17  ;;  %v225_v24 = vadd.f32 %v469_v18, %v331_v17 }
  0xf7   :  { %v462_v21 = vpop.f32.mrb[2].mxu0  ;;  %v470_v22 = vpop.f32.mrb[2].mxu1  ;;  %v185_v29 = vadd.f32 %v331_v17, %v184_v19  ;;  %v217_v30 = vadd.f32 %v331_v17, %v216_v20 }
  0xf8   :  { %v196_v25 = vadd.f32 %v462_v21, %v331_v17  ;;  %v228_v26 = vadd.f32 %v470_v22, %v331_v17  ;;  %v187_v27 = vpop.f32.mrb[3].mxu0  ;;  %v219_v28 = vpop.f32.mrb[3].mxu1 }
  0xf9   :  { %v188_v31 = vadd.f32 %v331_v17, %v187_v27  ;;  %v220_v32 = vadd.f32 %v331_v17, %v219_v28 }
  0xfa   :  { %v388_v33 = vpack.c.bf16 %v196_v25, %v193_v23  ;;  %v408_v34 = vpack.c.bf16 %v228_v26, %v225_v24 }
  0xfb   :  { %v383_v35 = vpack.c.bf16 %v188_v31, %v185_v29  ;;  %v403_v36 = vpack.c.bf16 %v220_v32, %v217_v30 }
  0xfc   :  { %420 = vst [vmem:[%s605_s3 + $0x8] sm:$0xff] %v388_v33   ;;  %424 = vst [vmem:[%s605_s3 + $0x28] sm:$0xff] %v408_v34  }
  0xfd   :  { %384 = vst [vmem:[%s605_s3] sm:$0xff] %v383_v35   ;;  %423 = vst [vmem:[%s605_s3 + $0x20] sm:$0xff] %v403_v36   ;;  %v465_v37 = vpop.f32.mrb[4].mxu0  ;;  %v473_v38 = vpop.f32.mrb[4].mxu1 }
  0xfe   :  { %v200_v39 = vpop.f32.mrb[5].mxu0  ;;  %v232_v40 = vpop.f32.mrb[5].mxu1  ;;  %v209_v43 = vadd.f32 %v465_v37, %v331_v17  ;;  %v241_v44 = vadd.f32 %v473_v38, %v331_v17 }
  0xff   :  { %v466_v41 = vpop.f32.mrb[6].mxu0  ;;  %v474_v42 = vpop.f32.mrb[6].mxu1  ;;  %v201_v49 = vadd.f32 %v331_v17, %v200_v39  ;;  %v233_v50 = vadd.f32 %v331_v17, %v232_v40 }
 0x100   :  { %v212_v45 = vadd.f32 %v466_v41, %v331_v17  ;;  %v244_v46 = vadd.f32 %v474_v42, %v331_v17  ;;  %v203_v47 = vpop.f32.mrb[7].mxu0  ;;  %v235_v48 = vpop.f32.mrb[7].mxu1 }
 0x101   :  { %v204_v51 = vadd.f32 %v331_v17, %v203_v47  ;;  %v236_v52 = vadd.f32 %v331_v17, %v235_v48 }
 0x102   :  { %v398_v53 = vpack.c.bf16 %v212_v45, %v209_v43  ;;  %v418_v54 = vpack.c.bf16 %v244_v46, %v241_v44 }
 0x103   :  { %v393_v55 = vpack.c.bf16 %v204_v51, %v201_v49  ;;  %v413_v56 = vpack.c.bf16 %v236_v52, %v233_v50 }
 0x104   :  { %422 = vst [vmem:[%s605_s3 + $0x18] sm:$0xff] %v398_v53   ;;  %426 = vst [vmem:[%s605_s3 + $0x38] sm:$0xff] %v418_v54  }
 0x105   :  { %421 = vst [vmem:[%s605_s3 + $0x10] sm:$0xff] %v393_v55   ;;  %425 = vst [vmem:[%s605_s3 + $0x30] sm:$0xff] %v413_v56  }

// kernel: mobile_posnet_forward.22
= control target key start
LH: loop header
LB: loop body
LE: loop exit
PB: predicated region body
PF: predicated region fallthrough
CT: control target
= control target key end

     0   :  { %s923_s12 = smov 0   ;;  %s1188_s0 = inlined_call_operand.vmem [shape: bf16[2,10,10,128], index: 0, kind: input, shape index: {}]   ;;  %s1189_s1 = inlined_call_operand.vmem [shape: f32[9,1,128], index: 1, kind: input, shape index: {}]   ;;  %s1190_s2 = inlined_call_operand.vmem [shape: f32[1,128], index: 2, kind: input, shape index: {}]   ;;  %s1191_s3 = inlined_call_operand.vmem [shape: bf16[2,8,8,128], index: 3, kind: output, shape index: {}]  }
   0x1 LB: > { %s842_s13 = sadd.s32 4294967295, %s901_s12   ;;  %p846_p0 = scmp.ge.s32.totalorder %s901_s12, 1  ;;  %s901_s12 = sphi %s923_s12, %s13_s12  }
   0x2   : > { %p137_p1 = scmp.lt.s32.totalorder %s901_s12, 3 }
   0x4   : > { %p138_p2 = pnand %p846_p0, %p137_p1 }
   0x5   : > { %p161_p3 = scmp.lt.s32.totalorder (!%p138_p2), %s842_s13, 1  ;;  %v850_v10 = vld [vmem:[%s1189_s1] ss:$0 sm:$0xff] (!%p138_p2)  ;;  %vm272_vm0 = vcmask (!%p138_p2), 1046528   ;;  %v851_v36 = vld [vmem:[%s1189_s1 + $0x1] ss:$0 sm:$0xff] (!%p138_p2) }
   0x6   : > { %141 = sbr.rel (%p138_p2) target bundleno = 114 (0x72), region = 32  ;;  %vm351_vm1 = vcmask (!%p138_p2), 1045504  }
   0xd   : > { %s1193_s13 = smov (!%p161_p3, %s842_s13), 1 }
   0xe   : > { %s886_s14 = smul.u32 80, %s1193_s13  ;;  %s862_s11 = sshll.u32 %s1193_s13, 5 }
   0xf   : > { %s170_s16 = scalar_lea.vmem %s1191_s3, %s862_s11 }
  0x10   : > { %s165_s17 = scalar_lea.vmem %s1188_s0, %s886_s14 }
  0x11   : > { %v171_v0 = vld [vmem:[%s165_s17] ss:$8 sps:$4 sm:$0xff]   ;;  %v937_v1 = vld [vmem:[%s165_s17 + $0x4] sm:$0x1]  ;;  %v174_v2 = vld [vmem:[%s165_s17 + $0xc] sm:$0x1] }
  0x12   : > { %v175_v3 = vld [vmem:[%s165_s17 + $0x10] ss:$8 sps:$4 sm:$0xff]   ;;  %v176_v4 = vld [vmem:[%s165_s17 + $0x14] sm:$0x1]  ;;  %v178_v5 = vld [vmem:[%s165_s17 + $0x1c] sm:$0x1]  ;;  %v939_v6 = vunpack.c.l.bf16 %v171_v0  ;;  %v192_v7 = vunpack.c.l.bf16 %v937_v1  ;;  %v942_v8 = vunpack.c.h.bf16 %v171_v0  ;;  %v944_v9 = vunpack.c.l.bf16 %v174_v2 }
  0x13   : > { %v179_v11 = vld [vmem:[%s165_s17 + $0x20] ss:$8 sps:$4 sm:$0xff]   ;;  %v180_v12 = vld [vmem:[%s165_s17 + $0x24] sm:$0x1]  ;;  %v182_v13 = vld [vmem:[%s165_s17 + $0x2c] sm:$0x1]  ;;  %v949_v14 = vunpack.c.l.bf16 %v175_v3  ;;  %v951_v15 = vunpack.c.l.bf16 %v176_v4  ;;  %v953_v16 = vunpack.c.h.bf16 %v175_v3  ;;  %v955_v17 = vunpack.c.l.bf16 %v178_v5 }
  0x14   : > { %v183_v18 = vld [vmem:[%s165_s17 + $0x30] ss:$8 sps:$4 sm:$0xff]   ;;  %v184_v19 = vld [vmem:[%s165_s17 + $0x34] sm:$0x1]  ;;  %v186_v20 = vld [vmem:[%s165_s17 + $0x3c] sm:$0x1]  ;;  %v957_v21 = vunpack.c.l.bf16 %v179_v11  ;;  %v959_v22 = vunpack.c.l.bf16 %v180_v12  ;;  %v961_v23 = vunpack.c.h.bf16 %v179_v11  ;;  %v963_v24 = vunpack.c.l.bf16 %v182_v13 }
  0x15   : > { %v187_v25 = vld [vmem:[%s165_s17 + $0x40] ss:$8 sps:$4 sm:$0xff]   ;;  %v188_v26 = vld [vmem:[%s165_s17 + $0x44] sm:$0x1]  ;;  %v965_v27 = vld [vmem:[%s165_s17 + $0x4c] sm:$0x1]  ;;  %v967_v28 = vunpack.c.l.bf16 %v183_v18  ;;  %v969_v29 = vunpack.c.l.bf16 %v184_v19  ;;  %v971_v30 = vunpack.c.h.bf16 %v183_v18  ;;  %v973_v31 = vunpack.c.l.bf16 %v186_v20 }
  0x16   : > { %v975_v32 = vunpack.c.l.bf16 %v187_v25  ;;  %v977_v33 = vunpack.c.l.bf16 %v188_v26  ;;  %v979_v34 = vunpack.c.h.bf16 %v187_v25  ;;  %v210_v35 = vunpack.c.l.bf16 %v965_v27  ;;  %v852_v26 = vld [vmem:[%s1189_s1 + $0x2] ss:$0 sm:$0xff] }
  0x17   : > { %v226_v37 = vmul.f32 %v850_v10, %v939_v6  ;;  %v227_v38 = vmul.f32 %v850_v10, %v942_v8  ;;  %v228_v39 = vmul.f32 %v850_v10, %v949_v14  ;;  %v229_v40 = vmul.f32 %v850_v10, %v953_v16 }
  0x18   : > { %v230_v41 = vmul.f32 %v850_v10, %v957_v21  ;;  %v231_v42 = vmul.f32 %v850_v10, %v961_v23  ;;  %v232_v43 = vmul.f32 %v850_v10, %v967_v28  ;;  %v233_v44 = vmul.f32 %v850_v10, %v971_v30 }
  0x19   : > { %v240_v45 = vmul.f32 %v851_v36, %v939_v6  ;;  %v241_v46 = vmul.f32 %v851_v36, %v192_v7  ;;  %v242_v47 = vmul.f32 %v851_v36, %v942_v8  ;;  %v243_v48 = vmul.f32 %v851_v36, %v944_v9 }
  0x1a   : > { %v244_v49 = vmul.f32 %v851_v36, %v949_v14  ;;  %v245_v50 = vmul.f32 %v851_v36, %v951_v15  ;;  %v246_v51 = vmul.f32 %v851_v36, %v953_v16  ;;  %v247_v52 = vmul.f32 %v851_v36, %v955_v17 }
  0x1b   : > { %v248_v53 = vmul.f32 %v851_v36, %v957_v21  ;;  %v249_v54 = vmul.f32 %v851_v36, %v959_v22  ;;  %v250_v55 = vmul.f32 %v851_v36, %v961_v23  ;;  %v251_v56 = vmul.f32 %v851_v36, %v963_v24 }
  0x1c   : > { %v252_v57 = vmul.f32 %v851_v36, %v967_v28  ;;  %v253_v58 = vmul.f32 %v851_v36, %v969_v29  ;;  %v254_v59 = vmul.f32 %v851_v36, %v971_v30  ;;  %v255_v60 = vmul.f32 %v851_v36, %v973_v31 }
  0x1d   : > { %v273_v61 = vrot.slane %v240_v45, 1  ;;  %v274_v62 = vrot.slane %v241_v46, 1  ;;  %v276_v63 = vrot.slane %v242_v47, 1  ;;  %v277_v0 = vrot.slane %v243_v48, 1 }
  0x1e   : > { %v279_v2 = vrot.slane %v244_v49, 1  ;;  %v280_v3 = vrot.slane %v245_v50, 1  ;;  %v282_v4 = vrot.slane %v246_v51, 1  ;;  %v283_v5 = vrot.slane %v247_v52, 1 }
  0x1f   : > { %v275_v10 = vsel %vm272_vm0, %v273_v61, %v274_v62  ;;  %v278_v11 = vsel %vm272_vm0, %v276_v63, %v277_v0  ;;  %v285_v12 = vrot.slane %v248_v53, 1  ;;  %v286_v13 = vrot.slane %v249_v54, 1 }
  0x20   : > { %v281_v18 = vsel %vm272_vm0, %v279_v2, %v280_v3  ;;  %v284_v19 = vsel %vm272_vm0, %v282_v4, %v283_v5  ;;  %v288_v20 = vrot.slane %v250_v55, 1  ;;  %v289_v25 = vrot.slane %v251_v56, 1 }
  0x21   : > { %v287_v36 = vsel %vm272_vm0, %v285_v12, %v286_v13  ;;  %v291_v45 = vrot.slane %v252_v57, 1  ;;  %v292_v46 = vrot.slane %v253_v58, 1  ;;  %v294_v47 = vrot.slane %v254_v59, 1 }
  0x22   : > { %v290_v48 = vsel %vm272_vm0, %v288_v20, %v289_v25  ;;  %v295_v49 = vrot.slane %v255_v60, 1  ;;  %v305_v50 = vadd.f32 %v275_v10, %v226_v37  ;;  %v306_v51 = vadd.f32 %v278_v11, %v227_v38 }
  0x23   : > { %v293_v52 = vsel %vm272_vm0, %v291_v45, %v292_v46  ;;  %v307_v53 = vadd.f32 %v281_v18, %v228_v39  ;;  %v308_v54 = vadd.f32 %v284_v19, %v229_v40  ;;  %v309_v55 = vadd.f32 %v287_v36, %v230_v41 }
  0x24   : > { %v296_v56 = vsel %vm272_vm0, %v294_v47, %v295_v49  ;;  %v310_v61 = vadd.f32 %v290_v48, %v231_v42  ;;  %v311_v62 = vadd.f32 %v293_v52, %v232_v43  ;;  %v319_v63 = vmul.f32 %v852_v26, %v939_v6  ;;  %v853_v47 = vld [vmem:[%s1189_s1 + $0x3] ss:$0 sm:$0xff] }
  0x25   : > { %v312_v0 = vadd.f32 %v296_v56, %v233_v44  ;;  %v320_v57 = vmul.f32 %v852_v26, %v192_v7  ;;  %v321_v58 = vmul.f32 %v852_v26, %v942_v8  ;;  %v322_v37 = vmul.f32 %v852_v26, %v944_v9 }
  0x26   : > { %v323_v38 = vmul.f32 %v852_v26, %v949_v14  ;;  %v324_v39 = vmul.f32 %v852_v26, %v951_v15  ;;  %v325_v40 = vmul.f32 %v852_v26, %v953_v16  ;;  %v326_v41 = vmul.f32 %v852_v26, %v955_v17 }
  0x27   : > { %v327_v42 = vmul.f32 %v852_v26, %v957_v21  ;;  %v328_v6 = vmul.f32 %v852_v26, %v959_v22  ;;  %v329_v43 = vmul.f32 %v852_v26, %v961_v23  ;;  %v330_v1 = vmul.f32 %v852_v26, %v963_v24 }
  0x28   : > { %v331_v7 = vmul.f32 %v852_v26, %v967_v28  ;;  %v332_v44 = vmul.f32 %v852_v26, %v969_v29  ;;  %v333_v59 = vmul.f32 %v852_v26, %v971_v30  ;;  %v334_v60 = vmul.f32 %v852_v26, %v973_v31 }
  0x29   : > { %v352_v2 = vrot.slane %v319_v63, 2  ;;  %v353_v3 = vrot.slane %v320_v57, 2  ;;  %v355_v4 = vrot.slane %v321_v58, 2  ;;  %v356_v5 = vrot.slane %v322_v37, 2 }
  0x2a   : > { %v358_v10 = vrot.slane %v323_v38, 2  ;;  %v359_v11 = vrot.slane %v324_v39, 2  ;;  %v361_v12 = vrot.slane %v325_v40, 2  ;;  %v362_v13 = vrot.slane %v326_v41, 2 }
  0x2b   : > { %v354_v18 = vsel %vm351_vm1, %v352_v2, %v353_v3  ;;  %v357_v19 = vsel %vm351_vm1, %v355_v4, %v356_v5  ;;  %v364_v20 = vrot.slane %v327_v42, 2  ;;  %v365_v25 = vrot.slane %v328_v6, 2 }
  0x2c   : > { %v360_v36 = vsel %vm351_vm1, %v358_v10, %v359_v11  ;;  %v363_v45 = vsel %vm351_vm1, %v361_v12, %v362_v13  ;;  %v367_v46 = vrot.slane %v329_v43, 2  ;;  %v368_v26 = vrot.slane %v330_v1, 2 }
  0x2d   : > { %v366_v48 = vsel %vm351_vm1, %v364_v20, %v365_v25  ;;  %v370_v49 = vrot.slane %v331_v7, 2  ;;  %v371_v52 = vrot.slane %v332_v44, 2  ;;  %v373_v56 = vrot.slane %v333_v59, 2 }
  0x2e   : > { %v369_v63 = vsel %vm351_vm1, %v367_v46, %v368_v26  ;;  %v374_v57 = vrot.slane %v334_v60, 2  ;;  %v384_v58 = vadd.f32 %v354_v18, %v305_v50  ;;  %v385_v37 = vadd.f32 %v357_v19, %v306_v51  ;;  %v854_v50 = vld [vmem:[%s1189_s1 + $0x4] ss:$0 sm:$0xff] }
  0x2f   : > { %v372_v38 = vsel %vm351_vm1, %v370_v49, %v371_v52  ;;  %v386_v39 = vadd.f32 %v360_v36, %v307_v53  ;;  %v387_v40 = vadd.f32 %v363_v45, %v308_v54  ;;  %v388_v41 = vadd.f32 %v366_v48, %v309_v55 }
  0x30   : > { %v375_v42 = vsel %vm351_vm1, %v373_v56, %v374_v57  ;;  %v389_v6 = vadd.f32 %v369_v63, %v310_v61  ;;  %v390_v43 = vadd.f32 %v372_v38, %v311_v62  ;;  %v398_v1 = vmul.f32 %v853_v47, %v942_v8 }
  0x31   : > { %v391_v2 = vadd.f32 %v375_v42, %v312_v0  ;;  %v399_v7 = vmul.f32 %v853_v47, %v949_v14  ;;  %v400_v44 = vmul.f32 %v853_v47, %v953_v16  ;;  %v401_v59 = vmul.f32 %v853_v47, %v957_v21 }
  0x32   : > { %v402_v51 = vmul.f32 %v853_v47, %v961_v23  ;;  %v403_v53 = vmul.f32 %v853_v47, %v967_v28  ;;  %v404_v54 = vmul.f32 %v853_v47, %v971_v30  ;;  %v405_v55 = vmul.f32 %v853_v47, %v975_v32 }
  0x33   : > { %v406_v61 = vadd.f32 %v398_v1, %v384_v58  ;;  %v407_v62 = vadd.f32 %v399_v7, %v385_v37  ;;  %v408_v0 = vadd.f32 %v400_v44, %v386_v39  ;;  %v409_v60 = vadd.f32 %v401_v59, %v387_v40 }
  0x34   : > { %v410_v3 = vadd.f32 %v402_v51, %v388_v41  ;;  %v411_v4 = vadd.f32 %v403_v53, %v389_v6  ;;  %v412_v5 = vadd.f32 %v404_v54, %v390_v43  ;;  %v413_v10 = vadd.f32 %v405_v55, %v391_v2 }
  0x35   : > { %v420_v11 = vmul.f32 %v854_v50, %v942_v8  ;;  %v421_v12 = vmul.f32 %v854_v50, %v944_v9  ;;  %v422_v13 = vmul.f32 %v854_v50, %v949_v14  ;;  %v423_v18 = vmul.f32 %v854_v50, %v951_v15 }
  0x36   : > { %v424_v19 = vmul.f32 %v854_v50, %v953_v16  ;;  %v425_v20 = vmul.f32 %v854_v50, %v955_v17  ;;  %v426_v25 = vmul.f32 %v854_v50, %v957_v21  ;;  %v427_v36 = vmul.f32 %v854_v50, %v959_v22 }
  0x37   : > { %v428_v45 = vmul.f32 %v854_v50, %v961_v23  ;;  %v429_v46 = vmul.f32 %v854_v50, %v963_v24  ;;  %v430_v26 = vmul.f32 %v854_v50, %v967_v28  ;;  %v431_v47 = vmul.f32 %v854_v50, %v969_v29 }
  0x38   : > { %v432_v48 = vmul.f32 %v854_v50, %v971_v30  ;;  %v433_v49 = vmul.f32 %v854_v50, %v973_v31  ;;  %v434_v52 = vmul.f32 %v854_v50, %v975_v32  ;;  %v435_v56 = vmul.f32 %v854_v50, %v977_v33  ;;  %v855_v50 = vld [vmem:[%s1189_s1 + $0x5] ss:$0 sm:$0xff] }
  0x39   : > { %v452_v63 = vrot.slane %v420_v11, 1  ;;  %v453_v57 = vrot.slane %v421_v12, 1  ;;  %v455_v58 = vrot.slane %v422_v13, 1  ;;  %v456_v37 = vrot.slane %v423_v18, 1 }
  0x3a   : > { %v458_v38 = vrot.slane %v424_v19, 1  ;;  %v459_v39 = vrot.slane %v425_v20, 1  ;;  %v461_v40 = vrot.slane %v426_v25, 1  ;;  %v462_v41 = vrot.slane %v427_v36, 1 }
  0x3b   : > { %v454_v42 = vsel %vm272_vm0, %v452_v63, %v453_v57  ;;  %v457_v6 = vsel %vm272_vm0, %v455_v58, %v456_v37  ;;  %v464_v43 = vrot.slane %v428_v45, 1  ;;  %v465_v1 = vrot.slane %v429_v46, 1 }
  0x3c   : > { %v460_v2 = vsel %vm272_vm0, %v458_v38, %v459_v39  ;;  %v463_v7 = vsel %vm272_vm0, %v461_v40, %v462_v41  ;;  %v467_v44 = vrot.slane %v430_v26, 1  ;;  %v468_v59 = vrot.slane %v431_v47, 1 }
  0x3d   : > { %v466_v51 = vsel %vm272_vm0, %v464_v43, %v465_v1  ;;  %v470_v53 = vrot.slane %v432_v48, 1  ;;  %v471_v54 = vrot.slane %v433_v49, 1  ;;  %v473_v55 = vrot.slane %v434_v52, 1 }
  0x3e   : > { %v469_v11 = vsel %vm272_vm0, %v467_v44, %v468_v59  ;;  %v474_v12 = vrot.slane %v435_v56, 1  ;;  %v484_v13 = vadd.f32 %v454_v42, %v406_v61  ;;  %v485_v18 = vadd.f32 %v457_v6, %v407_v62 }
  0x3f   : > { %v472_v19 = vsel %vm272_vm0, %v470_v53, %v471_v54  ;;  %v486_v20 = vadd.f32 %v460_v2, %v408_v0  ;;  %v487_v25 = vadd.f32 %v463_v7, %v409_v60  ;;  %v488_v36 = vadd.f32 %v466_v51, %v410_v3  ;;  %v856_v53 = vld [vmem:[%s1189_s1 + $0x6] ss:$0 sm:$0xff] }
  0x40   : > { %v475_v45 = vsel %vm272_vm0, %v473_v55, %v474_v12  ;;  %v489_v46 = vadd.f32 %v469_v11, %v411_v4  ;;  %v490_v26 = vadd.f32 %v472_v19, %v412_v5  ;;  %v498_v47 = vmul.f32 %v855_v50, %v942_v8 }
  0x41   : > { %v491_v63 = vadd.f32 %v475_v45, %v413_v10  ;;  %v499_v48 = vmul.f32 %v855_v50, %v944_v9  ;;  %v500_v49 = vmul.f32 %v855_v50, %v949_v14  ;;  %v501_v52 = vmul.f32 %v855_v50, %v951_v15 }
  0x42   : > { %v502_v61 = vmul.f32 %v855_v50, %v953_v16  ;;  %v503_v62 = vmul.f32 %v855_v50, %v955_v17  ;;  %v504_v0 = vmul.f32 %v855_v50, %v957_v21  ;;  %v505_v60 = vmul.f32 %v855_v50, %v959_v22 }
  0x43   : > { %v506_v3 = vmul.f32 %v855_v50, %v961_v23  ;;  %v507_v4 = vmul.f32 %v855_v50, %v963_v24  ;;  %v508_v8 = vmul.f32 %v855_v50, %v967_v28  ;;  %v509_v9 = vmul.f32 %v855_v50, %v969_v29 }
  0x44   : > { %v510_v5 = vmul.f32 %v855_v50, %v971_v30  ;;  %v511_v10 = vmul.f32 %v855_v50, %v973_v31  ;;  %v512_v56 = vmul.f32 %v855_v50, %v975_v32  ;;  %v513_v57 = vmul.f32 %v855_v50, %v977_v33 }
  0x45   : > { %v530_v58 = vrot.slane %v498_v47, 2  ;;  %v531_v37 = vrot.slane %v499_v48, 2  ;;  %v533_v38 = vrot.slane %v500_v49, 2  ;;  %v534_v39 = vrot.slane %v501_v52, 2 }
  0x46   : > { %v536_v40 = vrot.slane %v502_v61, 2  ;;  %v537_v41 = vrot.slane %v503_v62, 2  ;;  %v539_v42 = vrot.slane %v504_v0, 2  ;;  %v540_v6 = vrot.slane %v505_v60, 2 }
  0x47   : > { %v532_v43 = vsel %vm351_vm1, %v530_v58, %v531_v37  ;;  %v535_v1 = vsel %vm351_vm1, %v533_v38, %v534_v39  ;;  %v542_v2 = vrot.slane %v506_v3, 2  ;;  %v543_v7 = vrot.slane %v507_v4, 2 }
  0x48   : > { %v538_v44 = vsel %vm351_vm1, %v536_v40, %v537_v41  ;;  %v541_v59 = vsel %vm351_vm1, %v539_v42, %v540_v6  ;;  %v545_v51 = vrot.slane %v508_v8, 2  ;;  %v546_v50 = vrot.slane %v509_v9, 2 }
  0x49   : > { %v544_v54 = vsel %vm351_vm1, %v542_v2, %v543_v7  ;;  %v548_v55 = vrot.slane %v510_v5, 2  ;;  %v549_v11 = vrot.slane %v511_v10, 2  ;;  %v551_v12 = vrot.slane %v512_v56, 2 }
  0x4a   : > { %v547_v19 = vsel %vm351_vm1, %v545_v51, %v546_v50  ;;  %v552_v45 = vrot.slane %v513_v57, 2  ;;  %v562_v47 = vadd.f32 %v532_v43, %v484_v13  ;;  %v563_v48 = vadd.f32 %v535_v1, %v485_v18  ;;  %v857_v13 = vld [vmem:[%s1189_s1 + $0x7] ss:$0 sm:$0xff] }
  0x4b   : > { %v550_v49 = vsel %vm351_vm1, %v548_v55, %v549_v11  ;;  %v564_v52 = vadd.f32 %v538_v44, %v486_v20  ;;  %v565_v61 = vadd.f32 %v541_v59, %v487_v25  ;;  %v566_v62 = vadd.f32 %v544_v54, %v488_v36 }
  0x4c   : > { %v553_v0 = vsel %vm351_vm1, %v551_v12, %v552_v45  ;;  %v567_v60 = vadd.f32 %v547_v19, %v489_v46  ;;  %v568_v3 = vadd.f32 %v550_v49, %v490_v26  ;;  %v576_v4 = vmul.f32 %v856_v53, %v949_v14 }
  0x4d   : > { %v569_v8 = vadd.f32 %v553_v0, %v491_v63  ;;  %v577_v9 = vmul.f32 %v856_v53, %v953_v16  ;;  %v578_v5 = vmul.f32 %v856_v53, %v957_v21  ;;  %v579_v10 = vmul.f32 %v856_v53, %v961_v23 }
  0x4e   : > { %v580_v18 = vmul.f32 %v856_v53, %v967_v28  ;;  %v581_v20 = vmul.f32 %v856_v53, %v971_v30  ;;  %v582_v25 = vmul.f32 %v856_v53, %v975_v32  ;;  %v583_v36 = vmul.f32 %v856_v53, %v979_v34 }
  0x4f   : > { %v584_v46 = vadd.f32 %v576_v4, %v562_v47  ;;  %v585_v26 = vadd.f32 %v577_v9, %v563_v48  ;;  %v586_v63 = vadd.f32 %v578_v5, %v564_v52  ;;  %v587_v56 = vadd.f32 %v579_v10, %v565_v61  ;;  %v858_v5 = vld [vmem:[%s1189_s1 + $0x8] ss:$0 sm:$0xff] }
  0x50   : > { %v588_v57 = vadd.f32 %v580_v18, %v566_v62  ;;  %v589_v58 = vadd.f32 %v581_v20, %v567_v60  ;;  %v590_v37 = vadd.f32 %v582_v25, %v568_v3  ;;  %v591_v38 = vadd.f32 %v583_v36, %v569_v8 }
  0x51   : > { %v598_v39 = vmul.f32 %v857_v13, %v949_v14  ;;  %v599_v40 = vmul.f32 %v857_v13, %v951_v15  ;;  %v600_v41 = vmul.f32 %v857_v13, %v953_v16  ;;  %v601_v42 = vmul.f32 %v857_v13, %v955_v17 }
  0x52   : > { %v602_v6 = vmul.f32 %v857_v13, %v957_v21  ;;  %v603_v43 = vmul.f32 %v857_v13, %v959_v22  ;;  %v604_v1 = vmul.f32 %v857_v13, %v961_v23  ;;  %v605_v2 = vmul.f32 %v857_v13, %v963_v24 }
  0x53   : > { %v606_v7 = vmul.f32 %v857_v13, %v967_v28  ;;  %v607_v44 = vmul.f32 %v857_v13, %v969_v29  ;;  %v608_v59 = vmul.f32 %v857_v13, %v971_v30  ;;  %v609_v51 = vmul.f32 %v857_v13, %v973_v31 }
  0x54   : > { %v610_v50 = vmul.f32 %v857_v13, %v975_v32  ;;  %v611_v53 = vmul.f32 %v857_v13, %v977_v33  ;;  %v612_v54 = vmul.f32 %v857_v13, %v979_v34  ;;  %v613_v55 = vmul.f32 %v857_v13, %v210_v35 }
  0x55   : > { %v630_v11 = vrot.slane %v598_v39, 1  ;;  %v631_v12 = vrot.slane %v599_v40, 1  ;;  %v633_v19 = vrot.slane %v600_v41, 1  ;;  %v634_v45 = vrot.slane %v601_v42, 1 }
  0x56   : > { %v636_v47 = vrot.slane %v602_v6, 1  ;;  %v637_v48 = vrot.slane %v603_v43, 1  ;;  %v639_v49 = vrot.slane %v604_v1, 1  ;;  %v640_v52 = vrot.slane %v605_v2, 1 }
  0x57   : > { %v632_v61 = vsel %vm272_vm0, %v630_v11, %v631_v12  ;;  %v635_v62 = vsel %vm272_vm0, %v633_v19, %v634_v45  ;;  %v642_v0 = vrot.slane %v606_v7, 1  ;;  %v643_v60 = vrot.slane %v607_v44, 1 }
  0x58   : > { %v638_v3 = vsel %vm272_vm0, %v636_v47, %v637_v48  ;;  %v641_v4 = vsel %vm272_vm0, %v639_v49, %v640_v52  ;;  %v645_v8 = vrot.slane %v608_v59, 1  ;;  %v646_v9 = vrot.slane %v609_v51, 1  ;;  %v859_v48 = vld [vmem:[%s1190_s2] ss:$0 sm:$0xff] }
  0x59   : > { %v644_v10 = vsel %vm272_vm0, %v642_v0, %v643_v60  ;;  %v648_v13 = vrot.slane %v610_v50, 1  ;;  %v649_v18 = vrot.slane %v611_v53, 1  ;;  %v651_v20 = vrot.slane %v612_v54, 1 }
  0x5a   : > { %v647_v25 = vsel %vm272_vm0, %v645_v8, %v646_v9  ;;  %v652_v36 = vrot.slane %v613_v55, 1  ;;  %v662_v39 = vadd.f32 %v632_v61, %v584_v46  ;;  %v663_v40 = vadd.f32 %v635_v62, %v585_v26 }
  0x5b   : > { %v650_v41 = vsel %vm272_vm0, %v648_v13, %v649_v18  ;;  %v664_v42 = vadd.f32 %v638_v3, %v586_v63  ;;  %v665_v6 = vadd.f32 %v641_v4, %v587_v56  ;;  %v666_v43 = vadd.f32 %v644_v10, %v588_v57 }
  0x5c   : > { %v653_v1 = vsel %vm272_vm0, %v651_v20, %v652_v36  ;;  %v667_v2 = vadd.f32 %v647_v25, %v589_v58  ;;  %v668_v7 = vadd.f32 %v650_v41, %v590_v37  ;;  %v676_v44 = vmul.f32 %v858_v5, %v949_v14 }
  0x5d   : > { %v669_v59 = vadd.f32 %v653_v1, %v591_v38  ;;  %v677_v51 = vmul.f32 %v858_v5, %v951_v15  ;;  %v678_v50 = vmul.f32 %v858_v5, %v953_v16  ;;  %v679_v53 = vmul.f32 %v858_v5, %v955_v17 }
  0x5e   : > { %v680_v46 = vmul.f32 %v858_v5, %v957_v21  ;;  %v681_v26 = vmul.f32 %v858_v5, %v959_v22  ;;  %v682_v63 = vmul.f32 %v858_v5, %v961_v23  ;;  %v683_v56 = vmul.f32 %v858_v5, %v963_v24 }
  0x5f   : > { %v684_v57 = vmul.f32 %v858_v5, %v967_v28  ;;  %v685_v58 = vmul.f32 %v858_v5, %v969_v29  ;;  %v686_v14 = vmul.f32 %v858_v5, %v971_v30  ;;  %v687_v15 = vmul.f32 %v858_v5, %v973_v31 }
  0x60   : > { %v688_v16 = vmul.f32 %v858_v5, %v975_v32  ;;  %v689_v17 = vmul.f32 %v858_v5, %v977_v33  ;;  %v690_v21 = vmul.f32 %v858_v5, %v979_v34  ;;  %v691_v22 = vmul.f32 %v858_v5, %v210_v35 }
  0x61   : > { %v708_v23 = vrot.slane %v676_v44, 2  ;;  %v709_v37 = vrot.slane %v677_v51, 2  ;;  %v711_v24 = vrot.slane %v678_v50, 2  ;;  %v712_v38 = vrot.slane %v679_v53, 2 }
  0x62   : > { %v714_v28 = vrot.slane %v680_v46, 2  ;;  %v715_v54 = vrot.slane %v681_v26, 2  ;;  %v717_v29 = vrot.slane %v682_v63, 2  ;;  %v718_v55 = vrot.slane %v683_v56, 2 }
  0x63   : > { %v710_v30 = vsel %vm351_vm1, %v708_v23, %v709_v37  ;;  %v713_v31 = vsel %vm351_vm1, %v711_v24, %v712_v38  ;;  %v720_v32 = vrot.slane %v684_v57, 2  ;;  %v721_v11 = vrot.slane %v685_v58, 2 }
  0x64   : > { %v716_v33 = vsel %vm351_vm1, %v714_v28, %v715_v54  ;;  %v719_v34 = vsel %vm351_vm1, %v717_v29, %v718_v55  ;;  %v723_v27 = vrot.slane %v686_v14, 2  ;;  %v724_v35 = vrot.slane %v687_v15, 2 }
  0x65   : > { %v722_v12 = vsel %vm351_vm1, %v720_v32, %v721_v11  ;;  %v726_v19 = vrot.slane %v688_v16, 2  ;;  %v727_v45 = vrot.slane %v689_v17, 2  ;;  %v729_v47 = vrot.slane %v690_v21, 2 }
  0x66   : > { %v725_v49 = vsel %vm351_vm1, %v723_v27, %v724_v35  ;;  %v730_v52 = vrot.slane %v691_v22, 2  ;;  %v740_v61 = vadd.f32 %v710_v30, %v662_v39  ;;  %v741_v62 = vadd.f32 %v713_v31, %v663_v40 }
  0x67   : > { %v728_v0 = vsel %vm351_vm1, %v726_v19, %v727_v45  ;;  %v742_v60 = vadd.f32 %v716_v33, %v664_v42  ;;  %v743_v3 = vadd.f32 %v719_v34, %v665_v6  ;;  %v744_v4 = vadd.f32 %v722_v12, %v666_v43 }
  0x68   : > { %v731_v8 = vsel %vm351_vm1, %v729_v47, %v730_v52  ;;  %v745_v9 = vadd.f32 %v725_v49, %v667_v2  ;;  %v746_v5 = vadd.f32 %v728_v0, %v668_v7  ;;  %v755_v10 = vadd.f32 %v859_v48, %v740_v61 }
  0x69   : > { %v747_v13 = vadd.f32 %v731_v8, %v669_v59  ;;  %v756_v18 = vadd.f32 %v859_v48, %v741_v62  ;;  %v757_v20 = vadd.f32 %v859_v48, %v742_v60  ;;  %v758_v25 = vadd.f32 %v859_v48, %v743_v3 }
  0x6a   : > { %v759_v36 = vadd.f32 %v859_v48, %v744_v4  ;;  %v760_v41 = vadd.f32 %v859_v48, %v745_v9  ;;  %v761_v1 = vadd.f32 %v859_v48, %v746_v5  ;;  %v763_v39 = vmax.f32 %v755_v10, 0.0 }
  0x6b   : > { %v762_v40 = vadd.f32 %v859_v48, %v747_v13  ;;  %v764_v44 = vmax.f32 %v756_v18, 0.0  ;;  %v765_v51 = vmax.f32 %v757_v20, 0.0  ;;  %v766_v42 = vmax.f32 %v758_v25, 0.0 }
  0x6c   : > { %v767_v6 = vmax.f32 %v759_v36, 0.0  ;;  %v768_v43 = vmax.f32 %v760_v41, 0.0  ;;  %v769_v2 = vmax.f32 %v761_v1, 0.0 }
  0x6d   : > { %v770_v7 = vmax.f32 %v762_v40, 0.0  ;;  %v866_v59 = vpack.c.bf16 %v764_v44, %v763_v39  ;;  %v871_v50 = vpack.c.bf16 %v766_v42, %v765_v51 }
  0x6e   : > { %v876_v53 = vpack.c.bf16 %v768_v43, %v767_v6 }
  0x6f   : > { %867 = vst [vmem:[%s170_s16] sm:$0xff] %v866_v59   ;;  %883 = vst [vmem:[%s170_s16 + $0x8] sm:$0xff] %v871_v50   ;;  %v881_v46 = vpack.c.bf16 %v770_v7, %v769_v2 }
  0x70   : > { %884 = vst [vmem:[%s170_s16 + $0x10] sm:$0xff] %v876_v53  }
  0x71   : > { %885 = vst [vmem:[%s170_s16 + $0x18] sm:$0xff] %v881_v46  }
  0x72 PF: > { %s13_s12 = sadd.s32 1, %s901_s12  }
  0x73   : > { %p10_p4 = scmp.ge.s32.totalorder %s13_s12, 4  }
  0x75   :  { %12 = sbr.rel (!%p10_p4) target bundleno = 1 (0x1), region = 62 }

// kernel: mobile_posnet_forward.23
= control target key start
LH: loop header
LB: loop body
LE: loop exit
PB: predicated region body
PF: predicated region fallthrough
CT: control target
= control target key end

     0   :  { %s968_s1 = inlined_call_operand.vmem [shape: bf16[128,128], index: 1, kind: input, shape index: {}]   ;;  %s969_s0 = inlined_call_operand.vmem [shape: bf16[128,128], index: 0, kind: input, shape index: {}]   ;;  %s970_s3 = inlined_call_operand.vmem [shape: bf16[128,128], index: 3, kind: input, shape index: {}]   ;;  %s971_s2 = inlined_call_operand.vmem [shape: f32[1,128], index: 2, kind: input, shape index: {}]   ;;  %s972_s4 = inlined_call_operand.vmem [shape: f32[1,128], index: 4, kind: input, shape index: {}]   ;;  %s973_s5 = inlined_call_operand.vmem [shape: bf16[128,128], index: 5, kind: output, shape index: {}]  }
   0x1   :  { %v794_v0 = vld [vmem:[%s968_s1] sm:$0xff]   ;;  %v795_v1 = vld [vmem:[%s968_s1 + $0x8] sm:$0xff]   ;;  %v796_v2 = vld [vmem:[%s968_s1 + $0x10] sm:$0xff]  }
   0x2   :  { %730 = vmatprep.subr.bf16.mxu0 %v794_v0  ;;  %v797_v3 = vld [vmem:[%s968_s1 + $0x18] sm:$0xff]   ;;  %v802_v4 = vld [vmem:[%s969_s0] sm:$0xff]   ;;  %v799_v6 = vld [vmem:[%s968_s1 + $0x28] sm:$0xff]  }
   0x3   :  { %731 = vmatpush3.bf16.msra.mxu0 %v794_v0  ;;  %746 = vmatprep.mubr.bf16.mxu0 %v802_v4  ;;  %v798_v5 = vld [vmem:[%s968_s1 + $0x20] sm:$0xff]   ;;  %v811_v8 = vld [vmem:[%s970_s3 + $0x8] sm:$0xff]   ;;  %v800_v9 = vld [vmem:[%s968_s1 + $0x30] sm:$0xff]  }
   0x4   :  { %732 = vmatprep.subr.bf16.mxu0 %v795_v1  ;;  %v810_v7 = vld [vmem:[%s970_s3] sm:$0xff]   ;;  %v812_v10 = vld [vmem:[%s970_s3 + $0x10] sm:$0xff]   ;;  %v801_v11 = vld [vmem:[%s968_s1 + $0x38] sm:$0xff]  }
   0x5   :  { %762 = vmatprep.subr.bf16.mxu1 %v810_v7  ;;  %v813_v12 = vld [vmem:[%s970_s3 + $0x18] sm:$0xff]   ;;  %v803_v13 = vld [vmem:[%s969_s0 + $0x8] sm:$0xff]   ;;  %v804_v14 = vld [vmem:[%s969_s0 + $0x10] sm:$0xff]  }
   0x6   :  { %763 = vmatpush3.bf16.msra.mxu1 %v810_v7  ;;  %v805_v15 = vld [vmem:[%s969_s0 + $0x18] sm:$0xff]   ;;  %v806_v16 = vld [vmem:[%s969_s0 + $0x20] sm:$0xff]   ;;  %v807_v17 = vld [vmem:[%s969_s0 + $0x28] sm:$0xff]  }
   0x7   :  { %733 = vmatpush3.bf16.msra.mxu0 %v795_v1  ;;  %764 = vmatprep.subr.bf16.mxu1 %v811_v8  ;;  %v808_v18 = vld [vmem:[%s969_s0 + $0x30] sm:$0xff]   ;;  %v809_v19 = vld [vmem:[%s969_s0 + $0x38] sm:$0xff]   ;;  %v814_v20 = vld [vmem:[%s970_s3 + $0x20] sm:$0xff]  }
   0x8   :  { %734 = vmatprep.subr.bf16.mxu0 %v796_v2  ;;  %v815_v21 = vld [vmem:[%s970_s3 + $0x28] sm:$0xff]   ;;  %v816_v22 = vld [vmem:[%s970_s3 + $0x30] sm:$0xff]   ;;  %v817_v23 = vld [vmem:[%s970_s3 + $0x38] sm:$0xff]  }
   0x9   :  { %v923_v24 = vld [vmem:[%s971_s2] ss:$0 sm:$0xff] }
   0xa   :  { %765 = vmatpush3.bf16.msra.mxu1 %v811_v8 }
   0xb   :  { %735 = vmatpush3.bf16.msra.mxu0 %v796_v2  ;;  %766 = vmatprep.subr.bf16.mxu1 %v812_v10 }
   0xc   :  { %736 = vmatprep.subr.bf16.mxu0 %v797_v3 }
   0xe   :  { %767 = vmatpush3.bf16.msra.mxu1 %v812_v10 }
   0xf   :  { %737 = vmatpush3.bf16.msra.mxu0 %v797_v3  ;;  %768 = vmatprep.subr.bf16.mxu1 %v813_v12 }
  0x10   :  { %738 = vmatprep.subr.bf16.mxu0 %v798_v5 }
  0x12   :  { %769 = vmatpush3.bf16.msra.mxu1 %v813_v12 }
  0x13   :  { %739 = vmatpush3.bf16.msra.mxu0 %v798_v5  ;;  %770 = vmatprep.subr.bf16.mxu1 %v814_v20 }
  0x14   :  { %740 = vmatprep.subr.bf16.mxu0 %v799_v6 }
  0x16   :  { %771 = vmatpush3.bf16.msra.mxu1 %v814_v20 }
  0x17   :  { %741 = vmatpush3.bf16.msra.mxu0 %v799_v6  ;;  %772 = vmatprep.subr.bf16.mxu1 %v815_v21 }
  0x18   :  { %742 = vmatprep.subr.bf16.mxu0 %v800_v9 }
  0x1a   :  { %773 = vmatpush3.bf16.msra.mxu1 %v815_v21 }
  0x1b   :  { %743 = vmatpush3.bf16.msra.mxu0 %v800_v9  ;;  %774 = vmatprep.subr.bf16.mxu1 %v816_v22 }
  0x1c   :  { %744 = vmatprep.subr.bf16.mxu0 %v801_v11 }
  0x1e   :  { %775 = vmatpush3.bf16.msra.mxu1 %v816_v22 }
  0x1f   :  { %745 = vmatpush3.bf16.msra.mxu0 %v801_v11  ;;  %776 = vmatprep.subr.bf16.mxu1 %v817_v23 }
  0x22   :  { %747 = vmatmul.mubr.bf16.vlgmr.msra.gmra.mrb[0].mxu0 %v803_v13  ;;  %777 = vmatpush3.bf16.msra.mxu1 %v817_v23 }
  0x23   :  { %750 = vmatprep.mubr.bf16.mxu0 %v804_v14 }
  0x2a   :  { %751 = vmatmul.mubr.bf16.gmra.mrb[4].mxu0 %v805_v15 }
  0x2b   :  { %754 = vmatprep.mubr.bf16.mxu0 %v806_v16 }
  0x32   :  { %755 = vmatmul.mubr.bf16.gmra.mrb[8].mxu0 %v807_v17 }
  0x33   :  { %758 = vmatprep.mubr.bf16.mxu0 %v808_v18 }
  0x3a   :  { %759 = vmatmul.mubr.bf16.gmra.mrb[12].mxu0 %v809_v19 }
  0xf5   :  { %v748_v25 = vpop.f32.mrb[0].mxu0 }
  0xf6   :  { %v199_v26 = vadd.f32 %v748_v25, %v923_v24  ;;  %v190_v27 = vpop.f32.mrb[1].mxu0 }
  0xf7   :  { %v191_v28 = vadd.f32 %v923_v24, %v190_v27  ;;  %v749_v29 = vpop.f32.mrb[2].mxu0 }
  0xf8   :  { %v255_v30 = vadd.f32 3.0, %v199_v26  ;;  %v202_v31 = vadd.f32 %v749_v29, %v923_v24  ;;  %v193_v32 = vpop.f32.mrb[3].mxu0 }
  0xf9   :  { %v253_v33 = vadd.f32 3.0, %v191_v28  ;;  %v194_v34 = vadd.f32 %v923_v24, %v193_v32 }
  0xfa   :  { %v271_v35 = vmax.f32 %v255_v30, 0.0  ;;  %v256_v36 = vadd.f32 3.0, %v202_v31 }
  0xfb   :  { %v269_v37 = vmax.f32 %v253_v33, 0.0  ;;  %v254_v38 = vadd.f32 3.0, %v194_v34 }
  0xfc   :  { %v287_v39 = vmin.f32 %v271_v35, 6.0  ;;  %v272_v40 = vmax.f32 %v256_v36, 0.0 }
  0xfd   :  { %v285_v41 = vmin.f32 %v269_v37, 6.0  ;;  %v270_v42 = vmax.f32 %v254_v38, 0.0  ;;  %v752_v43 = vpop.f32.mrb[4].mxu0 }
  0xfe   :  { %v303_v44 = vmul.f32 %v287_v39, %v199_v26  ;;  %v288_v45 = vmin.f32 %v272_v40, 6.0  ;;  %v215_v46 = vadd.f32 %v752_v43, %v923_v24  ;;  %v206_v47 = vpop.f32.mrb[5].mxu0 }
  0xff   :  { %v286_v48 = vmin.f32 %v270_v42, 6.0  ;;  %v207_v49 = vadd.f32 %v923_v24, %v206_v47  ;;  %v753_v50 = vpop.f32.mrb[6].mxu0  ;;  %v301_v51 = vmul.f32 %v285_v41, %v191_v28 }
 0x100   :  { %v304_v52 = vmul.f32 %v288_v45, %v202_v31  ;;  %v259_v53 = vadd.f32 3.0, %v215_v46  ;;  %v218_v54 = vadd.f32 %v753_v50, %v923_v24  ;;  %v209_v55 = vpop.f32.mrb[7].mxu0  ;;  %v319_v59 = vmul.f32 0.16666667, %v303_v44 }
 0x101   :  { %v257_v56 = vadd.f32 3.0, %v207_v49  ;;  %v210_v57 = vadd.f32 %v923_v24, %v209_v55  ;;  %v302_v58 = vmul.f32 %v286_v48, %v194_v34  ;;  %v317_v1 = vmul.f32 0.16666667, %v301_v51 }
 0x102   :  { %v320_v60 = vmul.f32 0.16666667, %v304_v52  ;;  %v275_v61 = vmax.f32 %v259_v53, 0.0  ;;  %v260_v62 = vadd.f32 3.0, %v218_v54 }
 0x103   :  { %v273_v63 = vmax.f32 %v257_v56, 0.0  ;;  %v258_v0 = vadd.f32 3.0, %v210_v57  ;;  %v318_v2 = vmul.f32 0.16666667, %v302_v58 }
 0x104   :  { %v291_v3 = vmin.f32 %v275_v61, 6.0  ;;  %v276_v4 = vmax.f32 %v260_v62, 0.0  ;;  %v351_v5 = vpack.c.bf16 %v320_v60, %v319_v59 }
 0x105   :  { %v289_v6 = vmin.f32 %v273_v63, 6.0  ;;  %v274_v7 = vmax.f32 %v258_v0, 0.0  ;;  %v756_v8 = vpop.f32.mrb[8].mxu0  ;;  %v350_v9 = vpack.c.bf16 %v318_v2, %v317_v1 }
 0x106   :  { %v307_v10 = vmul.f32 %v291_v3, %v215_v46  ;;  %v292_v11 = vmin.f32 %v276_v4, 6.0  ;;  %v231_v12 = vadd.f32 %v756_v8, %v923_v24  ;;  %v222_v13 = vpop.f32.mrb[9].mxu0 }
 0x107   :  { %v305_v14 = vmul.f32 %v289_v6, %v207_v49  ;;  %v290_v15 = vmin.f32 %v274_v7, 6.0  ;;  %v223_v16 = vadd.f32 %v923_v24, %v222_v13  ;;  %v757_v17 = vpop.f32.mrb[10].mxu0  ;;  %778 = vmatprep.mubr.bf16.mxu1 %v350_v9 }
 0x108   :  { %v308_v18 = vmul.f32 %v292_v11, %v218_v54  ;;  %v263_v19 = vadd.f32 3.0, %v231_v12  ;;  %v234_v20 = vadd.f32 %v757_v17, %v923_v24  ;;  %v225_v21 = vpop.f32.mrb[11].mxu0  ;;  %779 = vmatmul.mubr.bf16.vlgmr.msra.gmra.mrb[0].mxu1 %v351_v5  ;;  %v323_v26 = vmul.f32 0.16666667, %v307_v10 }
 0x109   :  { %v306_v22 = vmul.f32 %v290_v15, %v210_v57  ;;  %v261_v23 = vadd.f32 3.0, %v223_v16  ;;  %v226_v25 = vadd.f32 %v923_v24, %v225_v21  ;;  %v321_v30 = vmul.f32 0.16666667, %v305_v14 }
 0x10a   :  { %v324_v27 = vmul.f32 0.16666667, %v308_v18  ;;  %v279_v28 = vmax.f32 %v263_v19, 0.0  ;;  %v264_v29 = vadd.f32 3.0, %v234_v20  ;;  %v610_v18 = vld [vmem:[%s972_s4] ss:$0 sm:$0xff] }
 0x10b   :  { %v322_v31 = vmul.f32 0.16666667, %v306_v22  ;;  %v277_v32 = vmax.f32 %v261_v23, 0.0  ;;  %v262_v33 = vadd.f32 3.0, %v226_v25 }
 0x10c   :  { %v295_v34 = vmin.f32 %v279_v28, 6.0  ;;  %v280_v35 = vmax.f32 %v264_v29, 0.0  ;;  %v353_v36 = vpack.c.bf16 %v324_v27, %v323_v26 }
 0x10d   :  { %v293_v37 = vmin.f32 %v277_v32, 6.0  ;;  %v278_v38 = vmax.f32 %v262_v33, 0.0  ;;  %v760_v39 = vpop.f32.mrb[12].mxu0  ;;  %v352_v40 = vpack.c.bf16 %v322_v31, %v321_v30 }
 0x10e   :  { %v311_v41 = vmul.f32 %v295_v34, %v231_v12  ;;  %v296_v42 = vmin.f32 %v280_v35, 6.0  ;;  %v247_v43 = vadd.f32 %v760_v39, %v923_v24  ;;  %v238_v44 = vpop.f32.mrb[13].mxu0 }
 0x10f   :  { %v309_v45 = vmul.f32 %v293_v37, %v223_v16  ;;  %v294_v46 = vmin.f32 %v278_v38, 6.0  ;;  %v239_v47 = vadd.f32 %v923_v24, %v238_v44  ;;  %v761_v48 = vpop.f32.mrb[14].mxu0  ;;  %782 = vmatprep.mubr.bf16.mxu1 %v352_v40 }
 0x110   :  { %v312_v49 = vmul.f32 %v296_v42, %v234_v20  ;;  %v267_v50 = vadd.f32 3.0, %v247_v43  ;;  %v250_v51 = vadd.f32 %v761_v48, %v923_v24  ;;  %v241_v52 = vpop.f32.mrb[15].mxu0  ;;  %783 = vmatmul.mubr.bf16.gmra.mrb[4].mxu1 %v353_v36  ;;  %v327_v56 = vmul.f32 0.16666667, %v311_v41 }
 0x111   :  { %v310_v53 = vmul.f32 %v294_v46, %v226_v25  ;;  %v265_v54 = vadd.f32 3.0, %v239_v47  ;;  %v242_v55 = vadd.f32 %v923_v24, %v241_v52  ;;  %v325_v60 = vmul.f32 0.16666667, %v309_v45 }
 0x112   :  { %v328_v57 = vmul.f32 0.16666667, %v312_v49  ;;  %v283_v58 = vmax.f32 %v267_v50, 0.0  ;;  %v268_v59 = vadd.f32 3.0, %v250_v51 }
 0x113   :  { %v326_v61 = vmul.f32 0.16666667, %v310_v53  ;;  %v281_v62 = vmax.f32 %v265_v54, 0.0  ;;  %v266_v63 = vadd.f32 3.0, %v242_v55 }
 0x114   :  { %v299_v0 = vmin.f32 %v283_v58, 6.0  ;;  %v284_v1 = vmax.f32 %v268_v59, 0.0  ;;  %v355_v2 = vpack.c.bf16 %v328_v57, %v327_v56 }
 0x115   :  { %v297_v3 = vmin.f32 %v281_v62, 6.0  ;;  %v282_v4 = vmax.f32 %v266_v63, 0.0  ;;  %v354_v5 = vpack.c.bf16 %v326_v61, %v325_v60 }
 0x116   :  { %v315_v6 = vmul.f32 %v299_v0, %v247_v43  ;;  %v300_v7 = vmin.f32 %v284_v1, 6.0 }
 0x117   :  { %v313_v8 = vmul.f32 %v297_v3, %v239_v47  ;;  %v298_v9 = vmin.f32 %v282_v4, 6.0  ;;  %786 = vmatprep.mubr.bf16.mxu1 %v354_v5 }
 0x118   :  { %v316_v24 = vmul.f32 %v300_v7, %v250_v51  ;;  %787 = vmatmul.mubr.bf16.gmra.mrb[8].mxu1 %v355_v2  ;;  %v331_v11 = vmul.f32 0.16666667, %v315_v6 }
 0x119   :  { %v314_v10 = vmul.f32 %v298_v9, %v242_v55  ;;  %v329_v13 = vmul.f32 0.16666667, %v313_v8 }
 0x11a   :  { %v332_v12 = vmul.f32 0.16666667, %v316_v24 }
 0x11b   :  { %v330_v14 = vmul.f32 0.16666667, %v314_v10 }
 0x11c   :  { %v357_v15 = vpack.c.bf16 %v332_v12, %v331_v11 }
 0x11d   :  { %v356_v16 = vpack.c.bf16 %v330_v14, %v329_v13 }
 0x11f   :  { %790 = vmatprep.mubr.bf16.mxu1 %v356_v16 }
 0x120   :  { %791 = vmatmul.mubr.bf16.gmra.mrb[12].mxu1 %v357_v15 }
 0x1db   :  { %v780_v17 = vpop.f32.mrb[0].mxu1 }
 0x1dc   :  { %v446_v19 = vpop.f32.mrb[1].mxu1  ;;  %v455_v21 = vadd.f32 %v780_v17, %v610_v18 }
 0x1dd   :  { %v781_v20 = vpop.f32.mrb[2].mxu1  ;;  %v447_v25 = vadd.f32 %v610_v18, %v446_v19 }
 0x1de   :  { %v458_v22 = vadd.f32 %v781_v20, %v610_v18  ;;  %v449_v23 = vpop.f32.mrb[3].mxu1 }
 0x1df   :  { %v450_v26 = vadd.f32 %v610_v18, %v449_v23 }
 0x1e0   :  { %v659_v27 = vpack.c.bf16 %v458_v22, %v455_v21 }
 0x1e1   :  { %v654_v28 = vpack.c.bf16 %v450_v26, %v447_v25 }
 0x1e2   :  { %691 = vst [vmem:[%s973_s5 + $0x8] sm:$0xff] %v659_v27  }
 0x1e3   :  { %655 = vst [vmem:[%s973_s5] sm:$0xff] %v654_v28   ;;  %v784_v29 = vpop.f32.mrb[4].mxu1 }
 0x1e4   :  { %v462_v30 = vpop.f32.mrb[5].mxu1  ;;  %v471_v32 = vadd.f32 %v784_v29, %v610_v18 }
 0x1e5   :  { %v785_v31 = vpop.f32.mrb[6].mxu1  ;;  %v463_v35 = vadd.f32 %v610_v18, %v462_v30 }
 0x1e6   :  { %v474_v33 = vadd.f32 %v785_v31, %v610_v18  ;;  %v465_v34 = vpop.f32.mrb[7].mxu1 }
 0x1e7   :  { %v466_v36 = vadd.f32 %v610_v18, %v465_v34 }
 0x1e8   :  { %v669_v37 = vpack.c.bf16 %v474_v33, %v471_v32 }
 0x1e9   :  { %v664_v38 = vpack.c.bf16 %v466_v36, %v463_v35 }
 0x1ea   :  { %693 = vst [vmem:[%s973_s5 + $0x18] sm:$0xff] %v669_v37  }
 0x1eb   :  { %692 = vst [vmem:[%s973_s5 + $0x10] sm:$0xff] %v664_v38   ;;  %v788_v39 = vpop.f32.mrb[8].mxu1 }
 0x1ec   :  { %v478_v40 = vpop.f32.mrb[9].mxu1  ;;  %v487_v42 = vadd.f32 %v788_v39, %v610_v18 }
 0x1ed   :  { %v789_v41 = vpop.f32.mrb[10].mxu1  ;;  %v479_v45 = vadd.f32 %v610_v18, %v478_v40 }
 0x1ee   :  { %v490_v43 = vadd.f32 %v789_v41, %v610_v18  ;;  %v481_v44 = vpop.f32.mrb[11].mxu1 }
 0x1ef   :  { %v482_v46 = vadd.f32 %v610_v18, %v481_v44 }
 0x1f0   :  { %v679_v47 = vpack.c.bf16 %v490_v43, %v487_v42 }
 0x1f1   :  { %v674_v48 = vpack.c.bf16 %v482_v46, %v479_v45 }
 0x1f2   :  { %695 = vst [vmem:[%s973_s5 + $0x28] sm:$0xff] %v679_v47  }
 0x1f3   :  { %694 = vst [vmem:[%s973_s5 + $0x20] sm:$0xff] %v674_v48   ;;  %v792_v49 = vpop.f32.mrb[12].mxu1 }
 0x1f4   :  { %v494_v50 = vpop.f32.mrb[13].mxu1  ;;  %v503_v52 = vadd.f32 %v792_v49, %v610_v18 }
 0x1f5   :  { %v793_v51 = vpop.f32.mrb[14].mxu1  ;;  %v495_v55 = vadd.f32 %v610_v18, %v494_v50 }
 0x1f6   :  { %v506_v53 = vadd.f32 %v793_v51, %v610_v18  ;;  %v497_v54 = vpop.f32.mrb[15].mxu1 }
 0x1f7   :  { %v498_v56 = vadd.f32 %v610_v18, %v497_v54 }
 0x1f8   :  { %v689_v57 = vpack.c.bf16 %v506_v53, %v503_v52 }
 0x1f9   :  { %v684_v58 = vpack.c.bf16 %v498_v56, %v495_v55 }
 0x1fa   :  { %697 = vst [vmem:[%s973_s5 + $0x38] sm:$0xff] %v689_v57  }
 0x1fb   :  { %696 = vst [vmem:[%s973_s5 + $0x30] sm:$0xff] %v684_v58  }

// kernel: mobile_posnet_forward.29
= control target key start
LH: loop header
LB: loop body
LE: loop exit
PB: predicated region body
PF: predicated region fallthrough
CT: control target
= control target key end

     0   :  { %s1845_s1 = inlined_call_operand.vmem [shape: bf16[640,128], index: 1, kind: input, shape index: {}]   ;;  %s1846_s0 = inlined_call_operand.vmem [shape: bf16[128,640], index: 0, kind: input, shape index: {}]   ;;  %s1847_s2 = inlined_call_operand.vmem [shape: f32[1,128], index: 2, kind: input, shape index: {}]   ;;  %s1848_s3 = inlined_call_operand.vmem [shape: bf16[128,128], index: 3, kind: output, shape index: {}]  }
   0x1   :  { %v1405_v0 = vld [vmem:[%s1845_s1 + $0x40] sm:$0xff]   ;;  %v1409_v4 = vld [vmem:[%s1845_s1 + $0x48] sm:$0xff]   ;;  %v1413_v8 = vld [vmem:[%s1845_s1 + $0x50] sm:$0xff]  }
   0x2   :  { %v1406_v1 = vld [vmem:[%s1845_s1 + $0xc0] sm:$0xff]   ;;  %1213 = vmatprep.subr.bf16.mxu0 %v1405_v0  ;;  %v1410_v5 = vld [vmem:[%s1845_s1 + $0xc8] sm:$0xff]   ;;  %v1414_v9 = vld [vmem:[%s1845_s1 + $0xd0] sm:$0xff]  }
   0x3   :  { %v1407_v2 = vld [vmem:[%s1845_s1] sm:$0xff]   ;;  %1277 = vmatprep.subr.bf16.mxu1 %v1406_v1  ;;  %v1411_v6 = vld [vmem:[%s1845_s1 + $0x8] sm:$0xff]   ;;  %v1415_v10 = vld [vmem:[%s1845_s1 + $0x10] sm:$0xff]  }
   0x4   :  { %v1408_v3 = vld [vmem:[%s1845_s1 + $0x80] sm:$0xff]   ;;  %1214 = vmatpush3.bf16.msra.mxu0 %v1407_v2  ;;  %v1412_v7 = vld [vmem:[%s1845_s1 + $0x88] sm:$0xff]   ;;  %v1416_v11 = vld [vmem:[%s1845_s1 + $0x90] sm:$0xff]  }
   0x5   :  { %1278 = vmatpush3.bf16.msra.mxu1 %v1408_v3  ;;  %1215 = vmatprep.subr.bf16.mxu0 %v1409_v4  ;;  %v1417_v12 = vld [vmem:[%s1845_s1 + $0x58] sm:$0xff]   ;;  %v1421_v16 = vld [vmem:[%s1845_s1 + $0x60] sm:$0xff]   ;;  %v1425_v20 = vld [vmem:[%s1845_s1 + $0x68] sm:$0xff]  }
   0x6   :  { %1279 = vmatprep.subr.bf16.mxu1 %v1410_v5  ;;  %v1418_v13 = vld [vmem:[%s1845_s1 + $0xd8] sm:$0xff]   ;;  %v1422_v17 = vld [vmem:[%s1845_s1 + $0xe0] sm:$0xff]   ;;  %v1426_v21 = vld [vmem:[%s1845_s1 + $0xe8] sm:$0xff]  }
   0x7   :  { %v1419_v14 = vld [vmem:[%s1845_s1 + $0x18] sm:$0xff]   ;;  %v1423_v18 = vld [vmem:[%s1845_s1 + $0x20] sm:$0xff]   ;;  %v1427_v22 = vld [vmem:[%s1845_s1 + $0x28] sm:$0xff]  }
   0x8   :  { %1216 = vmatpush3.bf16.msra.mxu0 %v1411_v6  ;;  %v1420_v15 = vld [vmem:[%s1845_s1 + $0x98] sm:$0xff]   ;;  %v1424_v19 = vld [vmem:[%s1845_s1 + $0xa0] sm:$0xff]   ;;  %v1428_v23 = vld [vmem:[%s1845_s1 + $0xa8] sm:$0xff]  }
   0x9   :  { %1280 = vmatpush3.bf16.msra.mxu1 %v1412_v7  ;;  %1217 = vmatprep.subr.bf16.mxu0 %v1413_v8  ;;  %v1429_v24 = vld [vmem:[%s1845_s1 + $0x70] sm:$0xff]   ;;  %v1433_v28 = vld [vmem:[%s1845_s1 + $0x78] sm:$0xff]   ;;  %v1442_v35 = vld [vmem:[%s1846_s0 + $0xc] ss:$20 sps:$4 sm:$0xff]  }
   0xa   :  { %1281 = vmatprep.subr.bf16.mxu1 %v1414_v9  ;;  %v1430_v25 = vld [vmem:[%s1845_s1 + $0xf0] sm:$0xff]   ;;  %v1434_v29 = vld [vmem:[%s1845_s1 + $0xf8] sm:$0xff]   ;;  %v1443_v36 = vld [vmem:[%s1845_s1 + $0x100] sm:$0xff]   ;;  %727 = vmatprep.mubr.bf16.mxu1 %v1442_v35 }
   0xb   :  { %v1431_v26 = vld [vmem:[%s1845_s1 + $0x30] sm:$0xff]   ;;  %v1435_v30 = vld [vmem:[%s1845_s1 + $0x38] sm:$0xff]   ;;  %v1444_v37 = vld [vmem:[%s1846_s0 + $0x2c] ss:$20 sps:$4 sm:$0xff]  }
   0xc   :  { %1218 = vmatpush3.bf16.msra.mxu0 %v1415_v10  ;;  %v1432_v27 = vld [vmem:[%s1845_s1 + $0xb0] sm:$0xff]   ;;  %v1436_v31 = vld [vmem:[%s1845_s1 + $0xb8] sm:$0xff]   ;;  %v1450_v39 = vld [vmem:[%s1845_s1 + $0x108] sm:$0xff]  }
   0xd   :  { %1282 = vmatpush3.bf16.msra.mxu1 %v1416_v11  ;;  %1219 = vmatprep.subr.bf16.mxu0 %v1417_v12  ;;  %v1437_v32 = vld [vmem:[%s1846_s0] ss:$20 sps:$4 sm:$0xff]   ;;  %v1439_v33 = vld [vmem:[%s1846_s0 + $0x4] ss:$20 sps:$4 sm:$0xff]   ;;  %v1440_v34 = vld [vmem:[%s1846_s0 + $0x8] ss:$20 sps:$4 sm:$0xff]  }
   0xe   :  { %1283 = vmatprep.subr.bf16.mxu1 %v1418_v13  ;;  %630 = vmatprep.mubr.bf16.mxu0 %v1439_v33  ;;  %v1446_v38 = vld [vmem:[%s1846_s0 + $0x34] ss:$20 sps:$4 sm:$0xff]   ;;  %v1449_v41 = vld [vmem:[%s1846_s0 + $0x30] ss:$20 sps:$4 sm:$0xff]   ;;  %v1464_v45 = vld [vmem:[%s1845_s1 + $0x118] sm:$0xff]  }
   0xf   :  { %v1448_v40 = vld [vmem:[%s1846_s0 + $0x28] ss:$20 sps:$4 sm:$0xff]   ;;  %v1457_v44 = vld [vmem:[%s1845_s1 + $0x110] sm:$0xff]   ;;  %v1456_v47 = vld [vmem:[%s1846_s0 + $0x58] ss:$20 sps:$4 sm:$0xff]  }
  0x10   :  { %1220 = vmatpush3.bf16.msra.mxu0 %v1419_v14  ;;  %v1451_v42 = vld [vmem:[%s1846_s0 + $0x54] ss:$20 sps:$4 sm:$0xff]   ;;  %v1453_v43 = vld [vmem:[%s1846_s0 + $0x5c] ss:$20 sps:$4 sm:$0xff]   ;;  %v1460_v49 = vld [vmem:[%s1846_s0 + $0x84] ss:$20 sps:$4 sm:$0xff]  }
  0x11   :  { %1284 = vmatpush3.bf16.msra.mxu1 %v1420_v15  ;;  %1221 = vmatprep.subr.bf16.mxu0 %v1421_v16  ;;  %v1455_v46 = vld [vmem:[%s1846_s0 + $0x50] ss:$20 sps:$4 sm:$0xff]   ;;  %v1478_v51 = vld [vmem:[%s1845_s1 + $0x128] sm:$0xff]   ;;  %v1463_v53 = vld [vmem:[%s1846_s0 + $0x80] ss:$20 sps:$4 sm:$0xff]  }
  0x12   :  { %1285 = vmatprep.subr.bf16.mxu1 %v1422_v17  ;;  %v1458_v48 = vld [vmem:[%s1846_s0 + $0x7c] ss:$20 sps:$4 sm:$0xff]   ;;  %v1471_v50 = vld [vmem:[%s1845_s1 + $0x120] sm:$0xff]   ;;  %v1462_v52 = vld [vmem:[%s1846_s0 + $0x78] ss:$20 sps:$4 sm:$0xff]  }
  0x13   :  { %v1465_v54 = vld [vmem:[%s1846_s0 + $0xa4] ss:$20 sps:$4 sm:$0xff]   ;;  %v1485_v55 = vld [vmem:[%s1845_s1 + $0x130] sm:$0xff]   ;;  %v1467_v56 = vld [vmem:[%s1846_s0 + $0xac] ss:$20 sps:$4 sm:$0xff]  }
  0x14   :  { %1222 = vmatpush3.bf16.msra.mxu0 %v1423_v18  ;;  %v1492_v57 = vld [vmem:[%s1845_s1 + $0x138] sm:$0xff]   ;;  %v1469_v58 = vld [vmem:[%s1846_s0 + $0xa0] ss:$20 sps:$4 sm:$0xff]   ;;  %v1477_v63 = vld [vmem:[%s1846_s0 + $0xd0] ss:$20 sps:$4 sm:$0xff]  }
  0x15   :  { %1286 = vmatpush3.bf16.msra.mxu1 %v1424_v19  ;;  %1223 = vmatprep.subr.bf16.mxu0 %v1425_v20  ;;  %v1470_v59 = vld [vmem:[%s1846_s0 + $0xa8] ss:$20 sps:$4 sm:$0xff]   ;;  %v1472_v60 = vld [vmem:[%s1846_s0 + $0xcc] ss:$20 sps:$4 sm:$0xff]   ;;  %v1483_v2 = vld [vmem:[%s1846_s0 + $0xf0] ss:$20 sps:$4 sm:$0xff]  }
  0x16   :  { %1287 = vmatprep.subr.bf16.mxu1 %v1426_v21  ;;  %v1474_v61 = vld [vmem:[%s1846_s0 + $0xd4] ss:$20 sps:$4 sm:$0xff]   ;;  %v1481_v1 = vld [vmem:[%s1846_s0 + $0xfc] ss:$20 sps:$4 sm:$0xff]   ;;  %v1484_v3 = vld [vmem:[%s1846_s0 + $0xf8] ss:$20 sps:$4 sm:$0xff]  }
  0x17   :  { %v1476_v62 = vld [vmem:[%s1846_s0 + $0xc8] ss:$20 sps:$4 sm:$0xff]   ;;  %v1488_v5 = vld [vmem:[%s1846_s0 + $0x124] ss:$20 sps:$4 sm:$0xff]   ;;  %v1491_v7 = vld [vmem:[%s1846_s0 + $0x120] ss:$20 sps:$4 sm:$0xff]  }
  0x18   :  { %1224 = vmatpush3.bf16.msra.mxu0 %v1427_v22  ;;  %v1479_v0 = vld [vmem:[%s1846_s0 + $0xf4] ss:$20 sps:$4 sm:$0xff]   ;;  %v1486_v4 = vld [vmem:[%s1846_s0 + $0x11c] ss:$20 sps:$4 sm:$0xff]   ;;  %v1490_v6 = vld [vmem:[%s1846_s0 + $0x118] ss:$20 sps:$4 sm:$0xff]  }
  0x19   :  { %1288 = vmatpush3.bf16.msra.mxu1 %v1428_v23  ;;  %1225 = vmatprep.subr.bf16.mxu0 %v1429_v24  ;;  %v1493_v8 = vld [vmem:[%s1846_s0 + $0x10] ss:$20 sps:$4 sm:$0xff]   ;;  %v1495_v10 = vld [vmem:[%s1846_s0 + $0x38] ss:$20 sps:$4 sm:$0xff]   ;;  %v1497_v12 = vld [vmem:[%s1846_s0 + $0x60] ss:$20 sps:$4 sm:$0xff]  }
  0x1a   :  { %1289 = vmatprep.subr.bf16.mxu1 %v1430_v25  ;;  %v1494_v9 = vld [vmem:[%s1846_s0 + $0xb0] ss:$20 sps:$4 sm:$0xff]   ;;  %v1496_v11 = vld [vmem:[%s1846_s0 + $0xd8] ss:$20 sps:$4 sm:$0xff]   ;;  %v1498_v13 = vld [vmem:[%s1846_s0 + $0x100] ss:$20 sps:$4 sm:$0xff]  }
  0x1b   :  { %v1499_v14 = vld [vmem:[%s1846_s0 + $0x88] ss:$20 sps:$4 sm:$0xff]   ;;  %v1764_v18 = vld [vmem:[%s1847_s2] ss:$0 sm:$0xff] }
  0x1c   :  { %1226 = vmatpush3.bf16.msra.mxu0 %v1431_v26  ;;  %v1500_v15 = vld [vmem:[%s1846_s0 + $0x128] ss:$20 sps:$4 sm:$0xff]  }
  0x1d   :  { %1290 = vmatpush3.bf16.msra.mxu1 %v1432_v27  ;;  %1227 = vmatprep.subr.bf16.mxu0 %v1433_v28 }
  0x1e   :  { %1291 = vmatprep.subr.bf16.mxu1 %v1434_v29 }
  0x20   :  { %1228 = vmatpush3.bf16.msra.mxu0 %v1435_v30 }
  0x21   :  { %1292 = vmatpush3.bf16.msra.mxu1 %v1436_v31  ;;  %1357 = vmatprep.subr.bf16.mxu0 %v1443_v36 }
  0x22   :  { %1389 = vmatprep.subr.bf16.mxu1 %v1443_v36 }
  0x23   :  { %631 = vmatmul.mubr.bf16.vlgmr.msra.gmra.mrb[0].mxu0 %v1437_v32 }
  0x24   :  { %728 = vmatmul.mubr.bf16.vlgmr.msra.gmra.mrb[0].mxu1 %v1440_v34  ;;  %1358 = vmatpush3.bf16.msra.mxu0 %v1443_v36 }
  0x25   :  { %1397 = vmatpush3.bf16.msra.mxu1 %v1443_v36  ;;  %638 = vmatprep.mubr.bf16.mxu0 %v1444_v37 }
  0x26   :  { %735 = vmatprep.mubr.bf16.mxu1 %v1446_v38  ;;  %1359 = vmatprep.subr.bf16.mxu0 %v1450_v39 }
  0x27   :  { %1390 = vmatprep.subr.bf16.mxu1 %v1450_v39 }
  0x28   :  { %1360 = vmatpush3.bf16.msra.mxu0 %v1450_v39 }
  0x29   :  { %1398 = vmatpush3.bf16.msra.mxu1 %v1450_v39  ;;  %1361 = vmatprep.subr.bf16.mxu0 %v1457_v44 }
  0x2a   :  { %1391 = vmatprep.subr.bf16.mxu1 %v1457_v44 }
  0x2b   :  { %639 = vmatmul.mubr.bf16.gmra.mrb[4].mxu0 %v1448_v40 }
  0x2c   :  { %736 = vmatmul.mubr.bf16.gmra.mrb[4].mxu1 %v1449_v41  ;;  %646 = vmatprep.mubr.bf16.mxu0 %v1451_v42 }
  0x2d   :  { %743 = vmatprep.mubr.bf16.mxu1 %v1453_v43  ;;  %1362 = vmatpush3.bf16.msra.mxu0 %v1457_v44 }
  0x2e   :  { %1399 = vmatpush3.bf16.msra.mxu1 %v1457_v44  ;;  %1363 = vmatprep.subr.bf16.mxu0 %v1464_v45 }
  0x2f   :  { %1392 = vmatprep.subr.bf16.mxu1 %v1464_v45 }
  0x31   :  { %1364 = vmatpush3.bf16.msra.mxu0 %v1464_v45 }
  0x32   :  { %1400 = vmatpush3.bf16.msra.mxu1 %v1464_v45  ;;  %1365 = vmatprep.subr.bf16.mxu0 %v1471_v50 }
  0x33   :  { %647 = vmatmul.mubr.bf16.gmra.mrb[8].mxu0 %v1455_v46  ;;  %1393 = vmatprep.subr.bf16.mxu1 %v1471_v50 }
  0x34   :  { %744 = vmatmul.mubr.bf16.gmra.mrb[8].mxu1 %v1456_v47  ;;  %654 = vmatprep.mubr.bf16.mxu0 %v1458_v48 }
  0x35   :  { %751 = vmatprep.mubr.bf16.mxu1 %v1460_v49  ;;  %1366 = vmatpush3.bf16.msra.mxu0 %v1471_v50 }
  0x36   :  { %1401 = vmatpush3.bf16.msra.mxu1 %v1471_v50  ;;  %1367 = vmatprep.subr.bf16.mxu0 %v1478_v51 }
  0x37   :  { %1394 = vmatprep.subr.bf16.mxu1 %v1478_v51 }
  0x39   :  { %1368 = vmatpush3.bf16.msra.mxu0 %v1478_v51 }
  0x3a   :  { %1402 = vmatpush3.bf16.msra.mxu1 %v1478_v51  ;;  %1369 = vmatprep.subr.bf16.mxu0 %v1485_v55 }
  0x3b   :  { %655 = vmatmul.mubr.bf16.gmra.mrb[12].mxu0 %v1462_v52  ;;  %1395 = vmatprep.subr.bf16.mxu1 %v1485_v55 }
  0x3c   :  { %752 = vmatmul.mubr.bf16.gmra.mrb[12].mxu1 %v1463_v53  ;;  %662 = vmatprep.mubr.bf16.mxu0 %v1465_v54 }
  0x3d   :  { %759 = vmatprep.mubr.bf16.mxu1 %v1467_v56  ;;  %1370 = vmatpush3.bf16.msra.mxu0 %v1485_v55 }
  0x3e   :  { %1403 = vmatpush3.bf16.msra.mxu1 %v1485_v55  ;;  %1371 = vmatprep.subr.bf16.mxu0 %v1492_v57 }
  0x3f   :  { %1396 = vmatprep.subr.bf16.mxu1 %v1492_v57 }
  0x41   :  { %1372 = vmatpush3.bf16.msra.mxu0 %v1492_v57 }
  0x42   :  { %1404 = vmatpush3.bf16.msra.mxu1 %v1492_v57 }
  0x43   :  { %663 = vmatmul.mubr.bf16.gmra.mrb[16].mxu0 %v1469_v58 }
  0x44   :  { %760 = vmatmul.mubr.bf16.gmra.mrb[16].mxu1 %v1470_v59  ;;  %670 = vmatprep.mubr.bf16.mxu0 %v1472_v60 }
  0x45   :  { %767 = vmatprep.mubr.bf16.mxu1 %v1474_v61 }
  0x4b   :  { %671 = vmatmul.mubr.bf16.gmra.mrb[20].mxu0 %v1476_v62 }
  0x4c   :  { %768 = vmatmul.mubr.bf16.gmra.mrb[20].mxu1 %v1477_v63  ;;  %678 = vmatprep.mubr.bf16.mxu0 %v1479_v0 }
  0x4d   :  { %775 = vmatprep.mubr.bf16.mxu1 %v1481_v1 }
  0x53   :  { %679 = vmatmul.mubr.bf16.gmra.mrb[24].mxu0 %v1483_v2 }
  0x54   :  { %776 = vmatmul.mubr.bf16.gmra.mrb[24].mxu1 %v1484_v3  ;;  %686 = vmatprep.mubr.bf16.mxu0 %v1486_v4 }
  0x55   :  { %783 = vmatprep.mubr.bf16.mxu1 %v1488_v5 }
  0x5b   :  { %687 = vmatmul.mubr.bf16.gmra.mrb[28].mxu0 %v1490_v6 }
  0x5c   :  { %784 = vmatmul.mubr.bf16.gmra.mrb[28].mxu1 %v1491_v7  ;;  %1373 = vmatprep.mubr.bf16.mxu0 %v1493_v8 }
  0x5d   :  { %1381 = vmatprep.mubr.bf16.mxu1 %v1494_v9 }
  0x63   :  { %1374 = vmatmul.mubr.bf16.vlgmr.msra.gmra.mrb[32].mxu0 %v1495_v10 }
  0x64   :  { %1382 = vmatmul.mubr.bf16.vlgmr.msra.gmra.mrb[32].mxu1 %v1496_v11  ;;  %1377 = vmatprep.mubr.bf16.mxu0 %v1497_v12 }
  0x65   :  { %1385 = vmatprep.mubr.bf16.mxu1 %v1498_v13 }
  0x6b   :  { %1378 = vmatmul.mubr.bf16.gmra.mrb[36].mxu0 %v1499_v14 }
  0x6c   :  { %1386 = vmatmul.mubr.bf16.gmra.mrb[36].mxu1 %v1500_v15 }
  0xf6   :  { %v1229_v16 = vpop.f32.mrb[0].mxu0 }
  0xf7   :  { %v1293_v17 = vpop.f32.mrb[0].mxu1  ;;  %v1230_v19 = vpop.f32.mrb[1].mxu0 }
  0xf8   :  { %v1231_v20 = vadd.f32 %v1230_v19, %v1229_v16  ;;  %v1294_v21 = vpop.f32.mrb[1].mxu1  ;;  %v1232_v22 = vpop.f32.mrb[2].mxu0 }
  0xf9   :  { %v1295_v23 = vadd.f32 %v1294_v21, %v1293_v17  ;;  %v1296_v24 = vpop.f32.mrb[2].mxu1  ;;  %v1233_v25 = vpop.f32.mrb[3].mxu0 }
  0xfa   :  { %v633_v26 = vadd.f32 %v1231_v20, %v1764_v18  ;;  %v1234_v27 = vadd.f32 %v1233_v25, %v1232_v22  ;;  %v1297_v28 = vpop.f32.mrb[3].mxu1 }
  0xfb   :  { %v1298_v29 = vadd.f32 %v1297_v28, %v1296_v24 }
  0xfc   :  { %v636_v30 = vadd.f32 %v1234_v27, %v1764_v18  ;;  %v1768_v31 = vadd.f32 %v1295_v23, %v633_v26 }
  0xfe   :  { %v1235_v32 = vpop.f32.mrb[4].mxu0  ;;  %v1770_v33 = vadd.f32 %v1298_v29, %v636_v30 }
  0xff   :  { %v1299_v34 = vpop.f32.mrb[4].mxu1  ;;  %v1236_v35 = vpop.f32.mrb[5].mxu0 }
 0x100   :  { %v1237_v36 = vadd.f32 %v1236_v35, %v1235_v32  ;;  %v1300_v37 = vpop.f32.mrb[5].mxu1  ;;  %v1238_v38 = vpop.f32.mrb[6].mxu0 }
 0x101   :  { %v1301_v39 = vadd.f32 %v1300_v37, %v1299_v34  ;;  %v1302_v40 = vpop.f32.mrb[6].mxu1  ;;  %v1239_v41 = vpop.f32.mrb[7].mxu0 }
 0x102   :  { %v641_v42 = vadd.f32 %v1237_v36, %v1764_v18  ;;  %v1240_v43 = vadd.f32 %v1239_v41, %v1238_v38  ;;  %v1303_v44 = vpop.f32.mrb[7].mxu1 }
 0x103   :  { %v1304_v45 = vadd.f32 %v1303_v44, %v1302_v40 }
 0x104   :  { %v644_v46 = vadd.f32 %v1240_v43, %v1764_v18  ;;  %v1774_v47 = vadd.f32 %v1301_v39, %v641_v42 }
 0x106   :  { %v1241_v48 = vpop.f32.mrb[8].mxu0  ;;  %v1776_v49 = vadd.f32 %v1304_v45, %v644_v46 }
 0x107   :  { %v1305_v50 = vpop.f32.mrb[8].mxu1  ;;  %v1242_v51 = vpop.f32.mrb[9].mxu0 }
 0x108   :  { %v1243_v52 = vadd.f32 %v1242_v51, %v1241_v48  ;;  %v1306_v53 = vpop.f32.mrb[9].mxu1  ;;  %v1244_v54 = vpop.f32.mrb[10].mxu0 }
 0x109   :  { %v1307_v55 = vadd.f32 %v1306_v53, %v1305_v50  ;;  %v1308_v56 = vpop.f32.mrb[10].mxu1  ;;  %v1245_v57 = vpop.f32.mrb[11].mxu0 }
 0x10a   :  { %v649_v58 = vadd.f32 %v1243_v52, %v1764_v18  ;;  %v1246_v59 = vadd.f32 %v1245_v57, %v1244_v54  ;;  %v1309_v60 = vpop.f32.mrb[11].mxu1 }
 0x10b   :  { %v1310_v61 = vadd.f32 %v1309_v60, %v1308_v56 }
 0x10c   :  { %v652_v62 = vadd.f32 %v1246_v59, %v1764_v18  ;;  %v1780_v63 = vadd.f32 %v1307_v55, %v649_v58 }
 0x10e   :  { %v1247_v0 = vpop.f32.mrb[12].mxu0  ;;  %v1782_v1 = vadd.f32 %v1310_v61, %v652_v62 }
 0x10f   :  { %v1311_v2 = vpop.f32.mrb[12].mxu1  ;;  %v1248_v3 = vpop.f32.mrb[13].mxu0 }
 0x110   :  { %v1249_v4 = vadd.f32 %v1248_v3, %v1247_v0  ;;  %v1312_v5 = vpop.f32.mrb[13].mxu1  ;;  %v1250_v6 = vpop.f32.mrb[14].mxu0 }
 0x111   :  { %v1313_v7 = vadd.f32 %v1312_v5, %v1311_v2  ;;  %v1314_v8 = vpop.f32.mrb[14].mxu1  ;;  %v1251_v9 = vpop.f32.mrb[15].mxu0 }
 0x112   :  { %v657_v10 = vadd.f32 %v1249_v4, %v1764_v18  ;;  %v1252_v11 = vadd.f32 %v1251_v9, %v1250_v6  ;;  %v1315_v12 = vpop.f32.mrb[15].mxu1 }
 0x113   :  { %v1316_v13 = vadd.f32 %v1315_v12, %v1314_v8 }
 0x114   :  { %v660_v14 = vadd.f32 %v1252_v11, %v1764_v18  ;;  %v1786_v15 = vadd.f32 %v1313_v7, %v657_v10 }
 0x116   :  { %v1253_v16 = vpop.f32.mrb[16].mxu0  ;;  %v1788_v17 = vadd.f32 %v1316_v13, %v660_v14 }
 0x117   :  { %v1317_v19 = vpop.f32.mrb[16].mxu1  ;;  %v1254_v20 = vpop.f32.mrb[17].mxu0 }
 0x118   :  { %v1255_v21 = vadd.f32 %v1254_v20, %v1253_v16  ;;  %v1318_v22 = vpop.f32.mrb[17].mxu1  ;;  %v1256_v23 = vpop.f32.mrb[18].mxu0 }
 0x119   :  { %v1319_v24 = vadd.f32 %v1318_v22, %v1317_v19  ;;  %v1320_v25 = vpop.f32.mrb[18].mxu1  ;;  %v1257_v26 = vpop.f32.mrb[19].mxu0 }
 0x11a   :  { %v665_v27 = vadd.f32 %v1255_v21, %v1764_v18  ;;  %v1258_v28 = vadd.f32 %v1257_v26, %v1256_v23  ;;  %v1321_v29 = vpop.f32.mrb[19].mxu1 }
 0x11b   :  { %v1322_v30 = vadd.f32 %v1321_v29, %v1320_v25 }
 0x11c   :  { %v668_v32 = vadd.f32 %v1258_v28, %v1764_v18  ;;  %v762_v34 = vadd.f32 %v1319_v24, %v665_v27 }
 0x11e   :  { %v1259_v35 = vpop.f32.mrb[20].mxu0  ;;  %v1792_v36 = vadd.f32 %v1322_v30, %v668_v32 }
 0x11f   :  { %v1323_v37 = vpop.f32.mrb[20].mxu1  ;;  %v1260_v38 = vpop.f32.mrb[21].mxu0 }
 0x120   :  { %v1261_v39 = vadd.f32 %v1260_v38, %v1259_v35  ;;  %v1324_v40 = vpop.f32.mrb[21].mxu1  ;;  %v1262_v41 = vpop.f32.mrb[22].mxu0 }
 0x121   :  { %v1325_v42 = vadd.f32 %v1324_v40, %v1323_v37  ;;  %v1326_v43 = vpop.f32.mrb[22].mxu1  ;;  %v1263_v44 = vpop.f32.mrb[23].mxu0 }
 0x122   :  { %v673_v45 = vadd.f32 %v1261_v39, %v1764_v18  ;;  %v1264_v46 = vadd.f32 %v1263_v44, %v1262_v41  ;;  %v1327_v48 = vpop.f32.mrb[23].mxu1 }
 0x123   :  { %v1328_v50 = vadd.f32 %v1327_v48, %v1326_v43 }
 0x124   :  { %v676_v51 = vadd.f32 %v1264_v46, %v1764_v18  ;;  %v770_v52 = vadd.f32 %v1325_v42, %v673_v45 }
 0x126   :  { %v1265_v53 = vpop.f32.mrb[24].mxu0  ;;  %v773_v54 = vadd.f32 %v1328_v50, %v676_v51 }
 0x127   :  { %v1329_v55 = vpop.f32.mrb[24].mxu1  ;;  %v1266_v56 = vpop.f32.mrb[25].mxu0 }
 0x128   :  { %v1267_v57 = vadd.f32 %v1266_v56, %v1265_v53  ;;  %v1330_v58 = vpop.f32.mrb[25].mxu1  ;;  %v1268_v59 = vpop.f32.mrb[26].mxu0 }
 0x129   :  { %v1331_v60 = vadd.f32 %v1330_v58, %v1329_v55  ;;  %v1332_v61 = vpop.f32.mrb[26].mxu1  ;;  %v1269_v62 = vpop.f32.mrb[27].mxu0 }
 0x12a   :  { %v681_v0 = vadd.f32 %v1267_v57, %v1764_v18  ;;  %v1270_v2 = vadd.f32 %v1269_v62, %v1268_v59  ;;  %v1333_v3 = vpop.f32.mrb[27].mxu1 }
 0x12b   :  { %v1334_v4 = vadd.f32 %v1333_v3, %v1332_v61 }
 0x12c   :  { %v684_v5 = vadd.f32 %v1270_v2, %v1764_v18  ;;  %v1798_v6 = vadd.f32 %v1331_v60, %v681_v0 }
 0x12e   :  { %v1271_v7 = vpop.f32.mrb[28].mxu0  ;;  %v1800_v8 = vadd.f32 %v1334_v4, %v684_v5 }
 0x12f   :  { %v1335_v9 = vpop.f32.mrb[28].mxu1  ;;  %v1272_v10 = vpop.f32.mrb[29].mxu0 }
 0x130   :  { %v1273_v11 = vadd.f32 %v1272_v10, %v1271_v7  ;;  %v1336_v12 = vpop.f32.mrb[29].mxu1  ;;  %v1274_v13 = vpop.f32.mrb[30].mxu0 }
 0x131   :  { %v1337_v14 = vadd.f32 %v1336_v12, %v1335_v9  ;;  %v1338_v16 = vpop.f32.mrb[30].mxu1  ;;  %v1275_v19 = vpop.f32.mrb[31].mxu0 }
 0x132   :  { %v689_v20 = vadd.f32 %v1273_v11, %v1764_v18  ;;  %v1276_v21 = vadd.f32 %v1275_v19, %v1274_v13  ;;  %v1339_v22 = vpop.f32.mrb[31].mxu1 }
 0x133   :  { %v1340_v23 = vadd.f32 %v1339_v22, %v1338_v16 }
 0x134   :  { %v692_v24 = vadd.f32 %v1276_v21, %v1764_v18  ;;  %v1804_v25 = vadd.f32 %v1337_v14, %v689_v20 }
 0x136   :  { %v1375_v26 = vpop.f32.mrb[32].mxu0  ;;  %v1806_v27 = vadd.f32 %v1340_v23, %v692_v24 }
 0x137   :  { %v835_v28 = vadd.f32 %v1375_v26, %v1774_v47  ;;  %v1383_v29 = vpop.f32.mrb[32].mxu1  ;;  %v826_v30 = vpop.f32.mrb[33].mxu0 }
 0x138   :  { %v867_v32 = vadd.f32 %v1383_v29, %v770_v52  ;;  %v827_v35 = vadd.f32 %v826_v30, %v1768_v31  ;;  %v858_v37 = vpop.f32.mrb[33].mxu1  ;;  %v1376_v38 = vpop.f32.mrb[34].mxu0 }
 0x139   :  { %v891_v39 = vadd.f32 3.0, %v835_v28  ;;  %v859_v40 = vadd.f32 %v858_v37, %v762_v34  ;;  %v838_v41 = vadd.f32 %v1376_v38, %v1776_v49  ;;  %v1384_v42 = vpop.f32.mrb[34].mxu1  ;;  %v829_v18 = vpop.f32.mrb[35].mxu0 }
 0x13a   :  { %v899_v43 = vadd.f32 3.0, %v867_v32  ;;  %v889_v44 = vadd.f32 3.0, %v827_v35  ;;  %v870_v45 = vadd.f32 %v1384_v42, %v773_v54  ;;  %v830_v46 = vadd.f32 %v829_v18, %v1770_v33  ;;  %v861_v48 = vpop.f32.mrb[35].mxu1 }
 0x13b   :  { %v907_v47 = vmax.f32 %v891_v39, 0.0  ;;  %v897_v50 = vadd.f32 3.0, %v859_v40  ;;  %v892_v51 = vadd.f32 3.0, %v838_v41  ;;  %v862_v52 = vadd.f32 %v861_v48, %v1792_v36 }
 0x13c   :  { %v915_v31 = vmax.f32 %v899_v43, 0.0  ;;  %v905_v53 = vmax.f32 %v889_v44, 0.0  ;;  %v900_v55 = vadd.f32 3.0, %v870_v45  ;;  %v890_v56 = vadd.f32 3.0, %v830_v46 }
 0x13d   :  { %v923_v34 = vmin.f32 %v907_v47, 6.0  ;;  %v913_v57 = vmax.f32 %v897_v50, 0.0  ;;  %v908_v49 = vmax.f32 %v892_v51, 0.0  ;;  %v898_v58 = vadd.f32 3.0, %v862_v52 }
 0x13e   :  { %v931_v59 = vmin.f32 %v915_v31, 6.0  ;;  %v921_v60 = vmin.f32 %v905_v53, 6.0  ;;  %v916_v61 = vmax.f32 %v900_v55, 0.0  ;;  %v906_v54 = vmax.f32 %v890_v56, 0.0  ;;  %v1379_v62 = vpop.f32.mrb[36].mxu0 }
 0x13f   :  { %v939_v33 = vmul.f32 %v923_v34, %v835_v28  ;;  %v929_v0 = vmin.f32 %v913_v57, 6.0  ;;  %v924_v2 = vmin.f32 %v908_v49, 6.0  ;;  %v914_v3 = vmax.f32 %v898_v58, 0.0  ;;  %v1387_v4 = vpop.f32.mrb[36].mxu1  ;;  %v842_v5 = vpop.f32.mrb[37].mxu0 }
 0x140   :  { %v947_v36 = vmul.f32 %v931_v59, %v867_v32  ;;  %v937_v7 = vmul.f32 %v921_v60, %v827_v35  ;;  %v932_v9 = vmin.f32 %v916_v61, 6.0  ;;  %v922_v10 = vmin.f32 %v906_v54, 6.0  ;;  %v874_v11 = vpop.f32.mrb[37].mxu1  ;;  %v1380_v12 = vpop.f32.mrb[38].mxu0 }
 0x141   :  { %v955_v13 = vmul.f32 0.16666667, %v939_v33  ;;  %v945_v14 = vmul.f32 %v929_v0, %v859_v40  ;;  %v940_v16 = vmul.f32 %v924_v2, %v838_v41  ;;  %v930_v19 = vmin.f32 %v914_v3, 6.0  ;;  %v1388_v20 = vpop.f32.mrb[38].mxu1  ;;  %v845_v21 = vpop.f32.mrb[39].mxu0 }
 0x142   :  { %v963_v22 = vmul.f32 0.16666667, %v947_v36  ;;  %v953_v23 = vmul.f32 0.16666667, %v937_v7  ;;  %v948_v24 = vmul.f32 %v932_v9, %v870_v45  ;;  %v938_v26 = vmul.f32 %v922_v10, %v830_v46  ;;  %v877_v28 = vpop.f32.mrb[39].mxu1 }
 0x143   :  { %v961_v29 = vmul.f32 0.16666667, %v945_v14  ;;  %v956_v30 = vmul.f32 0.16666667, %v940_v16  ;;  %v946_v37 = vmul.f32 %v930_v19, %v862_v52  ;;  %v851_v32 = vadd.f32 %v1379_v62, %v1786_v15 }
 0x144   :  { %v964_v35 = vmul.f32 0.16666667, %v948_v24  ;;  %v954_v38 = vmul.f32 0.16666667, %v938_v26  ;;  %v883_v39 = vadd.f32 %v1387_v4, %v1804_v25  ;;  %v843_v40 = vadd.f32 %v842_v5, %v1780_v63 }
 0x145   :  { %v1174_v41 = vpack.c.bf16 %v956_v30, %v955_v13  ;;  %v962_v42 = vmul.f32 0.16666667, %v946_v37  ;;  %v895_v18 = vadd.f32 3.0, %v851_v32  ;;  %v875_v43 = vadd.f32 %v874_v11, %v1798_v6 }
 0x146   :  { %v1194_v44 = vpack.c.bf16 %v964_v35, %v963_v22  ;;  %v1169_v45 = vpack.c.bf16 %v954_v38, %v953_v23  ;;  %v903_v46 = vadd.f32 3.0, %v883_v39  ;;  %v893_v48 = vadd.f32 3.0, %v843_v40 }
 0x147   :  { %1206 = vst [vmem:[%s1848_s3 + $0x8] sm:$0xff] %v1174_v41   ;;  %v1189_v15 = vpack.c.bf16 %v962_v42, %v961_v29  ;;  %v911_v47 = vmax.f32 %v895_v18, 0.0  ;;  %v901_v50 = vadd.f32 3.0, %v875_v43  ;;  %v854_v25 = vadd.f32 %v1380_v12, %v1788_v17 }
 0x148   :  { %1210 = vst [vmem:[%s1848_s3 + $0x28] sm:$0xff] %v1194_v44   ;;  %1170 = vst [vmem:[%s1848_s3] sm:$0xff] %v1169_v45   ;;  %v919_v63 = vmax.f32 %v903_v46, 0.0  ;;  %v909_v6 = vmax.f32 %v893_v48, 0.0  ;;  %v886_v51 = vadd.f32 %v1388_v20, %v1806_v27  ;;  %v846_v52 = vadd.f32 %v845_v21, %v1782_v1 }
 0x149   :  { %1209 = vst [vmem:[%s1848_s3 + $0x20] sm:$0xff] %v1189_v15   ;;  %v927_v31 = vmin.f32 %v911_v47, 6.0  ;;  %v917_v17 = vmax.f32 %v901_v50, 0.0  ;;  %v896_v53 = vadd.f32 3.0, %v854_v25  ;;  %v878_v55 = vadd.f32 %v877_v28, %v1800_v8 }
 0x14a   :  { %v935_v56 = vmin.f32 %v919_v63, 6.0  ;;  %v925_v34 = vmin.f32 %v909_v6, 6.0  ;;  %v904_v57 = vadd.f32 3.0, %v886_v51  ;;  %v894_v49 = vadd.f32 3.0, %v846_v52 }
 0x14b   :  { %v933_v58 = vmin.f32 %v917_v17, 6.0  ;;  %v912_v59 = vmax.f32 %v896_v53, 0.0  ;;  %v902_v60 = vadd.f32 3.0, %v878_v55  ;;  %v943_v54 = vmul.f32 %v927_v31, %v851_v32 }
 0x14c   :  { %v920_v61 = vmax.f32 %v904_v57, 0.0  ;;  %v910_v27 = vmax.f32 %v894_v49, 0.0  ;;  %v951_v1 = vmul.f32 %v935_v56, %v883_v39  ;;  %v941_v0 = vmul.f32 %v925_v34, %v843_v40 }
 0x14d   :  { %v928_v62 = vmin.f32 %v912_v59, 6.0  ;;  %v918_v33 = vmax.f32 %v902_v60, 0.0  ;;  %v949_v4 = vmul.f32 %v933_v58, %v875_v43  ;;  %v959_v9 = vmul.f32 0.16666667, %v943_v54 }
 0x14e   :  { %v936_v2 = vmin.f32 %v920_v61, 6.0  ;;  %v926_v3 = vmin.f32 %v910_v27, 6.0  ;;  %v967_v10 = vmul.f32 0.16666667, %v951_v1  ;;  %v957_v13 = vmul.f32 0.16666667, %v941_v0 }
 0x14f   :  { %v944_v5 = vmul.f32 %v928_v62, %v854_v25  ;;  %v934_v36 = vmin.f32 %v918_v33, 6.0  ;;  %v965_v19 = vmul.f32 0.16666667, %v949_v4 }
 0x150   :  { %v952_v8 = vmul.f32 %v936_v2, %v886_v51  ;;  %v942_v7 = vmul.f32 %v926_v3, %v846_v52 }
 0x151   :  { %v960_v11 = vmul.f32 0.16666667, %v944_v5  ;;  %v950_v12 = vmul.f32 %v934_v36, %v878_v55 }
 0x152   :  { %v968_v14 = vmul.f32 0.16666667, %v952_v8  ;;  %v958_v16 = vmul.f32 0.16666667, %v942_v7 }
 0x153   :  { %v1184_v20 = vpack.c.bf16 %v960_v11, %v959_v9  ;;  %v966_v21 = vmul.f32 0.16666667, %v950_v12 }
 0x154   :  { %v1204_v22 = vpack.c.bf16 %v968_v14, %v967_v10  ;;  %v1179_v23 = vpack.c.bf16 %v958_v16, %v957_v13 }
 0x155   :  { %1208 = vst [vmem:[%s1848_s3 + $0x18] sm:$0xff] %v1184_v20   ;;  %v1199_v24 = vpack.c.bf16 %v966_v21, %v965_v19 }
 0x156   :  { %1212 = vst [vmem:[%s1848_s3 + $0x38] sm:$0xff] %v1204_v22   ;;  %1207 = vst [vmem:[%s1848_s3 + $0x10] sm:$0xff] %v1179_v23  }
 0x157   :  { %1211 = vst [vmem:[%s1848_s3 + $0x30] sm:$0xff] %v1199_v24  }

// kernel: mobile_posnet_forward.31
= control target key start
LH: loop header
LB: loop body
LE: loop exit
PB: predicated region body
PF: predicated region fallthrough
CT: control target
= control target key end

     0   :  { %s701_s1 = inlined_call_operand.vmem [shape: bf16[256,128], index: 1, kind: input, shape index: {}]   ;;  %s702_s0 = inlined_call_operand.vmem [shape: bf16[128,256], index: 0, kind: input, shape index: {}]   ;;  %s703_s2 = inlined_call_operand.vmem [shape: f32[1,128], index: 2, kind: input, shape index: {}]   ;;  %s704_s3 = inlined_call_operand.vmem [shape: f32[128,128], index: 3, kind: output, shape index: {}]  }
   0x1   :  { %v476_v0 = vld [vmem:[%s701_s1 + $0x40] sm:$0xff]   ;;  %v478_v2 = vld [vmem:[%s701_s1 + $0x48] sm:$0xff]   ;;  %v480_v4 = vld [vmem:[%s701_s1 + $0x50] sm:$0xff]  }
   0x2   :  { %v477_v1 = vld [vmem:[%s701_s1] sm:$0xff]   ;;  %396 = vmatprep.subr.bf16.mxu0 %v476_v0  ;;  %460 = vmatprep.subr.bf16.mxu1 %v476_v0  ;;  %v479_v3 = vld [vmem:[%s701_s1 + $0x8] sm:$0xff]   ;;  %v481_v5 = vld [vmem:[%s701_s1 + $0x10] sm:$0xff]  }
   0x3   :  { %397 = vmatpush3.bf16.msra.mxu0 %v477_v1  ;;  %468 = vmatpush3.bf16.msra.mxu1 %v477_v1  ;;  %v482_v6 = vld [vmem:[%s701_s1 + $0x58] sm:$0xff]   ;;  %v484_v8 = vld [vmem:[%s701_s1 + $0x60] sm:$0xff]   ;;  %v486_v10 = vld [vmem:[%s701_s1 + $0x68] sm:$0xff]  }
   0x4   :  { %398 = vmatprep.subr.bf16.mxu0 %v478_v2  ;;  %461 = vmatprep.subr.bf16.mxu1 %v478_v2  ;;  %v483_v7 = vld [vmem:[%s701_s1 + $0x18] sm:$0xff]   ;;  %v485_v9 = vld [vmem:[%s701_s1 + $0x20] sm:$0xff]   ;;  %v487_v13 = vld [vmem:[%s701_s1 + $0x28] sm:$0xff]  }
   0x5   :  { %v494_v11 = vld [vmem:[%s702_s0 + $0x4] ss:$8 sps:$4 sm:$0xff]   ;;  %v488_v14 = vld [vmem:[%s701_s1 + $0x70] sm:$0xff]   ;;  %v490_v16 = vld [vmem:[%s701_s1 + $0x78] sm:$0xff]  }
   0x6   :  { %v497_v12 = vld [vmem:[%s702_s0 + $0x44] ss:$8 sps:$4 sm:$0xff]   ;;  %278 = vmatprep.mubr.bf16.mxu0 %v494_v11  ;;  %v489_v15 = vld [vmem:[%s701_s1 + $0x30] sm:$0xff]   ;;  %v491_v17 = vld [vmem:[%s701_s1 + $0x38] sm:$0xff]  }
   0x7   :  { %399 = vmatpush3.bf16.msra.mxu0 %v479_v3  ;;  %469 = vmatpush3.bf16.msra.mxu1 %v479_v3  ;;  %v492_v18 = vld [vmem:[%s702_s0] ss:$8 sps:$4 sm:$0xff]   ;;  %v498_v20 = vld [vmem:[%s702_s0 + $0x14] ss:$8 sps:$4 sm:$0xff]   ;;  %v502_v22 = vld [vmem:[%s702_s0 + $0x10] ss:$8 sps:$4 sm:$0xff]  }
   0x8   :  { %400 = vmatprep.subr.bf16.mxu0 %v480_v4  ;;  %462 = vmatprep.subr.bf16.mxu1 %v480_v4  ;;  %v495_v19 = vld [vmem:[%s702_s0 + $0x40] ss:$8 sps:$4 sm:$0xff]   ;;  %v500_v21 = vld [vmem:[%s702_s0 + $0x54] ss:$8 sps:$4 sm:$0xff]   ;;  %v503_v23 = vld [vmem:[%s702_s0 + $0x50] ss:$8 sps:$4 sm:$0xff]  }
   0x9   :  { %310 = vmatprep.mubr.bf16.mxu1 %v497_v12  ;;  %v504_v24 = vld [vmem:[%s702_s0 + $0x24] ss:$8 sps:$4 sm:$0xff]   ;;  %v508_v26 = vld [vmem:[%s702_s0 + $0x20] ss:$8 sps:$4 sm:$0xff]   ;;  %v510_v28 = vld [vmem:[%s702_s0 + $0x34] ss:$8 sps:$4 sm:$0xff]  }
   0xa   :  { %v506_v25 = vld [vmem:[%s702_s0 + $0x64] ss:$8 sps:$4 sm:$0xff]   ;;  %v509_v27 = vld [vmem:[%s702_s0 + $0x60] ss:$8 sps:$4 sm:$0xff]   ;;  %v512_v29 = vld [vmem:[%s702_s0 + $0x74] ss:$8 sps:$4 sm:$0xff]  }
   0xb   :  { %401 = vmatpush3.bf16.msra.mxu0 %v481_v5  ;;  %470 = vmatpush3.bf16.msra.mxu1 %v481_v5  ;;  %v514_v30 = vld [vmem:[%s702_s0 + $0x30] ss:$8 sps:$4 sm:$0xff]   ;;  %v635_v34 = vld [vmem:[%s703_s2] ss:$0 sm:$0xff] }
   0xc   :  { %402 = vmatprep.subr.bf16.mxu0 %v482_v6  ;;  %463 = vmatprep.subr.bf16.mxu1 %v482_v6  ;;  %v515_v31 = vld [vmem:[%s702_s0 + $0x70] ss:$8 sps:$4 sm:$0xff]  }
   0xf   :  { %403 = vmatpush3.bf16.msra.mxu0 %v483_v7  ;;  %471 = vmatpush3.bf16.msra.mxu1 %v483_v7 }
  0x10   :  { %404 = vmatprep.subr.bf16.mxu0 %v484_v8  ;;  %464 = vmatprep.subr.bf16.mxu1 %v484_v8 }
  0x13   :  { %405 = vmatpush3.bf16.msra.mxu0 %v485_v9  ;;  %472 = vmatpush3.bf16.msra.mxu1 %v485_v9 }
  0x14   :  { %406 = vmatprep.subr.bf16.mxu0 %v486_v10  ;;  %465 = vmatprep.subr.bf16.mxu1 %v486_v10 }
  0x17   :  { %407 = vmatpush3.bf16.msra.mxu0 %v487_v13  ;;  %473 = vmatpush3.bf16.msra.mxu1 %v487_v13 }
  0x18   :  { %408 = vmatprep.subr.bf16.mxu0 %v488_v14  ;;  %466 = vmatprep.subr.bf16.mxu1 %v488_v14 }
  0x1b   :  { %409 = vmatpush3.bf16.msra.mxu0 %v489_v15  ;;  %474 = vmatpush3.bf16.msra.mxu1 %v489_v15 }
  0x1c   :  { %410 = vmatprep.subr.bf16.mxu0 %v490_v16  ;;  %467 = vmatprep.subr.bf16.mxu1 %v490_v16 }
  0x1f   :  { %411 = vmatpush3.bf16.msra.mxu0 %v491_v17  ;;  %475 = vmatpush3.bf16.msra.mxu1 %v491_v17 }
  0x22   :  { %279 = vmatmul.mubr.bf16.vlgmr.msra.gmra.mrb[0].mxu0 %v492_v18  ;;  %311 = vmatmul.mubr.bf16.vlgmr.msra.gmra.mrb[0].mxu1 %v495_v19 }
  0x23   :  { %286 = vmatprep.mubr.bf16.mxu0 %v498_v20  ;;  %318 = vmatprep.mubr.bf16.mxu1 %v500_v21 }
  0x2a   :  { %287 = vmatmul.mubr.bf16.gmra.mrb[4].mxu0 %v502_v22  ;;  %319 = vmatmul.mubr.bf16.gmra.mrb[4].mxu1 %v503_v23 }
  0x2b   :  { %294 = vmatprep.mubr.bf16.mxu0 %v504_v24  ;;  %326 = vmatprep.mubr.bf16.mxu1 %v506_v25 }
  0x32   :  { %295 = vmatmul.mubr.bf16.gmra.mrb[8].mxu0 %v508_v26  ;;  %327 = vmatmul.mubr.bf16.gmra.mrb[8].mxu1 %v509_v27 }
  0x33   :  { %302 = vmatprep.mubr.bf16.mxu0 %v510_v28  ;;  %334 = vmatprep.mubr.bf16.mxu1 %v512_v29 }
  0x3a   :  { %303 = vmatmul.mubr.bf16.gmra.mrb[12].mxu0 %v514_v30  ;;  %335 = vmatmul.mubr.bf16.gmra.mrb[12].mxu1 %v515_v31 }
  0xf5   :  { %v412_v32 = vpop.f32.mrb[0].mxu0  ;;  %v436_v33 = vpop.f32.mrb[0].mxu1 }
  0xf6   :  { %v413_v35 = vpop.f32.mrb[1].mxu0  ;;  %v437_v36 = vpop.f32.mrb[1].mxu1 }
  0xf7   :  { %v414_v37 = vadd.f32 %v413_v35, %v412_v32  ;;  %v438_v38 = vadd.f32 %v437_v36, %v436_v33  ;;  %v415_v39 = vpop.f32.mrb[2].mxu0  ;;  %v439_v40 = vpop.f32.mrb[2].mxu1 }
  0xf8   :  { %v416_v41 = vpop.f32.mrb[3].mxu0  ;;  %v440_v42 = vpop.f32.mrb[3].mxu1 }
  0xf9   :  { %v281_v43 = vadd.f32 %v414_v37, %v635_v34  ;;  %v313_v44 = vadd.f32 %v438_v38, %v635_v34  ;;  %v417_v45 = vadd.f32 %v416_v41, %v415_v39  ;;  %v441_v46 = vadd.f32 %v440_v42, %v439_v40 }
  0xfb   :  { %343 = vst [vmem:[%s704_s3] sm:$0xff] %v281_v43  ;;  %351 = vst [vmem:[%s704_s3 + $0x40] sm:$0xff] %v313_v44  ;;  %v284_v47 = vadd.f32 %v417_v45, %v635_v34  ;;  %v316_v48 = vadd.f32 %v441_v46, %v635_v34 }
  0xfd   :  { %344 = vst [vmem:[%s704_s3 + $0x8] sm:$0xff] %v284_v47  ;;  %352 = vst [vmem:[%s704_s3 + $0x48] sm:$0xff] %v316_v48  ;;  %v418_v49 = vpop.f32.mrb[4].mxu0  ;;  %v442_v50 = vpop.f32.mrb[4].mxu1 }
  0xfe   :  { %v419_v51 = vpop.f32.mrb[5].mxu0  ;;  %v443_v52 = vpop.f32.mrb[5].mxu1 }
  0xff   :  { %v420_v53 = vadd.f32 %v419_v51, %v418_v49  ;;  %v444_v54 = vadd.f32 %v443_v52, %v442_v50  ;;  %v421_v55 = vpop.f32.mrb[6].mxu0  ;;  %v445_v56 = vpop.f32.mrb[6].mxu1 }
 0x100   :  { %v422_v57 = vpop.f32.mrb[7].mxu0  ;;  %v446_v58 = vpop.f32.mrb[7].mxu1 }
 0x101   :  { %v289_v59 = vadd.f32 %v420_v53, %v635_v34  ;;  %v321_v60 = vadd.f32 %v444_v54, %v635_v34  ;;  %v423_v61 = vadd.f32 %v422_v57, %v421_v55  ;;  %v447_v62 = vadd.f32 %v446_v58, %v445_v56 }
 0x103   :  { %345 = vst [vmem:[%s704_s3 + $0x10] sm:$0xff] %v289_v59  ;;  %353 = vst [vmem:[%s704_s3 + $0x50] sm:$0xff] %v321_v60  ;;  %v292_v63 = vadd.f32 %v423_v61, %v635_v34  ;;  %v324_v0 = vadd.f32 %v447_v62, %v635_v34 }
 0x105   :  { %346 = vst [vmem:[%s704_s3 + $0x18] sm:$0xff] %v292_v63  ;;  %354 = vst [vmem:[%s704_s3 + $0x58] sm:$0xff] %v324_v0  ;;  %v424_v1 = vpop.f32.mrb[8].mxu0  ;;  %v448_v2 = vpop.f32.mrb[8].mxu1 }
 0x106   :  { %v425_v3 = vpop.f32.mrb[9].mxu0  ;;  %v449_v4 = vpop.f32.mrb[9].mxu1 }
 0x107   :  { %v426_v5 = vadd.f32 %v425_v3, %v424_v1  ;;  %v450_v6 = vadd.f32 %v449_v4, %v448_v2  ;;  %v427_v7 = vpop.f32.mrb[10].mxu0  ;;  %v451_v8 = vpop.f32.mrb[10].mxu1 }
 0x108   :  { %v428_v9 = vpop.f32.mrb[11].mxu0  ;;  %v452_v10 = vpop.f32.mrb[11].mxu1 }
 0x109   :  { %v297_v11 = vadd.f32 %v426_v5, %v635_v34  ;;  %v329_v12 = vadd.f32 %v450_v6, %v635_v34  ;;  %v429_v13 = vadd.f32 %v428_v9, %v427_v7  ;;  %v453_v14 = vadd.f32 %v452_v10, %v451_v8 }
 0x10b   :  { %347 = vst [vmem:[%s704_s3 + $0x20] sm:$0xff] %v297_v11  ;;  %355 = vst [vmem:[%s704_s3 + $0x60] sm:$0xff] %v329_v12  ;;  %v300_v15 = vadd.f32 %v429_v13, %v635_v34  ;;  %v332_v16 = vadd.f32 %v453_v14, %v635_v34 }
 0x10d   :  { %348 = vst [vmem:[%s704_s3 + $0x28] sm:$0xff] %v300_v15  ;;  %356 = vst [vmem:[%s704_s3 + $0x68] sm:$0xff] %v332_v16  ;;  %v430_v17 = vpop.f32.mrb[12].mxu0  ;;  %v454_v18 = vpop.f32.mrb[12].mxu1 }
 0x10e   :  { %v431_v19 = vpop.f32.mrb[13].mxu0  ;;  %v455_v20 = vpop.f32.mrb[13].mxu1 }
 0x10f   :  { %v432_v21 = vadd.f32 %v431_v19, %v430_v17  ;;  %v456_v22 = vadd.f32 %v455_v20, %v454_v18  ;;  %v433_v23 = vpop.f32.mrb[14].mxu0  ;;  %v457_v24 = vpop.f32.mrb[14].mxu1 }
 0x110   :  { %v434_v25 = vpop.f32.mrb[15].mxu0  ;;  %v458_v26 = vpop.f32.mrb[15].mxu1 }
 0x111   :  { %v305_v27 = vadd.f32 %v432_v21, %v635_v34  ;;  %v337_v28 = vadd.f32 %v456_v22, %v635_v34  ;;  %v435_v29 = vadd.f32 %v434_v25, %v433_v23  ;;  %v459_v30 = vadd.f32 %v458_v26, %v457_v24 }
 0x113   :  { %349 = vst [vmem:[%s704_s3 + $0x30] sm:$0xff] %v305_v27  ;;  %357 = vst [vmem:[%s704_s3 + $0x70] sm:$0xff] %v337_v28  ;;  %v308_v31 = vadd.f32 %v435_v29, %v635_v34  ;;  %v340_v32 = vadd.f32 %v459_v30, %v635_v34 }
 0x115   :  { %350 = vst [vmem:[%s704_s3 + $0x38] sm:$0xff] %v308_v31  ;;  %358 = vst [vmem:[%s704_s3 + $0x78] sm:$0xff] %v340_v32 }

// kernel: mobile_posnet_forward.30
= control target key start
LH: loop header
LB: loop body
LE: loop exit
PB: predicated region body
PF: predicated region fallthrough
CT: control target
= control target key end

     0   :  { %s1769_s18 = smov 0   ;;  %s1946_s0 = inlined_call_operand.vmem [shape: bf16[512,4], index: 0, kind: input, shape index: {}]   ;;  %s1947_s1 = inlined_call_operand.vmem [shape: bf16[4,128], index: 1, kind: input, shape index: {}]   ;;  %s1948_s2 = inlined_call_operand.vmem [shape: f32[1,128], index: 2, kind: input, shape index: {}]   ;;  %s1949_s3 = inlined_call_operand.vmem [shape: bf16[128,128], index: 3, kind: input, shape index: {}]   ;;  %s1950_s4 = inlined_call_operand.vmem [shape: f32[1,128], index: 4, kind: input, shape index: {}]   ;;  %s1951_s5 = inlined_call_operand.vmem [shape: bf16[512,128], index: 5, kind: output, shape index: {}]  }
   0x1 LB: > { %s1347_s19 = sadd.s32 4294967295, %s1737_s18   ;;  %p1351_p0 = scmp.ge.s32.totalorder %s1737_s18, 1  ;;  %s1737_s18 = sphi %s1769_s18, %s15_s18  }
   0x2   : > { %p188_p1 = scmp.lt.s32.totalorder %s1737_s18, 3 }
   0x4   : > { %p189_p2 = pnand %p1351_p0, %p188_p1 }
   0x5   : > { %v261_v0 = vld [vmem:[%s1947_s1] sm:$0x3] (!%p189_p2)  ;;  %vm398_vm0 = vcmask (!%p189_p2), 1041408   ;;  %s1352_s22 = sshll.u32 (!%p189_p2), %s1347_s19, 5  ;;  %v1724_v3 = vld [vmem:[%s1949_s3 + $0x8] sm:$0xff] (!%p189_p2)   ;;  %vm349_vm1 = vcmask (!%p189_p2), 31744  }
   0x6   : > { %192 = sbr.rel (%p189_p2) target bundleno = 534 (0x216), region = 40  ;;  %v1723_v1 = vld [vmem:[%s1949_s3] sm:$0xff] (!%p189_p2)   ;;  %1698 = vmatprep.subr.msk.bf16.mxu0 (!%p189_p2), %vm398_vm0, %v261_v0  ;;  %v400_v2 = vsel (!%p189_p2), %vm398_vm0, %v261_v0, 0  ;;  %p217_p3 = scmp.lt.s32.totalorder (!%p189_p2), %s1352_s22, 63  ;;  %v1725_v4 = vld [vmem:[%s1949_s3 + $0x10] sm:$0xff] (!%p189_p2)   ;;  %v1726_v8 = vld [vmem:[%s1949_s3 + $0x18] sm:$0xff] (!%p189_p2)  }
   0x7   : > { %1601 = vmatpush3.bf16.msra.mxu0 (!%p189_p2), %v400_v2  ;;  %1682 = vmatprep.subr.bf16.mxu1 (!%p189_p2), %v1723_v1  ;;  %v1727_v22 = vld [vmem:[%s1949_s3 + $0x20] sm:$0xff] (!%p189_p2)   ;;  %v1728_v23 = vld [vmem:[%s1949_s3 + $0x28] sm:$0xff] (!%p189_p2)   ;;  %v1729_v24 = vld [vmem:[%s1949_s3 + $0x30] sm:$0xff] (!%p189_p2)  }
   0x8   : > { %1634 = vmatprep.subr.bf16.mxu0 (!%p189_p2), %v1723_v1  ;;  %1690 = vmatpush3.bf16.msra.mxu1 (!%p189_p2), %v1723_v1  ;;  %v1730_v25 = vld [vmem:[%s1949_s3 + $0x38] sm:$0xff] (!%p189_p2)   ;;  %v1849_v26 = vld [vmem:[%s1948_s2] ss:$0 sm:$0xff] (!%p189_p2) }
   0x9   : > { %1683 = vmatprep.subr.bf16.mxu1 (!%p189_p2), %v1724_v3 }
   0xc   : > { %1691 = vmatpush3.bf16.msra.mxu1 (!%p189_p2), %v1724_v3 }
   0xd   : > { %s1953_s22 = smov (!%p217_p3, %s1352_s22), 63  ;;  %1684 = vmatprep.subr.bf16.mxu1 %v1725_v4 }
   0xe   : > { %s1353_s27 = sshll.u32 %s1953_s22, 2 }
   0xf   : > { %s1797_s7 = scalar_lea.vmem %s1946_s0, %s1353_s27  ;;  %s1901_s26 = scalar_lea.vmem %s1951_s5, %s1353_s27 }
  0x10   : > { %v1707_v5 = vld [vmem:[%s1797_s7] sm:$0xff]   ;;  %v1708_v6 = vld [vmem:[%s1797_s7 + $0x8] sm:$0xff]   ;;  %v1709_v7 = vld [vmem:[%s1797_s7 + $0x10] sm:$0xff]   ;;  %1692 = vmatpush3.bf16.msra.mxu1 %v1725_v4 }
  0x11   : > { %1602 = vmatprep.mubr.msk.bf16.mxu0 %vm349_vm1, %v1707_v5  ;;  %1685 = vmatprep.subr.bf16.mxu1 %v1726_v8  ;;  %v1710_v9 = vld [vmem:[%s1797_s7 + $0x18] sm:$0xff]   ;;  %v1711_v10 = vld [vmem:[%s1797_s7 + $0x20] sm:$0xff]   ;;  %v1712_v11 = vld [vmem:[%s1797_s7 + $0x28] sm:$0xff]  }
  0x12   : > { %1603 = vmatmul.mubr.msk.bf16.vlgmr.msra.gmra.mrb[0].mxu0 %vm349_vm1, %v1708_v6  ;;  %v1713_v12 = vld [vmem:[%s1797_s7 + $0x30] sm:$0xff]   ;;  %v1714_v13 = vld [vmem:[%s1797_s7 + $0x38] sm:$0xff]   ;;  %v1715_v14 = vld [vmem:[%s1797_s7 + $0x40] sm:$0xff]  }
  0x13   : > { %1606 = vmatprep.mubr.msk.bf16.mxu0 %vm349_vm1, %v1709_v7  ;;  %1635 = vmatpush3.bf16.msra.mxu0 %v1723_v1  ;;  %v1716_v15 = vld [vmem:[%s1797_s7 + $0x48] sm:$0xff]   ;;  %v1717_v16 = vld [vmem:[%s1797_s7 + $0x50] sm:$0xff]   ;;  %v1718_v17 = vld [vmem:[%s1797_s7 + $0x58] sm:$0xff]  }
  0x14   : > { %1636 = vmatprep.subr.bf16.mxu0 %v1724_v3  ;;  %1693 = vmatpush3.bf16.msra.mxu1 %v1726_v8  ;;  %v1719_v18 = vld [vmem:[%s1797_s7 + $0x60] sm:$0xff]   ;;  %v1720_v19 = vld [vmem:[%s1797_s7 + $0x68] sm:$0xff]   ;;  %v1721_v20 = vld [vmem:[%s1797_s7 + $0x70] sm:$0xff]  }
  0x15   : > { %v1722_v21 = vld [vmem:[%s1797_s7 + $0x78] sm:$0xff]   ;;  %1686 = vmatprep.subr.bf16.mxu1 %v1727_v22 }
  0x17   : > { %1637 = vmatpush3.bf16.msra.mxu0 %v1724_v3 }
  0x18   : > { %1638 = vmatprep.subr.bf16.mxu0 %v1725_v4  ;;  %1694 = vmatpush3.bf16.msra.mxu1 %v1727_v22 }
  0x19   : > { %1687 = vmatprep.subr.bf16.mxu1 %v1728_v23 }
  0x1a   : > { %1607 = vmatmul.mubr.msk.bf16.gmra.mrb[4].mxu0 %vm349_vm1, %v1710_v9 }
  0x1b   : > { %1610 = vmatprep.mubr.msk.bf16.mxu0 %vm349_vm1, %v1711_v10  ;;  %1639 = vmatpush3.bf16.msra.mxu0 %v1725_v4 }
  0x1c   : > { %1640 = vmatprep.subr.bf16.mxu0 %v1726_v8  ;;  %1695 = vmatpush3.bf16.msra.mxu1 %v1728_v23 }
  0x1d   : > { %1688 = vmatprep.subr.bf16.mxu1 %v1729_v24 }
  0x1f   : > { %1641 = vmatpush3.bf16.msra.mxu0 %v1726_v8 }
  0x20   : > { %1642 = vmatprep.subr.bf16.mxu0 %v1727_v22  ;;  %1696 = vmatpush3.bf16.msra.mxu1 %v1729_v24 }
  0x21   : > { %1689 = vmatprep.subr.bf16.mxu1 %v1730_v25 }
  0x22   : > { %1611 = vmatmul.mubr.msk.bf16.gmra.mrb[8].mxu0 %vm349_vm1, %v1712_v11 }
  0x23   : > { %1614 = vmatprep.mubr.msk.bf16.mxu0 %vm349_vm1, %v1713_v12  ;;  %1643 = vmatpush3.bf16.msra.mxu0 %v1727_v22 }
  0x24   : > { %1644 = vmatprep.subr.bf16.mxu0 %v1728_v23  ;;  %1697 = vmatpush3.bf16.msra.mxu1 %v1730_v25 }
  0x27   : > { %1645 = vmatpush3.bf16.msra.mxu0 %v1728_v23 }
  0x28   : > { %1646 = vmatprep.subr.bf16.mxu0 %v1729_v24 }
  0x2a   : > { %1615 = vmatmul.mubr.msk.bf16.gmra.mrb[12].mxu0 %vm349_vm1, %v1714_v13 }
  0x2b   : > { %1618 = vmatprep.mubr.msk.bf16.mxu0 %vm349_vm1, %v1715_v14  ;;  %1647 = vmatpush3.bf16.msra.mxu0 %v1729_v24 }
  0x2c   : > { %1648 = vmatprep.subr.bf16.mxu0 %v1730_v25 }
  0x2f   : > { %1649 = vmatpush3.bf16.msra.mxu0 %v1730_v25 }
  0x32   : > { %1619 = vmatmul.mubr.msk.bf16.gmra.mrb[16].mxu0 %vm349_vm1, %v1716_v15 }
  0x33   : > { %1622 = vmatprep.mubr.msk.bf16.mxu0 %vm349_vm1, %v1717_v16 }
  0x3a   : > { %1623 = vmatmul.mubr.msk.bf16.gmra.mrb[20].mxu0 %vm349_vm1, %v1718_v17 }
  0x3b   : > { %1626 = vmatprep.mubr.msk.bf16.mxu0 %vm349_vm1, %v1719_v18 }
  0x42   : > { %1627 = vmatmul.mubr.msk.bf16.gmra.mrb[24].mxu0 %vm349_vm1, %v1720_v19 }
  0x43   : > { %1630 = vmatprep.mubr.msk.bf16.mxu0 %vm349_vm1, %v1721_v20 }
  0x4a   : > { %1631 = vmatmul.mubr.msk.bf16.gmra.mrb[28].mxu0 %vm349_vm1, %v1722_v21 }
  0xe5   : > { %v1604_v27 = vpop.f32.mrb[0].mxu0 }
  0xe6   : > { %v445_v28 = vadd.f32 %v1604_v27, %v1849_v26  ;;  %v436_v29 = vpop.f32.mrb[1].mxu0 }
  0xe7   : > { %v437_v30 = vadd.f32 %v1849_v26, %v436_v29  ;;  %v1605_v31 = vpop.f32.mrb[2].mxu0 }
  0xe8   : > { %v565_v32 = vadd.f32 3.0, %v445_v28  ;;  %v448_v33 = vadd.f32 %v1605_v31, %v1849_v26  ;;  %v439_v34 = vpop.f32.mrb[3].mxu0 }
  0xe9   : > { %v563_v35 = vadd.f32 3.0, %v437_v30  ;;  %v440_v36 = vadd.f32 %v1849_v26, %v439_v34 }
  0xea   : > { %v597_v37 = vmax.f32 %v565_v32, 0.0  ;;  %v566_v38 = vadd.f32 3.0, %v448_v33 }
  0xeb   : > { %v595_v39 = vmax.f32 %v563_v35, 0.0  ;;  %v564_v40 = vadd.f32 3.0, %v440_v36 }
  0xec   : > { %v629_v41 = vmin.f32 %v597_v37, 6.0  ;;  %v598_v42 = vmax.f32 %v566_v38, 0.0 }
  0xed   : > { %v627_v43 = vmin.f32 %v595_v39, 6.0  ;;  %v596_v44 = vmax.f32 %v564_v40, 0.0  ;;  %v1608_v45 = vpop.f32.mrb[4].mxu0 }
  0xee   : > { %v661_v46 = vmul.f32 %v629_v41, %v445_v28  ;;  %v630_v47 = vmin.f32 %v598_v42, 6.0  ;;  %v461_v48 = vadd.f32 %v1608_v45, %v1849_v26  ;;  %v452_v49 = vpop.f32.mrb[5].mxu0 }
  0xef   : > { %v659_v50 = vmul.f32 %v627_v43, %v437_v30  ;;  %v628_v51 = vmin.f32 %v596_v44, 6.0  ;;  %v453_v52 = vadd.f32 %v1849_v26, %v452_v49  ;;  %v1609_v53 = vpop.f32.mrb[6].mxu0 }
  0xf0   : > { %v662_v54 = vmul.f32 %v630_v47, %v448_v33  ;;  %v569_v55 = vadd.f32 3.0, %v461_v48  ;;  %v464_v56 = vadd.f32 %v1609_v53, %v1849_v26  ;;  %v455_v57 = vpop.f32.mrb[7].mxu0  ;;  %v693_v61 = vmul.f32 0.16666667, %v661_v46 }
  0xf1   : > { %v660_v58 = vmul.f32 %v628_v51, %v440_v36  ;;  %v567_v59 = vadd.f32 3.0, %v453_v52  ;;  %v456_v60 = vadd.f32 %v1849_v26, %v455_v57  ;;  %v691_v1 = vmul.f32 0.16666667, %v659_v50 }
  0xf2   : > { %v694_v62 = vmul.f32 0.16666667, %v662_v54  ;;  %v601_v63 = vmax.f32 %v569_v55, 0.0  ;;  %v570_v0 = vadd.f32 3.0, %v464_v56 }
  0xf3   : > { %v692_v2 = vmul.f32 0.16666667, %v660_v58  ;;  %v599_v3 = vmax.f32 %v567_v59, 0.0  ;;  %v568_v4 = vadd.f32 3.0, %v456_v60 }
  0xf4   : > { %v741_v5 = vpack.c.bf16 %v694_v62, %v693_v61  ;;  %v633_v6 = vmin.f32 %v601_v63, 6.0  ;;  %v602_v7 = vmax.f32 %v570_v0, 0.0 }
  0xf5   : > { %v631_v8 = vmin.f32 %v599_v3, 6.0  ;;  %v600_v9 = vmax.f32 %v568_v4, 0.0  ;;  %v1612_v10 = vpop.f32.mrb[8].mxu0  ;;  %v740_v11 = vpack.c.bf16 %v692_v2, %v691_v1 }
  0xf6   : > { %v665_v12 = vmul.f32 %v633_v6, %v461_v48  ;;  %v634_v13 = vmin.f32 %v602_v7, 6.0  ;;  %v477_v14 = vadd.f32 %v1612_v10, %v1849_v26  ;;  %v468_v15 = vpop.f32.mrb[9].mxu0 }
  0xf7   : > { %v632_v16 = vmin.f32 %v600_v9, 6.0  ;;  %v469_v17 = vadd.f32 %v1849_v26, %v468_v15  ;;  %v1613_v18 = vpop.f32.mrb[10].mxu0  ;;  %1650 = vmatprep.mubr.bf16.mxu0 %v740_v11  ;;  %v663_v19 = vmul.f32 %v631_v8, %v453_v52 }
  0xf8   : > { %v666_v20 = vmul.f32 %v634_v13, %v464_v56  ;;  %v573_v21 = vadd.f32 3.0, %v477_v14  ;;  %v480_v22 = vadd.f32 %v1613_v18, %v1849_v26  ;;  %v471_v23 = vpop.f32.mrb[11].mxu0  ;;  %1651 = vmatmul.mubr.bf16.vlgmr.msra.gmra.mrb[32].mxu0 %v741_v5  ;;  %v697_v28 = vmul.f32 0.16666667, %v665_v12 }
  0xf9   : > { %v571_v24 = vadd.f32 3.0, %v469_v17  ;;  %v472_v25 = vadd.f32 %v1849_v26, %v471_v23  ;;  %v664_v27 = vmul.f32 %v632_v16, %v456_v60  ;;  %v695_v34 = vmul.f32 0.16666667, %v663_v19 }
  0xfa   : > { %v698_v29 = vmul.f32 0.16666667, %v666_v20  ;;  %v605_v30 = vmax.f32 %v573_v21, 0.0  ;;  %v574_v31 = vadd.f32 3.0, %v480_v22 }
  0xfb   : > { %v603_v32 = vmax.f32 %v571_v24, 0.0  ;;  %v572_v33 = vadd.f32 3.0, %v472_v25  ;;  %v696_v35 = vmul.f32 0.16666667, %v664_v27 }
  0xfc   : > { %v637_v36 = vmin.f32 %v605_v30, 6.0  ;;  %v606_v37 = vmax.f32 %v574_v31, 0.0  ;;  %v743_v38 = vpack.c.bf16 %v698_v29, %v697_v28 }
  0xfd   : > { %v635_v39 = vmin.f32 %v603_v32, 6.0  ;;  %v604_v40 = vmax.f32 %v572_v33, 0.0  ;;  %v1616_v41 = vpop.f32.mrb[12].mxu0  ;;  %v742_v42 = vpack.c.bf16 %v696_v35, %v695_v34 }
  0xfe   : > { %v669_v43 = vmul.f32 %v637_v36, %v477_v14  ;;  %v638_v44 = vmin.f32 %v606_v37, 6.0  ;;  %v493_v45 = vadd.f32 %v1616_v41, %v1849_v26  ;;  %v484_v46 = vpop.f32.mrb[13].mxu0 }
  0xff   : > { %v667_v47 = vmul.f32 %v635_v39, %v469_v17  ;;  %v636_v48 = vmin.f32 %v604_v40, 6.0  ;;  %v485_v49 = vadd.f32 %v1849_v26, %v484_v46  ;;  %v1617_v50 = vpop.f32.mrb[14].mxu0  ;;  %1654 = vmatprep.mubr.bf16.mxu1 %v742_v42 }
 0x100   : > { %v670_v51 = vmul.f32 %v638_v44, %v480_v22  ;;  %v577_v52 = vadd.f32 3.0, %v493_v45  ;;  %v496_v53 = vadd.f32 %v1617_v50, %v1849_v26  ;;  %v487_v54 = vpop.f32.mrb[15].mxu0  ;;  %1655 = vmatmul.mubr.bf16.vlgmr.msra.gmra.mrb[0].mxu1 %v743_v38  ;;  %v701_v58 = vmul.f32 0.16666667, %v669_v43 }
 0x101   : > { %v668_v55 = vmul.f32 %v636_v48, %v472_v25  ;;  %v575_v56 = vadd.f32 3.0, %v485_v49  ;;  %v488_v57 = vadd.f32 %v1849_v26, %v487_v54  ;;  %v699_v62 = vmul.f32 0.16666667, %v667_v47 }
 0x102   : > { %v702_v59 = vmul.f32 0.16666667, %v670_v51  ;;  %v609_v60 = vmax.f32 %v577_v52, 0.0  ;;  %v578_v61 = vadd.f32 3.0, %v496_v53 }
 0x103   : > { %v700_v63 = vmul.f32 0.16666667, %v668_v55  ;;  %v607_v0 = vmax.f32 %v575_v56, 0.0  ;;  %v576_v1 = vadd.f32 3.0, %v488_v57 }
 0x104   : > { %v641_v2 = vmin.f32 %v609_v60, 6.0  ;;  %v610_v3 = vmax.f32 %v578_v61, 0.0  ;;  %v745_v4 = vpack.c.bf16 %v702_v59, %v701_v58 }
 0x105   : > { %v639_v5 = vmin.f32 %v607_v0, 6.0  ;;  %v608_v6 = vmax.f32 %v576_v1, 0.0  ;;  %v1620_v7 = vpop.f32.mrb[16].mxu0  ;;  %v744_v8 = vpack.c.bf16 %v700_v63, %v699_v62 }
 0x106   : > { %v673_v9 = vmul.f32 %v641_v2, %v493_v45  ;;  %v642_v10 = vmin.f32 %v610_v3, 6.0  ;;  %v509_v11 = vadd.f32 %v1620_v7, %v1849_v26  ;;  %v500_v12 = vpop.f32.mrb[17].mxu0 }
 0x107   : > { %v671_v13 = vmul.f32 %v639_v5, %v485_v49  ;;  %v640_v14 = vmin.f32 %v608_v6, 6.0  ;;  %v501_v15 = vadd.f32 %v1849_v26, %v500_v12  ;;  %v1621_v16 = vpop.f32.mrb[18].mxu0  ;;  %1658 = vmatprep.mubr.bf16.mxu1 %v744_v8 }
 0x108   : > { %v674_v17 = vmul.f32 %v642_v10, %v496_v53  ;;  %v581_v18 = vadd.f32 3.0, %v509_v11  ;;  %v512_v19 = vadd.f32 %v1621_v16, %v1849_v26  ;;  %v503_v20 = vpop.f32.mrb[19].mxu0  ;;  %1659 = vmatmul.mubr.bf16.gmra.mrb[4].mxu1 %v745_v4  ;;  %v705_v24 = vmul.f32 0.16666667, %v673_v9 }
 0x109   : > { %v672_v21 = vmul.f32 %v640_v14, %v488_v57  ;;  %v579_v22 = vadd.f32 3.0, %v501_v15  ;;  %v504_v23 = vadd.f32 %v1849_v26, %v503_v20  ;;  %v703_v29 = vmul.f32 0.16666667, %v671_v13 }
 0x10a   : > { %v706_v25 = vmul.f32 0.16666667, %v674_v17  ;;  %v613_v27 = vmax.f32 %v581_v18, 0.0  ;;  %v582_v28 = vadd.f32 3.0, %v512_v19 }
 0x10b   : > { %v704_v30 = vmul.f32 0.16666667, %v672_v21  ;;  %v611_v31 = vmax.f32 %v579_v22, 0.0  ;;  %v580_v32 = vadd.f32 3.0, %v504_v23 }
 0x10c   : > { %v645_v33 = vmin.f32 %v613_v27, 6.0  ;;  %v614_v34 = vmax.f32 %v582_v28, 0.0  ;;  %v747_v35 = vpack.c.bf16 %v706_v25, %v705_v24 }
 0x10d   : > { %v643_v36 = vmin.f32 %v611_v31, 6.0  ;;  %v612_v37 = vmax.f32 %v580_v32, 0.0  ;;  %v1624_v38 = vpop.f32.mrb[20].mxu0  ;;  %v746_v39 = vpack.c.bf16 %v704_v30, %v703_v29 }
 0x10e   : > { %v677_v40 = vmul.f32 %v645_v33, %v509_v11  ;;  %v646_v41 = vmin.f32 %v614_v34, 6.0  ;;  %v525_v42 = vadd.f32 %v1624_v38, %v1849_v26  ;;  %v516_v43 = vpop.f32.mrb[21].mxu0 }
 0x10f   : > { %v675_v44 = vmul.f32 %v643_v36, %v501_v15  ;;  %v644_v45 = vmin.f32 %v612_v37, 6.0  ;;  %v517_v46 = vadd.f32 %v1849_v26, %v516_v43  ;;  %v1625_v47 = vpop.f32.mrb[22].mxu0  ;;  %1662 = vmatprep.mubr.bf16.mxu1 %v746_v39 }
 0x110   : > { %v678_v48 = vmul.f32 %v646_v41, %v512_v19  ;;  %v585_v49 = vadd.f32 3.0, %v525_v42  ;;  %v528_v50 = vadd.f32 %v1625_v47, %v1849_v26  ;;  %v519_v51 = vpop.f32.mrb[23].mxu0  ;;  %1663 = vmatmul.mubr.bf16.gmra.mrb[8].mxu1 %v747_v35  ;;  %v709_v55 = vmul.f32 0.16666667, %v677_v40 }
 0x111   : > { %v676_v52 = vmul.f32 %v644_v45, %v504_v23  ;;  %v583_v53 = vadd.f32 3.0, %v517_v46  ;;  %v520_v54 = vadd.f32 %v1849_v26, %v519_v51  ;;  %v707_v59 = vmul.f32 0.16666667, %v675_v44 }
 0x112   : > { %v710_v56 = vmul.f32 0.16666667, %v678_v48  ;;  %v617_v57 = vmax.f32 %v585_v49, 0.0  ;;  %v586_v58 = vadd.f32 3.0, %v528_v50 }
 0x113   : > { %v708_v60 = vmul.f32 0.16666667, %v676_v52  ;;  %v615_v61 = vmax.f32 %v583_v53, 0.0  ;;  %v584_v62 = vadd.f32 3.0, %v520_v54 }
 0x114   : > { %v649_v63 = vmin.f32 %v617_v57, 6.0  ;;  %v618_v0 = vmax.f32 %v586_v58, 0.0  ;;  %v749_v1 = vpack.c.bf16 %v710_v56, %v709_v55 }
 0x115   : > { %v647_v2 = vmin.f32 %v615_v61, 6.0  ;;  %v616_v3 = vmax.f32 %v584_v62, 0.0  ;;  %v1628_v4 = vpop.f32.mrb[24].mxu0  ;;  %v748_v5 = vpack.c.bf16 %v708_v60, %v707_v59 }
 0x116   : > { %v681_v6 = vmul.f32 %v649_v63, %v525_v42  ;;  %v650_v7 = vmin.f32 %v618_v0, 6.0  ;;  %v541_v8 = vadd.f32 %v1628_v4, %v1849_v26  ;;  %v532_v9 = vpop.f32.mrb[25].mxu0 }
 0x117   : > { %v679_v10 = vmul.f32 %v647_v2, %v517_v46  ;;  %v648_v11 = vmin.f32 %v616_v3, 6.0  ;;  %v533_v12 = vadd.f32 %v1849_v26, %v532_v9  ;;  %v1629_v13 = vpop.f32.mrb[26].mxu0  ;;  %1666 = vmatprep.mubr.bf16.mxu1 %v748_v5 }
 0x118   : > { %v682_v14 = vmul.f32 %v650_v7, %v528_v50  ;;  %v589_v15 = vadd.f32 3.0, %v541_v8  ;;  %v544_v16 = vadd.f32 %v1629_v13, %v1849_v26  ;;  %v535_v17 = vpop.f32.mrb[27].mxu0  ;;  %1667 = vmatmul.mubr.bf16.gmra.mrb[12].mxu1 %v749_v1  ;;  %v713_v21 = vmul.f32 0.16666667, %v681_v6  ;;  %v1886_v13 = vld [vmem:[%s1950_s4] ss:$0 sm:$0xff] }
 0x119   : > { %v680_v18 = vmul.f32 %v648_v11, %v520_v54  ;;  %v587_v19 = vadd.f32 3.0, %v533_v12  ;;  %v536_v20 = vadd.f32 %v1849_v26, %v535_v17  ;;  %v711_v25 = vmul.f32 0.16666667, %v679_v10 }
 0x11a   : > { %v714_v22 = vmul.f32 0.16666667, %v682_v14  ;;  %v621_v23 = vmax.f32 %v589_v15, 0.0  ;;  %v590_v24 = vadd.f32 3.0, %v544_v16 }
 0x11b   : > { %v712_v27 = vmul.f32 0.16666667, %v680_v18  ;;  %v619_v28 = vmax.f32 %v587_v19, 0.0  ;;  %v588_v29 = vadd.f32 3.0, %v536_v20 }
 0x11c   : > { %v653_v30 = vmin.f32 %v621_v23, 6.0  ;;  %v622_v31 = vmax.f32 %v590_v24, 0.0  ;;  %v751_v32 = vpack.c.bf16 %v714_v22, %v713_v21 }
 0x11d   : > { %v651_v33 = vmin.f32 %v619_v28, 6.0  ;;  %v620_v34 = vmax.f32 %v588_v29, 0.0  ;;  %v1632_v35 = vpop.f32.mrb[28].mxu0  ;;  %v750_v36 = vpack.c.bf16 %v712_v27, %v711_v25 }
 0x11e   : > { %v685_v37 = vmul.f32 %v653_v30, %v541_v8  ;;  %v654_v38 = vmin.f32 %v622_v31, 6.0  ;;  %v557_v39 = vadd.f32 %v1632_v35, %v1849_v26  ;;  %v548_v40 = vpop.f32.mrb[29].mxu0 }
 0x11f   : > { %v683_v41 = vmul.f32 %v651_v33, %v533_v12  ;;  %v652_v42 = vmin.f32 %v620_v34, 6.0  ;;  %v549_v43 = vadd.f32 %v1849_v26, %v548_v40  ;;  %v1633_v44 = vpop.f32.mrb[30].mxu0  ;;  %1670 = vmatprep.mubr.bf16.mxu1 %v750_v36 }
 0x120   : > { %v686_v45 = vmul.f32 %v654_v38, %v544_v16  ;;  %v593_v46 = vadd.f32 3.0, %v557_v39  ;;  %v560_v47 = vadd.f32 %v1633_v44, %v1849_v26  ;;  %v551_v48 = vpop.f32.mrb[31].mxu0  ;;  %1671 = vmatmul.mubr.bf16.gmra.mrb[16].mxu1 %v751_v32  ;;  %v717_v52 = vmul.f32 0.16666667, %v685_v37 }
 0x121   : > { %v684_v49 = vmul.f32 %v652_v42, %v536_v20  ;;  %v591_v50 = vadd.f32 3.0, %v549_v43  ;;  %v552_v51 = vadd.f32 %v1849_v26, %v551_v48  ;;  %v715_v56 = vmul.f32 0.16666667, %v683_v41 }
 0x122   : > { %v718_v53 = vmul.f32 0.16666667, %v686_v45  ;;  %v625_v54 = vmax.f32 %v593_v46, 0.0  ;;  %v594_v55 = vadd.f32 3.0, %v560_v47 }
 0x123   : > { %v716_v57 = vmul.f32 0.16666667, %v684_v49  ;;  %v623_v58 = vmax.f32 %v591_v50, 0.0  ;;  %v592_v59 = vadd.f32 3.0, %v552_v51 }
 0x124   : > { %v657_v60 = vmin.f32 %v625_v54, 6.0  ;;  %v626_v61 = vmax.f32 %v594_v55, 0.0  ;;  %v753_v62 = vpack.c.bf16 %v718_v53, %v717_v52 }
 0x125   : > { %v655_v63 = vmin.f32 %v623_v58, 6.0  ;;  %v624_v0 = vmax.f32 %v592_v59, 0.0  ;;  %v752_v1 = vpack.c.bf16 %v716_v57, %v715_v56 }
 0x126   : > { %v689_v2 = vmul.f32 %v657_v60, %v557_v39  ;;  %v658_v3 = vmin.f32 %v626_v61, 6.0 }
 0x127   : > { %v687_v4 = vmul.f32 %v655_v63, %v549_v43  ;;  %v656_v5 = vmin.f32 %v624_v0, 6.0  ;;  %1674 = vmatprep.mubr.bf16.mxu1 %v752_v1 }
 0x128   : > { %v690_v26 = vmul.f32 %v658_v3, %v560_v47  ;;  %1675 = vmatmul.mubr.bf16.gmra.mrb[20].mxu1 %v753_v62  ;;  %v721_v7 = vmul.f32 0.16666667, %v689_v2 }
 0x129   : > { %v688_v6 = vmul.f32 %v656_v5, %v552_v51  ;;  %v719_v9 = vmul.f32 0.16666667, %v687_v4 }
 0x12a   : > { %v722_v8 = vmul.f32 0.16666667, %v690_v26 }
 0x12b   : > { %v720_v10 = vmul.f32 0.16666667, %v688_v6 }
 0x12c   : > { %v755_v11 = vpack.c.bf16 %v722_v8, %v721_v7 }
 0x12d   : > { %v754_v12 = vpack.c.bf16 %v720_v10, %v719_v9 }
 0x12f   : > { %1678 = vmatprep.mubr.bf16.mxu1 %v754_v12 }
 0x130   : > { %1679 = vmatmul.mubr.bf16.gmra.mrb[24].mxu1 %v755_v11 }
 0x1cb   : > { %v1652_v14 = vpop.f32.mrb[32].mxu0 }
 0x1cc   : > { %v853_v15 = vadd.f32 %v1652_v14, %v1886_v13  ;;  %v844_v16 = vpop.f32.mrb[33].mxu0 }
 0x1cd   : > { %v845_v17 = vadd.f32 %v1886_v13, %v844_v16  ;;  %v1653_v18 = vpop.f32.mrb[34].mxu0 }
 0x1ce   : > { %v973_v19 = vadd.f32 3.0, %v853_v15  ;;  %v856_v20 = vadd.f32 %v1653_v18, %v1886_v13  ;;  %v847_v21 = vpop.f32.mrb[35].mxu0 }
 0x1cf   : > { %v971_v22 = vadd.f32 3.0, %v845_v17  ;;  %v848_v23 = vadd.f32 %v1886_v13, %v847_v21 }
 0x1d0   : > { %v1005_v24 = vmax.f32 %v973_v19, 0.0  ;;  %v974_v25 = vadd.f32 3.0, %v856_v20 }
 0x1d1   : > { %v1003_v27 = vmax.f32 %v971_v22, 0.0  ;;  %v972_v28 = vadd.f32 3.0, %v848_v23 }
 0x1d2   : > { %v1037_v29 = vmin.f32 %v1005_v24, 6.0  ;;  %v1006_v30 = vmax.f32 %v974_v25, 0.0 }
 0x1d3   : > { %v1035_v31 = vmin.f32 %v1003_v27, 6.0  ;;  %v1004_v32 = vmax.f32 %v972_v28, 0.0  ;;  %v1656_v33 = vpop.f32.mrb[0].mxu1 }
 0x1d4   : > { %v1069_v34 = vmul.f32 %v1037_v29, %v853_v15  ;;  %v1038_v35 = vmin.f32 %v1006_v30, 6.0  ;;  %v869_v36 = vadd.f32 %v1656_v33, %v1886_v13  ;;  %v860_v37 = vpop.f32.mrb[1].mxu1 }
 0x1d5   : > { %v1067_v38 = vmul.f32 %v1035_v31, %v845_v17  ;;  %v1036_v39 = vmin.f32 %v1004_v32, 6.0  ;;  %v861_v40 = vadd.f32 %v1886_v13, %v860_v37  ;;  %v1657_v41 = vpop.f32.mrb[2].mxu1 }
 0x1d6   : > { %v1070_v42 = vmul.f32 %v1038_v35, %v856_v20  ;;  %v977_v43 = vadd.f32 3.0, %v869_v36  ;;  %v872_v44 = vadd.f32 %v1657_v41, %v1886_v13  ;;  %v863_v45 = vpop.f32.mrb[3].mxu1  ;;  %v1101_v49 = vmul.f32 0.16666667, %v1069_v34 }
 0x1d7   : > { %v1068_v46 = vmul.f32 %v1036_v39, %v848_v23  ;;  %v975_v47 = vadd.f32 3.0, %v861_v40  ;;  %v864_v48 = vadd.f32 %v1886_v13, %v863_v45  ;;  %v1099_v53 = vmul.f32 0.16666667, %v1067_v38 }
 0x1d8   : > { %v1102_v50 = vmul.f32 0.16666667, %v1070_v42  ;;  %v1009_v51 = vmax.f32 %v977_v43, 0.0  ;;  %v978_v52 = vadd.f32 3.0, %v872_v44 }
 0x1d9   : > { %v1100_v54 = vmul.f32 0.16666667, %v1068_v46  ;;  %v1007_v55 = vmax.f32 %v975_v47, 0.0  ;;  %v976_v56 = vadd.f32 3.0, %v864_v48 }
 0x1da   : > { %v1472_v57 = vpack.c.bf16 %v1102_v50, %v1101_v49  ;;  %v1041_v58 = vmin.f32 %v1009_v51, 6.0  ;;  %v1010_v59 = vmax.f32 %v978_v52, 0.0 }
 0x1db   : > { %v1467_v60 = vpack.c.bf16 %v1100_v54, %v1099_v53  ;;  %v1039_v61 = vmin.f32 %v1007_v55, 6.0  ;;  %v1008_v62 = vmax.f32 %v976_v56, 0.0  ;;  %v1660_v63 = vpop.f32.mrb[4].mxu1 }
 0x1dc   : > { %1544 = vst [vmem:[%s1901_s26 + $0x8] sm:$0xff] %v1472_v57   ;;  %v1073_v0 = vmul.f32 %v1041_v58, %v869_v36  ;;  %v1042_v1 = vmin.f32 %v1010_v59, 6.0  ;;  %v885_v2 = vadd.f32 %v1660_v63, %v1886_v13  ;;  %v876_v3 = vpop.f32.mrb[5].mxu1 }
 0x1dd   : > { %1468 = vst [vmem:[%s1901_s26] sm:$0xff] %v1467_v60   ;;  %v1071_v4 = vmul.f32 %v1039_v61, %v861_v40  ;;  %v1040_v5 = vmin.f32 %v1008_v62, 6.0  ;;  %v877_v26 = vadd.f32 %v1886_v13, %v876_v3  ;;  %v1661_v6 = vpop.f32.mrb[6].mxu1 }
 0x1de   : > { %v1074_v7 = vmul.f32 %v1042_v1, %v872_v44  ;;  %v981_v8 = vadd.f32 3.0, %v885_v2  ;;  %v888_v9 = vadd.f32 %v1661_v6, %v1886_v13  ;;  %v879_v10 = vpop.f32.mrb[7].mxu1  ;;  %v1105_v15 = vmul.f32 0.16666667, %v1073_v0 }
 0x1df   : > { %v1072_v11 = vmul.f32 %v1040_v5, %v864_v48  ;;  %v979_v12 = vadd.f32 3.0, %v877_v26  ;;  %v880_v14 = vadd.f32 %v1886_v13, %v879_v10  ;;  %v1103_v19 = vmul.f32 0.16666667, %v1071_v4 }
 0x1e0   : > { %v1106_v16 = vmul.f32 0.16666667, %v1074_v7  ;;  %v1013_v17 = vmax.f32 %v981_v8, 0.0  ;;  %v982_v18 = vadd.f32 3.0, %v888_v9 }
 0x1e1   : > { %v1104_v20 = vmul.f32 0.16666667, %v1072_v11  ;;  %v1011_v21 = vmax.f32 %v979_v12, 0.0  ;;  %v980_v22 = vadd.f32 3.0, %v880_v14 }
 0x1e2   : > { %v1482_v23 = vpack.c.bf16 %v1106_v16, %v1105_v15  ;;  %v1045_v24 = vmin.f32 %v1013_v17, 6.0  ;;  %v1014_v25 = vmax.f32 %v982_v18, 0.0 }
 0x1e3   : > { %v1477_v27 = vpack.c.bf16 %v1104_v20, %v1103_v19  ;;  %v1043_v28 = vmin.f32 %v1011_v21, 6.0  ;;  %v1012_v29 = vmax.f32 %v980_v22, 0.0  ;;  %v1664_v30 = vpop.f32.mrb[8].mxu1 }
 0x1e4   : > { %1546 = vst [vmem:[%s1901_s26 + $0x18] sm:$0xff] %v1482_v23   ;;  %v1077_v31 = vmul.f32 %v1045_v24, %v885_v2  ;;  %v1046_v32 = vmin.f32 %v1014_v25, 6.0  ;;  %v901_v33 = vadd.f32 %v1664_v30, %v1886_v13  ;;  %v892_v34 = vpop.f32.mrb[9].mxu1 }
 0x1e5   : > { %1545 = vst [vmem:[%s1901_s26 + $0x10] sm:$0xff] %v1477_v27   ;;  %v1075_v35 = vmul.f32 %v1043_v28, %v877_v26  ;;  %v1044_v36 = vmin.f32 %v1012_v29, 6.0  ;;  %v893_v37 = vadd.f32 %v1886_v13, %v892_v34  ;;  %v1665_v38 = vpop.f32.mrb[10].mxu1 }
 0x1e6   : > { %v1078_v39 = vmul.f32 %v1046_v32, %v888_v9  ;;  %v985_v40 = vadd.f32 3.0, %v901_v33  ;;  %v904_v41 = vadd.f32 %v1665_v38, %v1886_v13  ;;  %v895_v42 = vpop.f32.mrb[11].mxu1  ;;  %v1109_v46 = vmul.f32 0.16666667, %v1077_v31 }
 0x1e7   : > { %v1076_v43 = vmul.f32 %v1044_v36, %v880_v14  ;;  %v983_v44 = vadd.f32 3.0, %v893_v37  ;;  %v896_v45 = vadd.f32 %v1886_v13, %v895_v42  ;;  %v1107_v50 = vmul.f32 0.16666667, %v1075_v35 }
 0x1e8   : > { %v1110_v47 = vmul.f32 0.16666667, %v1078_v39  ;;  %v1017_v48 = vmax.f32 %v985_v40, 0.0  ;;  %v986_v49 = vadd.f32 3.0, %v904_v41 }
 0x1e9   : > { %v1108_v51 = vmul.f32 0.16666667, %v1076_v43  ;;  %v1015_v52 = vmax.f32 %v983_v44, 0.0  ;;  %v984_v53 = vadd.f32 3.0, %v896_v45 }
 0x1ea   : > { %v1492_v54 = vpack.c.bf16 %v1110_v47, %v1109_v46  ;;  %v1049_v55 = vmin.f32 %v1017_v48, 6.0  ;;  %v1018_v56 = vmax.f32 %v986_v49, 0.0 }
 0x1eb   : > { %v1487_v57 = vpack.c.bf16 %v1108_v51, %v1107_v50  ;;  %v1047_v58 = vmin.f32 %v1015_v52, 6.0  ;;  %v1016_v59 = vmax.f32 %v984_v53, 0.0  ;;  %v1668_v60 = vpop.f32.mrb[12].mxu1 }
 0x1ec   : > { %1548 = vst [vmem:[%s1901_s26 + $0x28] sm:$0xff] %v1492_v54   ;;  %v1081_v61 = vmul.f32 %v1049_v55, %v901_v33  ;;  %v1050_v62 = vmin.f32 %v1018_v56, 6.0  ;;  %v917_v63 = vadd.f32 %v1668_v60, %v1886_v13  ;;  %v908_v0 = vpop.f32.mrb[13].mxu1 }
 0x1ed   : > { %1547 = vst [vmem:[%s1901_s26 + $0x20] sm:$0xff] %v1487_v57   ;;  %v1079_v1 = vmul.f32 %v1047_v58, %v893_v37  ;;  %v1048_v2 = vmin.f32 %v1016_v59, 6.0  ;;  %v909_v3 = vadd.f32 %v1886_v13, %v908_v0  ;;  %v1669_v4 = vpop.f32.mrb[14].mxu1 }
 0x1ee   : > { %v1082_v5 = vmul.f32 %v1050_v62, %v904_v41  ;;  %v989_v26 = vadd.f32 3.0, %v917_v63  ;;  %v920_v6 = vadd.f32 %v1669_v4, %v1886_v13  ;;  %v911_v7 = vpop.f32.mrb[15].mxu1  ;;  %v1113_v11 = vmul.f32 0.16666667, %v1081_v61 }
 0x1ef   : > { %v1080_v8 = vmul.f32 %v1048_v2, %v896_v45  ;;  %v987_v9 = vadd.f32 3.0, %v909_v3  ;;  %v912_v10 = vadd.f32 %v1886_v13, %v911_v7  ;;  %v1111_v16 = vmul.f32 0.16666667, %v1079_v1 }
 0x1f0   : > { %v1114_v12 = vmul.f32 0.16666667, %v1082_v5  ;;  %v1021_v14 = vmax.f32 %v989_v26, 0.0  ;;  %v990_v15 = vadd.f32 3.0, %v920_v6 }
 0x1f1   : > { %v1112_v17 = vmul.f32 0.16666667, %v1080_v8  ;;  %v1019_v18 = vmax.f32 %v987_v9, 0.0  ;;  %v988_v19 = vadd.f32 3.0, %v912_v10 }
 0x1f2   : > { %v1502_v20 = vpack.c.bf16 %v1114_v12, %v1113_v11  ;;  %v1053_v21 = vmin.f32 %v1021_v14, 6.0  ;;  %v1022_v22 = vmax.f32 %v990_v15, 0.0 }
 0x1f3   : > { %v1497_v23 = vpack.c.bf16 %v1112_v17, %v1111_v16  ;;  %v1051_v24 = vmin.f32 %v1019_v18, 6.0  ;;  %v1020_v25 = vmax.f32 %v988_v19, 0.0  ;;  %v1672_v27 = vpop.f32.mrb[16].mxu1 }
 0x1f4   : > { %1550 = vst [vmem:[%s1901_s26 + $0x38] sm:$0xff] %v1502_v20   ;;  %v1085_v28 = vmul.f32 %v1053_v21, %v917_v63  ;;  %v1054_v29 = vmin.f32 %v1022_v22, 6.0  ;;  %v933_v30 = vadd.f32 %v1672_v27, %v1886_v13  ;;  %v924_v31 = vpop.f32.mrb[17].mxu1 }
 0x1f5   : > { %1549 = vst [vmem:[%s1901_s26 + $0x30] sm:$0xff] %v1497_v23   ;;  %v1083_v32 = vmul.f32 %v1051_v24, %v909_v3  ;;  %v1052_v33 = vmin.f32 %v1020_v25, 6.0  ;;  %v925_v34 = vadd.f32 %v1886_v13, %v924_v31  ;;  %v1673_v35 = vpop.f32.mrb[18].mxu1 }
 0x1f6   : > { %v1086_v36 = vmul.f32 %v1054_v29, %v920_v6  ;;  %v993_v37 = vadd.f32 3.0, %v933_v30  ;;  %v936_v38 = vadd.f32 %v1673_v35, %v1886_v13  ;;  %v927_v39 = vpop.f32.mrb[19].mxu1  ;;  %v1117_v43 = vmul.f32 0.16666667, %v1085_v28 }
 0x1f7   : > { %v1084_v40 = vmul.f32 %v1052_v33, %v912_v10  ;;  %v991_v41 = vadd.f32 3.0, %v925_v34  ;;  %v928_v42 = vadd.f32 %v1886_v13, %v927_v39  ;;  %v1115_v47 = vmul.f32 0.16666667, %v1083_v32 }
 0x1f8   : > { %v1118_v44 = vmul.f32 0.16666667, %v1086_v36  ;;  %v1025_v45 = vmax.f32 %v993_v37, 0.0  ;;  %v994_v46 = vadd.f32 3.0, %v936_v38 }
 0x1f9   : > { %v1116_v48 = vmul.f32 0.16666667, %v1084_v40  ;;  %v1023_v49 = vmax.f32 %v991_v41, 0.0  ;;  %v992_v50 = vadd.f32 3.0, %v928_v42 }
 0x1fa   : > { %v1512_v51 = vpack.c.bf16 %v1118_v44, %v1117_v43  ;;  %v1057_v52 = vmin.f32 %v1025_v45, 6.0  ;;  %v1026_v53 = vmax.f32 %v994_v46, 0.0 }
 0x1fb   : > { %v1507_v54 = vpack.c.bf16 %v1116_v48, %v1115_v47  ;;  %v1055_v55 = vmin.f32 %v1023_v49, 6.0  ;;  %v1024_v56 = vmax.f32 %v992_v50, 0.0  ;;  %v1676_v57 = vpop.f32.mrb[20].mxu1 }
 0x1fc   : > { %1552 = vst [vmem:[%s1901_s26 + $0x48] sm:$0xff] %v1512_v51   ;;  %v1089_v58 = vmul.f32 %v1057_v52, %v933_v30  ;;  %v1058_v59 = vmin.f32 %v1026_v53, 6.0  ;;  %v949_v60 = vadd.f32 %v1676_v57, %v1886_v13  ;;  %v940_v61 = vpop.f32.mrb[21].mxu1 }
 0x1fd   : > { %1551 = vst [vmem:[%s1901_s26 + $0x40] sm:$0xff] %v1507_v54   ;;  %v1087_v62 = vmul.f32 %v1055_v55, %v925_v34  ;;  %v1056_v63 = vmin.f32 %v1024_v56, 6.0  ;;  %v941_v0 = vadd.f32 %v1886_v13, %v940_v61  ;;  %v1677_v1 = vpop.f32.mrb[22].mxu1 }
 0x1fe   : > { %v1090_v2 = vmul.f32 %v1058_v59, %v936_v38  ;;  %v997_v3 = vadd.f32 3.0, %v949_v60  ;;  %v952_v4 = vadd.f32 %v1677_v1, %v1886_v13  ;;  %v943_v5 = vpop.f32.mrb[23].mxu1  ;;  %v1121_v8 = vmul.f32 0.16666667, %v1089_v58 }
 0x1ff   : > { %v1088_v26 = vmul.f32 %v1056_v63, %v928_v42  ;;  %v995_v6 = vadd.f32 3.0, %v941_v0  ;;  %v944_v7 = vadd.f32 %v1886_v13, %v943_v5  ;;  %v1119_v12 = vmul.f32 0.16666667, %v1087_v62 }
 0x200   : > { %v1122_v9 = vmul.f32 0.16666667, %v1090_v2  ;;  %v1029_v10 = vmax.f32 %v997_v3, 0.0  ;;  %v998_v11 = vadd.f32 3.0, %v952_v4 }
 0x201   : > { %v1120_v14 = vmul.f32 0.16666667, %v1088_v26  ;;  %v1027_v15 = vmax.f32 %v995_v6, 0.0  ;;  %v996_v16 = vadd.f32 3.0, %v944_v7 }
 0x202   : > { %v1522_v17 = vpack.c.bf16 %v1122_v9, %v1121_v8  ;;  %v1061_v18 = vmin.f32 %v1029_v10, 6.0  ;;  %v1030_v19 = vmax.f32 %v998_v11, 0.0 }
 0x203   : > { %v1517_v20 = vpack.c.bf16 %v1120_v14, %v1119_v12  ;;  %v1059_v21 = vmin.f32 %v1027_v15, 6.0  ;;  %v1028_v22 = vmax.f32 %v996_v16, 0.0  ;;  %v1680_v23 = vpop.f32.mrb[24].mxu1 }
 0x204   : > { %1554 = vst [vmem:[%s1901_s26 + $0x58] sm:$0xff] %v1522_v17   ;;  %v1093_v24 = vmul.f32 %v1061_v18, %v949_v60  ;;  %v1062_v25 = vmin.f32 %v1030_v19, 6.0  ;;  %v965_v27 = vadd.f32 %v1680_v23, %v1886_v13  ;;  %v956_v28 = vpop.f32.mrb[25].mxu1 }
 0x205   : > { %1553 = vst [vmem:[%s1901_s26 + $0x50] sm:$0xff] %v1517_v20   ;;  %v1091_v29 = vmul.f32 %v1059_v21, %v941_v0  ;;  %v1060_v30 = vmin.f32 %v1028_v22, 6.0  ;;  %v957_v31 = vadd.f32 %v1886_v13, %v956_v28  ;;  %v1681_v32 = vpop.f32.mrb[26].mxu1 }
 0x206   : > { %v1094_v33 = vmul.f32 %v1062_v25, %v952_v4  ;;  %v1001_v34 = vadd.f32 3.0, %v965_v27  ;;  %v968_v35 = vadd.f32 %v1681_v32, %v1886_v13  ;;  %v959_v36 = vpop.f32.mrb[27].mxu1  ;;  %v1125_v40 = vmul.f32 0.16666667, %v1093_v24 }
 0x207   : > { %v1092_v37 = vmul.f32 %v1060_v30, %v944_v7  ;;  %v999_v38 = vadd.f32 3.0, %v957_v31  ;;  %v960_v39 = vadd.f32 %v1886_v13, %v959_v36  ;;  %v1123_v44 = vmul.f32 0.16666667, %v1091_v29 }
 0x208   : > { %v1126_v41 = vmul.f32 0.16666667, %v1094_v33  ;;  %v1033_v42 = vmax.f32 %v1001_v34, 0.0  ;;  %v1002_v43 = vadd.f32 3.0, %v968_v35 }
 0x209   : > { %v1124_v45 = vmul.f32 0.16666667, %v1092_v37  ;;  %v1031_v46 = vmax.f32 %v999_v38, 0.0  ;;  %v1000_v47 = vadd.f32 3.0, %v960_v39 }
 0x20a   : > { %v1532_v48 = vpack.c.bf16 %v1126_v41, %v1125_v40  ;;  %v1065_v49 = vmin.f32 %v1033_v42, 6.0  ;;  %v1034_v50 = vmax.f32 %v1002_v43, 0.0 }
 0x20b   : > { %v1527_v51 = vpack.c.bf16 %v1124_v45, %v1123_v44  ;;  %v1063_v52 = vmin.f32 %v1031_v46, 6.0  ;;  %v1032_v53 = vmax.f32 %v1000_v47, 0.0 }
 0x20c   : > { %1556 = vst [vmem:[%s1901_s26 + $0x68] sm:$0xff] %v1532_v48   ;;  %v1097_v54 = vmul.f32 %v1065_v49, %v965_v27  ;;  %v1066_v13 = vmin.f32 %v1034_v50, 6.0 }
 0x20d   : > { %1555 = vst [vmem:[%s1901_s26 + $0x60] sm:$0xff] %v1527_v51   ;;  %v1095_v55 = vmul.f32 %v1063_v52, %v957_v31  ;;  %v1064_v56 = vmin.f32 %v1032_v53, 6.0 }
 0x20e   : > { %v1098_v57 = vmul.f32 %v1066_v13, %v968_v35  ;;  %v1129_v59 = vmul.f32 0.16666667, %v1097_v54 }
 0x20f   : > { %v1096_v58 = vmul.f32 %v1064_v56, %v960_v39  ;;  %v1127_v61 = vmul.f32 0.16666667, %v1095_v55 }
 0x210   : > { %v1130_v60 = vmul.f32 0.16666667, %v1098_v57 }
 0x211   : > { %v1128_v62 = vmul.f32 0.16666667, %v1096_v58 }
 0x212   : > { %v1542_v63 = vpack.c.bf16 %v1130_v60, %v1129_v59 }
 0x213   : > { %v1537_v0 = vpack.c.bf16 %v1128_v62, %v1127_v61 }
 0x214   : > { %1558 = vst [vmem:[%s1901_s26 + $0x78] sm:$0xff] %v1542_v63  }
 0x215   : > { %1557 = vst [vmem:[%s1901_s26 + $0x70] sm:$0xff] %v1537_v0  }
 0x216 PF: > { %s15_s18 = sadd.s32 1, %s1737_s18  }
 0x217   : > { %p12_p4 = scmp.ge.s32.totalorder %s15_s18, 4  }
 0x219   :  { %14 = sbr.rel (!%p12_p4) target bundleno = 1 (0x1), region = 70 }

</bundles_post_ra>
